<compile_context>
chip_gen: v6e
topology: v6e:2x2x1
jax: 0.10.0
libtpu: 0.0.40
codegen_flags: <defaults>
</compile_context>

<pallas_src>
import functools

import jax
import jax.numpy as jnp
from jax.experimental import pallas as pl
from jax.experimental.pallas import tpu as pltpu

# Sizes fixed by the architecture (8600 = 200 * 43 classifier features).
_W_IN = 750       # time samples
_H_IN = 2         # EEG channels (height of the NCHW input)
_W_COL = 768      # block-1 conv rows computed (746 valid), 3 W-tiles of 256
_KH2 = 16         # packed lanes of the fused (2,5) first-stage kernel (10 used)
_C1 = 128         # 25  -> 128
_C2 = 128         # 50  -> 128
_C3 = 128         # 100 -> 128
_C4 = 256         # 200 -> 256
_S1_ROWS = 384    # pooled rows stored after block 1 (373 valid)
_S2_ROWS = 192    # (184 valid)
_S3_ROWS = 96     # (90 valid)
_S4_ROWS = 48     # (43 valid)


# ----------------------------- activations ---------------------------------
def _act(y, activation):
    if activation == "ReLU":
        return jnp.maximum(y, 0.0)
    if activation == "LeakyReLU":
        return jnp.where(y > 0, y, 0.01 * y)
    if activation == "ELU":
        # exp(min(y,0)) - 1 matches torch ELU(alpha=1) for y <= 0.
        return jnp.where(y > 0, y, jnp.exp(jnp.minimum(y, 0.0)) - 1.0)
    raise ValueError(f"unknown activation {activation}")


# --------------- fused conv(1,5) + BN-shift + act + maxpool -----------------
def _conv_block(src, w_ref, shift, dst, *, tiles, activation):
    """One deep_conv block, operating on channels-last (W, C) VMEM refs.

    Even/odd conv rows are accumulated separately (stride-2 sublane loads) so
    the MaxPool(1,2) is a single jnp.maximum on live values.  BN scale is
    already folded into w_ref; `shift` is the remaining per-channel affine.
    `tiles` is a static list of (conv_row_start, conv_rows) with even entries.
    """
    K = w_ref.shape[0]
    cop = w_ref.shape[2]
    for start, rows in tiles:                       # static, <= 2 tiles
        half = rows // 2
        acc_e = jnp.zeros((half, cop), jnp.float32)
        acc_o = jnp.zeros((half, cop), jnp.float32)
        for k in range(K):                          # K = 5 shifted matmuls
            wt = w_ref[k]                           # (Cin_p, Cout_p)
            acc_e = acc_e + jnp.dot(
                src[pl.ds(start + k, half, stride=2), :], wt,
                preferred_element_type=jnp.float32)
            acc_o = acc_o + jnp.dot(
                src[pl.ds(start + k + 1, half, stride=2), :], wt,
                preferred_element_type=jnp.float32)
        # activation is monotone: act(maxpool(bn)) == maxpool(act(bn))
        y = _act(jnp.maximum(acc_e, acc_o) + shift, activation)
        dst[start // 2:start // 2 + half, :] = y
        # Dropout: identity in eval mode.


# ------------------------- whole-network kernel -----------------------------
def _deepconvnet_kernel(x_ref, w1_ref, t1_ref, w2_ref, t2_ref, w3_ref, t3_ref,
                        w4_ref, t4_ref, wfc_ref, bfc_ref, o_ref,
                        s1, s2, s3, s4, *, activation):
    # ---- block 1: (first_conv ∘ conv(2,1)) folded into one (2,5) conv whose
    #      10 taps sit in the 16 lanes of x_ref; BN1 scale folded into w1. ----
    w1 = w1_ref[...]                                  # (16, 128)
    t1 = t1_ref[...]                                  # (1, 128) BN1 shift
    for t in range(3):                                # 3 W-tiles of 256 conv rows
        base = t * 256
        z_e = jnp.dot(x_ref[pl.ds(base, 128, stride=2), :], w1,
                      preferred_element_type=jnp.float32)
        z_o = jnp.dot(x_ref[pl.ds(base + 1, 128, stride=2), :], w1,
                      preferred_element_type=jnp.float32)
        s1[t * 128:(t + 1) * 128, :] = _act(jnp.maximum(z_e, z_o) + t1,
                                            activation)

    # ---- deep_conv_2 .. deep_conv_4 ----
    _conv_block(s1, w2_ref, t2_ref[...], s2, tiles=((0, 192), (192, 184)),
                activation=activation)
    _conv_block(s2, w3_ref, t3_ref[...], s3, tiles=((0, 180),),
                activation=activation)
    s4[...] = jnp.zeros(s4.shape, s4.dtype)   # pad rows must be 0 for the fc reduce
    _conv_block(s3, w4_ref, t4_ref[...], s4, tiles=((0, 86),),
                activation=activation)

    # ---- classifier: VPU multiply + full reduce; logits in lanes 0..1 ----
    feat = s4[...]                                    # (48, 256), (w, c) layout
    p0 = jnp.sum(feat * wfc_ref[0])
    p1 = jnp.sum(feat * wfc_ref[1])
    lane = jax.lax.broadcasted_iota(jnp.int32, (1, 128), 1)
    logits = (jnp.where(lane == 0, p0, 0.0)
              + jnp.where(lane == 1, p1, 0.0)
              + bfc_ref[...])
    o_ref[...] = logits.astype(o_ref.dtype)


# ------------------------- host-side packing --------------------------------
def _im2col_first(x):
    """(N,1,2,750) NCHW -> (N, 768, 16); column k*2+h holds x[n,0,h,w+k]."""
    N = x.shape[0]
    x2 = x[:, 0, :, :]                                           # (N, 2, 750)
    xp = jnp.pad(x2, ((0, 0), (0, 0), (0, _W_COL + 4 - _W_IN)))  # (N, 2, 772)
    cols = jnp.stack([xp[:, :, k:k + _W_COL] for k in range(5)], axis=1)
    xcol = jnp.transpose(cols, (0, 3, 1, 2)).reshape(N, _W_COL, 10)
    return jnp.pad(xcol, ((0, 0), (0, 0), (0, _KH2 - 10)))       # (N, 768, 16)


def _bn_scale_shift(bn, eps=1e-5):
    gamma, beta, mean, var = bn
    scale = gamma / jnp.sqrt(var + eps)
    shift = beta - mean * scale
    return scale, shift


def pack_params(params):
    """Pack torch-layout params into padded, BN-folded kernel operands (once)."""
    # block 1: fold first_conv (1,5) and conv1 (2,1) into one (2,5) conv.
    w0 = params["first_conv_w"][:, 0, 0, :]            # (25, 5)   [ci, k]
    w1 = params["conv1_w"][:, :, :, 0]                  # (25, 25, 2) [co, ci, h]
    weff = jnp.einsum("ik,oih->kho", w0, w1)            # (5, 2, 25)  [k, h, co]
    s1c, t1c = _bn_scale_shift(params["bn1"])
    weff = weff * s1c[None, None, :]                     # fold BN1 scale
    w1p = jnp.zeros((_KH2, _C1), jnp.float32).at[:10, :25].set(weff.reshape(10, 25))
    t1p = jnp.zeros((1, _C1), jnp.float32).at[0, :25].set(t1c)

    def pack_conv(w, bn, cip, cop):
        scale, shift = _bn_scale_shift(bn)
        wk = jnp.transpose(w[:, :, 0, :], (2, 1, 0)) * scale[None, None, :]
        K, ci, co = wk.shape
        wp = jnp.zeros((K, cip, cop), jnp.float32).at[:, :ci, :co].set(wk)
        tp = jnp.zeros((1, cop), jnp.float32).at[0, :co].set(shift)
        return wp, tp

    w2p, t2p = pack_conv(params["conv2_w"], params["bn2"], _C1, _C2)
    w3p, t3p = pack_conv(params["conv3_w"], params["bn3"], _C2, _C3)
    w4p, t4p = pack_conv(params["conv4_w"], params["bn4"], _C3, _C4)

    # classifier: torch flatten order of (N,200,1,43) is f = c*43 + w.
    wfc = params["fc_w"].reshape(2, 200, 43)             # [o, c, w]
    wfc = jnp.transpose(wfc, (0, 2, 1))                  # [o, w, c]
    wfcp = jnp.zeros((2, _S4_ROWS, _C4), jnp.float32).at[:, :43, :200].set(wfc)
    bfcp = jnp.zeros((1, 128), jnp.float32).at[0, :2].set(params["fc_b"])

    return {"w1": w1p, "t1": t1p, "w2": w2p, "t2": t2p, "w3": w3p, "t3": t3p,
            "w4": w4p, "t4": t4p, "wfc": wfcp, "bfc": bfcp}


# ------------------------------- forward ------------------------------------
def deepconvnet_forward(x, packed, activation="ELU"):
    N = x.shape[0]
    assert x.shape[1:] == (1, _H_IN, _W_IN), x.shape
    xcol = _im2col_first(x)
    kernel = functools.partial(_deepconvnet_kernel, activation=activation)
    const2 = lambda n: (0, 0)
    const3 = lambda n: (0, 0, 0)
    out = pl.pallas_call(
        kernel,
        out_shape=jax.ShapeDtypeStruct((N, 1, 128), jnp.float32),
        grid=(N,),
        in_specs=[
            pl.BlockSpec((None, _W_COL, _KH2), lambda n: (n, 0, 0)),  # xcol
            pl.BlockSpec((_KH2, _C1), const2),                        # w1
            pl.BlockSpec((1, _C1), const2),                           # t1
            pl.BlockSpec((5, _C1, _C2), const3),                      # w2
            pl.BlockSpec((1, _C2), const2),                           # t2
            pl.BlockSpec((5, _C2, _C3), const3),                      # w3
            pl.BlockSpec((1, _C3), const2),                           # t3
            pl.BlockSpec((5, _C3, _C4), const3),                      # w4
            pl.BlockSpec((1, _C4), const2),                           # t4
            pl.BlockSpec((2, _S4_ROWS, _C4), const3),                 # wfc
            pl.BlockSpec((1, 128), const2),                           # bfc
        ],
        out_specs=pl.BlockSpec((None, 1, 128), lambda n: (n, 0, 0)),
        scratch_shapes=[
            pltpu.VMEM((_S1_ROWS, _C1), jnp.float32),
            pltpu.VMEM((_S2_ROWS, _C2), jnp.float32),
            pltpu.VMEM((_S3_ROWS, _C3), jnp.float32),
            pltpu.VMEM((_S4_ROWS, _C4), jnp.float32),
        ],
        compiler_params=pltpu.CompilerParams(
            dimension_semantics=("parallel",)),   # v7x: split batch over 2 TCs
    )(xcol, packed["w1"], packed["t1"], packed["w2"], packed["t2"],
      packed["w3"], packed["t3"], packed["w4"], packed["t4"],
      packed["wfc"], packed["bfc"])
    return out[:, 0, :2]


# --------------------------- parameter init ---------------------------------
def init_params(key):
    keys = jax.random.split(key, 11)

    def conv_w(k, co, ci, kh, kw):
        return 0.1 * jax.random.normal(k, (co, ci, kh, kw), jnp.float32)

    def bn(k, c):
        k1, k2, k3, k4 = jax.random.split(k, 4)
        gamma = jax.random.uniform(k1, (c,), jnp.float32, 0.5, 1.5)
        beta = 0.1 * jax.random.normal(k2, (c,), jnp.float32)
        mean = 0.1 * jax.random.normal(k3, (c,), jnp.float32)
        var = jax.random.uniform(k4, (c,), jnp.float32, 0.5, 1.5)
        return gamma, beta, mean, var

    return {
        "first_conv_w": conv_w(keys[0], 25, 1, 1, 5),
        "conv1_w": conv_w(keys[1], 25, 25, 2, 1),
        "bn1": bn(keys[2], 25),
        "conv2_w": conv_w(keys[3], 50, 25, 1, 5),
        "bn2": bn(keys[4], 50),
        "conv3_w": conv_w(keys[5], 100, 50, 1, 5),
        "bn3": bn(keys[6], 100),
        "conv4_w": conv_w(keys[7], 200, 100, 1, 5),
        "bn4": bn(keys[8], 200),
        "fc_w": 0.01 * jax.random.normal(keys[9], (2, 8600), jnp.float32),
        "fc_b": 0.01 * jax.random.normal(keys[10], (2,), jnp.float32),
    }


if __name__ == "__main__":
    key = jax.random.PRNGKey(0)
    pkey, xkey = jax.random.split(key)
    params = init_params(pkey)
    packed = pack_params(params)
    # shape fixed by the 8600-feature classifier: (N, 1, 2, 750)
    x = jax.random.normal(xkey, (2, 1, 2, 750), jnp.float32)
    out = deepconvnet_forward(x, packed, activation="ELU")
    out = jax.block_until_ready(out)
    assert out.shape == (2, 2) and out.dtype == jnp.float32
    print("KERNEL_OK")
</pallas_src>

<mosaic_0001>
module attributes {stable_mosaic.version = 11 : i64} {
  func.func @_deepconvnet_kernel(%arg0: i32, %arg1: memref<1x768x16xf32, #tpu.memory_space<vmem>>, %arg2: memref<16x128xf32, #tpu.memory_space<vmem>>, %arg3: memref<1x128xf32, #tpu.memory_space<vmem>>, %arg4: memref<5x128x128xf32, #tpu.memory_space<vmem>>, %arg5: memref<1x128xf32, #tpu.memory_space<vmem>>, %arg6: memref<5x128x128xf32, #tpu.memory_space<vmem>>, %arg7: memref<1x128xf32, #tpu.memory_space<vmem>>, %arg8: memref<5x128x256xf32, #tpu.memory_space<vmem>>, %arg9: memref<1x256xf32, #tpu.memory_space<vmem>>, %arg10: memref<2x48x256xf32, #tpu.memory_space<vmem>>, %arg11: memref<1x128xf32, #tpu.memory_space<vmem>>, %arg12: memref<1x1x128xf32, #tpu.memory_space<vmem>>, %arg13: memref<384x128xf32, #tpu.memory_space<vmem>>, %arg14: memref<192x128xf32, #tpu.memory_space<vmem>>, %arg15: memref<96x128xf32, #tpu.memory_space<vmem>>, %arg16: memref<48x256xf32, #tpu.memory_space<vmem>>) attributes {dimension_semantics = [#tpu.dimension_semantics<parallel>], iteration_bounds = array<i64: 2>, scalar_prefetch = 0 : i64, scratch_operands = 4 : i64, tpu.core_type = #tpu.core_type<tc>, window_params = [{transform_indices = @transform_0, window_bounds = array<i64: 1, 768, 16>}, {pipeline_mode = #tpu.pipeline_mode<synchronous>, transform_indices = @transform_1, window_bounds = array<i64: 16, 128>}, {pipeline_mode = #tpu.pipeline_mode<synchronous>, transform_indices = @transform_2, window_bounds = array<i64: 1, 128>}, {pipeline_mode = #tpu.pipeline_mode<synchronous>, transform_indices = @transform_3, window_bounds = array<i64: 5, 128, 128>}, {pipeline_mode = #tpu.pipeline_mode<synchronous>, transform_indices = @transform_4, window_bounds = array<i64: 1, 128>}, {pipeline_mode = #tpu.pipeline_mode<synchronous>, transform_indices = @transform_5, window_bounds = array<i64: 5, 128, 128>}, {pipeline_mode = #tpu.pipeline_mode<synchronous>, transform_indices = @transform_6, window_bounds = array<i64: 1, 128>}, {pipeline_mode = #tpu.pipeline_mode<synchronous>, transform_indices = @transform_7, window_bounds = array<i64: 5, 128, 256>}, {pipeline_mode = #tpu.pipeline_mode<synchronous>, transform_indices = @transform_8, window_bounds = array<i64: 1, 256>}, {pipeline_mode = #tpu.pipeline_mode<synchronous>, transform_indices = @transform_9, window_bounds = array<i64: 2, 48, 256>}, {pipeline_mode = #tpu.pipeline_mode<synchronous>, transform_indices = @transform_10, window_bounds = array<i64: 1, 128>}, {transform_indices = @transform_11, window_bounds = array<i64: 1, 1, 128>}]} {
    %c0 = arith.constant 0 : index
    %c0_0 = arith.constant 0 : index
    %0 = vector.load %arg2[%c0, %c0_0] : memref<16x128xf32, #tpu.memory_space<vmem>>, vector<16x128xf32>
    %c0_1 = arith.constant 0 : index
    %c0_2 = arith.constant 0 : index
    %1 = vector.load %arg3[%c0_1, %c0_2] : memref<1x128xf32, #tpu.memory_space<vmem>>, vector<1x128xf32>
    %c0_3 = arith.constant 0 : index
    %c0_4 = arith.constant 0 : index
    %c0_5 = arith.constant 0 : index
    %2 = tpu.strided_load %arg1[%c0_3, %c0_4, %c0_5] {strides = array<i32: 1, 2, 1>} : memref<1x768x16xf32, #tpu.memory_space<vmem>>, vector<1x128x16xf32>
    %3 = vector.shape_cast %2 : vector<1x128x16xf32> to vector<128x16xf32>
    %cst = arith.constant dense<0.000000e+00> : vector<128x128xf32>
    %4 = tpu.matmul %3, %0, %cst {dimension_numbers = #tpu.dot_dimension_numbers<[1], [0], [0], [1], [0, 0, 1, 1], [], []>} : vector<128x16xf32>, vector<16x128xf32>, vector<128x128xf32> -> vector<128x128xf32>
    %c0_6 = arith.constant 0 : index
    %c1 = arith.constant 1 : index
    %c0_7 = arith.constant 0 : index
    %5 = tpu.strided_load %arg1[%c0_6, %c1, %c0_7] {strides = array<i32: 1, 2, 1>} : memref<1x768x16xf32, #tpu.memory_space<vmem>>, vector<1x128x16xf32>
    %6 = vector.shape_cast %5 : vector<1x128x16xf32> to vector<128x16xf32>
    %cst_8 = arith.constant dense<0.000000e+00> : vector<128x128xf32>
    %7 = tpu.matmul %6, %0, %cst_8 {dimension_numbers = #tpu.dot_dimension_numbers<[1], [0], [0], [1], [0, 0, 1, 1], [], []>} : vector<128x16xf32>, vector<16x128xf32>, vector<128x128xf32> -> vector<128x128xf32>
    %8 = arith.maximumf %4, %7 : vector<128x128xf32>
    %9 = vector.broadcast %1 : vector<1x128xf32> to vector<128x128xf32>
    %10 = arith.addf %8, %9 : vector<128x128xf32>
    %cst_9 = arith.constant 0.000000e+00 : f32
    %11 = vector.broadcast %cst_9 : f32 to vector<128x128xf32>
    %12 = arith.cmpf ogt, %10, %11 : vector<128x128xf32>
    %cst_10 = arith.constant 0.000000e+00 : f32
    %13 = vector.broadcast %cst_10 : f32 to vector<128x128xf32>
    %14 = arith.minimumf %10, %13 : vector<128x128xf32>
    %15 = math.exp %14 : vector<128x128xf32>
    %cst_11 = arith.constant 1.000000e+00 : f32
    %16 = vector.broadcast %cst_11 : f32 to vector<128x128xf32>
    %17 = arith.subf %15, %16 : vector<128x128xf32>
    %18 = arith.select %12, %10, %17 : vector<128x128xi1>, vector<128x128xf32>
    %c0_12 = arith.constant 0 : index
    %c0_13 = arith.constant 0 : index
    %19 = vector.load %arg13[%c0_12, %c0_13] : memref<384x128xf32, #tpu.memory_space<vmem>>, vector<128x128xf32>
    tpu.vector_store %arg13[%c0_12, %c0_13], %18 {strides = array<i32>} : memref<384x128xf32, #tpu.memory_space<vmem>>, vector<128x128xf32>,
    %c0_14 = arith.constant 0 : index
    %c256 = arith.constant 256 : index
    %c0_15 = arith.constant 0 : index
    %20 = tpu.strided_load %arg1[%c0_14, %c256, %c0_15] {strides = array<i32: 1, 2, 1>} : memref<1x768x16xf32, #tpu.memory_space<vmem>>, vector<1x128x16xf32>
    %21 = vector.shape_cast %20 : vector<1x128x16xf32> to vector<128x16xf32>
    %cst_16 = arith.constant dense<0.000000e+00> : vector<128x128xf32>
    %22 = tpu.matmul %21, %0, %cst_16 {dimension_numbers = #tpu.dot_dimension_numbers<[1], [0], [0], [1], [0, 0, 1, 1], [], []>} : vector<128x16xf32>, vector<16x128xf32>, vector<128x128xf32> -> vector<128x128xf32>
    %c0_17 = arith.constant 0 : index
    %c257 = arith.constant 257 : index
    %c0_18 = arith.constant 0 : index
    %23 = tpu.strided_load %arg1[%c0_17, %c257, %c0_18] {strides = array<i32: 1, 2, 1>} : memref<1x768x16xf32, #tpu.memory_space<vmem>>, vector<1x128x16xf32>
    %24 = vector.shape_cast %23 : vector<1x128x16xf32> to vector<128x16xf32>
    %cst_19 = arith.constant dense<0.000000e+00> : vector<128x128xf32>
    %25 = tpu.matmul %24, %0, %cst_19 {dimension_numbers = #tpu.dot_dimension_numbers<[1], [0], [0], [1], [0, 0, 1, 1], [], []>} : vector<128x16xf32>, vector<16x128xf32>, vector<128x128xf32> -> vector<128x128xf32>
    %26 = arith.maximumf %22, %25 : vector<128x128xf32>
    %27 = vector.broadcast %1 : vector<1x128xf32> to vector<128x128xf32>
    %28 = arith.addf %26, %27 : vector<128x128xf32>
    %cst_20 = arith.constant 0.000000e+00 : f32
    %29 = vector.broadcast %cst_20 : f32 to vector<128x128xf32>
    %30 = arith.cmpf ogt, %28, %29 : vector<128x128xf32>
    %cst_21 = arith.constant 0.000000e+00 : f32
    %31 = vector.broadcast %cst_21 : f32 to vector<128x128xf32>
    %32 = arith.minimumf %28, %31 : vector<128x128xf32>
    %33 = math.exp %32 : vector<128x128xf32>
    %cst_22 = arith.constant 1.000000e+00 : f32
    %34 = vector.broadcast %cst_22 : f32 to vector<128x128xf32>
    %35 = arith.subf %33, %34 : vector<128x128xf32>
    %36 = arith.select %30, %28, %35 : vector<128x128xi1>, vector<128x128xf32>
    %c128 = arith.constant 128 : index
    %c0_23 = arith.constant 0 : index
    %37 = vector.load %arg13[%c128, %c0_23] : memref<384x128xf32, #tpu.memory_space<vmem>>, vector<128x128xf32>
    tpu.vector_store %arg13[%c128, %c0_23], %36 {strides = array<i32>} : memref<384x128xf32, #tpu.memory_space<vmem>>, vector<128x128xf32>,
    %c0_24 = arith.constant 0 : index
    %c512 = arith.constant 512 : index
    %c0_25 = arith.constant 0 : index
    %38 = tpu.strided_load %arg1[%c0_24, %c512, %c0_25] {strides = array<i32: 1, 2, 1>} : memref<1x768x16xf32, #tpu.memory_space<vmem>>, vector<1x128x16xf32>
    %39 = vector.shape_cast %38 : vector<1x128x16xf32> to vector<128x16xf32>
    %cst_26 = arith.constant dense<0.000000e+00> : vector<128x128xf32>
    %40 = tpu.matmul %39, %0, %cst_26 {dimension_numbers = #tpu.dot_dimension_numbers<[1], [0], [0], [1], [0, 0, 1, 1], [], []>} : vector<128x16xf32>, vector<16x128xf32>, vector<128x128xf32> -> vector<128x128xf32>
    %c0_27 = arith.constant 0 : index
    %c513 = arith.constant 513 : index
    %c0_28 = arith.constant 0 : index
    %41 = tpu.strided_load %arg1[%c0_27, %c513, %c0_28] {strides = array<i32: 1, 2, 1>} : memref<1x768x16xf32, #tpu.memory_space<vmem>>, vector<1x128x16xf32>
    %42 = vector.shape_cast %41 : vector<1x128x16xf32> to vector<128x16xf32>
    %cst_29 = arith.constant dense<0.000000e+00> : vector<128x128xf32>
    %43 = tpu.matmul %42, %0, %cst_29 {dimension_numbers = #tpu.dot_dimension_numbers<[1], [0], [0], [1], [0, 0, 1, 1], [], []>} : vector<128x16xf32>, vector<16x128xf32>, vector<128x128xf32> -> vector<128x128xf32>
    %44 = arith.maximumf %40, %43 : vector<128x128xf32>
    %45 = vector.broadcast %1 : vector<1x128xf32> to vector<128x128xf32>
    %46 = arith.addf %44, %45 : vector<128x128xf32>
    %cst_30 = arith.constant 0.000000e+00 : f32
    %47 = vector.broadcast %cst_30 : f32 to vector<128x128xf32>
    %48 = arith.cmpf ogt, %46, %47 : vector<128x128xf32>
    %cst_31 = arith.constant 0.000000e+00 : f32
    %49 = vector.broadcast %cst_31 : f32 to vector<128x128xf32>
    %50 = arith.minimumf %46, %49 : vector<128x128xf32>
    %51 = math.exp %50 : vector<128x128xf32>
    %cst_32 = arith.constant 1.000000e+00 : f32
    %52 = vector.broadcast %cst_32 : f32 to vector<128x128xf32>
    %53 = arith.subf %51, %52 : vector<128x128xf32>
    %54 = arith.select %48, %46, %53 : vector<128x128xi1>, vector<128x128xf32>
    %c256_33 = arith.constant 256 : index
    %c0_34 = arith.constant 0 : index
    %55 = vector.load %arg13[%c256_33, %c0_34] : memref<384x128xf32, #tpu.memory_space<vmem>>, vector<128x128xf32>
    tpu.vector_store %arg13[%c256_33, %c0_34], %54 {strides = array<i32>} : memref<384x128xf32, #tpu.memory_space<vmem>>, vector<128x128xf32>,
    %c0_35 = arith.constant 0 : index
    %c0_36 = arith.constant 0 : index
    %56 = vector.load %arg5[%c0_35, %c0_36] : memref<1x128xf32, #tpu.memory_space<vmem>>, vector<1x128xf32>
    %cst_37 = arith.constant 0.000000e+00 : f32
    %57 = vector.broadcast %cst_37 : f32 to vector<96x128xf32>
    %cst_38 = arith.constant 0.000000e+00 : f32
    %58 = vector.broadcast %cst_38 : f32 to vector<96x128xf32>
    %c0_39 = arith.constant 0 : index
    %c0_40 = arith.constant 0 : index
    %c0_41 = arith.constant 0 : index
    %59 = vector.load %arg4[%c0_39, %c0_40, %c0_41] : memref<5x128x128xf32, #tpu.memory_space<vmem>>, vector<1x128x128xf32>
    %60 = vector.shape_cast %59 : vector<1x128x128xf32> to vector<128x128xf32>
    %c0_42 = arith.constant 0 : index
    %c0_43 = arith.constant 0 : index
    %61 = tpu.strided_load %arg13[%c0_42, %c0_43] {strides = array<i32: 2, 1>} : memref<384x128xf32, #tpu.memory_space<vmem>>, vector<96x128xf32>
    %cst_44 = arith.constant dense<0.000000e+00> : vector<96x128xf32>
    %62 = tpu.matmul %61, %60, %cst_44 {dimension_numbers = #tpu.dot_dimension_numbers<[1], [0], [0], [1], [0, 0, 1, 1], [], []>} : vector<96x128xf32>, vector<128x128xf32>, vector<96x128xf32> -> vector<96x128xf32>
    %63 = arith.addf %57, %62 : vector<96x128xf32>
    %c1_45 = arith.constant 1 : index
    %c0_46 = arith.constant 0 : index
    %64 = tpu.strided_load %arg13[%c1_45, %c0_46] {strides = array<i32: 2, 1>} : memref<384x128xf32, #tpu.memory_space<vmem>>, vector<96x128xf32>
    %cst_47 = arith.constant dense<0.000000e+00> : vector<96x128xf32>
    %65 = tpu.matmul %64, %60, %cst_47 {dimension_numbers = #tpu.dot_dimension_numbers<[1], [0], [0], [1], [0, 0, 1, 1], [], []>} : vector<96x128xf32>, vector<128x128xf32>, vector<96x128xf32> -> vector<96x128xf32>
    %66 = arith.addf %58, %65 : vector<96x128xf32>
    %c1_48 = arith.constant 1 : index
    %c0_49 = arith.constant 0 : index
    %c0_50 = arith.constant 0 : index
    %67 = vector.load %arg4[%c1_48, %c0_49, %c0_50] : memref<5x128x128xf32, #tpu.memory_space<vmem>>, vector<1x128x128xf32>
    %68 = vector.shape_cast %67 : vector<1x128x128xf32> to vector<128x128xf32>
    %c1_51 = arith.constant 1 : index
    %c0_52 = arith.constant 0 : index
    %69 = tpu.strided_load %arg13[%c1_51, %c0_52] {strides = array<i32: 2, 1>} : memref<384x128xf32, #tpu.memory_space<vmem>>, vector<96x128xf32>
    %cst_53 = arith.constant dense<0.000000e+00> : vector<96x128xf32>
    %70 = tpu.matmul %69, %68, %cst_53 {dimension_numbers = #tpu.dot_dimension_numbers<[1], [0], [0], [1], [0, 0, 1, 1], [], []>} : vector<96x128xf32>, vector<128x128xf32>, vector<96x128xf32> -> vector<96x128xf32>
    %71 = arith.addf %63, %70 : vector<96x128xf32>
    %c2 = arith.constant 2 : index
    %c0_54 = arith.constant 0 : index
    %72 = tpu.strided_load %arg13[%c2, %c0_54] {strides = array<i32: 2, 1>} : memref<384x128xf32, #tpu.memory_space<vmem>>, vector<96x128xf32>
    %cst_55 = arith.constant dense<0.000000e+00> : vector<96x128xf32>
    %73 = tpu.matmul %72, %68, %cst_55 {dimension_numbers = #tpu.dot_dimension_numbers<[1], [0], [0], [1], [0, 0, 1, 1], [], []>} : vector<96x128xf32>, vector<128x128xf32>, vector<96x128xf32> -> vector<96x128xf32>
    %74 = arith.addf %66, %73 : vector<96x128xf32>
    %c2_56 = arith.constant 2 : index
    %c0_57 = arith.constant 0 : index
    %c0_58 = arith.constant 0 : index
    %75 = vector.load %arg4[%c2_56, %c0_57, %c0_58] : memref<5x128x128xf32, #tpu.memory_space<vmem>>, vector<1x128x128xf32>
    %76 = vector.shape_cast %75 : vector<1x128x128xf32> to vector<128x128xf32>
    %c2_59 = arith.constant 2 : index
    %c0_60 = arith.constant 0 : index
    %77 = tpu.strided_load %arg13[%c2_59, %c0_60] {strides = array<i32: 2, 1>} : memref<384x128xf32, #tpu.memory_space<vmem>>, vector<96x128xf32>
    %cst_61 = arith.constant dense<0.000000e+00> : vector<96x128xf32>
    %78 = tpu.matmul %77, %76, %cst_61 {dimension_numbers = #tpu.dot_dimension_numbers<[1], [0], [0], [1], [0, 0, 1, 1], [], []>} : vector<96x128xf32>, vector<128x128xf32>, vector<96x128xf32> -> vector<96x128xf32>
    %79 = arith.addf %71, %78 : vector<96x128xf32>
    %c3 = arith.constant 3 : index
    %c0_62 = arith.constant 0 : index
    %80 = tpu.strided_load %arg13[%c3, %c0_62] {strides = array<i32: 2, 1>} : memref<384x128xf32, #tpu.memory_space<vmem>>, vector<96x128xf32>
    %cst_63 = arith.constant dense<0.000000e+00> : vector<96x128xf32>
    %81 = tpu.matmul %80, %76, %cst_63 {dimension_numbers = #tpu.dot_dimension_numbers<[1], [0], [0], [1], [0, 0, 1, 1], [], []>} : vector<96x128xf32>, vector<128x128xf32>, vector<96x128xf32> -> vector<96x128xf32>
    %82 = arith.addf %74, %81 : vector<96x128xf32>
    %c3_64 = arith.constant 3 : index
    %c0_65 = arith.constant 0 : index
    %c0_66 = arith.constant 0 : index
    %83 = vector.load %arg4[%c3_64, %c0_65, %c0_66] : memref<5x128x128xf32, #tpu.memory_space<vmem>>, vector<1x128x128xf32>
    %84 = vector.shape_cast %83 : vector<1x128x128xf32> to vector<128x128xf32>
    %c3_67 = arith.constant 3 : index
    %c0_68 = arith.constant 0 : index
    %85 = tpu.strided_load %arg13[%c3_67, %c0_68] {strides = array<i32: 2, 1>} : memref<384x128xf32, #tpu.memory_space<vmem>>, vector<96x128xf32>
    %cst_69 = arith.constant dense<0.000000e+00> : vector<96x128xf32>
    %86 = tpu.matmul %85, %84, %cst_69 {dimension_numbers = #tpu.dot_dimension_numbers<[1], [0], [0], [1], [0, 0, 1, 1], [], []>} : vector<96x128xf32>, vector<128x128xf32>, vector<96x128xf32> -> vector<96x128xf32>
    %87 = arith.addf %79, %86 : vector<96x128xf32>
    %c4 = arith.constant 4 : index
    %c0_70 = arith.constant 0 : index
    %88 = tpu.strided_load %arg13[%c4, %c0_70] {strides = array<i32: 2, 1>} : memref<384x128xf32, #tpu.memory_space<vmem>>, vector<96x128xf32>
    %cst_71 = arith.constant dense<0.000000e+00> : vector<96x128xf32>
    %89 = tpu.matmul %88, %84, %cst_71 {dimension_numbers = #tpu.dot_dimension_numbers<[1], [0], [0], [1], [0, 0, 1, 1], [], []>} : vector<96x128xf32>, vector<128x128xf32>, vector<96x128xf32> -> vector<96x128xf32>
    %90 = arith.addf %82, %89 : vector<96x128xf32>
    %c4_72 = arith.constant 4 : index
    %c0_73 = arith.constant 0 : index
    %c0_74 = arith.constant 0 : index
    %91 = vector.load %arg4[%c4_72, %c0_73, %c0_74] : memref<5x128x128xf32, #tpu.memory_space<vmem>>, vector<1x128x128xf32>
    %92 = vector.shape_cast %91 : vector<1x128x128xf32> to vector<128x128xf32>
    %c4_75 = arith.constant 4 : index
    %c0_76 = arith.constant 0 : index
    %93 = tpu.strided_load %arg13[%c4_75, %c0_76] {strides = array<i32: 2, 1>} : memref<384x128xf32, #tpu.memory_space<vmem>>, vector<96x128xf32>
    %cst_77 = arith.constant dense<0.000000e+00> : vector<96x128xf32>
    %94 = tpu.matmul %93, %92, %cst_77 {dimension_numbers = #tpu.dot_dimension_numbers<[1], [0], [0], [1], [0, 0, 1, 1], [], []>} : vector<96x128xf32>, vector<128x128xf32>, vector<96x128xf32> -> vector<96x128xf32>
    %95 = arith.addf %87, %94 : vector<96x128xf32>
    %c5 = arith.constant 5 : index
    %c0_78 = arith.constant 0 : index
    %96 = tpu.strided_load %arg13[%c5, %c0_78] {strides = array<i32: 2, 1>} : memref<384x128xf32, #tpu.memory_space<vmem>>, vector<96x128xf32>
    %cst_79 = arith.constant dense<0.000000e+00> : vector<96x128xf32>
    %97 = tpu.matmul %96, %92, %cst_79 {dimension_numbers = #tpu.dot_dimension_numbers<[1], [0], [0], [1], [0, 0, 1, 1], [], []>} : vector<96x128xf32>, vector<128x128xf32>, vector<96x128xf32> -> vector<96x128xf32>
    %98 = arith.addf %90, %97 : vector<96x128xf32>
    %99 = arith.maximumf %95, %98 : vector<96x128xf32>
    %100 = vector.broadcast %56 : vector<1x128xf32> to vector<96x128xf32>
    %101 = arith.addf %99, %100 : vector<96x128xf32>
    %cst_80 = arith.constant 0.000000e+00 : f32
    %102 = vector.broadcast %cst_80 : f32 to vector<96x128xf32>
    %103 = arith.cmpf ogt, %101, %102 : vector<96x128xf32>
    %cst_81 = arith.constant 0.000000e+00 : f32
    %104 = vector.broadcast %cst_81 : f32 to vector<96x128xf32>
    %105 = arith.minimumf %101, %104 : vector<96x128xf32>
    %106 = math.exp %105 : vector<96x128xf32>
    %cst_82 = arith.constant 1.000000e+00 : f32
    %107 = vector.broadcast %cst_82 : f32 to vector<96x128xf32>
    %108 = arith.subf %106, %107 : vector<96x128xf32>
    %109 = arith.select %103, %101, %108 : vector<96x128xi1>, vector<96x128xf32>
    %c0_83 = arith.constant 0 : index
    %c0_84 = arith.constant 0 : index
    %110 = vector.load %arg14[%c0_83, %c0_84] : memref<192x128xf32, #tpu.memory_space<vmem>>, vector<96x128xf32>
    tpu.vector_store %arg14[%c0_83, %c0_84], %109 {strides = array<i32>} : memref<192x128xf32, #tpu.memory_space<vmem>>, vector<96x128xf32>,
    %cst_85 = arith.constant 0.000000e+00 : f32
    %111 = vector.broadcast %cst_85 : f32 to vector<92x128xf32>
    %cst_86 = arith.constant 0.000000e+00 : f32
    %112 = vector.broadcast %cst_86 : f32 to vector<92x128xf32>
    %c0_87 = arith.constant 0 : index
    %c0_88 = arith.constant 0 : index
    %c0_89 = arith.constant 0 : index
    %113 = vector.load %arg4[%c0_87, %c0_88, %c0_89] : memref<5x128x128xf32, #tpu.memory_space<vmem>>, vector<1x128x128xf32>
    %114 = vector.shape_cast %113 : vector<1x128x128xf32> to vector<128x128xf32>
    %c192 = arith.constant 192 : index
    %c0_90 = arith.constant 0 : index
    %115 = tpu.strided_load %arg13[%c192, %c0_90] {strides = array<i32: 2, 1>} : memref<384x128xf32, #tpu.memory_space<vmem>>, vector<92x128xf32>
    %cst_91 = arith.constant dense<0.000000e+00> : vector<92x128xf32>
    %116 = tpu.matmul %115, %114, %cst_91 {dimension_numbers = #tpu.dot_dimension_numbers<[1], [0], [0], [1], [0, 0, 1, 1], [], []>} : vector<92x128xf32>, vector<128x128xf32>, vector<92x128xf32> -> vector<92x128xf32>
    %117 = arith.addf %111, %116 : vector<92x128xf32>
    %c193 = arith.constant 193 : index
    %c0_92 = arith.constant 0 : index
    %118 = tpu.strided_load %arg13[%c193, %c0_92] {strides = array<i32: 2, 1>} : memref<384x128xf32, #tpu.memory_space<vmem>>, vector<92x128xf32>
    %cst_93 = arith.constant dense<0.000000e+00> : vector<92x128xf32>
    %119 = tpu.matmul %118, %114, %cst_93 {dimension_numbers = #tpu.dot_dimension_numbers<[1], [0], [0], [1], [0, 0, 1, 1], [], []>} : vector<92x128xf32>, vector<128x128xf32>, vector<92x128xf32> -> vector<92x128xf32>
    %120 = arith.addf %112, %119 : vector<92x128xf32>
    %c1_94 = arith.constant 1 : index
    %c0_95 = arith.constant 0 : index
    %c0_96 = arith.constant 0 : index
    %121 = vector.load %arg4[%c1_94, %c0_95, %c0_96] : memref<5x128x128xf32, #tpu.memory_space<vmem>>, vector<1x128x128xf32>
    %122 = vector.shape_cast %121 : vector<1x128x128xf32> to vector<128x128xf32>
    %c193_97 = arith.constant 193 : index
    %c0_98 = arith.constant 0 : index
    %123 = tpu.strided_load %arg13[%c193_97, %c0_98] {strides = array<i32: 2, 1>} : memref<384x128xf32, #tpu.memory_space<vmem>>, vector<92x128xf32>
    %cst_99 = arith.constant dense<0.000000e+00> : vector<92x128xf32>
    %124 = tpu.matmul %123, %122, %cst_99 {dimension_numbers = #tpu.dot_dimension_numbers<[1], [0], [0], [1], [0, 0, 1, 1], [], []>} : vector<92x128xf32>, vector<128x128xf32>, vector<92x128xf32> -> vector<92x128xf32>
    %125 = arith.addf %117, %124 : vector<92x128xf32>
    %c194 = arith.constant 194 : index
    %c0_100 = arith.constant 0 : index
    %126 = tpu.strided_load %arg13[%c194, %c0_100] {strides = array<i32: 2, 1>} : memref<384x128xf32, #tpu.memory_space<vmem>>, vector<92x128xf32>
    %cst_101 = arith.constant dense<0.000000e+00> : vector<92x128xf32>
    %127 = tpu.matmul %126, %122, %cst_101 {dimension_numbers = #tpu.dot_dimension_numbers<[1], [0], [0], [1], [0, 0, 1, 1], [], []>} : vector<92x128xf32>, vector<128x128xf32>, vector<92x128xf32> -> vector<92x128xf32>
    %128 = arith.addf %120, %127 : vector<92x128xf32>
    %c2_102 = arith.constant 2 : index
    %c0_103 = arith.constant 0 : index
    %c0_104 = arith.constant 0 : index
    %129 = vector.load %arg4[%c2_102, %c0_103, %c0_104] : memref<5x128x128xf32, #tpu.memory_space<vmem>>, vector<1x128x128xf32>
    %130 = vector.shape_cast %129 : vector<1x128x128xf32> to vector<128x128xf32>
    %c194_105 = arith.constant 194 : index
    %c0_106 = arith.constant 0 : index
    %131 = tpu.strided_load %arg13[%c194_105, %c0_106] {strides = array<i32: 2, 1>} : memref<384x128xf32, #tpu.memory_space<vmem>>, vector<92x128xf32>
    %cst_107 = arith.constant dense<0.000000e+00> : vector<92x128xf32>
    %132 = tpu.matmul %131, %130, %cst_107 {dimension_numbers = #tpu.dot_dimension_numbers<[1], [0], [0], [1], [0, 0, 1, 1], [], []>} : vector<92x128xf32>, vector<128x128xf32>, vector<92x128xf32> -> vector<92x128xf32>
    %133 = arith.addf %125, %132 : vector<92x128xf32>
    %c195 = arith.constant 195 : index
    %c0_108 = arith.constant 0 : index
    %134 = tpu.strided_load %arg13[%c195, %c0_108] {strides = array<i32: 2, 1>} : memref<384x128xf32, #tpu.memory_space<vmem>>, vector<92x128xf32>
    %cst_109 = arith.constant dense<0.000000e+00> : vector<92x128xf32>
    %135 = tpu.matmul %134, %130, %cst_109 {dimension_numbers = #tpu.dot_dimension_numbers<[1], [0], [0], [1], [0, 0, 1, 1], [], []>} : vector<92x128xf32>, vector<128x128xf32>, vector<92x128xf32> -> vector<92x128xf32>
    %136 = arith.addf %128, %135 : vector<92x128xf32>
    %c3_110 = arith.constant 3 : index
    %c0_111 = arith.constant 0 : index
    %c0_112 = arith.constant 0 : index
    %137 = vector.load %arg4[%c3_110, %c0_111, %c0_112] : memref<5x128x128xf32, #tpu.memory_space<vmem>>, vector<1x128x128xf32>
    %138 = vector.shape_cast %137 : vector<1x128x128xf32> to vector<128x128xf32>
    %c195_113 = arith.constant 195 : index
    %c0_114 = arith.constant 0 : index
    %139 = tpu.strided_load %arg13[%c195_113, %c0_114] {strides = array<i32: 2, 1>} : memref<384x128xf32, #tpu.memory_space<vmem>>, vector<92x128xf32>
    %cst_115 = arith.constant dense<0.000000e+00> : vector<92x128xf32>
    %140 = tpu.matmul %139, %138, %cst_115 {dimension_numbers = #tpu.dot_dimension_numbers<[1], [0], [0], [1], [0, 0, 1, 1], [], []>} : vector<92x128xf32>, vector<128x128xf32>, vector<92x128xf32> -> vector<92x128xf32>
    %141 = arith.addf %133, %140 : vector<92x128xf32>
    %c196 = arith.constant 196 : index
    %c0_116 = arith.constant 0 : index
    %142 = tpu.strided_load %arg13[%c196, %c0_116] {strides = array<i32: 2, 1>} : memref<384x128xf32, #tpu.memory_space<vmem>>, vector<92x128xf32>
    %cst_117 = arith.constant dense<0.000000e+00> : vector<92x128xf32>
    %143 = tpu.matmul %142, %138, %cst_117 {dimension_numbers = #tpu.dot_dimension_numbers<[1], [0], [0], [1], [0, 0, 1, 1], [], []>} : vector<92x128xf32>, vector<128x128xf32>, vector<92x128xf32> -> vector<92x128xf32>
    %144 = arith.addf %136, %143 : vector<92x128xf32>
    %c4_118 = arith.constant 4 : index
    %c0_119 = arith.constant 0 : index
    %c0_120 = arith.constant 0 : index
    %145 = vector.load %arg4[%c4_118, %c0_119, %c0_120] : memref<5x128x128xf32, #tpu.memory_space<vmem>>, vector<1x128x128xf32>
    %146 = vector.shape_cast %145 : vector<1x128x128xf32> to vector<128x128xf32>
    %c196_121 = arith.constant 196 : index
    %c0_122 = arith.constant 0 : index
    %147 = tpu.strided_load %arg13[%c196_121, %c0_122] {strides = array<i32: 2, 1>} : memref<384x128xf32, #tpu.memory_space<vmem>>, vector<92x128xf32>
    %cst_123 = arith.constant dense<0.000000e+00> : vector<92x128xf32>
    %148 = tpu.matmul %147, %146, %cst_123 {dimension_numbers = #tpu.dot_dimension_numbers<[1], [0], [0], [1], [0, 0, 1, 1], [], []>} : vector<92x128xf32>, vector<128x128xf32>, vector<92x128xf32> -> vector<92x128xf32>
    %149 = arith.addf %141, %148 : vector<92x128xf32>
    %c197 = arith.constant 197 : index
    %c0_124 = arith.constant 0 : index
    %150 = tpu.strided_load %arg13[%c197, %c0_124] {strides = array<i32: 2, 1>} : memref<384x128xf32, #tpu.memory_space<vmem>>, vector<92x128xf32>
    %cst_125 = arith.constant dense<0.000000e+00> : vector<92x128xf32>
    %151 = tpu.matmul %150, %146, %cst_125 {dimension_numbers = #tpu.dot_dimension_numbers<[1], [0], [0], [1], [0, 0, 1, 1], [], []>} : vector<92x128xf32>, vector<128x128xf32>, vector<92x128xf32> -> vector<92x128xf32>
    %152 = arith.addf %144, %151 : vector<92x128xf32>
    %153 = arith.maximumf %149, %152 : vector<92x128xf32>
    %154 = vector.broadcast %56 : vector<1x128xf32> to vector<92x128xf32>
    %155 = arith.addf %153, %154 : vector<92x128xf32>
    %cst_126 = arith.constant 0.000000e+00 : f32
    %156 = vector.broadcast %cst_126 : f32 to vector<92x128xf32>
    %157 = arith.cmpf ogt, %155, %156 : vector<92x128xf32>
    %cst_127 = arith.constant 0.000000e+00 : f32
    %158 = vector.broadcast %cst_127 : f32 to vector<92x128xf32>
    %159 = arith.minimumf %155, %158 : vector<92x128xf32>
    %160 = math.exp %159 : vector<92x128xf32>
    %cst_128 = arith.constant 1.000000e+00 : f32
    %161 = vector.broadcast %cst_128 : f32 to vector<92x128xf32>
    %162 = arith.subf %160, %161 : vector<92x128xf32>
    %163 = arith.select %157, %155, %162 : vector<92x128xi1>, vector<92x128xf32>
    %c96 = arith.constant 96 : index
    %c0_129 = arith.constant 0 : index
    %164 = vector.load %arg14[%c96, %c0_129] : memref<192x128xf32, #tpu.memory_space<vmem>>, vector<92x128xf32>
    tpu.vector_store %arg14[%c96, %c0_129], %163 {strides = array<i32>} : memref<192x128xf32, #tpu.memory_space<vmem>>, vector<92x128xf32>,
    %c0_130 = arith.constant 0 : index
    %c0_131 = arith.constant 0 : index
    %165 = vector.load %arg7[%c0_130, %c0_131] : memref<1x128xf32, #tpu.memory_space<vmem>>, vector<1x128xf32>
    %cst_132 = arith.constant 0.000000e+00 : f32
    %166 = vector.broadcast %cst_132 : f32 to vector<90x128xf32>
    %cst_133 = arith.constant 0.000000e+00 : f32
    %167 = vector.broadcast %cst_133 : f32 to vector<90x128xf32>
    %c0_134 = arith.constant 0 : index
    %c0_135 = arith.constant 0 : index
    %c0_136 = arith.constant 0 : index
    %168 = vector.load %arg6[%c0_134, %c0_135, %c0_136] : memref<5x128x128xf32, #tpu.memory_space<vmem>>, vector<1x128x128xf32>
    %169 = vector.shape_cast %168 : vector<1x128x128xf32> to vector<128x128xf32>
    %c0_137 = arith.constant 0 : index
    %c0_138 = arith.constant 0 : index
    %170 = tpu.strided_load %arg14[%c0_137, %c0_138] {strides = array<i32: 2, 1>} : memref<192x128xf32, #tpu.memory_space<vmem>>, vector<90x128xf32>
    %cst_139 = arith.constant dense<0.000000e+00> : vector<90x128xf32>
    %171 = tpu.matmul %170, %169, %cst_139 {dimension_numbers = #tpu.dot_dimension_numbers<[1], [0], [0], [1], [0, 0, 1, 1], [], []>} : vector<90x128xf32>, vector<128x128xf32>, vector<90x128xf32> -> vector<90x128xf32>
    %172 = arith.addf %166, %171 : vector<90x128xf32>
    %c1_140 = arith.constant 1 : index
    %c0_141 = arith.constant 0 : index
    %173 = tpu.strided_load %arg14[%c1_140, %c0_141] {strides = array<i32: 2, 1>} : memref<192x128xf32, #tpu.memory_space<vmem>>, vector<90x128xf32>
    %cst_142 = arith.constant dense<0.000000e+00> : vector<90x128xf32>
    %174 = tpu.matmul %173, %169, %cst_142 {dimension_numbers = #tpu.dot_dimension_numbers<[1], [0], [0], [1], [0, 0, 1, 1], [], []>} : vector<90x128xf32>, vector<128x128xf32>, vector<90x128xf32> -> vector<90x128xf32>
    %175 = arith.addf %167, %174 : vector<90x128xf32>
    %c1_143 = arith.constant 1 : index
    %c0_144 = arith.constant 0 : index
    %c0_145 = arith.constant 0 : index
    %176 = vector.load %arg6[%c1_143, %c0_144, %c0_145] : memref<5x128x128xf32, #tpu.memory_space<vmem>>, vector<1x128x128xf32>
    %177 = vector.shape_cast %176 : vector<1x128x128xf32> to vector<128x128xf32>
    %c1_146 = arith.constant 1 : index
    %c0_147 = arith.constant 0 : index
    %178 = tpu.strided_load %arg14[%c1_146, %c0_147] {strides = array<i32: 2, 1>} : memref<192x128xf32, #tpu.memory_space<vmem>>, vector<90x128xf32>
    %cst_148 = arith.constant dense<0.000000e+00> : vector<90x128xf32>
    %179 = tpu.matmul %178, %177, %cst_148 {dimension_numbers = #tpu.dot_dimension_numbers<[1], [0], [0], [1], [0, 0, 1, 1], [], []>} : vector<90x128xf32>, vector<128x128xf32>, vector<90x128xf32> -> vector<90x128xf32>
    %180 = arith.addf %172, %179 : vector<90x128xf32>
    %c2_149 = arith.constant 2 : index
    %c0_150 = arith.constant 0 : index
    %181 = tpu.strided_load %arg14[%c2_149, %c0_150] {strides = array<i32: 2, 1>} : memref<192x128xf32, #tpu.memory_space<vmem>>, vector<90x128xf32>
    %cst_151 = arith.constant dense<0.000000e+00> : vector<90x128xf32>
    %182 = tpu.matmul %181, %177, %cst_151 {dimension_numbers = #tpu.dot_dimension_numbers<[1], [0], [0], [1], [0, 0, 1, 1], [], []>} : vector<90x128xf32>, vector<128x128xf32>, vector<90x128xf32> -> vector<90x128xf32>
    %183 = arith.addf %175, %182 : vector<90x128xf32>
    %c2_152 = arith.constant 2 : index
    %c0_153 = arith.constant 0 : index
    %c0_154 = arith.constant 0 : index
    %184 = vector.load %arg6[%c2_152, %c0_153, %c0_154] : memref<5x128x128xf32, #tpu.memory_space<vmem>>, vector<1x128x128xf32>
    %185 = vector.shape_cast %184 : vector<1x128x128xf32> to vector<128x128xf32>
    %c2_155 = arith.constant 2 : index
    %c0_156 = arith.constant 0 : index
    %186 = tpu.strided_load %arg14[%c2_155, %c0_156] {strides = array<i32: 2, 1>} : memref<192x128xf32, #tpu.memory_space<vmem>>, vector<90x128xf32>
    %cst_157 = arith.constant dense<0.000000e+00> : vector<90x128xf32>
    %187 = tpu.matmul %186, %185, %cst_157 {dimension_numbers = #tpu.dot_dimension_numbers<[1], [0], [0], [1], [0, 0, 1, 1], [], []>} : vector<90x128xf32>, vector<128x128xf32>, vector<90x128xf32> -> vector<90x128xf32>
    %188 = arith.addf %180, %187 : vector<90x128xf32>
    %c3_158 = arith.constant 3 : index
    %c0_159 = arith.constant 0 : index
    %189 = tpu.strided_load %arg14[%c3_158, %c0_159] {strides = array<i32: 2, 1>} : memref<192x128xf32, #tpu.memory_space<vmem>>, vector<90x128xf32>
    %cst_160 = arith.constant dense<0.000000e+00> : vector<90x128xf32>
    %190 = tpu.matmul %189, %185, %cst_160 {dimension_numbers = #tpu.dot_dimension_numbers<[1], [0], [0], [1], [0, 0, 1, 1], [], []>} : vector<90x128xf32>, vector<128x128xf32>, vector<90x128xf32> -> vector<90x128xf32>
    %191 = arith.addf %183, %190 : vector<90x128xf32>
    %c3_161 = arith.constant 3 : index
    %c0_162 = arith.constant 0 : index
    %c0_163 = arith.constant 0 : index
    %192 = vector.load %arg6[%c3_161, %c0_162, %c0_163] : memref<5x128x128xf32, #tpu.memory_space<vmem>>, vector<1x128x128xf32>
    %193 = vector.shape_cast %192 : vector<1x128x128xf32> to vector<128x128xf32>
    %c3_164 = arith.constant 3 : index
    %c0_165 = arith.constant 0 : index
    %194 = tpu.strided_load %arg14[%c3_164, %c0_165] {strides = array<i32: 2, 1>} : memref<192x128xf32, #tpu.memory_space<vmem>>, vector<90x128xf32>
    %cst_166 = arith.constant dense<0.000000e+00> : vector<90x128xf32>
    %195 = tpu.matmul %194, %193, %cst_166 {dimension_numbers = #tpu.dot_dimension_numbers<[1], [0], [0], [1], [0, 0, 1, 1], [], []>} : vector<90x128xf32>, vector<128x128xf32>, vector<90x128xf32> -> vector<90x128xf32>
    %196 = arith.addf %188, %195 : vector<90x128xf32>
    %c4_167 = arith.constant 4 : index
    %c0_168 = arith.constant 0 : index
    %197 = tpu.strided_load %arg14[%c4_167, %c0_168] {strides = array<i32: 2, 1>} : memref<192x128xf32, #tpu.memory_space<vmem>>, vector<90x128xf32>
    %cst_169 = arith.constant dense<0.000000e+00> : vector<90x128xf32>
    %198 = tpu.matmul %197, %193, %cst_169 {dimension_numbers = #tpu.dot_dimension_numbers<[1], [0], [0], [1], [0, 0, 1, 1], [], []>} : vector<90x128xf32>, vector<128x128xf32>, vector<90x128xf32> -> vector<90x128xf32>
    %199 = arith.addf %191, %198 : vector<90x128xf32>
    %c4_170 = arith.constant 4 : index
    %c0_171 = arith.constant 0 : index
    %c0_172 = arith.constant 0 : index
    %200 = vector.load %arg6[%c4_170, %c0_171, %c0_172] : memref<5x128x128xf32, #tpu.memory_space<vmem>>, vector<1x128x128xf32>
    %201 = vector.shape_cast %200 : vector<1x128x128xf32> to vector<128x128xf32>
    %c4_173 = arith.constant 4 : index
    %c0_174 = arith.constant 0 : index
    %202 = tpu.strided_load %arg14[%c4_173, %c0_174] {strides = array<i32: 2, 1>} : memref<192x128xf32, #tpu.memory_space<vmem>>, vector<90x128xf32>
    %cst_175 = arith.constant dense<0.000000e+00> : vector<90x128xf32>
    %203 = tpu.matmul %202, %201, %cst_175 {dimension_numbers = #tpu.dot_dimension_numbers<[1], [0], [0], [1], [0, 0, 1, 1], [], []>} : vector<90x128xf32>, vector<128x128xf32>, vector<90x128xf32> -> vector<90x128xf32>
    %204 = arith.addf %196, %203 : vector<90x128xf32>
    %c5_176 = arith.constant 5 : index
    %c0_177 = arith.constant 0 : index
    %205 = tpu.strided_load %arg14[%c5_176, %c0_177] {strides = array<i32: 2, 1>} : memref<192x128xf32, #tpu.memory_space<vmem>>, vector<90x128xf32>
    %cst_178 = arith.constant dense<0.000000e+00> : vector<90x128xf32>
    %206 = tpu.matmul %205, %201, %cst_178 {dimension_numbers = #tpu.dot_dimension_numbers<[1], [0], [0], [1], [0, 0, 1, 1], [], []>} : vector<90x128xf32>, vector<128x128xf32>, vector<90x128xf32> -> vector<90x128xf32>
    %207 = arith.addf %199, %206 : vector<90x128xf32>
    %208 = arith.maximumf %204, %207 : vector<90x128xf32>
    %209 = vector.broadcast %165 : vector<1x128xf32> to vector<90x128xf32>
    %210 = arith.addf %208, %209 : vector<90x128xf32>
    %cst_179 = arith.constant 0.000000e+00 : f32
    %211 = vector.broadcast %cst_179 : f32 to vector<90x128xf32>
    %212 = arith.cmpf ogt, %210, %211 : vector<90x128xf32>
    %cst_180 = arith.constant 0.000000e+00 : f32
    %213 = vector.broadcast %cst_180 : f32 to vector<90x128xf32>
    %214 = arith.minimumf %210, %213 : vector<90x128xf32>
    %215 = math.exp %214 : vector<90x128xf32>
    %cst_181 = arith.constant 1.000000e+00 : f32
    %216 = vector.broadcast %cst_181 : f32 to vector<90x128xf32>
    %217 = arith.subf %215, %216 : vector<90x128xf32>
    %218 = arith.select %212, %210, %217 : vector<90x128xi1>, vector<90x128xf32>
    %c0_182 = arith.constant 0 : index
    %c0_183 = arith.constant 0 : index
    %219 = vector.load %arg15[%c0_182, %c0_183] : memref<96x128xf32, #tpu.memory_space<vmem>>, vector<90x128xf32>
    tpu.vector_store %arg15[%c0_182, %c0_183], %218 {strides = array<i32>} : memref<96x128xf32, #tpu.memory_space<vmem>>, vector<90x128xf32>,
    %cst_184 = arith.constant 0.000000e+00 : f32
    %220 = vector.broadcast %cst_184 : f32 to vector<48x256xf32>
    %c0_185 = arith.constant 0 : index
    %c0_186 = arith.constant 0 : index
    %221 = vector.load %arg16[%c0_185, %c0_186] : memref<48x256xf32, #tpu.memory_space<vmem>>, vector<48x256xf32>
    tpu.vector_store %arg16[%c0_185, %c0_186], %220 {strides = array<i32>} : memref<48x256xf32, #tpu.memory_space<vmem>>, vector<48x256xf32>,
    %c0_187 = arith.constant 0 : index
    %c0_188 = arith.constant 0 : index
    %222 = vector.load %arg9[%c0_187, %c0_188] : memref<1x256xf32, #tpu.memory_space<vmem>>, vector<1x256xf32>
    %cst_189 = arith.constant 0.000000e+00 : f32
    %223 = vector.broadcast %cst_189 : f32 to vector<43x256xf32>
    %cst_190 = arith.constant 0.000000e+00 : f32
    %224 = vector.broadcast %cst_190 : f32 to vector<43x256xf32>
    %c0_191 = arith.constant 0 : index
    %c0_192 = arith.constant 0 : index
    %c0_193 = arith.constant 0 : index
    %225 = vector.load %arg8[%c0_191, %c0_192, %c0_193] : memref<5x128x256xf32, #tpu.memory_space<vmem>>, vector<1x128x256xf32>
    %226 = vector.shape_cast %225 : vector<1x128x256xf32> to vector<128x256xf32>
    %c0_194 = arith.constant 0 : index
    %c0_195 = arith.constant 0 : index
    %227 = tpu.strided_load %arg15[%c0_194, %c0_195] {strides = array<i32: 2, 1>} : memref<96x128xf32, #tpu.memory_space<vmem>>, vector<43x128xf32>
    %cst_196 = arith.constant dense<0.000000e+00> : vector<43x256xf32>
    %228 = tpu.matmul %227, %226, %cst_196 {dimension_numbers = #tpu.dot_dimension_numbers<[1], [0], [0], [1], [0, 0, 1, 1], [], []>} : vector<43x128xf32>, vector<128x256xf32>, vector<43x256xf32> -> vector<43x256xf32>
    %229 = arith.addf %223, %228 : vector<43x256xf32>
    %c1_197 = arith.constant 1 : index
    %c0_198 = arith.constant 0 : index
    %230 = tpu.strided_load %arg15[%c1_197, %c0_198] {strides = array<i32: 2, 1>} : memref<96x128xf32, #tpu.memory_space<vmem>>, vector<43x128xf32>
    %cst_199 = arith.constant dense<0.000000e+00> : vector<43x256xf32>
    %231 = tpu.matmul %230, %226, %cst_199 {dimension_numbers = #tpu.dot_dimension_numbers<[1], [0], [0], [1], [0, 0, 1, 1], [], []>} : vector<43x128xf32>, vector<128x256xf32>, vector<43x256xf32> -> vector<43x256xf32>
    %232 = arith.addf %224, %231 : vector<43x256xf32>
    %c1_200 = arith.constant 1 : index
    %c0_201 = arith.constant 0 : index
    %c0_202 = arith.constant 0 : index
    %233 = vector.load %arg8[%c1_200, %c0_201, %c0_202] : memref<5x128x256xf32, #tpu.memory_space<vmem>>, vector<1x128x256xf32>
    %234 = vector.shape_cast %233 : vector<1x128x256xf32> to vector<128x256xf32>
    %c1_203 = arith.constant 1 : index
    %c0_204 = arith.constant 0 : index
    %235 = tpu.strided_load %arg15[%c1_203, %c0_204] {strides = array<i32: 2, 1>} : memref<96x128xf32, #tpu.memory_space<vmem>>, vector<43x128xf32>
    %cst_205 = arith.constant dense<0.000000e+00> : vector<43x256xf32>
    %236 = tpu.matmul %235, %234, %cst_205 {dimension_numbers = #tpu.dot_dimension_numbers<[1], [0], [0], [1], [0, 0, 1, 1], [], []>} : vector<43x128xf32>, vector<128x256xf32>, vector<43x256xf32> -> vector<43x256xf32>
    %237 = arith.addf %229, %236 : vector<43x256xf32>
    %c2_206 = arith.constant 2 : index
    %c0_207 = arith.constant 0 : index
    %238 = tpu.strided_load %arg15[%c2_206, %c0_207] {strides = array<i32: 2, 1>} : memref<96x128xf32, #tpu.memory_space<vmem>>, vector<43x128xf32>
    %cst_208 = arith.constant dense<0.000000e+00> : vector<43x256xf32>
    %239 = tpu.matmul %238, %234, %cst_208 {dimension_numbers = #tpu.dot_dimension_numbers<[1], [0], [0], [1], [0, 0, 1, 1], [], []>} : vector<43x128xf32>, vector<128x256xf32>, vector<43x256xf32> -> vector<43x256xf32>
    %240 = arith.addf %232, %239 : vector<43x256xf32>
    %c2_209 = arith.constant 2 : index
    %c0_210 = arith.constant 0 : index
    %c0_211 = arith.constant 0 : index
    %241 = vector.load %arg8[%c2_209, %c0_210, %c0_211] : memref<5x128x256xf32, #tpu.memory_space<vmem>>, vector<1x128x256xf32>
    %242 = vector.shape_cast %241 : vector<1x128x256xf32> to vector<128x256xf32>
    %c2_212 = arith.constant 2 : index
    %c0_213 = arith.constant 0 : index
    %243 = tpu.strided_load %arg15[%c2_212, %c0_213] {strides = array<i32: 2, 1>} : memref<96x128xf32, #tpu.memory_space<vmem>>, vector<43x128xf32>
    %cst_214 = arith.constant dense<0.000000e+00> : vector<43x256xf32>
    %244 = tpu.matmul %243, %242, %cst_214 {dimension_numbers = #tpu.dot_dimension_numbers<[1], [0], [0], [1], [0, 0, 1, 1], [], []>} : vector<43x128xf32>, vector<128x256xf32>, vector<43x256xf32> -> vector<43x256xf32>
    %245 = arith.addf %237, %244 : vector<43x256xf32>
    %c3_215 = arith.constant 3 : index
    %c0_216 = arith.constant 0 : index
    %246 = tpu.strided_load %arg15[%c3_215, %c0_216] {strides = array<i32: 2, 1>} : memref<96x128xf32, #tpu.memory_space<vmem>>, vector<43x128xf32>
    %cst_217 = arith.constant dense<0.000000e+00> : vector<43x256xf32>
    %247 = tpu.matmul %246, %242, %cst_217 {dimension_numbers = #tpu.dot_dimension_numbers<[1], [0], [0], [1], [0, 0, 1, 1], [], []>} : vector<43x128xf32>, vector<128x256xf32>, vector<43x256xf32> -> vector<43x256xf32>
    %248 = arith.addf %240, %247 : vector<43x256xf32>
    %c3_218 = arith.constant 3 : index
    %c0_219 = arith.constant 0 : index
    %c0_220 = arith.constant 0 : index
    %249 = vector.load %arg8[%c3_218, %c0_219, %c0_220] : memref<5x128x256xf32, #tpu.memory_space<vmem>>, vector<1x128x256xf32>
    %250 = vector.shape_cast %249 : vector<1x128x256xf32> to vector<128x256xf32>
    %c3_221 = arith.constant 3 : index
    %c0_222 = arith.constant 0 : index
    %251 = tpu.strided_load %arg15[%c3_221, %c0_222] {strides = array<i32: 2, 1>} : memref<96x128xf32, #tpu.memory_space<vmem>>, vector<43x128xf32>
    %cst_223 = arith.constant dense<0.000000e+00> : vector<43x256xf32>
    %252 = tpu.matmul %251, %250, %cst_223 {dimension_numbers = #tpu.dot_dimension_numbers<[1], [0], [0], [1], [0, 0, 1, 1], [], []>} : vector<43x128xf32>, vector<128x256xf32>, vector<43x256xf32> -> vector<43x256xf32>
    %253 = arith.addf %245, %252 : vector<43x256xf32>
    %c4_224 = arith.constant 4 : index
    %c0_225 = arith.constant 0 : index
    %254 = tpu.strided_load %arg15[%c4_224, %c0_225] {strides = array<i32: 2, 1>} : memref<96x128xf32, #tpu.memory_space<vmem>>, vector<43x128xf32>
    %cst_226 = arith.constant dense<0.000000e+00> : vector<43x256xf32>
    %255 = tpu.matmul %254, %250, %cst_226 {dimension_numbers = #tpu.dot_dimension_numbers<[1], [0], [0], [1], [0, 0, 1, 1], [], []>} : vector<43x128xf32>, vector<128x256xf32>, vector<43x256xf32> -> vector<43x256xf32>
    %256 = arith.addf %248, %255 : vector<43x256xf32>
    %c4_227 = arith.constant 4 : index
    %c0_228 = arith.constant 0 : index
    %c0_229 = arith.constant 0 : index
    %257 = vector.load %arg8[%c4_227, %c0_228, %c0_229] : memref<5x128x256xf32, #tpu.memory_space<vmem>>, vector<1x128x256xf32>
    %258 = vector.shape_cast %257 : vector<1x128x256xf32> to vector<128x256xf32>
    %c4_230 = arith.constant 4 : index
    %c0_231 = arith.constant 0 : index
    %259 = tpu.strided_load %arg15[%c4_230, %c0_231] {strides = array<i32: 2, 1>} : memref<96x128xf32, #tpu.memory_space<vmem>>, vector<43x128xf32>
    %cst_232 = arith.constant dense<0.000000e+00> : vector<43x256xf32>
    %260 = tpu.matmul %259, %258, %cst_232 {dimension_numbers = #tpu.dot_dimension_numbers<[1], [0], [0], [1], [0, 0, 1, 1], [], []>} : vector<43x128xf32>, vector<128x256xf32>, vector<43x256xf32> -> vector<43x256xf32>
    %261 = arith.addf %253, %260 : vector<43x256xf32>
    %c5_233 = arith.constant 5 : index
    %c0_234 = arith.constant 0 : index
    %262 = tpu.strided_load %arg15[%c5_233, %c0_234] {strides = array<i32: 2, 1>} : memref<96x128xf32, #tpu.memory_space<vmem>>, vector<43x128xf32>
    %cst_235 = arith.constant dense<0.000000e+00> : vector<43x256xf32>
    %263 = tpu.matmul %262, %258, %cst_235 {dimension_numbers = #tpu.dot_dimension_numbers<[1], [0], [0], [1], [0, 0, 1, 1], [], []>} : vector<43x128xf32>, vector<128x256xf32>, vector<43x256xf32> -> vector<43x256xf32>
    %264 = arith.addf %256, %263 : vector<43x256xf32>
    %265 = arith.maximumf %261, %264 : vector<43x256xf32>
    %266 = vector.broadcast %222 : vector<1x256xf32> to vector<43x256xf32>
    %267 = arith.addf %265, %266 : vector<43x256xf32>
    %cst_236 = arith.constant 0.000000e+00 : f32
    %268 = vector.broadcast %cst_236 : f32 to vector<43x256xf32>
    %269 = arith.cmpf ogt, %267, %268 : vector<43x256xf32>
    %cst_237 = arith.constant 0.000000e+00 : f32
    %270 = vector.broadcast %cst_237 : f32 to vector<43x256xf32>
    %271 = arith.minimumf %267, %270 : vector<43x256xf32>
    %272 = math.exp %271 : vector<43x256xf32>
    %cst_238 = arith.constant 1.000000e+00 : f32
    %273 = vector.broadcast %cst_238 : f32 to vector<43x256xf32>
    %274 = arith.subf %272, %273 : vector<43x256xf32>
    %275 = arith.select %269, %267, %274 : vector<43x256xi1>, vector<43x256xf32>
    %c0_239 = arith.constant 0 : index
    %c0_240 = arith.constant 0 : index
    %276 = vector.load %arg16[%c0_239, %c0_240] : memref<48x256xf32, #tpu.memory_space<vmem>>, vector<43x256xf32>
    tpu.vector_store %arg16[%c0_239, %c0_240], %275 {strides = array<i32>} : memref<48x256xf32, #tpu.memory_space<vmem>>, vector<43x256xf32>,
    %c0_241 = arith.constant 0 : index
    %c0_242 = arith.constant 0 : index
    %277 = vector.load %arg16[%c0_241, %c0_242] : memref<48x256xf32, #tpu.memory_space<vmem>>, vector<48x256xf32>
    %c0_243 = arith.constant 0 : index
    %c0_244 = arith.constant 0 : index
    %c0_245 = arith.constant 0 : index
    %278 = vector.load %arg10[%c0_243, %c0_244, %c0_245] : memref<2x48x256xf32, #tpu.memory_space<vmem>>, vector<1x48x256xf32>
    %279 = vector.shape_cast %278 : vector<1x48x256xf32> to vector<48x256xf32>
    %280 = arith.mulf %277, %279 : vector<48x256xf32>
    %281 = vector.shape_cast %280 : vector<48x256xf32> to vector<1x48x256xf32>
    %cst_246 = arith.constant dense<0.000000e+00> : vector<1xf32>
    %282 = vector.multi_reduction <add>, %281, %cst_246 [1, 2] : vector<1x48x256xf32> to vector<1xf32>
    %283 = vector.shape_cast %282 : vector<1xf32> to vector<1x1x1xf32>
    %284 = vector.extract %283[0, 0, 0] : f32 from vector<1x1x1xf32>
    %c1_247 = arith.constant 1 : index
    %c0_248 = arith.constant 0 : index
    %c0_249 = arith.constant 0 : index
    %285 = vector.load %arg10[%c1_247, %c0_248, %c0_249] : memref<2x48x256xf32, #tpu.memory_space<vmem>>, vector<1x48x256xf32>
    %286 = vector.shape_cast %285 : vector<1x48x256xf32> to vector<48x256xf32>
    %287 = arith.mulf %277, %286 : vector<48x256xf32>
    %288 = vector.shape_cast %287 : vector<48x256xf32> to vector<1x48x256xf32>
    %cst_250 = arith.constant dense<0.000000e+00> : vector<1xf32>
    %289 = vector.multi_reduction <add>, %288, %cst_250 [1, 2] : vector<1x48x256xf32> to vector<1xf32>
    %290 = vector.shape_cast %289 : vector<1xf32> to vector<1x1x1xf32>
    %291 = vector.extract %290[0, 0, 0] : f32 from vector<1x1x1xf32>
    %292 = tpu.iota {dimensions = array<i32: 1>} : vector<1x128xi32>
    %c0_i32 = arith.constant 0 : i32
    %293 = vector.broadcast %c0_i32 : i32 to vector<1x128xi32>
    %294 = arith.cmpi eq, %292, %293 : vector<1x128xi32>
    %cst_251 = arith.constant 0.000000e+00 : f32
    %295 = vector.broadcast %284 : f32 to vector<1x128xf32>
    %296 = vector.broadcast %cst_251 : f32 to vector<1x128xf32>
    %297 = arith.select %294, %295, %296 : vector<1x128xi1>, vector<1x128xf32>
    %c1_i32 = arith.constant 1 : i32
    %298 = vector.broadcast %c1_i32 : i32 to vector<1x128xi32>
    %299 = arith.cmpi eq, %292, %298 : vector<1x128xi32>
    %cst_252 = arith.constant 0.000000e+00 : f32
    %300 = vector.broadcast %291 : f32 to vector<1x128xf32>
    %301 = vector.broadcast %cst_252 : f32 to vector<1x128xf32>
    %302 = arith.select %299, %300, %301 : vector<1x128xi1>, vector<1x128xf32>
    %303 = arith.addf %297, %302 : vector<1x128xf32>
    %c0_253 = arith.constant 0 : index
    %c0_254 = arith.constant 0 : index
    %304 = vector.load %arg11[%c0_253, %c0_254] : memref<1x128xf32, #tpu.memory_space<vmem>>, vector<1x128xf32>
    %305 = arith.addf %303, %304 : vector<1x128xf32>
    %c0_255 = arith.constant 0 : index
    %c0_256 = arith.constant 0 : index
    %c0_257 = arith.constant 0 : index
    %306 = vector.load %arg12[%c0_255, %c0_256, %c0_257] : memref<1x1x128xf32, #tpu.memory_space<vmem>>, vector<1x1x128xf32>
    %307 = vector.shape_cast %306 : vector<1x1x128xf32> to vector<1x128xf32>
    %308 = vector.shape_cast %305 : vector<1x128xf32> to vector<1x1x128xf32>
    tpu.vector_store %arg12[%c0_255, %c0_256, %c0_257], %308 {strides = array<i32>} : memref<1x1x128xf32, #tpu.memory_space<vmem>>, vector<1x1x128xf32>,
    return
  }
  func.func @transform_0(%arg0: i32) -> (i32, i32, i32) {
    %c0_i32 = arith.constant 0 : i32
    %c0_i32_0 = arith.constant 0 : i32
    %c0_i32_1 = arith.constant 0 : i32
    return %arg0, %c0_i32, %c0_i32_0 : i32, i32, i32
  }
  func.func @transform_1(%arg0: i32) -> (i32, i32) {
    %c0_i32 = arith.constant 0 : i32
    %c0_i32_0 = arith.constant 0 : i32
    %c0_i32_1 = arith.constant 0 : i32
    return %c0_i32, %c0_i32_0 : i32, i32
  }
  func.func @transform_2(%arg0: i32) -> (i32, i32) {
    %c0_i32 = arith.constant 0 : i32
    %c0_i32_0 = arith.constant 0 : i32
    %c0_i32_1 = arith.constant 0 : i32
    return %c0_i32, %c0_i32_0 : i32, i32
  }
  func.func @transform_3(%arg0: i32) -> (i32, i32, i32) {
    %c0_i32 = arith.constant 0 : i32
    %c0_i32_0 = arith.constant 0 : i32
    %c0_i32_1 = arith.constant 0 : i32
    %c0_i32_2 = arith.constant 0 : i32
    return %c0_i32, %c0_i32_0, %c0_i32_1 : i32, i32, i32
  }
  func.func @transform_4(%arg0: i32) -> (i32, i32) {
    %c0_i32 = arith.constant 0 : i32
    %c0_i32_0 = arith.constant 0 : i32
    %c0_i32_1 = arith.constant 0 : i32
    return %c0_i32, %c0_i32_0 : i32, i32
  }
  func.func @transform_5(%arg0: i32) -> (i32, i32, i32) {
    %c0_i32 = arith.constant 0 : i32
    %c0_i32_0 = arith.constant 0 : i32
    %c0_i32_1 = arith.constant 0 : i32
    %c0_i32_2 = arith.constant 0 : i32
    return %c0_i32, %c0_i32_0, %c0_i32_1 : i32, i32, i32
  }
  func.func @transform_6(%arg0: i32) -> (i32, i32) {
    %c0_i32 = arith.constant 0 : i32
    %c0_i32_0 = arith.constant 0 : i32
    %c0_i32_1 = arith.constant 0 : i32
    return %c0_i32, %c0_i32_0 : i32, i32
  }
  func.func @transform_7(%arg0: i32) -> (i32, i32, i32) {
    %c0_i32 = arith.constant 0 : i32
    %c0_i32_0 = arith.constant 0 : i32
    %c0_i32_1 = arith.constant 0 : i32
    %c0_i32_2 = arith.constant 0 : i32
    return %c0_i32, %c0_i32_0, %c0_i32_1 : i32, i32, i32
  }
  func.func @transform_8(%arg0: i32) -> (i32, i32) {
    %c0_i32 = arith.constant 0 : i32
    %c0_i32_0 = arith.constant 0 : i32
    %c0_i32_1 = arith.constant 0 : i32
    return %c0_i32, %c0_i32_0 : i32, i32
  }
  func.func @transform_9(%arg0: i32) -> (i32, i32, i32) {
    %c0_i32 = arith.constant 0 : i32
    %c0_i32_0 = arith.constant 0 : i32
    %c0_i32_1 = arith.constant 0 : i32
    %c0_i32_2 = arith.constant 0 : i32
    return %c0_i32, %c0_i32_0, %c0_i32_1 : i32, i32, i32
  }
  func.func @transform_10(%arg0: i32) -> (i32, i32) {
    %c0_i32 = arith.constant 0 : i32
    %c0_i32_0 = arith.constant 0 : i32
    %c0_i32_1 = arith.constant 0 : i32
    return %c0_i32, %c0_i32_0 : i32, i32
  }
  func.func @transform_11(%arg0: i32) -> (i32, i32, i32) {
    %c0_i32 = arith.constant 0 : i32
    %c0_i32_0 = arith.constant 0 : i32
    %c0_i32_1 = arith.constant 0 : i32
    return %arg0, %c0_i32, %c0_i32_0 : i32, i32, i32
  }
}

</mosaic_0001>

<bundles_post_ra>
// kernel: tpu_custom_call.1
= control target key start
LH: loop header
LB: loop body
LE: loop exit
PB: predicated region body
PF: predicated region fallthrough
CT: control target
= control target key end

     0   :  { %s16260_s0 = inlined_call_operand.vmem [shape: f32[2,768,16], index: 0, kind: input, shape index: {}]   ;;  %s16261_s1 = inlined_call_operand.vmem [shape: f32[16,128], index: 1, kind: input, shape index: {}]   ;;  %s16262_s2 = inlined_call_operand.vmem [shape: f32[1,128], index: 2, kind: input, shape index: {}]   ;;  %s16263_s3 = inlined_call_operand.hbm [shape: f32[5,128,128], index: 3, kind: input, shape index: {}]   ;;  %s16264_s4 = inlined_call_operand.vmem [shape: f32[1,128], index: 4, kind: input, shape index: {}]   ;;  %s16265_s5 = inlined_call_operand.hbm [shape: f32[5,128,128], index: 5, kind: input, shape index: {}]   ;;  %s16266_s6 = inlined_call_operand.vmem [shape: f32[1,128], index: 6, kind: input, shape index: {}]   ;;  %s16267_s7 = inlined_call_operand.vmem [shape: f32[5,128,256], index: 7, kind: input, shape index: {}]   ;;  %s16268_s8 = inlined_call_operand.vmem [shape: f32[1,256], index: 8, kind: input, shape index: {}]   ;;  %s16269_s9 = inlined_call_operand.vmem [shape: f32[2,48,256], index: 9, kind: input, shape index: {}]   ;;  %s16270_s10 = inlined_call_operand.vmem [shape: f32[1,128], index: 10, kind: input, shape index: {}]   ;;  %s16271_s11 = inlined_call_operand.hbm [shape: f32[2,1,128], index: 11, kind: output, shape index: {}]  }
   0x1   :  { %16354 = sst [smem:[#allocation97_spill]] %s16260_s0 }
   0x2   :  { %16 = vsyncpa [#allocation7], 0 }
   0x3   :  { %17 = vsyncpa [#allocation10], 0 }
   0x4   :  { %18 = vsyncpa [#allocation8], 0 }
   0x5   :  { %20 = vsyncpa [#allocation8 + $0x1], 0  ;;  %s12352_s17 = smov 0   ;;  %s12354_s18 = smov 0  }
   0x6   :  { %s12356_s19 = smov 0   ;;  %s12358_s20 = smov 0  }
   0x7 LB: > { %s12373_s21 = sadd.s32 4294967295, %s12284_s20   ;;  %s8839_s22 = sadd.s32 4294967294, %s12284_s20   ;;  %s12284_s20 = sphi %s12358_s20, %s16706_s20   ;;  %s12280_s19 = sphi %s12356_s19, %s16705_s19   ;;  %s12276_s18 = sphi %s12354_s18, %s16704_s18   ;;  %s12272_s17 = sphi %s12352_s17, %s16703_s17  }
   0x8   : > { %s12377_s23 = sadd.s32 1, %s12284_s20   ;;  %s269_s24 = sadd.s32 1, %s12280_s19 }
   0x9   : > { %s266_s25 = ssub.s32 %s12284_s20, %s12377_s23  ;;  %p279_p0 = scmp.ne.s32.totalorder %s12280_s19, %s12276_s18 }
   0xa   : > { %p267_p1 = scmp.eq.s32.totalorder %s266_s25, 0  ;;  %p280_p2 = scmp.eq.s32.totalorder %s12373_s21, 1 }
   0xb   : > { %p285_p3 = scmp.ne.s32.totalorder %s12276_s18, %s12272_s17  ;;  %p286_p4 = scmp.eq.s32.totalorder %s8839_s22, 1 }
   0xc   : > { %s12388_s26 = scalar_select %p267_p1, %s12280_s19, %s269_s24  }
   0xd   : > { %p12390_p5 = por %p280_p2, %p279_p0  ;;  %p12394_p6 = por %p286_p4, %p285_p3 }
   0xe   : > { %16355 = sst [smem:[#allocation15_spill]] %s12388_s26  ;;  %p8840_p7 = scmp.ge.s32.totalorder %s12284_s20, 1 }
   0xf   : > { %s16357_s28 = scalar_select %p12394_p6, 1, 0 }
  0x10   : > { %p293_p8 = scmp.lt.s32.totalorder %s12284_s20, 3  ;;  %p16272_p9 = scmp.eq.s32.totalorder %s12373_s21, 0 }
  0x11   : > { %s12286_s30 = smov [#allocation6]   ;;  %s12287_s14 = smov [#allocation9]  }
  0x12   : > { %p12401_p10 = pnand %p8840_p7, %p293_p8  ;;  %s311_s12 = sshll.u32 %s12286_s30, 4  ;;  %s312_s12 = int_to_ptr.vmem [resolvable:$true] %s311_s12 }
  0x13   : > { %s327_s15 = sshll.u32 %s12287_s14, 4  ;;  %s12175_s16 = scalar_lea.vmem %s312_s12, 10240  ;;  %s328_s15 = int_to_ptr.vmem [resolvable:$true] %s327_s15 }
  0x14   : > { %p11912_p11 = pneg %p12401_p10  ;;  %p12176_p0 = scmp.ne.s32.totalorder %s312_s12, %s12175_s16 }
  0x15   : > { %p12183_p3 = scmp.lt.s32.totalorder %s312_s12, %s312_s12  ;;  %p12184_p4 = scmp.lt.s32.totalorder %s12175_s16, %s12175_s16 }
  0x16   : > { %p12409_p12 = pnand %p16272_p9, %p11912_p11 }
  0x17   : > { %p12185_p7 = por %p12184_p4, %p12183_p3 }
  0x18   : > { %p12166_p13 = pneg %p12409_p12 }
  0x1a   : > { %p12178_p1 = pnand %p12176_p0, %p12166_p13 }
  0x1c   : > { %p12179_p2 = pneg %p12178_p1 }
  0x1e   : > { %p12186_p8 = pnand %p12185_p7, %p12179_p2 }
  0x20   : > { %12189 = shalt.err (!%p12186_p8)
}
  0x21   : > { %s12288_s22 = smov 128   ;;  %s12289_s24 = smov 8  }
  0x22   : > { %11915 = dma.hbm_to_vmem [thread:$0]  (!%p12409_p12), %s16263_s3, 10240, %s312_s12, [#allocation7], %s12288_s22, %s12288_s22, %s12289_s24  }
  0x23   : > { %s12201_s14 = scalar_lea.vmem %s328_s15, 10240  ;;  %p12209_p9 = scmp.lt.s32.totalorder %s328_s15, %s328_s15 }
  0x24   : > { %p12202_p11 = scmp.ne.s32.totalorder %s328_s15, %s12201_s14  ;;  %p12210_p6 = scmp.lt.s32.totalorder %s12201_s14, %s12201_s14 }
  0x26   : > { %p12204_p0 = pnand %p12202_p11, %p12166_p13  ;;  %p12211_p3 = por %p12210_p6, %p12209_p9 }
  0x28   : > { %p12205_p1 = pneg %p12204_p0 }
  0x2a   : > { %p12212_p2 = pnand %p12211_p3, %p12205_p1 }
  0x2c   : > { %12215 = shalt.err (!%p12212_p2)
}
  0x2d   : > { %11918 = dma.hbm_to_vmem [thread:$0]  (!%p12409_p12), %s16265_s5, 10240, %s328_s15, [#allocation10], %s12288_s22, %s12288_s22, %s12289_s24  }
  0x2e   : > { %366 = sbr.rel (%p12401_p10) target bundleno = 1966 (0x7ae), region = 64 }
  0x33   : > { %p16360_p4 = scmp.eq.s32.totalorder %s12373_s21, 0 }
  0x35   : > { %12259 = dma.done.wait (%p16360_p4), [#allocation7], 10240   ;;  %p16361_p13 = pmov %p16360_p4 }
  0x36   : > { %p16362_p7 = pmov %p16360_p4 }
  0x37   : > { %12261 = vsyncadd (%p16361_p13), [#allocation7], 4294957056 }
  0x38   : > { %12263 = dma.done.wait (%p16362_p7), [#allocation10], 10240   ;;  %p16363_p6 = pmov %p16360_p4 }
  0x39   : > { %p409_p9 = scmp.lt.s32.totalorder %s12373_s21, 1  ;;  %s16364_s0 = sld [smem:[#allocation97_spill]]  ;;  %v12451_v0 = vld [vmem:[%s16261_s1 + $0x8] sm:$0xff]  ;;  %v12456_v1 = vld [vmem:[%s16261_s1] sm:$0xff]  ;;  %vm448_vm0 = vcmask 130048  }
  0x3a   : > { %12265 = vsyncadd (%p16363_p6), [#allocation10], 4294957056  ;;  %10229 = vmatprep.subr.mxu0 %v12451_v0  ;;  %10257 = vmatprep.subr.mxu1 %v12451_v0  ;;  %s407_s22 = sand.u32 1, %s12276_s18   ;;  %s9278_s14 = sshll.u32 %s12373_s21, 4 }
  0x3b   : > { %s410_s26 = scalar_select %p409_p9, %s12373_s21, 1  ;;  %10230 = vmatpush3.msra.mxu0 %v12451_v0  ;;  %10258 = vmatpush3.msra.mxu1 %v12451_v0 }
  0x3c   : > { %10231 = vmatprep.subr.mxu0 %v12456_v1  ;;  %10259 = vmatprep.subr.mxu1 %v12456_v1  ;;  %s408_s16 = scalar_lea.vmem [#allocation11], %s407_s22  ;;  %s8760_s29 = scalar_lea.hbm %s16271_s11, %s9278_s14 }
  0x3d   : > { %s11897_s12 = smul.u32 768, %s410_s26  ;;  %10232 = vmatpush3.msra.mxu0 %v12456_v1  ;;  %10260 = vmatpush3.msra.mxu1 %v12456_v1  ;;  %s8762_s26 = sshll.u32 %s408_s16, 4  ;;  %s8763_s26 = int_to_ptr.vmem [resolvable:$true] %s8762_s26 }
  0x3e   : > { %10285 = vmatprep.subr.mxu0 %v12451_v0  ;;  %10313 = vmatprep.subr.mxu1 %v12451_v0 }
  0x3f   : > { %s12446_s15 = scalar_lea.vmem %s16364_s0, %s11897_s12  ;;  %s12216_s0 = scalar_lea.vmem %s8763_s26, 16 }
  0x40   : > { %v417_v2 = vld [vmem:[%s12446_s15] ss:$2 sm:$0xff]  ;;  %v8879_v3 = vld [vmem:[%s12446_s15 + $0x1] ss:$2 sm:$0xff]  ;;  %v8848_v4 = vld [vmem:[%s12446_s15 + $0x10] ss:$2 sm:$0xff]  ;;  %p12217_p10 = scmp.ne.s32.totalorder %s8763_s26, %s12216_s0 }
  0x41   : > { %v8880_v5 = vld [vmem:[%s12446_s15 + $0x11] ss:$2 sm:$0xff]  ;;  %10233 = vmatprep.mubr.msk.f32.mxu0 %vm448_vm0, %v417_v2  ;;  %10261 = vmatprep.mubr.msk.f32.mxu1 %vm448_vm0, %v8879_v3  ;;  %v8849_v6 = vld [vmem:[%s12446_s15 + $0x20] ss:$2 sm:$0xff]  ;;  %v8881_v7 = vld [vmem:[%s12446_s15 + $0x21] ss:$2 sm:$0xff] }
  0x42   : > { %10234 = vmatmul.mubr.msk.f32.vlgmr.msra.gmra.mxu0 %vm448_vm0, %v8848_v4  ;;  %10262 = vmatmul.mubr.msk.f32.vlgmr.msra.gmra.mxu1 %vm448_vm0, %v8880_v5  ;;  %v8850_v8 = vld [vmem:[%s12446_s15 + $0x30] ss:$2 sm:$0xff]  ;;  %v8882_v9 = vld [vmem:[%s12446_s15 + $0x31] ss:$2 sm:$0xff]  ;;  %v8851_v10 = vld [vmem:[%s12446_s15 + $0x40] ss:$2 sm:$0xff]  ;;  %p12218_p12 = pnand %p12217_p10, %p12390_p5 }
  0x43   : > { %10286 = vmatpush3.msra.mxu0 %v12451_v0  ;;  %10314 = vmatpush3.msra.mxu1 %v12451_v0  ;;  %v8883_v11 = vld [vmem:[%s12446_s15 + $0x41] ss:$2 sm:$0xff]  ;;  %v8852_v12 = vld [vmem:[%s12446_s15 + $0x50] ss:$2 sm:$0xff]  ;;  %v8884_v13 = vld [vmem:[%s12446_s15 + $0x51] ss:$2 sm:$0xff] }
  0x44   : > { %10236 = vmatprep.mubr.msk.f32.mxu0 %vm448_vm0, %v8849_v6  ;;  %10264 = vmatprep.mubr.msk.f32.mxu1 %vm448_vm0, %v8881_v7  ;;  %v8853_v14 = vld [vmem:[%s12446_s15 + $0x60] ss:$2 sm:$0xff]  ;;  %v8885_v15 = vld [vmem:[%s12446_s15 + $0x61] ss:$2 sm:$0xff]  ;;  %v8854_v16 = vld [vmem:[%s12446_s15 + $0x70] ss:$2 sm:$0xff]  ;;  %p12219_p8 = pneg %p12218_p12 }
  0x45   : > { %10287 = vmatprep.subr.mxu0 %v12456_v1  ;;  %10315 = vmatprep.subr.mxu1 %v12456_v1  ;;  %v8886_v17 = vld [vmem:[%s12446_s15 + $0x71] ss:$2 sm:$0xff]  ;;  %v8855_v18 = vld [vmem:[%s12446_s15 + $0x80] ss:$2 sm:$0xff]  ;;  %v8887_v19 = vld [vmem:[%s12446_s15 + $0x81] ss:$2 sm:$0xff] }
  0x46   : > { %10237 = vmatmul.mubr.msk.f32.gmra.mxu0 %vm448_vm0, %v8850_v8  ;;  %10265 = vmatmul.mubr.msk.f32.gmra.mxu1 %vm448_vm0, %v8882_v9  ;;  %v8856_v20 = vld [vmem:[%s12446_s15 + $0x90] ss:$2 sm:$0xff]  ;;  %v8888_v21 = vld [vmem:[%s12446_s15 + $0x91] ss:$2 sm:$0xff]  ;;  %v8857_v22 = vld [vmem:[%s12446_s15 + $0xa0] ss:$2 sm:$0xff] }
  0x47   : > { %10239 = vmatprep.mubr.msk.f32.mxu0 %vm448_vm0, %v8851_v10  ;;  %10267 = vmatprep.mubr.msk.f32.mxu1 %vm448_vm0, %v8883_v11  ;;  %v8889_v23 = vld [vmem:[%s12446_s15 + $0xa1] ss:$2 sm:$0xff]  ;;  %v8858_v24 = vld [vmem:[%s12446_s15 + $0xb0] ss:$2 sm:$0xff]  ;;  %v8890_v25 = vld [vmem:[%s12446_s15 + $0xb1] ss:$2 sm:$0xff] }
  0x48   : > { %10288 = vmatpush3.msra.mxu0 %v12456_v1  ;;  %10316 = vmatpush3.msra.mxu1 %v12456_v1  ;;  %v8859_v26 = vld [vmem:[%s12446_s15 + $0xc0] ss:$2 sm:$0xff]  ;;  %v8891_v27 = vld [vmem:[%s12446_s15 + $0xc1] ss:$2 sm:$0xff]  ;;  %v8860_v28 = vld [vmem:[%s12446_s15 + $0xd0] ss:$2 sm:$0xff] }
  0x49   : > { %10341 = vmatprep.subr.mxu0 %v12451_v0  ;;  %10369 = vmatprep.subr.mxu1 %v12451_v0  ;;  %v8892_v29 = vld [vmem:[%s12446_s15 + $0xd1] ss:$2 sm:$0xff]  ;;  %v8861_v30 = vld [vmem:[%s12446_s15 + $0xe0] ss:$2 sm:$0xff]  ;;  %v8893_v31 = vld [vmem:[%s12446_s15 + $0xe1] ss:$2 sm:$0xff] }
  0x4a   : > { %10240 = vmatmul.mubr.msk.f32.gmra.mxu0 %vm448_vm0, %v8852_v12  ;;  %10268 = vmatmul.mubr.msk.f32.gmra.mxu1 %vm448_vm0, %v8884_v13  ;;  %v8862_v32 = vld [vmem:[%s12446_s15 + $0xf0] ss:$2 sm:$0xff]  ;;  %v8894_v33 = vld [vmem:[%s12446_s15 + $0xf1] ss:$2 sm:$0xff]  ;;  %v8928_v34 = vld [vmem:[%s12446_s15 + $0x100] ss:$2 sm:$0xff] }
  0x4b   : > { %10242 = vmatprep.mubr.msk.f32.mxu0 %vm448_vm0, %v8853_v14  ;;  %10270 = vmatprep.mubr.msk.f32.mxu1 %vm448_vm0, %v8885_v15  ;;  %v8960_v35 = vld [vmem:[%s12446_s15 + $0x101] ss:$2 sm:$0xff]  ;;  %v8929_v36 = vld [vmem:[%s12446_s15 + $0x110] ss:$2 sm:$0xff]  ;;  %v8961_v37 = vld [vmem:[%s12446_s15 + $0x111] ss:$2 sm:$0xff] }
  0x4c   : > { %v8930_v38 = vld [vmem:[%s12446_s15 + $0x120] ss:$2 sm:$0xff]  ;;  %v8962_v39 = vld [vmem:[%s12446_s15 + $0x121] ss:$2 sm:$0xff]  ;;  %v8931_v40 = vld [vmem:[%s12446_s15 + $0x130] ss:$2 sm:$0xff] }
  0x4d   : > { %v8963_v41 = vld [vmem:[%s12446_s15 + $0x131] ss:$2 sm:$0xff]  ;;  %v8932_v42 = vld [vmem:[%s12446_s15 + $0x140] ss:$2 sm:$0xff]  ;;  %v8964_v43 = vld [vmem:[%s12446_s15 + $0x141] ss:$2 sm:$0xff] }
  0x4e   : > { %10243 = vmatmul.mubr.msk.f32.gmra.mxu0 %vm448_vm0, %v8854_v16  ;;  %10271 = vmatmul.mubr.msk.f32.gmra.mxu1 %vm448_vm0, %v8886_v17  ;;  %v8933_v44 = vld [vmem:[%s12446_s15 + $0x150] ss:$2 sm:$0xff]  ;;  %v8965_v45 = vld [vmem:[%s12446_s15 + $0x151] ss:$2 sm:$0xff]  ;;  %v8934_v46 = vld [vmem:[%s12446_s15 + $0x160] ss:$2 sm:$0xff] }
  0x4f   : > { %10245 = vmatprep.mubr.msk.f32.mxu0 %vm448_vm0, %v8855_v18  ;;  %10273 = vmatprep.mubr.msk.f32.mxu1 %vm448_vm0, %v8887_v19  ;;  %v8966_v47 = vld [vmem:[%s12446_s15 + $0x161] ss:$2 sm:$0xff]  ;;  %v8935_v48 = vld [vmem:[%s12446_s15 + $0x170] ss:$2 sm:$0xff]  ;;  %v8967_v49 = vld [vmem:[%s12446_s15 + $0x171] ss:$2 sm:$0xff] }
  0x50   : > { %v8936_v50 = vld [vmem:[%s12446_s15 + $0x180] ss:$2 sm:$0xff]  ;;  %v8968_v51 = vld [vmem:[%s12446_s15 + $0x181] ss:$2 sm:$0xff]  ;;  %v8937_v52 = vld [vmem:[%s12446_s15 + $0x190] ss:$2 sm:$0xff] }
  0x51   : > { %v8969_v53 = vld [vmem:[%s12446_s15 + $0x191] ss:$2 sm:$0xff]  ;;  %v8938_v54 = vld [vmem:[%s12446_s15 + $0x1a0] ss:$2 sm:$0xff]  ;;  %v8970_v55 = vld [vmem:[%s12446_s15 + $0x1a1] ss:$2 sm:$0xff] }
  0x52   : > { %10246 = vmatmul.mubr.msk.f32.gmra.mxu0 %vm448_vm0, %v8856_v20  ;;  %10274 = vmatmul.mubr.msk.f32.gmra.mxu1 %vm448_vm0, %v8888_v21  ;;  %v8939_v56 = vld [vmem:[%s12446_s15 + $0x1b0] ss:$2 sm:$0xff]  ;;  %v8971_v57 = vld [vmem:[%s12446_s15 + $0x1b1] ss:$2 sm:$0xff]  ;;  %v8940_v58 = vld [vmem:[%s12446_s15 + $0x1c0] ss:$2 sm:$0xff] }
  0x53   : > { %10248 = vmatprep.mubr.msk.f32.mxu0 %vm448_vm0, %v8857_v22  ;;  %10276 = vmatprep.mubr.msk.f32.mxu1 %vm448_vm0, %v8889_v23  ;;  %v8972_v59 = vld [vmem:[%s12446_s15 + $0x1c1] ss:$2 sm:$0xff]  ;;  %v8941_v60 = vld [vmem:[%s12446_s15 + $0x1d0] ss:$2 sm:$0xff]  ;;  %v8973_v61 = vld [vmem:[%s12446_s15 + $0x1d1] ss:$2 sm:$0xff] }
  0x54   : > { %v8942_v62 = vld [vmem:[%s12446_s15 + $0x1e0] ss:$2 sm:$0xff]  ;;  %v8974_v63 = vld [vmem:[%s12446_s15 + $0x1e1] ss:$2 sm:$0xff]  ;;  %v9009_v4 = vld [vmem:[%s12446_s15 + $0x210] ss:$2 sm:$0xff] }
  0x55   : > { %v9008_v2 = vld [vmem:[%s12446_s15 + $0x200] ss:$2 sm:$0xff]  ;;  %v9040_v3 = vld [vmem:[%s12446_s15 + $0x201] ss:$2 sm:$0xff]  ;;  %v9041_v5 = vld [vmem:[%s12446_s15 + $0x211] ss:$2 sm:$0xff] }
  0x56   : > { %10249 = vmatmul.mubr.msk.f32.gmra.mxu0 %vm448_vm0, %v8858_v24  ;;  %10277 = vmatmul.mubr.msk.f32.gmra.mxu1 %vm448_vm0, %v8890_v25  ;;  %v9010_v6 = vld [vmem:[%s12446_s15 + $0x220] ss:$2 sm:$0xff]  ;;  %v9042_v7 = vld [vmem:[%s12446_s15 + $0x221] ss:$2 sm:$0xff]  ;;  %v9011_v8 = vld [vmem:[%s12446_s15 + $0x230] ss:$2 sm:$0xff] }
  0x57   : > { %10251 = vmatprep.mubr.msk.f32.mxu0 %vm448_vm0, %v8859_v26  ;;  %10279 = vmatprep.mubr.msk.f32.mxu1 %vm448_vm0, %v8891_v27  ;;  %v9043_v9 = vld [vmem:[%s12446_s15 + $0x231] ss:$2 sm:$0xff]  ;;  %v9012_v10 = vld [vmem:[%s12446_s15 + $0x240] ss:$2 sm:$0xff]  ;;  %v9044_v11 = vld [vmem:[%s12446_s15 + $0x241] ss:$2 sm:$0xff] }
  0x58   : > { %v9013_v12 = vld [vmem:[%s12446_s15 + $0x250] ss:$2 sm:$0xff]  ;;  %v9045_v13 = vld [vmem:[%s12446_s15 + $0x251] ss:$2 sm:$0xff]  ;;  %v9014_v14 = vld [vmem:[%s12446_s15 + $0x260] ss:$2 sm:$0xff] }
  0x59   : > { %v9046_v15 = vld [vmem:[%s12446_s15 + $0x261] ss:$2 sm:$0xff]  ;;  %v12636_v16 = vld [vmem:[#allocation6 + $0xf8] sm:$0xff]  ;;  %v9016_v20 = vld [vmem:[%s12446_s15 + $0x280] ss:$2 sm:$0xff] }
  0x5a   : > { %10252 = vmatmul.mubr.msk.f32.gmra.mxu0 %vm448_vm0, %v8860_v28  ;;  %10280 = vmatmul.mubr.msk.f32.gmra.mxu1 %vm448_vm0, %v8892_v29  ;;  %v12638_v17 = vld [vmem:[#allocation6 + $0x78] sm:$0xff]  ;;  %v9048_v21 = vld [vmem:[%s12446_s15 + $0x281] ss:$2 sm:$0xff]  ;;  %v12650_v22 = vld [vmem:[#allocation6 + $0xf0] sm:$0xff] }
  0x5b   : > { %10254 = vmatprep.mubr.msk.f32.mxu0 %vm448_vm0, %v8861_v30  ;;  %10282 = vmatprep.mubr.msk.f32.mxu1 %vm448_vm0, %v8893_v31  ;;  %v9015_v18 = vld [vmem:[%s12446_s15 + $0x270] ss:$2 sm:$0xff]  ;;  %v9047_v19 = vld [vmem:[%s12446_s15 + $0x271] ss:$2 sm:$0xff]  ;;  %v9018_v26 = vld [vmem:[%s12446_s15 + $0x2a0] ss:$2 sm:$0xff] }
  0x5c   : > { %v12652_v23 = vld [vmem:[#allocation6 + $0x70] sm:$0xff]  ;;  %v9050_v27 = vld [vmem:[%s12446_s15 + $0x2a1] ss:$2 sm:$0xff] }
  0x5d   : > { %v9017_v24 = vld [vmem:[%s12446_s15 + $0x290] ss:$2 sm:$0xff]  ;;  %v9049_v25 = vld [vmem:[%s12446_s15 + $0x291] ss:$2 sm:$0xff]  ;;  %v12666_v28 = vld [vmem:[#allocation6 + $0xe8] sm:$0xff] }
  0x5e   : > { %10255 = vmatmul.mubr.msk.f32.gmra.mxu0 %vm448_vm0, %v8862_v32  ;;  %10283 = vmatmul.mubr.msk.f32.gmra.mxu1 %vm448_vm0, %v8894_v33  ;;  %v12668_v29 = vld [vmem:[#allocation6 + $0x68] sm:$0xff]  ;;  %v9019_v30 = vld [vmem:[%s12446_s15 + $0x2b0] ss:$2 sm:$0xff]  ;;  %v9051_v31 = vld [vmem:[%s12446_s15 + $0x2b1] ss:$2 sm:$0xff] }
  0x5f   : > { %10289 = vmatprep.mubr.msk.f32.mxu0 %vm448_vm0, %v8928_v34  ;;  %10317 = vmatprep.mubr.msk.f32.mxu1 %vm448_vm0, %v8960_v35  ;;  %v9020_v32 = vld [vmem:[%s12446_s15 + $0x2c0] ss:$2 sm:$0xff]  ;;  %v9052_v33 = vld [vmem:[%s12446_s15 + $0x2c1] ss:$2 sm:$0xff] }
  0x60   : > { %v12682_v34 = vld [vmem:[#allocation6 + $0xe0] sm:$0xff] }
  0x61   : > { %v12684_v35 = vld [vmem:[#allocation6 + $0x60] sm:$0xff] }
  0x62   : > { %10290 = vmatmul.mubr.msk.f32.vlgmr.msra.gmra.mxu0 %vm448_vm0, %v8929_v36  ;;  %10318 = vmatmul.mubr.msk.f32.vlgmr.msra.gmra.mxu1 %vm448_vm0, %v8961_v37  ;;  %v9021_v36 = vld [vmem:[%s12446_s15 + $0x2d0] ss:$2 sm:$0xff]  ;;  %v9053_v37 = vld [vmem:[%s12446_s15 + $0x2d1] ss:$2 sm:$0xff] }
  0x63   : > { %10292 = vmatprep.mubr.msk.f32.mxu0 %vm448_vm0, %v8930_v38  ;;  %10320 = vmatprep.mubr.msk.f32.mxu1 %vm448_vm0, %v8962_v39  ;;  %v9022_v38 = vld [vmem:[%s12446_s15 + $0x2e0] ss:$2 sm:$0xff]  ;;  %v9054_v39 = vld [vmem:[%s12446_s15 + $0x2e1] ss:$2 sm:$0xff] }
  0x64   : > { %10342 = vmatpush3.msra.mxu0 %v12451_v0  ;;  %10370 = vmatpush3.msra.mxu1 %v12451_v0  ;;  %v8943_v0 = vld [vmem:[%s12446_s15 + $0x1f0] ss:$2 sm:$0xff] }
  0x65   : > { %10343 = vmatprep.subr.mxu0 %v12456_v1  ;;  %10371 = vmatprep.subr.mxu1 %v12456_v1 }
  0x66   : > { %10293 = vmatmul.mubr.msk.f32.gmra.mxu0 %vm448_vm0, %v8931_v40  ;;  %10321 = vmatmul.mubr.msk.f32.gmra.mxu1 %vm448_vm0, %v8963_v41  ;;  %v12698_v40 = vld [vmem:[#allocation6 + $0xd8] sm:$0xff] }
  0x67   : > { %10295 = vmatprep.mubr.msk.f32.mxu0 %vm448_vm0, %v8932_v42  ;;  %10323 = vmatprep.mubr.msk.f32.mxu1 %vm448_vm0, %v8964_v43  ;;  %v12700_v41 = vld [vmem:[#allocation6 + $0x58] sm:$0xff] }
  0x68   : > { %10344 = vmatpush3.msra.mxu0 %v12456_v1  ;;  %10372 = vmatpush3.msra.mxu1 %v12456_v1  ;;  %v8975_v1 = vld [vmem:[%s12446_s15 + $0x1f1] ss:$2 sm:$0xff]  ;;  %v9023_v42 = vld [vmem:[%s12446_s15 + $0x2f0] ss:$2 sm:$0xff] }
  0x69   : > { %10397 = vmatprep.subr.mxu0 %v12636_v16  ;;  %10447 = vmatprep.subr.mxu1 %v12638_v17  ;;  %v9055_v43 = vld [vmem:[%s12446_s15 + $0x2f1] ss:$2 sm:$0xff] }
  0x6a   : > { %10296 = vmatmul.mubr.msk.f32.gmra.mxu0 %vm448_vm0, %v8933_v44  ;;  %10324 = vmatmul.mubr.msk.f32.gmra.mxu1 %vm448_vm0, %v8965_v45  ;;  %v12710_v44 = vld [vmem:[#allocation6 + $0xd0] sm:$0xff] }
  0x6b   : > { %10298 = vmatprep.mubr.msk.f32.mxu0 %vm448_vm0, %v8934_v46  ;;  %10326 = vmatprep.mubr.msk.f32.mxu1 %vm448_vm0, %v8966_v47  ;;  %v12712_v45 = vld [vmem:[#allocation6 + $0x50] sm:$0xff]  ;;  %v12718_v46 = vld [vmem:[#allocation6 + $0xc8] sm:$0xff] }
  0x6c   : > { %v12720_v47 = vld [vmem:[#allocation6 + $0x48] sm:$0xff] }
  0x6e   : > { %10299 = vmatmul.mubr.msk.f32.gmra.mxu0 %vm448_vm0, %v8935_v48  ;;  %10327 = vmatmul.mubr.msk.f32.gmra.mxu1 %vm448_vm0, %v8967_v49  ;;  %v12726_v48 = vld [vmem:[#allocation6 + $0xc0] sm:$0xff] }
  0x6f   : > { %10301 = vmatprep.mubr.msk.f32.mxu0 %vm448_vm0, %v8936_v50  ;;  %10329 = vmatprep.mubr.msk.f32.mxu1 %vm448_vm0, %v8968_v51  ;;  %v12728_v49 = vld [vmem:[#allocation6 + $0x40] sm:$0xff]  ;;  %v12734_v50 = vld [vmem:[#allocation6 + $0xb8] sm:$0xff] }
  0x70   : > { %v12736_v51 = vld [vmem:[#allocation6 + $0x38] sm:$0xff] }
  0x72   : > { %10302 = vmatmul.mubr.msk.f32.gmra.mxu0 %vm448_vm0, %v8937_v52  ;;  %10330 = vmatmul.mubr.msk.f32.gmra.mxu1 %vm448_vm0, %v8969_v53  ;;  %v12742_v52 = vld [vmem:[#allocation6 + $0xb0] sm:$0xff] }
  0x73   : > { %10304 = vmatprep.mubr.msk.f32.mxu0 %vm448_vm0, %v8938_v54  ;;  %10332 = vmatprep.mubr.msk.f32.mxu1 %vm448_vm0, %v8970_v55  ;;  %v12744_v53 = vld [vmem:[#allocation6 + $0x30] sm:$0xff]  ;;  %v12750_v54 = vld [vmem:[#allocation6 + $0xa8] sm:$0xff] }
  0x74   : > { %v12752_v55 = vld [vmem:[#allocation6 + $0x28] sm:$0xff] }
  0x76   : > { %10305 = vmatmul.mubr.msk.f32.gmra.mxu0 %vm448_vm0, %v8939_v56  ;;  %10333 = vmatmul.mubr.msk.f32.gmra.mxu1 %vm448_vm0, %v8971_v57  ;;  %v12758_v56 = vld [vmem:[#allocation6 + $0xa0] sm:$0xff] }
  0x77   : > { %10307 = vmatprep.mubr.msk.f32.mxu0 %vm448_vm0, %v8940_v58  ;;  %10335 = vmatprep.mubr.msk.f32.mxu1 %vm448_vm0, %v8972_v59  ;;  %v12760_v57 = vld [vmem:[#allocation6 + $0x20] sm:$0xff]  ;;  %v12766_v58 = vld [vmem:[#allocation6 + $0x98] sm:$0xff] }
  0x78   : > { %v12768_v59 = vld [vmem:[#allocation6 + $0x18] sm:$0xff] }
  0x7a   : > { %10308 = vmatmul.mubr.msk.f32.gmra.mxu0 %vm448_vm0, %v8941_v60  ;;  %10336 = vmatmul.mubr.msk.f32.gmra.mxu1 %vm448_vm0, %v8973_v61  ;;  %v12774_v60 = vld [vmem:[#allocation6 + $0x90] sm:$0xff] }
  0x7b   : > { %10310 = vmatprep.mubr.msk.f32.mxu0 %vm448_vm0, %v8942_v62  ;;  %10338 = vmatprep.mubr.msk.f32.mxu1 %vm448_vm0, %v8974_v63  ;;  %v12776_v61 = vld [vmem:[#allocation6 + $0x10] sm:$0xff]  ;;  %v12782_v62 = vld [vmem:[#allocation6 + $0x88] sm:$0xff] }
  0x7c   : > { %v2207_v63 = vld [vmem:[#allocation6 + $0x8] sm:$0xff] }
  0x7e   : > { %10311 = vmatmul.mubr.msk.f32.gmra.mxu0 %vm448_vm0, %v8943_v0  ;;  %10339 = vmatmul.mubr.msk.f32.gmra.mxu1 %vm448_vm0, %v8975_v1  ;;  %v2270_v0 = vld [vmem:[#allocation6 + $0x80] sm:$0xff] }
  0x7f   : > { %10345 = vmatprep.mubr.msk.f32.mxu0 %vm448_vm0, %v9008_v2  ;;  %10373 = vmatprep.mubr.msk.f32.mxu1 %vm448_vm0, %v9040_v3  ;;  %v2206_v1 = vld [vmem:[#allocation6] sm:$0xff] }
  0x80   : > { %v12795_v3 = vld [vmem:[%s16262_s2] ss:$0 sm:$0xff] }
  0x82   : > { %10346 = vmatmul.mubr.msk.f32.vlgmr.msra.gmra.mxu0 %vm448_vm0, %v9009_v4  ;;  %10374 = vmatmul.mubr.msk.f32.vlgmr.msra.gmra.mxu1 %vm448_vm0, %v9041_v5 }
  0x83   : > { %10348 = vmatprep.mubr.msk.f32.mxu0 %vm448_vm0, %v9010_v6  ;;  %10376 = vmatprep.mubr.msk.f32.mxu1 %vm448_vm0, %v9042_v7 }
  0x84   : > { %10398 = vmatpush3.msra.mxu0 %v12636_v16  ;;  %10448 = vmatpush3.msra.mxu1 %v12638_v17 }
  0x85   : > { %10399 = vmatprep.subr.mxu0 %v12650_v22  ;;  %10449 = vmatprep.subr.mxu1 %v12652_v23 }
  0x86   : > { %10349 = vmatmul.mubr.msk.f32.gmra.mxu0 %vm448_vm0, %v9011_v8  ;;  %10377 = vmatmul.mubr.msk.f32.gmra.mxu1 %vm448_vm0, %v9043_v9 }
  0x87   : > { %10351 = vmatprep.mubr.msk.f32.mxu0 %vm448_vm0, %v9012_v10  ;;  %10379 = vmatprep.mubr.msk.f32.mxu1 %vm448_vm0, %v9044_v11 }
  0x88   : > { %10400 = vmatpush3.msra.mxu0 %v12650_v22  ;;  %10450 = vmatpush3.msra.mxu1 %v12652_v23 }
  0x89   : > { %10401 = vmatprep.subr.mxu0 %v12666_v28  ;;  %10451 = vmatprep.subr.mxu1 %v12668_v29 }
  0x8a   : > { %10352 = vmatmul.mubr.msk.f32.gmra.mxu0 %vm448_vm0, %v9013_v12  ;;  %10380 = vmatmul.mubr.msk.f32.gmra.mxu1 %vm448_vm0, %v9045_v13 }
  0x8b   : > { %10354 = vmatprep.mubr.msk.f32.mxu0 %vm448_vm0, %v9014_v14  ;;  %10382 = vmatprep.mubr.msk.f32.mxu1 %vm448_vm0, %v9046_v15 }
  0x8c   : > { %10402 = vmatpush3.msra.mxu0 %v12666_v28  ;;  %10452 = vmatpush3.msra.mxu1 %v12668_v29 }
  0x8d   : > { %10403 = vmatprep.subr.mxu0 %v12682_v34  ;;  %10453 = vmatprep.subr.mxu1 %v12684_v35 }
  0x8e   : > { %10355 = vmatmul.mubr.msk.f32.gmra.mxu0 %vm448_vm0, %v9015_v18  ;;  %10383 = vmatmul.mubr.msk.f32.gmra.mxu1 %vm448_vm0, %v9047_v19 }
  0x8f   : > { %10357 = vmatprep.mubr.msk.f32.mxu0 %vm448_vm0, %v9016_v20  ;;  %10385 = vmatprep.mubr.msk.f32.mxu1 %vm448_vm0, %v9048_v21 }
  0x90   : > { %10404 = vmatpush3.msra.mxu0 %v12682_v34  ;;  %10454 = vmatpush3.msra.mxu1 %v12684_v35 }
  0x91   : > { %10405 = vmatprep.subr.mxu0 %v12698_v40  ;;  %10455 = vmatprep.subr.mxu1 %v12700_v41 }
  0x92   : > { %10358 = vmatmul.mubr.msk.f32.gmra.mxu0 %vm448_vm0, %v9017_v24  ;;  %10386 = vmatmul.mubr.msk.f32.gmra.mxu1 %vm448_vm0, %v9049_v25 }
  0x93   : > { %10360 = vmatprep.mubr.msk.f32.mxu0 %vm448_vm0, %v9018_v26  ;;  %10388 = vmatprep.mubr.msk.f32.mxu1 %vm448_vm0, %v9050_v27 }
  0x94   : > { %10406 = vmatpush3.msra.mxu0 %v12698_v40  ;;  %10456 = vmatpush3.msra.mxu1 %v12700_v41 }
  0x95   : > { %10407 = vmatprep.subr.mxu0 %v12710_v44  ;;  %10457 = vmatprep.subr.mxu1 %v12712_v45 }
  0x96   : > { %10361 = vmatmul.mubr.msk.f32.gmra.mxu0 %vm448_vm0, %v9019_v30  ;;  %10389 = vmatmul.mubr.msk.f32.gmra.mxu1 %vm448_vm0, %v9051_v31 }
  0x97   : > { %10363 = vmatprep.mubr.msk.f32.mxu0 %vm448_vm0, %v9020_v32  ;;  %10391 = vmatprep.mubr.msk.f32.mxu1 %vm448_vm0, %v9052_v33 }
  0x98   : > { %10408 = vmatpush3.msra.mxu0 %v12710_v44  ;;  %10458 = vmatpush3.msra.mxu1 %v12712_v45 }
  0x99   : > { %10409 = vmatprep.subr.mxu0 %v12718_v46  ;;  %10459 = vmatprep.subr.mxu1 %v12720_v47 }
  0x9a   : > { %10364 = vmatmul.mubr.msk.f32.gmra.mxu0 %vm448_vm0, %v9021_v36  ;;  %10392 = vmatmul.mubr.msk.f32.gmra.mxu1 %vm448_vm0, %v9053_v37 }
  0x9b   : > { %10366 = vmatprep.mubr.msk.f32.mxu0 %vm448_vm0, %v9022_v38  ;;  %10394 = vmatprep.mubr.msk.f32.mxu1 %vm448_vm0, %v9054_v39 }
  0x9c   : > { %10410 = vmatpush3.msra.mxu0 %v12718_v46  ;;  %10460 = vmatpush3.msra.mxu1 %v12720_v47 }
  0x9d   : > { %10411 = vmatprep.subr.mxu0 %v12726_v48  ;;  %10461 = vmatprep.subr.mxu1 %v12728_v49 }
  0x9e   : > { %10367 = vmatmul.mubr.msk.f32.gmra.mxu0 %vm448_vm0, %v9023_v42  ;;  %10395 = vmatmul.mubr.msk.f32.gmra.mxu1 %vm448_vm0, %v9055_v43 }
  0x9f   : > { %10412 = vmatpush3.msra.mxu0 %v12726_v48  ;;  %10462 = vmatpush3.msra.mxu1 %v12728_v49 }
  0xa0   : > { %10413 = vmatprep.subr.mxu0 %v12734_v50  ;;  %10463 = vmatprep.subr.mxu1 %v12736_v51 }
  0xa1   : > { %10414 = vmatpush3.msra.mxu0 %v12734_v50  ;;  %10464 = vmatpush3.msra.mxu1 %v12736_v51 }
  0xa2   : > { %10415 = vmatprep.subr.mxu0 %v12742_v52  ;;  %10465 = vmatprep.subr.mxu1 %v12744_v53 }
  0xa3   : > { %10416 = vmatpush3.msra.mxu0 %v12742_v52  ;;  %10466 = vmatpush3.msra.mxu1 %v12744_v53 }
  0xa4   : > { %10417 = vmatprep.subr.mxu0 %v12750_v54  ;;  %10467 = vmatprep.subr.mxu1 %v12752_v55 }
  0xa5   : > { %10418 = vmatpush3.msra.mxu0 %v12750_v54  ;;  %10468 = vmatpush3.msra.mxu1 %v12752_v55 }
  0xa6   : > { %10419 = vmatprep.subr.mxu0 %v12758_v56  ;;  %10469 = vmatprep.subr.mxu1 %v12760_v57 }
  0xa7   : > { %10420 = vmatpush3.msra.mxu0 %v12758_v56  ;;  %10470 = vmatpush3.msra.mxu1 %v12760_v57 }
  0xa8   : > { %10421 = vmatprep.subr.mxu0 %v12766_v58  ;;  %10471 = vmatprep.subr.mxu1 %v12768_v59 }
  0xa9   : > { %10422 = vmatpush3.msra.mxu0 %v12766_v58  ;;  %10472 = vmatpush3.msra.mxu1 %v12768_v59 }
  0xaa   : > { %10423 = vmatprep.subr.mxu0 %v12774_v60  ;;  %10473 = vmatprep.subr.mxu1 %v12776_v61 }
  0xab   : > { %10424 = vmatpush3.msra.mxu0 %v12774_v60  ;;  %10474 = vmatpush3.msra.mxu1 %v12776_v61 }
  0xac   : > { %10425 = vmatprep.subr.mxu0 %v12782_v62  ;;  %10475 = vmatprep.subr.mxu1 %v2207_v63 }
  0xad   : > { %10426 = vmatpush3.msra.mxu0 %v12782_v62  ;;  %10476 = vmatpush3.msra.mxu1 %v2207_v63 }
  0xae   : > { %10427 = vmatprep.subr.mxu0 %v2270_v0  ;;  %10477 = vmatprep.subr.mxu1 %v2206_v1 }
  0xaf   : > { %10428 = vmatpush3.msra.mxu0 %v2270_v0  ;;  %10478 = vmatpush3.msra.mxu1 %v2206_v1 }
  0xb0   : > { %10497 = vmatprep.subr.mxu0 %v12636_v16  ;;  %10547 = vmatprep.subr.mxu1 %v12638_v17 }
 0x102   : > { %v10235_v2 = vpop.f32.mrf.mxu0  ;;  %v10263_v4 = vpop.f32.mrf.mxu1 }
 0x103   : > { %v868_v5 = vmax.f32 %v10235_v2, %v10263_v4 }
 0x104   : > { %v563_v6 = vpop.f32.mrf.mxu0  ;;  %v788_v7 = vpop.f32.mrf.mxu1 }
 0x105   : > { %v12798_v8 = vadd.f32 %v12795_v3, %v868_v5  ;;  %v867_v9 = vmax.f32 %v563_v6, %v788_v7 }
 0x106   : > { %v10238_v10 = vpop.f32.mrf.mxu0  ;;  %v10266_v11 = vpop.f32.mrf.mxu1 }
 0x107   : > { %v922_v12 = vmin.f32 %v12798_v8, 0.0  ;;  %v12802_v13 = vadd.f32 %v12795_v3, %v867_v9  ;;  %v870_v14 = vmax.f32 %v10238_v10, %v10266_v11  ;;  %vm906_vm1 = vcmp.gt.f32.partialorder %v12798_v8, 0.0 }
 0x108   : > { %v573_v15 = vpop.f32.mrf.mxu0  ;;  %v798_v18 = vpop.f32.mrf.mxu1 }
 0x109   : > { %v939_v19 = vmul.f32 1.442695, %v922_v12  ;;  %v921_v20 = vmin.f32 %v12802_v13, 0.0  ;;  %v12806_v21 = vadd.f32 %v12795_v3, %v870_v14  ;;  %v869_v24 = vmax.f32 %v573_v15, %v798_v18 }
 0x10a   : > { %v10241_v25 = vpop.f32.mrf.mxu0  ;;  %v10269_v26 = vpop.f32.mrf.mxu1  ;;  %vm905_vm2 = vcmp.gt.f32.partialorder %v12802_v13, 0.0 }
 0x10b   : > { %11965 = vpow2.f32 %v939_v19  ;;  %v937_v27 = vmul.f32 1.442695, %v921_v20  ;;  %v924_v30 = vmin.f32 %v12806_v21, 0.0  ;;  %v12810_v31 = vadd.f32 %v12795_v3, %v869_v24 }
 0x10c   : > { %v872_v32 = vmax.f32 %v10241_v25, %v10269_v26  ;;  %v583_v33 = vpop.f32.mrf.mxu0  ;;  %v808_v36 = vpop.f32.mrf.mxu1  ;;  %vm908_vm3 = vcmp.gt.f32.partialorder %v12806_v21, 0.0 }
 0x10d   : > { %11967 = vpow2.f32 %v937_v27  ;;  %v943_v37 = vmul.f32 1.442695, %v924_v30  ;;  %v871_v38 = vmax.f32 %v583_v33, %v808_v36  ;;  %v923_v39 = vmin.f32 %v12810_v31, 0.0 }
 0x10e   : > { %v12814_v42 = vadd.f32 %v12795_v3, %v872_v32  ;;  %v10244_v43 = vpop.f32.mrf.mxu0  ;;  %v10272_v63 = vpop.f32.mrf.mxu1  ;;  %vm907_vm4 = vcmp.gt.f32.partialorder %v12810_v31, 0.0 }
 0x10f   : > { %11969 = vpow2.f32 %v943_v37  ;;  %v12817_v0 = vadd.f32 %v12795_v3, %v871_v38  ;;  %v874_v1 = vmax.f32 %v10244_v43, %v10272_v63  ;;  %v941_v2 = vmul.f32 1.442695, %v923_v39 }
 0x110   : > { %v926_v4 = vmin.f32 %v12814_v42, 0.0  ;;  %v593_v5 = vpop.f32.mrf.mxu0  ;;  %v818_v6 = vpop.f32.mrf.mxu1  ;;  %vm910_vm5 = vcmp.gt.f32.partialorder %v12814_v42, 0.0 }
 0x111   : > { %v925_v7 = vmin.f32 %v12817_v0, 0.0  ;;  %v12822_v9 = vadd.f32 %v12795_v3, %v874_v1  ;;  %v873_v10 = vmax.f32 %v593_v5, %v818_v6  ;;  %11971 = vpow2.f32 %v941_v2 }
 0x112   : > { %v947_v11 = vmul.f32 1.442695, %v926_v4  ;;  %v10247_v12 = vpop.f32.mrf.mxu0  ;;  %v10275_v14 = vpop.f32.mrf.mxu1  ;;  %vm909_vm6 = vcmp.gt.f32.partialorder %v12817_v0, 0.0 }
 0x113   : > { %v945_v15 = vmul.f32 1.442695, %v925_v7  ;;  %v928_v18 = vmin.f32 %v12822_v9, 0.0  ;;  %v12826_v19 = vadd.f32 %v12795_v3, %v873_v10  ;;  %v876_v20 = vmax.f32 %v10247_v12, %v10275_v14 }
 0x114   : > { %11973 = vpow2.f32 %v947_v11  ;;  %v603_v24 = vpop.f32.mrf.mxu0  ;;  %v828_v25 = vpop.f32.mrf.mxu1  ;;  %vm912_vm7 = vcmp.gt.f32.partialorder %v12822_v9, 0.0 }
 0x115   : > { %11975 = vpow2.f32 %v945_v15  ;;  %v951_v26 = vmul.f32 1.442695, %v928_v18  ;;  %v927_v27 = vmin.f32 %v12826_v19, 0.0  ;;  %v12830_v30 = vadd.f32 %v12795_v3, %v876_v20 }
 0x116   : > { %v875_v32 = vmax.f32 %v603_v24, %v828_v25  ;;  %v10250_v33 = vpop.f32.mrf.mxu0  ;;  %v10278_v36 = vpop.f32.mrf.mxu1  ;;  %vm911_vm8 = vcmp.gt.f32.partialorder %v12826_v19, 0.0 }
 0x117   : > { %11977 = vpow2.f32 %v951_v26  ;;  %v949_v37 = vmul.f32 1.442695, %v927_v27  ;;  %v878_v38 = vmax.f32 %v10250_v33, %v10278_v36  ;;  %v930_v43 = vmin.f32 %v12830_v30, 0.0 }
 0x118   : > { %v11966_v39 = vpop.eup %11965  ;;  %v12834_v63 = vadd.f32 %v12795_v3, %v875_v32  ;;  %v613_v1 = vpop.f32.mrf.mxu0  ;;  %vm914_vm9 = vcmp.gt.f32.partialorder %v12830_v30, 0.0 }
 0x119   : > { %v838_v2 = vpop.f32.mrf.mxu1  ;;  %v8913_v4 = vadd.f32 -1.0, %v11966_v39  ;;  %11979 = vpow2.f32 %v949_v37  ;;  %v12837_v5 = vadd.f32 %v12795_v3, %v878_v38  ;;  %v955_v10 = vmul.f32 1.442695, %v930_v43 }
 0x11a   : > { %v877_v6 = vmax.f32 %v613_v1, %v838_v2  ;;  %v11968_v7 = vpop.eup %11967  ;;  %v929_v11 = vmin.f32 %v12834_v63, 0.0  ;;  %v10253_v12 = vpop.f32.mrf.mxu0  ;;  %vm913_vm10 = vcmp.gt.f32.partialorder %v12834_v63, 0.0 }
 0x11b   : > { %v10281_v14 = vpop.f32.mrf.mxu1  ;;  %v986_v15 = vsel %vm906_vm1, %v12798_v8, %v8913_v4  ;;  %v8912_v18 = vadd.f32 -1.0, %v11968_v7  ;;  %v932_v20 = vmin.f32 %v12837_v5, 0.0  ;;  %11981 = vpow2.f32 %v955_v10 }
 0x11c   : > { %v11970_v24 = vpop.eup %11969  ;;  %1002 = vst [vmem:[#allocation2 + $0x8] sm:$0xff] %v986_v15  ;;  %v953_v25 = vmul.f32 1.442695, %v929_v11  ;;  %v12845_v26 = vadd.f32 %v12795_v3, %v877_v6  ;;  %v880_v27 = vmax.f32 %v10253_v12, %v10281_v14  ;;  %v623_v32 = vpop.f32.mrf.mxu0  ;;  %vm916_vm11 = vcmp.gt.f32.partialorder %v12837_v5, 0.0 }
 0x11d   : > { %v848_v33 = vpop.f32.mrf.mxu1  ;;  %v985_v36 = vsel %vm905_vm2, %v12802_v13, %v8912_v18  ;;  %v8915_v37 = vadd.f32 -1.0, %v11970_v24  ;;  %v959_v38 = vmul.f32 1.442695, %v932_v20 }
 0x11e   : > { %v879_v8 = vmax.f32 %v623_v32, %v848_v33  ;;  %1001 = vst [vmem:[#allocation2] sm:$0xff] %v985_v36  ;;  %11983 = vpow2.f32 %v953_v25  ;;  %v931_v39 = vmin.f32 %v12845_v26, 0.0  ;;  %v12851_v43 = vadd.f32 %v12795_v3, %v880_v27  ;;  %v10256_v1 = vpop.f32.mrf.mxu0  ;;  %v11972_v4 = vpop.eup %11971 }
 0x11f   : > { %v10284_v2 = vpop.f32.mrf.mxu1  ;;  %v988_v6 = vsel %vm908_vm3, %v12806_v21, %v8915_v37  ;;  %11985 = vpow2.f32 %v959_v38  ;;  %v8914_v10 = vadd.f32 -1.0, %v11972_v4  ;;  %vm915_vm12 = vcmp.gt.f32.partialorder %v12845_v26, 0.0 }
 0x120   : > { %v12855_v13 = vadd.f32 %v12795_v3, %v879_v8  ;;  %v882_v7 = vmax.f32 %v10256_v1, %v10284_v2  ;;  %1004 = vst [vmem:[#allocation2 + $0x18] sm:$0xff] %v988_v6  ;;  %v957_v11 = vmul.f32 1.442695, %v931_v39  ;;  %v934_v12 = vmin.f32 %v12851_v43, 0.0  ;;  %v633_v14 = vpop.f32.mrf.mxu0 }
 0x121   : > { %v858_v15 = vpop.f32.mrf.mxu1  ;;  %v11974_v18 = vpop.eup %11973  ;;  %v987_v27 = vsel %vm907_vm4, %v12810_v31, %v8914_v10  ;;  %vm918_vm13 = vcmp.gt.f32.partialorder %v12851_v43, 0.0 }
 0x122   : > { %v933_v20 = vmin.f32 %v12855_v13, 0.0  ;;  %v12862_v21 = vadd.f32 %v12795_v3, %v882_v7  ;;  %v881_v24 = vmax.f32 %v633_v14, %v858_v15  ;;  %v11976_v25 = vpop.eup %11975  ;;  %v8917_v32 = vadd.f32 -1.0, %v11974_v18  ;;  %v10291_v36 = vpop.f32.mrf.mxu0  ;;  %1003 = vst [vmem:[#allocation2 + $0x10] sm:$0xff] %v987_v27 }
 0x123   : > { %11987 = vpow2.f32 %v957_v11  ;;  %v963_v33 = vmul.f32 1.442695, %v934_v12  ;;  %v10319_v37 = vpop.f32.mrf.mxu1  ;;  %v8916_v38 = vadd.f32 -1.0, %v11976_v25  ;;  %vm917_vm14 = vcmp.gt.f32.partialorder %v12855_v13, 0.0 }
 0x124   : > { %v961_v8 = vmul.f32 1.442695, %v933_v20  ;;  %v936_v39 = vmin.f32 %v12862_v21, 0.0  ;;  %v11978_v1 = vpop.eup %11977  ;;  %v990_v2 = vsel %vm910_vm5, %v12814_v42, %v8917_v32  ;;  %v12871_v31 = vadd.f32 %v12795_v3, %v881_v24  ;;  %v1163_v6 = vpop.f32.mrf.mxu0 }
 0x125   : > { %11989 = vpow2.f32 %v963_v33  ;;  %v1468_v4 = vmax.f32 %v10291_v36, %v10319_v37  ;;  %v1388_v7 = vpop.f32.mrf.mxu1  ;;  %1006 = vst [vmem:[#allocation2 + $0x28] sm:$0xff] %v990_v2  ;;  %v989_v10 = vsel %vm909_vm6, %v12817_v0, %v8916_v38  ;;  %v8919_v11 = vadd.f32 -1.0, %v11978_v1  ;;  %v12874_v14 = vld [vmem:[#allocation2 + $0x1] ss:$2 sm:$0xff]  ;;  %v2222_v0 = vld [vmem:[#allocation2] ss:$2 sm:$0xff] }
 0x126   : > { %11991 = vpow2.f32 %v961_v8  ;;  %v967_v12 = vmul.f32 1.442695, %v936_v39  ;;  %v11980_v15 = vpop.eup %11979  ;;  %1005 = vst [vmem:[#allocation2 + $0x20] sm:$0xff] %v989_v10  ;;  %v935_v42 = vmin.f32 %v12871_v31, 0.0  ;;  %v1467_v20 = vmax.f32 %v1163_v6, %v1388_v7  ;;  %v10294_v24 = vpop.f32.mrf.mxu0  ;;  %10429 = vmatprep.mubr.f32.mxu0 %v12874_v14  ;;  %10479 = vmatprep.mubr.f32.mxu1 %v2222_v0 }
 0x127   : > { %v12879_v18 = vadd.f32 %v12795_v3, %v1468_v4  ;;  %v10322_v25 = vpop.f32.mrf.mxu1  ;;  %v992_v27 = vsel %vm912_vm7, %v12822_v9, %v8919_v11  ;;  %v8918_v32 = vadd.f32 -1.0, %v11980_v15  ;;  %vm920_vm15 = vcmp.gt.f32.partialorder %v12862_v21, 0.0 }
 0x128   : > { %11993 = vpow2.f32 %v967_v12  ;;  %v1470_v33 = vmax.f32 %v10294_v24, %v10322_v25  ;;  %1008 = vst [vmem:[#allocation2 + $0x38] sm:$0xff] %v992_v27  ;;  %v965_v36 = vmul.f32 1.442695, %v935_v42  ;;  %v12886_v38 = vadd.f32 %v12795_v3, %v1467_v20  ;;  %v1173_v8 = vpop.f32.mrf.mxu0  ;;  %v11982_v1 = vpop.eup %11981 }
 0x129   : > { %v1516_v37 = vmin.f32 %v12879_v18, 0.0  ;;  %v1398_v39 = vpop.f32.mrf.mxu1  ;;  %v991_v2 = vsel %vm911_vm8, %v12826_v19, %v8918_v32  ;;  %v8921_v6 = vadd.f32 -1.0, %v11982_v1  ;;  %v12893_v12 = vld [vmem:[#allocation2 + $0x11] ss:$2 sm:$0xff]  ;;  %v2224_v24 = vld [vmem:[#allocation2 + $0x10] ss:$2 sm:$0xff] }
 0x12a   : > { %v12890_v9 = vadd.f32 %v12795_v3, %v1470_v33  ;;  %v1469_v4 = vmax.f32 %v1173_v8, %v1398_v39  ;;  %1007 = vst [vmem:[#allocation2 + $0x30] sm:$0xff] %v991_v2  ;;  %11995 = vpow2.f32 %v965_v36  ;;  %v10297_v10 = vpop.f32.mrf.mxu0  ;;  %v1515_v42 = vmin.f32 %v12886_v38, 0.0  ;;  %10430 = vmatmul.mubr.f32.vlgmr.msra.gmra.mxu0 %v12893_v12  ;;  %10480 = vmatmul.mubr.f32.vlgmr.msra.gmra.mxu1 %v2224_v24 }
 0x12b   : > { %v1533_v7 = vmul.f32 1.442695, %v1516_v37  ;;  %v10325_v11 = vpop.f32.mrf.mxu1  ;;  %v11984_v15 = vpop.eup %11983  ;;  %v994_v0 = vsel %vm914_vm9, %v12830_v30, %v8921_v6  ;;  %10498 = vmatpush3.msra.mxu0 %v12636_v16  ;;  %10548 = vmatpush3.msra.mxu1 %v12638_v17  ;;  %vm919_vm0 = vcmp.gt.f32.partialorder %v12871_v31, 0.0  ;;  %vm1500_vm1 = vcmp.gt.f32.partialorder %v12879_v18, 0.0 }
 0x12c   : > { %v1518_v19 = vmin.f32 %v12890_v9, 0.0  ;;  %v12899_v20 = vadd.f32 %v12795_v3, %v1469_v4  ;;  %v11986_v25 = vpop.eup %11985  ;;  %v8920_v27 = vadd.f32 -1.0, %v11984_v15  ;;  %v1472_v32 = vmax.f32 %v10297_v10, %v10325_v11  ;;  %v1183_v33 = vpop.f32.mrf.mxu0  ;;  %1010 = vst [vmem:[#allocation2 + $0x48] sm:$0xff] %v994_v0  ;;  %10499 = vmatprep.subr.mxu0 %v12650_v22  ;;  %10549 = vmatprep.subr.mxu1 %v12652_v23 }
 0x12d   : > { %11997 = vpow2.f32 %v1533_v7  ;;  %v1408_v36 = vpop.f32.mrf.mxu1  ;;  %v8923_v37 = vadd.f32 -1.0, %v11986_v25  ;;  %v1531_v8 = vmul.f32 1.442695, %v1515_v42  ;;  %v12914_v7 = vld [vmem:[#allocation2 + $0x21] ss:$2 sm:$0xff]  ;;  %10500 = vmatpush3.msra.mxu0 %v12650_v22  ;;  %10550 = vmatpush3.msra.mxu1 %v12652_v23  ;;  %vm1499_vm2 = vcmp.gt.f32.partialorder %v12886_v38, 0.0 }
 0x12e   : > { %v1537_v39 = vmul.f32 1.442695, %v1518_v19  ;;  %v993_v30 = vsel %vm913_vm10, %v12834_v63, %v8920_v27  ;;  %v1517_v1 = vmin.f32 %v12899_v20, 0.0  ;;  %v12912_v2 = vadd.f32 %v12795_v3, %v1472_v32  ;;  %v10300_v4 = vpop.f32.mrf.mxu0  ;;  %v2226_v10 = vld [vmem:[#allocation2 + $0x20] ss:$2 sm:$0xff]  ;;  %10432 = vmatprep.mubr.f32.mxu0 %v12914_v7  ;;  %10501 = vmatprep.subr.mxu0 %v12666_v28 }
 0x12f   : > { %v1471_v16 = vmax.f32 %v1183_v33, %v1408_v36  ;;  %v10328_v6 = vpop.f32.mrf.mxu1  ;;  %1009 = vst [vmem:[#allocation2 + $0x40] sm:$0xff] %v993_v30  ;;  %v996_v63 = vsel %vm916_vm11, %v12837_v5, %v8923_v37  ;;  %11999 = vpow2.f32 %v1531_v8  ;;  %10482 = vmatprep.mubr.f32.mxu1 %v2226_v10  ;;  %10551 = vmatprep.subr.mxu1 %v12668_v29  ;;  %vm1502_vm3 = vcmp.gt.f32.partialorder %v12890_v9, 0.0 }
 0x130   : > { %v11988_v17 = vpop.eup %11987  ;;  %v1474_v11 = vmax.f32 %v10300_v4, %v10328_v6  ;;  %1012 = vst [vmem:[#allocation2 + $0x58] sm:$0xff] %v996_v63  ;;  %12001 = vpow2.f32 %v1537_v39  ;;  %v1535_v42 = vmul.f32 1.442695, %v1517_v1  ;;  %v1193_v19 = vpop.f32.mrf.mxu0  ;;  %v1520_v5 = vmin.f32 %v12912_v2, 0.0  ;;  %10502 = vmatpush3.msra.mxu0 %v12666_v28  ;;  %10552 = vmatpush3.msra.mxu1 %v12668_v29 }
 0x131   : > { %v8922_v15 = vadd.f32 -1.0, %v11988_v17  ;;  %v1418_v24 = vpop.f32.mrf.mxu1  ;;  %v12927_v25 = vadd.f32 %v12795_v3, %v1471_v16  ;;  %v12932_v32 = vld [vmem:[#allocation2 + $0x31] ss:$2 sm:$0xff]  ;;  %v2228_v33 = vld [vmem:[#allocation2 + $0x30] ss:$2 sm:$0xff]  ;;  %10503 = vmatprep.subr.mxu0 %v12682_v34  ;;  %10553 = vmatprep.subr.mxu1 %v12684_v35  ;;  %vm1501_vm4 = vcmp.gt.f32.partialorder %v12899_v20, 0.0 }
 0x132   : > { %v11990_v22 = vpop.eup %11989  ;;  %v12930_v0 = vadd.f32 %v12795_v3, %v1474_v11  ;;  %v1473_v27 = vmax.f32 %v1193_v19, %v1418_v24  ;;  %12003 = vpow2.f32 %v1535_v42  ;;  %v10303_v8 = vpop.f32.mrf.mxu0  ;;  %10433 = vmatmul.mubr.f32.gmra.mxu0 %v12932_v32  ;;  %10483 = vmatmul.mubr.f32.gmra.mxu1 %v2228_v33  ;;  %v1541_v1 = vmul.f32 1.442695, %v1520_v5 }
 0x133   : > { %v11992_v23 = vpop.eup %11991  ;;  %v995_v36 = vsel %vm915_vm12, %v12845_v26, %v8922_v15  ;;  %v8925_v37 = vadd.f32 -1.0, %v11990_v22  ;;  %v10331_v39 = vpop.f32.mrf.mxu1  ;;  %v1519_v16 = vmin.f32 %v12927_v25, 0.0  ;;  %10504 = vmatpush3.msra.mxu0 %v12682_v34  ;;  %10554 = vmatpush3.msra.mxu1 %v12684_v35  ;;  %vm1504_vm5 = vcmp.gt.f32.partialorder %v12912_v2, 0.0 }
 0x134   : > { %1011 = vst [vmem:[#allocation2 + $0x50] sm:$0xff] %v995_v36  ;;  %v8924_v30 = vadd.f32 -1.0, %v11992_v23  ;;  %v1522_v4 = vmin.f32 %v12930_v0, 0.0  ;;  %v12948_v6 = vadd.f32 %v12795_v3, %v1473_v27  ;;  %v1203_v10 = vpop.f32.mrf.mxu0  ;;  %12005 = vpow2.f32 %v1541_v1  ;;  %10505 = vmatprep.subr.mxu0 %v12698_v40  ;;  %10555 = vmatprep.subr.mxu1 %v12700_v41 }
 0x135   : > { %v11994_v28 = vpop.eup %11993  ;;  %v998_v26 = vsel %vm918_vm13, %v12851_v43, %v8925_v37  ;;  %v1428_v17 = vpop.f32.mrf.mxu1  ;;  %v1539_v11 = vmul.f32 1.442695, %v1519_v16  ;;  %v1476_v42 = vmax.f32 %v10303_v8, %v10331_v39  ;;  %10506 = vmatpush3.msra.mxu0 %v12698_v40  ;;  %10556 = vmatpush3.msra.mxu1 %v12700_v41  ;;  %vm1503_vm6 = vcmp.gt.f32.partialorder %v12927_v25, 0.0 }
 0x136   : > { %1014 = vst [vmem:[#allocation2 + $0x68] sm:$0xff] %v998_v26  ;;  %v997_v29 = vsel %vm917_vm14, %v12855_v13, %v8924_v30  ;;  %v8927_v63 = vadd.f32 -1.0, %v11994_v28  ;;  %v1545_v43 = vmul.f32 1.442695, %v1522_v4  ;;  %v1521_v15 = vmin.f32 %v12948_v6, 0.0  ;;  %v10306_v34 = vpop.f32.mrf.mxu0  ;;  %10507 = vmatprep.subr.mxu0 %v12710_v44  ;;  %10557 = vmatprep.subr.mxu1 %v12712_v45 }
 0x137   : > { %1013 = vst [vmem:[#allocation2 + $0x60] sm:$0xff] %v997_v29  ;;  %v12957_v19 = vld [vmem:[#allocation2 + $0x41] ss:$2 sm:$0xff]  ;;  %v10334_v24 = vpop.f32.mrf.mxu1  ;;  %v11996_v13 = vpop.eup %11995  ;;  %12007 = vpow2.f32 %v1539_v11  ;;  %v1475_v22 = vmax.f32 %v1203_v10, %v1428_v17  ;;  %v2230_v5 = vld [vmem:[#allocation2 + $0x40] ss:$2 sm:$0xff]  ;;  %v12965_v36 = vadd.f32 %v12795_v3, %v1476_v42  ;;  %10508 = vmatpush3.msra.mxu0 %v12710_v44  ;;  %10558 = vmatpush3.msra.mxu1 %v12712_v45  ;;  %vm1506_vm7 = vcmp.gt.f32.partialorder %v12930_v0, 0.0 }
 0x138   : > { %v1000_v35 = vsel %vm920_vm15, %v12862_v21, %v8927_v63  ;;  %10435 = vmatprep.mubr.f32.mxu0 %v12957_v19  ;;  %v1478_v27 = vmax.f32 %v10306_v34, %v10334_v24  ;;  %v8926_v33 = vadd.f32 -1.0, %v11996_v13  ;;  %12009 = vpow2.f32 %v1545_v43  ;;  %10485 = vmatprep.mubr.f32.mxu1 %v2230_v5  ;;  %v1213_v40 = vpop.f32.mrf.mxu0 }
 0x139   : > { %1016 = vst [vmem:[#allocation2 + $0x78] sm:$0xff] %v1000_v35  ;;  %v1543_v23 = vmul.f32 1.442695, %v1521_v15  ;;  %v1438_v37 = vpop.f32.mrf.mxu1  ;;  %v12970_v8 = vadd.f32 %v12795_v3, %v1475_v22  ;;  %10509 = vmatprep.subr.mxu0 %v12718_v46  ;;  %v1524_v44 = vmin.f32 %v12965_v36, 0.0  ;;  %10559 = vmatprep.subr.mxu1 %v12720_v47  ;;  %vm1505_vm8 = vcmp.gt.f32.partialorder %v12948_v6, 0.0 }
 0x13a   : > { %v11998_v21 = vpop.eup %11997  ;;  %v12973_v41 = vadd.f32 %v12795_v3, %v1478_v27  ;;  %v1477_v39 = vmax.f32 %v1213_v40, %v1438_v37  ;;  %v999_v30 = vsel %vm919_vm0, %v12871_v31, %v8926_v33  ;;  %v10309_v26 = vpop.f32.mrf.mxu0  ;;  %10510 = vmatpush3.msra.mxu0 %v12718_v46  ;;  %10560 = vmatpush3.msra.mxu1 %v12720_v47  ;;  %vm1508_vm9 = vcmp.gt.f32.partialorder %v12965_v36, 0.0 }
 0x13b   : > { %v8993_v1 = vadd.f32 -1.0, %v11998_v21  ;;  %12011 = vpow2.f32 %v1543_v23  ;;  %v12978_v16 = vld [vmem:[#allocation2 + $0x51] ss:$2 sm:$0xff]  ;;  %v2232_v28 = vld [vmem:[#allocation2 + $0x50] ss:$2 sm:$0xff]  ;;  %v10337_v4 = vpop.f32.mrf.mxu1  ;;  %1015 = vst [vmem:[#allocation2 + $0x70] sm:$0xff] %v999_v30  ;;  %10511 = vmatprep.subr.mxu0 %v12726_v48  ;;  %10561 = vmatprep.subr.mxu1 %v12728_v49 }
 0x13c   : > { %v1523_v31 = vmin.f32 %v12970_v8, 0.0  ;;  %10436 = vmatmul.mubr.f32.gmra.mxu0 %v12978_v16  ;;  %10486 = vmatmul.mubr.f32.gmra.mxu1 %v2232_v28  ;;  %v12000_v10 = vpop.eup %11999  ;;  %v1526_v45 = vmin.f32 %v12973_v41, 0.0  ;;  %v12990_v29 = vadd.f32 %v12795_v3, %v1477_v39  ;;  %v1480_v63 = vmax.f32 %v10309_v26, %v10337_v4  ;;  %v1223_v11 = vpop.f32.mrf.mxu0 }
 0x13d   : > { %v1580_v17 = vsel %vm1500_vm1, %v12879_v18, %v8993_v1  ;;  %v1448_v43 = vpop.f32.mrf.mxu1  ;;  %v12002_v15 = vpop.eup %12001  ;;  %v8992_v42 = vadd.f32 -1.0, %v12000_v10  ;;  %v1549_v34 = vmul.f32 1.442695, %v1524_v44  ;;  %10512 = vmatpush3.msra.mxu0 %v12726_v48  ;;  %10562 = vmatpush3.msra.mxu1 %v12728_v49  ;;  %vm1507_vm10 = vcmp.gt.f32.partialorder %v12970_v8, 0.0 }
 0x13e   : > { %1596 = vst [vmem:[#allocation2 + $0x88] sm:$0xff] %v1580_v17  ;;  %v1547_v24 = vmul.f32 1.442695, %v1523_v31  ;;  %v1479_v18 = vmax.f32 %v1223_v11, %v1448_v43  ;;  %v8995_v13 = vadd.f32 -1.0, %v12002_v15  ;;  %v1553_v35 = vmul.f32 1.442695, %v1526_v45  ;;  %v10312_v46 = vpop.f32.mrf.mxu0  ;;  %10513 = vmatprep.subr.mxu0 %v12734_v50  ;;  %10563 = vmatprep.subr.mxu1 %v12736_v51 }
 0x13f   : > { %v1525_v22 = vmin.f32 %v12990_v29, 0.0  ;;  %v10340_v5 = vpop.f32.mrf.mxu1  ;;  %v12004_v27 = vpop.eup %12003  ;;  %v1579_v47 = vsel %vm1499_vm2, %v12886_v38, %v8992_v42  ;;  %12013 = vpow2.f32 %v1549_v34  ;;  %v13003_v33 = vld [vmem:[#allocation2 + $0x61] ss:$2 sm:$0xff]  ;;  %v2234_v23 = vld [vmem:[#allocation2 + $0x60] ss:$2 sm:$0xff]  ;;  %v13008_v40 = vadd.f32 %v12795_v3, %v1480_v63  ;;  %10514 = vmatpush3.msra.mxu0 %v12734_v50  ;;  %10564 = vmatpush3.msra.mxu1 %v12736_v51 }
 0x140   : > { %v13011_v48 = vadd.f32 %v12795_v3, %v1479_v18  ;;  %1595 = vst [vmem:[#allocation2 + $0x80] sm:$0xff] %v1579_v47  ;;  %v1582_v37 = vsel %vm1502_vm3, %v12890_v9, %v8995_v13  ;;  %v8994_v38 = vadd.f32 -1.0, %v12004_v27  ;;  %12015 = vpow2.f32 %v1547_v24  ;;  %10438 = vmatprep.mubr.f32.mxu0 %v13003_v33  ;;  %10488 = vmatprep.mubr.f32.mxu1 %v2234_v23  ;;  %v1233_v49 = vpop.f32.mrf.mxu0 }
 0x141   : > { %v1551_v21 = vmul.f32 1.442695, %v1525_v22  ;;  %v1458_v39 = vpop.f32.mrf.mxu1  ;;  %1598 = vst [vmem:[#allocation2 + $0x98] sm:$0xff] %v1582_v37  ;;  %12017 = vpow2.f32 %v1553_v35  ;;  %v1528_v30 = vmin.f32 %v13008_v40, 0.0  ;;  %v12006_v1 = vpop.eup %12005  ;;  %10515 = vmatprep.subr.mxu0 %v12742_v52  ;;  %v1482_v4 = vmax.f32 %v10312_v46, %v10340_v5  ;;  %10565 = vmatprep.subr.mxu1 %v12744_v53 }
 0x142   : > { %v1581_v9 = vsel %vm1501_vm4, %v12899_v20, %v8994_v38  ;;  %v13022_v28 = vld [vmem:[#allocation2 + $0x71] ss:$2 sm:$0xff]  ;;  %v2236_v26 = vld [vmem:[#allocation2 + $0x70] ss:$2 sm:$0xff]  ;;  %v1481_v44 = vmax.f32 %v1233_v49, %v1458_v39  ;;  %v10347_v31 = vpop.f32.mrf.mxu0  ;;  %v8997_v17 = vadd.f32 -1.0, %v12006_v1  ;;  %v1527_v20 = vmin.f32 %v13011_v48, 0.0  ;;  %10516 = vmatpush3.msra.mxu0 %v12742_v52  ;;  %10566 = vmatpush3.msra.mxu1 %v12744_v53 }
 0x143   : > { %12019 = vpow2.f32 %v1551_v21  ;;  %v10375_v10 = vpop.f32.mrf.mxu1  ;;  %1597 = vst [vmem:[#allocation2 + $0x90] sm:$0xff] %v1581_v9  ;;  %10439 = vmatmul.mubr.f32.gmra.mxu0 %v13022_v28  ;;  %10489 = vmatmul.mubr.f32.gmra.mxu1 %v2236_v26  ;;  %v1557_v50 = vmul.f32 1.442695, %v1528_v30  ;;  %v13032_v51 = vadd.f32 %v12795_v3, %v1482_v4  ;;  %vm1510_vm11 = vcmp.gt.f32.partialorder %v12973_v41, 0.0 }
 0x144   : > { %v2062_v45 = vmax.f32 %v10347_v31, %v10375_v10  ;;  %v12008_v63 = vpop.eup %12007  ;;  %v13035_v11 = vadd.f32 %v12795_v3, %v1481_v44  ;;  %v1757_v43 = vpop.f32.mrf.mxu0  ;;  %v1584_v34 = vsel %vm1504_vm5, %v12912_v2, %v8997_v17  ;;  %10517 = vmatprep.subr.mxu0 %v12750_v54  ;;  %v1555_v18 = vmul.f32 1.442695, %v1527_v20  ;;  %10567 = vmatprep.subr.mxu1 %v12752_v55 }
 0x145   : > { %v1982_v15 = vpop.f32.mrf.mxu1  ;;  %v12010_v42 = vpop.eup %12009  ;;  %v8996_v24 = vadd.f32 -1.0, %v12008_v63  ;;  %12021 = vpow2.f32 %v1557_v50  ;;  %1600 = vst [vmem:[#allocation2 + $0xa8] sm:$0xff] %v1584_v34  ;;  %10518 = vmatpush3.msra.mxu0 %v12750_v54  ;;  %v1530_v13 = vmin.f32 %v13032_v51, 0.0  ;;  %10568 = vmatpush3.msra.mxu1 %v12752_v55  ;;  %vm1509_vm12 = vcmp.gt.f32.partialorder %v12990_v29, 0.0 }
 0x146   : > { %v8999_v52 = vadd.f32 -1.0, %v12010_v42  ;;  %v10350_v2 = vpop.f32.mrf.mxu0  ;;  %10519 = vmatprep.subr.mxu0 %v12758_v56  ;;  %12023 = vpow2.f32 %v1555_v18  ;;  %v13051_v27 = vadd.f32 %v12795_v3, %v2062_v45  ;;  %v2061_v47 = vmax.f32 %v1757_v43, %v1982_v15  ;;  %10569 = vmatprep.subr.mxu1 %v12760_v57 }
 0x147   : > { %v10378_v35 = vpop.f32.mrf.mxu1  ;;  %v1583_v53 = vsel %vm1503_vm6, %v12927_v25, %v8996_v24  ;;  %v13046_v46 = vld [vmem:[#allocation2 + $0x81] ss:$2 sm:$0xff]  ;;  %v2238_v5 = vld [vmem:[#allocation2 + $0x80] ss:$2 sm:$0xff]  ;;  %v1561_v25 = vmul.f32 1.442695, %v1530_v13  ;;  %10520 = vmatpush3.msra.mxu0 %v12758_v56  ;;  %10570 = vmatpush3.msra.mxu1 %v12760_v57 }
 0x148   : > { %v12012_v22 = vpop.eup %12011  ;;  %1599 = vst [vmem:[#allocation2 + $0xa0] sm:$0xff] %v1583_v53  ;;  %v1586_v54 = vsel %vm1506_vm7, %v12930_v0, %v8999_v52  ;;  %10441 = vmatprep.mubr.f32.mxu0 %v13046_v46  ;;  %10491 = vmatprep.mubr.f32.mxu1 %v2238_v5  ;;  %v1529_v37 = vmin.f32 %v13035_v11, 0.0  ;;  %v1767_v55 = vpop.f32.mrf.mxu0  ;;  %v2110_v21 = vmin.f32 %v13051_v27, 0.0  ;;  %v13063_v0 = vadd.f32 %v12795_v3, %v2061_v47  ;;  %v12157_v47 = vld [vmem:[#allocation6 + $0x8] sm:$0xff] }
 0x149   : > { %v8998_v23 = vadd.f32 -1.0, %v12012_v22  ;;  %v1992_v38 = vpop.f32.mrf.mxu1  ;;  %1602 = vst [vmem:[#allocation2 + $0xb8] sm:$0xff] %v1586_v54  ;;  %v2064_v49 = vmax.f32 %v10350_v2, %v10378_v35  ;;  %10521 = vmatprep.subr.mxu0 %v12766_v58  ;;  %12025 = vpow2.f32 %v1561_v25  ;;  %10571 = vmatprep.subr.mxu1 %v12768_v59  ;;  %v12158_v54 = vld [vmem:[#allocation6 + $0x88] sm:$0xff]  ;;  %vm1512_vm13 = vcmp.gt.f32.partialorder %v13008_v40, 0.0 }
 0x14a   : > { %v13066_v30 = vld [vmem:[#allocation2 + $0x91] ss:$2 sm:$0xff]  ;;  %v2240_v1 = vld [vmem:[#allocation2 + $0x90] ss:$2 sm:$0xff]  ;;  %v2063_v9 = vmax.f32 %v1767_v55, %v1992_v38  ;;  %v10353_v26 = vpop.f32.mrf.mxu0  ;;  %v1559_v56 = vmul.f32 1.442695, %v1529_v37  ;;  %10522 = vmatpush3.msra.mxu0 %v12766_v58  ;;  %10572 = vmatpush3.msra.mxu1 %v12768_v59 }
 0x14b   : > { %v1585_v39 = vsel %vm1505_vm8, %v12948_v6, %v8998_v23  ;;  %v10381_v4 = vpop.f32.mrf.mxu1  ;;  %10442 = vmatmul.mubr.f32.gmra.mxu0 %v13066_v30  ;;  %10492 = vmatmul.mubr.f32.gmra.mxu1 %v2240_v1  ;;  %v2127_v44 = vmul.f32 1.442695, %v2110_v21  ;;  %v13072_v31 = vadd.f32 %v12795_v3, %v2064_v49  ;;  %v2109_v57 = vmin.f32 %v13063_v0, 0.0  ;;  %v12159_v21 = vld [vmem:[#allocation6 + $0x80] sm:$0xff] }
 0x14c   : > { %1601 = vst [vmem:[#allocation2 + $0xb0] sm:$0xff] %v1585_v39  ;;  %v2066_v6 = vmax.f32 %v10353_v26, %v10381_v4  ;;  %v12014_v10 = vpop.eup %12013  ;;  %v13080_v17 = vadd.f32 %v12795_v3, %v2063_v9  ;;  %v1777_v50 = vpop.f32.mrf.mxu0  ;;  %10523 = vmatprep.subr.mxu0 %v12774_v60  ;;  %12027 = vpow2.f32 %v1559_v56  ;;  %10573 = vmatprep.subr.mxu1 %v12776_v61  ;;  %v13117_v9 = vld [vmem:[#allocation2 + $0x2] ss:$2 sm:$0xff]  ;;  %vm1511_vm14 = vcmp.gt.f32.partialorder %v13011_v48, 0.0 }
 0x14d   : > { %v2002_v20 = vpop.f32.mrf.mxu1  ;;  %v12016_v45 = vpop.eup %12015  ;;  %v9001_v63 = vadd.f32 -1.0, %v12014_v10  ;;  %v2112_v43 = vmin.f32 %v13072_v31, 0.0  ;;  %10524 = vmatpush3.msra.mxu0 %v12774_v60  ;;  %12029 = vpow2.f32 %v2127_v44  ;;  %v2125_v42 = vmul.f32 1.442695, %v2109_v57  ;;  %10574 = vmatpush3.msra.mxu1 %v12776_v61  ;;  %v13126_v10 = vld [vmem:[%s16262_s2] ss:$0 sm:$0xff] }
 0x14e   : > { %v12018_v15 = vpop.eup %12017  ;;  %v9000_v58 = vadd.f32 -1.0, %v12016_v45  ;;  %v10356_v34 = vpop.f32.mrf.mxu0  ;;  %10525 = vmatprep.subr.mxu0 %v12782_v62  ;;  %v2111_v35 = vmin.f32 %v13080_v17, 0.0  ;;  %v13098_v60 = vadd.f32 %v12795_v3, %v2066_v6  ;;  %10575 = vmatprep.subr.mxu1 %v12157_v47  ;;  %vm1514_vm15 = vcmp.gt.f32.partialorder %v13032_v51, 0.0 }
 0x14f   : > { %v10384_v24 = vpop.f32.mrf.mxu1  ;;  %v1588_v59 = vsel %vm1508_vm9, %v12965_v36, %v9001_v63  ;;  %v9003_v52 = vadd.f32 -1.0, %v12018_v15  ;;  %v13092_v13 = vld [vmem:[#allocation2 + $0xa1] ss:$2 sm:$0xff]  ;;  %v2242_v2 = vld [vmem:[#allocation2 + $0xa0] ss:$2 sm:$0xff]  ;;  %12031 = vpow2.f32 %v2125_v42  ;;  %v2065_v36 = vmax.f32 %v1777_v50, %v2002_v20  ;;  %10526 = vmatpush3.msra.mxu0 %v12158_v54  ;;  %10576 = vmatpush3.msra.mxu1 %v12157_v47 }
 0x150   : > { %v12020_v18 = vpop.eup %12019  ;;  %1604 = vst [vmem:[#allocation2 + $0xc8] sm:$0xff] %v1588_v59  ;;  %v1587_v22 = vsel %vm1507_vm10, %v12970_v8, %v9000_v58  ;;  %10444 = vmatprep.mubr.f32.mxu0 %v13092_v13  ;;  %10494 = vmatprep.mubr.f32.mxu1 %v2242_v2  ;;  %v1787_v5 = vpop.f32.mrf.mxu0  ;;  %v2131_v23 = vmul.f32 1.442695, %v2112_v43  ;;  %v2129_v25 = vmul.f32 1.442695, %v2111_v35  ;;  %v2068_v49 = vmax.f32 %v10356_v34, %v10384_v24 }
 0x151   : > { %v9002_v53 = vadd.f32 -1.0, %v12020_v18  ;;  %v2012_v61 = vpop.f32.mrf.mxu1  ;;  %1603 = vst [vmem:[#allocation2 + $0xc0] sm:$0xff] %v1587_v22  ;;  %v1590_v62 = vsel %vm1510_vm11, %v12973_v41, %v9003_v52  ;;  %10527 = vmatprep.subr.mxu0 %v12159_v21  ;;  %v13114_v41 = vadd.f32 %v12795_v3, %v2065_v36  ;;  %v2114_v4 = vmin.f32 %v13098_v60, 0.0  ;;  %v12160_v3 = vld [vmem:[#allocation6] sm:$0xff] }
 0x152   : > { %v12022_v8 = vpop.eup %12021  ;;  %1606 = vst [vmem:[#allocation2 + $0xd8] sm:$0xff] %v1590_v62  ;;  %v10359_v39 = vpop.f32.mrf.mxu0  ;;  %12033 = vpow2.f32 %v2131_v23  ;;  %v2067_v56 = vmax.f32 %v1787_v5, %v2012_v61  ;;  %10577 = vmatprep.subr.mxu1 %v12160_v3  ;;  %v13129_v57 = vadd.f32 %v13126_v10, %v2068_v49  ;;  %10528 = vmatpush3.msra.mxu0 %v12159_v21  ;;  %v13138_v58 = vld [vmem:[#allocation2 + $0x12] ss:$2 sm:$0xff]  ;;  %vm1513_vm0 = vcmp.gt.f32.partialorder %v13035_v11, 0.0  ;;  %v13149_v35 = vld [vmem:[#allocation2 + $0x22] ss:$2 sm:$0xff] }
 0x153   : > { %v1589_v37 = vsel %vm1509_vm12, %v12990_v29, %v9002_v53  ;;  %v13110_v55 = vld [vmem:[#allocation2 + $0xb1] ss:$2 sm:$0xff]  ;;  %v2244_v38 = vld [vmem:[#allocation2 + $0xb0] ss:$2 sm:$0xff]  ;;  %v10387_v1 = vpop.f32.mrf.mxu1  ;;  %v9005_v26 = vadd.f32 -1.0, %v12022_v8  ;;  %v12024_v44 = vpop.eup %12023  ;;  %12035 = vpow2.f32 %v2129_v25  ;;  %v2113_v6 = vmin.f32 %v13114_v41, 0.0  ;;  %10578 = vmatpush3.msra.mxu1 %v12160_v3 }
 0x154   : > { %1605 = vst [vmem:[#allocation2 + $0xd0] sm:$0xff] %v1589_v37  ;;  %10445 = vmatmul.mubr.f32.gmra.mxu0 %v13110_v55  ;;  %10495 = vmatmul.mubr.f32.gmra.mxu1 %v2244_v38  ;;  %v2826_v29 = vld [vmem:[#allocation6 + $0x178] sm:$0xff]  ;;  %v1797_v50 = vpop.f32.mrf.mxu0  ;;  %v9004_v63 = vadd.f32 -1.0, %v12024_v44  ;;  %v2135_v43 = vmul.f32 1.442695, %v2114_v4  ;;  %v13136_v15 = vadd.f32 %v13126_v10, %v2067_v56  ;;  %v2070_v34 = vmax.f32 %v10359_v39, %v10387_v1  ;;  %v2823_v3 = vld [vmem:[#allocation6 + $0x160] sm:$0xff] }
 0x155   : > { %10529 = vmatprep.mubr.f32.mxu0 %v13117_v9  ;;  %v2022_v20 = vpop.f32.mrf.mxu1  ;;  %10579 = vmatprep.mubr.f32.mxu1 %v12874_v14  ;;  %v1592_v45 = vsel %vm1512_vm13, %v13008_v40, %v9005_v26  ;;  %v2133_v42 = vmul.f32 1.442695, %v2113_v6  ;;  %v2116_v14 = vmin.f32 %v13129_v57, 0.0  ;;  %v2825_v40 = vld [vmem:[#allocation6 + $0x170] sm:$0xff]  ;;  %vm2094_vm1 = vcmp.gt.f32.partialorder %v13051_v27, 0.0 }
 0x156   : > { %10597 = vmatprep.subr.mxu0 %v2826_v29  ;;  %1608 = vst [vmem:[#allocation2 + $0xe8] sm:$0xff] %v1592_v45  ;;  %v10362_v24 = vpop.f32.mrf.mxu0  ;;  %v12026_v59 = vpop.eup %12025  ;;  %10647 = vmatprep.subr.mxu1 %v2826_v29  ;;  %v1591_v52 = vsel %vm1511_vm14, %v13011_v48, %v9004_v63  ;;  %12037 = vpow2.f32 %v2135_v43  ;;  %v2115_v2 = vmin.f32 %v13136_v15, 0.0  ;;  %v13152_v53 = vadd.f32 %v13126_v10, %v2070_v34  ;;  %v2824_v48 = vld [vmem:[#allocation6 + $0x168] sm:$0xff]  ;;  %v13170_v1 = vld [vmem:[#allocation2 + $0x32] ss:$2 sm:$0xff] }
 0x157   : > { %v10390_v18 = vpop.f32.mrf.mxu1  ;;  %1607 = vst [vmem:[#allocation2 + $0xe0] sm:$0xff] %v1591_v52  ;;  %v9007_v22 = vadd.f32 -1.0, %v12026_v59  ;;  %12039 = vpow2.f32 %v2133_v42  ;;  %v2069_v36 = vmax.f32 %v1797_v50, %v2022_v20  ;;  %v2139_v62 = vmul.f32 1.442695, %v2116_v14  ;;  %v13180_v45 = vld [vmem:[#allocation2 + $0x42] ss:$2 sm:$0xff] }
 0x158   : > { %10530 = vmatmul.mubr.f32.vlgmr.msra.gmra.mxu0 %v13138_v58  ;;  %10580 = vmatmul.mubr.f32.vlgmr.msra.gmra.mxu1 %v12893_v12  ;;  %v1807_v5 = vpop.f32.mrf.mxu0  ;;  %v2137_v47 = vmul.f32 1.442695, %v2115_v2  ;;  %v2072_v54 = vmax.f32 %v10362_v24, %v10390_v18  ;;  %v2118_v8 = vmin.f32 %v13152_v53, 0.0  ;;  %vm2093_vm2 = vcmp.gt.f32.partialorder %v13063_v0, 0.0  ;;  %v2822_v14 = vld [vmem:[#allocation6 + $0x158] sm:$0xff] }
 0x159   : > { %10598 = vmatpush3.msra.mxu0 %v2826_v29  ;;  %v2032_v61 = vpop.f32.mrf.mxu1  ;;  %10648 = vmatpush3.msra.mxu1 %v2826_v29  ;;  %v12028_v23 = vpop.eup %12027  ;;  %v1594_v25 = vsel %vm1514_vm15, %v13032_v51, %v9007_v22  ;;  %v13162_v37 = vadd.f32 %v13126_v10, %v2069_v36  ;;  %12041 = vpow2.f32 %v2139_v62  ;;  %vm2096_vm3 = vcmp.gt.f32.partialorder %v13072_v31, 0.0 }
 0x15a   : > { %10532 = vmatprep.mubr.f32.mxu0 %v13149_v35  ;;  %v2071_v12 = vmax.f32 %v1807_v5, %v2032_v61  ;;  %10582 = vmatprep.mubr.f32.mxu1 %v12914_v7  ;;  %v10365_v38 = vpop.f32.mrf.mxu0  ;;  %v12030_v49 = vpop.eup %12029  ;;  %1610 = vst [vmem:[#allocation2 + $0xf8] sm:$0xff] %v1594_v25  ;;  %v9006_v39 = vadd.f32 -1.0, %v12028_v23  ;;  %v13165_v7 = vadd.f32 %v13126_v10, %v2072_v54  ;;  %12043 = vpow2.f32 %v2137_v47  ;;  %v2821_v54 = vld [vmem:[#allocation6 + $0x150] sm:$0xff] }
 0x15b   : > { %10599 = vmatprep.subr.mxu0 %v2825_v40  ;;  %v10393_v21 = vpop.f32.mrf.mxu1  ;;  %10649 = vmatprep.subr.mxu1 %v2825_v40  ;;  %v9073_v29 = vadd.f32 -1.0, %v12030_v49  ;;  %v2143_v26 = vmul.f32 1.442695, %v2118_v8  ;;  %v2117_v50 = vmin.f32 %v13162_v37, 0.0  ;;  %vm2095_vm4 = vcmp.gt.f32.partialorder %v13080_v17, 0.0  ;;  %v2820_v49 = vld [vmem:[#allocation6 + $0x148] sm:$0xff] }
 0x15c   : > { %10600 = vmatpush3.msra.mxu0 %v2825_v40  ;;  %v13168_v51 = vadd.f32 %v13126_v10, %v2071_v12  ;;  %10650 = vmatpush3.msra.mxu1 %v2825_v40  ;;  %v1817_v4 = vpop.f32.mrf.mxu0  ;;  %v12032_v44 = vpop.eup %12031  ;;  %v1593_v6 = vsel %vm1513_vm0, %v13035_v11, %v9006_v39  ;;  %v2120_v20 = vmin.f32 %v13165_v7, 0.0  ;;  %v2074_v18 = vmax.f32 %v10365_v38, %v10393_v21  ;;  %v13210_v8 = vld [vmem:[#allocation2 + $0x62] ss:$2 sm:$0xff] }
 0x15d   : > { %10601 = vmatprep.subr.mxu0 %v2824_v48  ;;  %v2042_v56 = vpop.f32.mrf.mxu1  ;;  %10651 = vmatprep.subr.mxu1 %v2824_v48  ;;  %1609 = vst [vmem:[#allocation2 + $0xf0] sm:$0xff] %v1593_v6  ;;  %v2174_v63 = vsel %vm2094_vm1, %v13051_v27, %v9073_v29  ;;  %v9072_v43 = vadd.f32 -1.0, %v12032_v44  ;;  %12045 = vpow2.f32 %v2143_v26  ;;  %vm2098_vm5 = vcmp.gt.f32.partialorder %v13098_v60, 0.0 }
 0x15e   : > { %10533 = vmatmul.mubr.f32.gmra.mxu0 %v13170_v1  ;;  %10583 = vmatmul.mubr.f32.gmra.mxu1 %v12932_v32  ;;  %v10368_v11 = vpop.f32.mrf.mxu0  ;;  %2190 = vst [vmem:[#allocation2 + $0x108] sm:$0xff] %v2174_v63  ;;  %v2141_v32 = vmul.f32 1.442695, %v2117_v50  ;;  %v2147_v34 = vmul.f32 1.442695, %v2120_v20  ;;  %v2119_v24 = vmin.f32 %v13168_v51, 0.0  ;;  %v2073_v40 = vmax.f32 %v1817_v4, %v2042_v56 }
 0x15f   : > { %10602 = vmatpush3.msra.mxu0 %v2824_v48  ;;  %v10396_v42 = vpop.f32.mrf.mxu1  ;;  %10652 = vmatpush3.msra.mxu1 %v2824_v48  ;;  %v12034_v59 = vpop.eup %12033  ;;  %v2173_v27 = vsel %vm2093_vm2, %v13063_v0, %v9072_v43  ;;  %v13194_v5 = vadd.f32 %v13126_v10, %v2074_v18  ;;  %vm2097_vm6 = vcmp.gt.f32.partialorder %v13114_v41, 0.0  ;;  %v13227_v50 = vld [vmem:[#allocation2 + $0x72] ss:$2 sm:$0xff]  ;;  %vm2100_vm7 = vcmp.gt.f32.partialorder %v13129_v57, 0.0  ;;  %v13237_v43 = vld [vmem:[#allocation2 + $0x82] ss:$2 sm:$0xff] }
 0x160   : > { %10535 = vmatprep.mubr.f32.mxu0 %v13180_v45  ;;  %10585 = vmatprep.mubr.f32.mxu1 %v12957_v19  ;;  %v2076_v52 = vmax.f32 %v10368_v11, %v10396_v42  ;;  %v12036_v2 = vpop.eup %12035  ;;  %2189 = vst [vmem:[#allocation2 + $0x100] sm:$0xff] %v2173_v27  ;;  %v9075_v22 = vadd.f32 -1.0, %v12034_v59  ;;  %12047 = vpow2.f32 %v2141_v32  ;;  %v2145_v36 = vmul.f32 1.442695, %v2119_v24  ;;  %v13196_v19 = vld [vmem:[#allocation2 + $0x52] ss:$2 sm:$0xff]  ;;  %v1827_v62 = vpop.f32.mrf.mxu0 }
 0x161   : > { %10603 = vmatprep.subr.mxu0 %v2823_v3  ;;  %10653 = vmatprep.subr.mxu1 %v2823_v3  ;;  %v9074_v61 = vadd.f32 -1.0, %v12036_v2  ;;  %12049 = vpow2.f32 %v2147_v34  ;;  %v13199_v0 = vadd.f32 %v13126_v10, %v2073_v40  ;;  %v2052_v47 = vpop.f32.mrf.mxu1  ;;  %v2122_v23 = vmin.f32 %v13194_v5, 0.0  ;;  %v2818_v42 = vld [vmem:[#allocation6 + $0x138] sm:$0xff]  ;;  %v2817_v59 = vld [vmem:[#allocation6 + $0x130] sm:$0xff] }
 0x162   : > { %10604 = vmatpush3.msra.mxu0 %v2823_v3  ;;  %10654 = vmatpush3.msra.mxu1 %v2823_v3  ;;  %v13202_v48 = vadd.f32 %v13126_v10, %v2076_v52  ;;  %v2176_v12 = vsel %vm2096_vm3, %v13072_v31, %v9075_v22  ;;  %12051 = vpow2.f32 %v2145_v36  ;;  %v2075_v26 = vmax.f32 %v1827_v62, %v2052_v47  ;;  %v13255_v40 = vld [vmem:[#allocation2 + $0xa2] ss:$2 sm:$0xff]  ;;  %v13265_v62 = vld [vmem:[#allocation2 + $0xb2] ss:$2 sm:$0xff] }
 0x163   : > { %10605 = vmatprep.subr.mxu0 %v2822_v14  ;;  %10655 = vmatprep.subr.mxu1 %v2822_v14  ;;  %v12038_v25 = vpop.eup %12037  ;;  %2192 = vst [vmem:[#allocation2 + $0x118] sm:$0xff] %v2176_v12  ;;  %v2175_v38 = vsel %vm2095_vm4, %v13080_v17, %v9074_v61  ;;  %v2121_v31 = vmin.f32 %v13199_v0, 0.0  ;;  %v2151_v39 = vmul.f32 1.442695, %v2122_v23  ;;  %vm2099_vm8 = vcmp.gt.f32.partialorder %v13136_v15, 0.0  ;;  %v2815_v47 = vld [vmem:[#allocation6 + $0x120] sm:$0xff] }
 0x164   : > { %10536 = vmatmul.mubr.f32.gmra.mxu0 %v13196_v19  ;;  %10586 = vmatmul.mubr.f32.gmra.mxu1 %v12978_v16  ;;  %v12040_v21 = vpop.eup %12039  ;;  %2191 = vst [vmem:[#allocation2 + $0x110] sm:$0xff] %v2175_v38  ;;  %v9077_v16 = vadd.f32 -1.0, %v12038_v25  ;;  %v2124_v29 = vmin.f32 %v13202_v48, 0.0  ;;  %v13225_v3 = vadd.f32 %v13126_v10, %v2075_v26  ;;  %vm2102_vm9 = vcmp.gt.f32.partialorder %v13152_v53, 0.0  ;;  %v13274_v25 = vld [vmem:[#allocation2 + $0x3] ss:$2 sm:$0xff] }
 0x165   : > { %10606 = vmatpush3.msra.mxu0 %v2822_v14  ;;  %10656 = vmatpush3.msra.mxu1 %v2822_v14  ;;  %v9076_v17 = vadd.f32 -1.0, %v12040_v21  ;;  %v2149_v4 = vmul.f32 1.442695, %v2121_v31  ;;  %12053 = vpow2.f32 %v2151_v39  ;;  %vm2101_vm10 = vcmp.gt.f32.partialorder %v13162_v37, 0.0  ;;  %v3140_v39 = vld [vmem:[#allocation6 + $0x1f0] sm:$0xff]  ;;  %v3139_v26 = vld [vmem:[#allocation6 + $0x1e8] sm:$0xff] }
 0x166   : > { %10538 = vmatprep.mubr.f32.mxu0 %v13210_v8  ;;  %10588 = vmatprep.mubr.f32.mxu1 %v13003_v33  ;;  %v2178_v56 = vsel %vm2098_vm5, %v13098_v60, %v9077_v16  ;;  %v2155_v44 = vmul.f32 1.442695, %v2124_v29  ;;  %v12042_v6 = vpop.eup %12041  ;;  %v2819_v60 = vld [vmem:[#allocation6 + $0x140] sm:$0xff]  ;;  %v2123_v63 = vmin.f32 %v13225_v3, 0.0  ;;  %vm2104_vm11 = vcmp.gt.f32.partialorder %v13165_v7, 0.0 }
 0x167   : > { %10607 = vmatprep.subr.mxu0 %v2821_v54  ;;  %10657 = vmatprep.subr.mxu1 %v2821_v54  ;;  %2194 = vst [vmem:[#allocation2 + $0x128] sm:$0xff] %v2178_v56  ;;  %v2177_v33 = vsel %vm2097_vm6, %v13114_v41, %v9076_v17  ;;  %12055 = vpow2.f32 %v2149_v4  ;;  %v12044_v20 = vpop.eup %12043  ;;  %v9079_v10 = vadd.f32 -1.0, %v12042_v6  ;;  %vm2103_vm12 = vcmp.gt.f32.partialorder %v13168_v51, 0.0  ;;  %v13282_v16 = vld [vmem:[#allocation2 + $0x13] ss:$2 sm:$0xff] }
 0x168   : > { %10608 = vmatpush3.msra.mxu0 %v2821_v54  ;;  %10658 = vmatpush3.msra.mxu1 %v2821_v54  ;;  %2193 = vst [vmem:[#allocation2 + $0x120] sm:$0xff] %v2177_v33  ;;  %12057 = vpow2.f32 %v2155_v44  ;;  %v9078_v41 = vadd.f32 -1.0, %v12044_v20  ;;  %v2153_v32 = vmul.f32 1.442695, %v2123_v63  ;;  %vm2106_vm13 = vcmp.gt.f32.partialorder %v13194_v5, 0.0  ;;  %v2814_v54 = vld [vmem:[#allocation6 + $0x118] sm:$0xff] }
 0x169   : > { %10609 = vmatprep.subr.mxu0 %v2820_v49  ;;  %10659 = vmatprep.subr.mxu1 %v2820_v49  ;;  %v2180_v14 = vsel %vm2100_vm7, %v13129_v57, %v9079_v10  ;;  %v13248_v57 = vld [vmem:[#allocation2 + $0x92] ss:$2 sm:$0xff]  ;;  %vm2105_vm14 = vcmp.gt.f32.partialorder %v13199_v0, 0.0  ;;  %vm2108_vm15 = vcmp.gt.f32.partialorder %v13202_v48, 0.0  ;;  %vm2107_vm0 = vcmp.gt.f32.partialorder %v13225_v3, 0.0  ;;  %v3135_v44 = vld [vmem:[#allocation6 + $0x1c8] sm:$0xff] }
 0x16a   : > { %10539 = vmatmul.mubr.f32.gmra.mxu0 %v13227_v50  ;;  %10589 = vmatmul.mubr.f32.gmra.mxu1 %v13022_v28  ;;  %v12046_v11 = vpop.eup %12045  ;;  %2196 = vst [vmem:[#allocation2 + $0x138] sm:$0xff] %v2180_v14  ;;  %v2179_v28 = vsel %vm2099_vm8, %v13136_v15, %v9078_v41  ;;  %12059 = vpow2.f32 %v2153_v32  ;;  %v13286_v29 = vld [vmem:[#allocation2 + $0x23] ss:$2 sm:$0xff]  ;;  %v3137_v4 = vld [vmem:[#allocation6 + $0x1d8] sm:$0xff] }
 0x16b   : > { %10610 = vmatpush3.msra.mxu0 %v2820_v49  ;;  %10660 = vmatpush3.msra.mxu1 %v2820_v49  ;;  %v9081_v34 = vadd.f32 -1.0, %v12046_v11  ;;  %2195 = vst [vmem:[#allocation2 + $0x130] sm:$0xff] %v2179_v28  ;;  %v3138_v17 = vld [vmem:[#allocation6 + $0x1e0] sm:$0xff]  ;;  %v3136_v56 = vld [vmem:[#allocation6 + $0x1d0] sm:$0xff]  ;;  %v3133_v6 = vld [vmem:[#allocation6 + $0x1b8] sm:$0xff] }
 0x16c   : > { %10541 = vmatprep.mubr.f32.mxu0 %v13237_v43  ;;  %10591 = vmatprep.mubr.f32.mxu1 %v13046_v46  ;;  %v3132_v33 = vld [vmem:[#allocation6 + $0x1b0] sm:$0xff]  ;;  %v3130_v63 = vld [vmem:[#allocation6 + $0x1a0] sm:$0xff]  ;;  %v3129_v41 = vld [vmem:[#allocation6 + $0x198] sm:$0xff] }
 0x16d   : > { %10611 = vmatprep.subr.mxu0 %v2819_v60  ;;  %10661 = vmatprep.subr.mxu1 %v2819_v60  ;;  %v12048_v24 = vpop.eup %12047  ;;  %v2182_v18 = vsel %vm2102_vm9, %v13152_v53, %v9081_v34  ;;  %v2816_v53 = vld [vmem:[#allocation6 + $0x128] sm:$0xff]  ;;  %v13322_v10 = vld [vmem:[#allocation2 + $0xb3] ss:$2 sm:$0xff]  ;;  %v13330_v28 = vld [vmem:[#allocation2 + $0x14] ss:$2 sm:$0xff] }
 0x16e   : > { %10612 = vmatpush3.msra.mxu0 %v2819_v60  ;;  %10662 = vmatpush3.msra.mxu1 %v2819_v60  ;;  %v12050_v46 = vpop.eup %12049  ;;  %2198 = vst [vmem:[#allocation2 + $0x148] sm:$0xff] %v2182_v18  ;;  %v9080_v15 = vadd.f32 -1.0, %v12048_v24  ;;  %v13318_v20 = vld [vmem:[#allocation2 + $0xa3] ss:$2 sm:$0xff]  ;;  %v3456_v32 = vld [vmem:[#allocation6 + $0x278] sm:$0xff] }
 0x16f   : > { %10613 = vmatprep.subr.mxu0 %v2818_v42  ;;  %10663 = vmatprep.subr.mxu1 %v2818_v42  ;;  %v12052_v27 = vpop.eup %12051  ;;  %v9083_v52 = vadd.f32 -1.0, %v12050_v46  ;;  %v3131_v60 = vld [vmem:[#allocation6 + $0x1a8] sm:$0xff]  ;;  %v3128_v11 = vld [vmem:[#allocation6 + $0x190] sm:$0xff]  ;;  %v3126_v14 = vld [vmem:[#allocation6 + $0x180] sm:$0xff] }
 0x170   : > { %10542 = vmatmul.mubr.f32.gmra.mxu0 %v13248_v57  ;;  %10592 = vmatmul.mubr.f32.gmra.mxu1 %v13066_v30  ;;  %v2181_v2 = vsel %vm2101_vm10, %v13162_v37, %v9080_v15  ;;  %v9082_v22 = vadd.f32 -1.0, %v12052_v27  ;;  %v3455_v34 = vld [vmem:[#allocation6 + $0x270] sm:$0xff]  ;;  %v3453_v46 = vld [vmem:[#allocation6 + $0x260] sm:$0xff]  ;;  %v3452_v15 = vld [vmem:[#allocation6 + $0x258] sm:$0xff] }
 0x171   : > { %10614 = vmatpush3.msra.mxu0 %v2818_v42  ;;  %10664 = vmatpush3.msra.mxu1 %v2818_v42  ;;  %2197 = vst [vmem:[#allocation2 + $0x140] sm:$0xff] %v2181_v2  ;;  %v2184_v30 = vsel %vm2104_vm11, %v13165_v7, %v9083_v52  ;;  %v3127_v42 = vld [vmem:[#allocation6 + $0x188] sm:$0xff]  ;;  %v13338_v18 = vld [vmem:[#allocation2 + $0x34] ss:$2 sm:$0xff] }
 0x172   : > { %10544 = vmatprep.mubr.f32.mxu0 %v13255_v40  ;;  %10594 = vmatprep.mubr.f32.mxu1 %v13092_v13  ;;  %2200 = vst [vmem:[#allocation2 + $0x158] sm:$0xff] %v2184_v30  ;;  %v2183_v36 = vsel %vm2103_vm12, %v13168_v51, %v9082_v22  ;;  %v12054_v61 = vpop.eup %12053  ;;  %v13334_v24 = vld [vmem:[#allocation2 + $0x24] ss:$2 sm:$0xff]  ;;  %v13346_v27 = vld [vmem:[#allocation2 + $0x54] ss:$2 sm:$0xff] }
 0x173   : > { %10615 = vmatprep.subr.mxu0 %v2817_v59  ;;  %10665 = vmatprep.subr.mxu1 %v2817_v59  ;;  %2199 = vst [vmem:[#allocation2 + $0x150] sm:$0xff] %v2183_v36  ;;  %v9085_v13 = vadd.f32 -1.0, %v12054_v61  ;;  %v13350_v52 = vld [vmem:[#allocation2 + $0x64] ss:$2 sm:$0xff]  ;;  %v13354_v2 = vld [vmem:[#allocation2 + $0x74] ss:$2 sm:$0xff] }
 0x174   : > { %10616 = vmatpush3.msra.mxu0 %v2817_v59  ;;  %10666 = vmatpush3.msra.mxu1 %v2817_v59  ;;  %v12056_v37 = vpop.eup %12055  ;;  %v13342_v59 = vld [vmem:[#allocation2 + $0x44] ss:$2 sm:$0xff]  ;;  %v3448_v36 = vld [vmem:[#allocation6 + $0x238] sm:$0xff] }
 0x175   : > { %10617 = vmatprep.subr.mxu0 %v2816_v53  ;;  %10667 = vmatprep.subr.mxu1 %v2816_v53  ;;  %v12058_v7 = vpop.eup %12057  ;;  %v9084_v51 = vadd.f32 -1.0, %v12056_v37  ;;  %v2186_v12 = vsel %vm2106_vm13, %v13194_v5, %v9085_v13  ;;  %v3449_v22 = vld [vmem:[#allocation6 + $0x240] sm:$0xff]  ;;  %v3446_v37 = vld [vmem:[#allocation6 + $0x228] sm:$0xff] }
 0x176   : > { %10545 = vmatmul.mubr.f32.gmra.mxu0 %v13265_v62  ;;  %10595 = vmatmul.mubr.f32.gmra.mxu1 %v13110_v55  ;;  %v9087_v23 = vadd.f32 -1.0, %v12058_v7  ;;  %2202 = vst [vmem:[#allocation2 + $0x168] sm:$0xff] %v2186_v12  ;;  %v2813_v55 = vld [vmem:[#allocation6 + $0x110] sm:$0xff]  ;;  %v3445_v7 = vld [vmem:[#allocation6 + $0x220] sm:$0xff] }
 0x177   : > { %10618 = vmatpush3.msra.mxu0 %v2816_v53  ;;  %10668 = vmatpush3.msra.mxu1 %v2816_v53  ;;  %v2185_v38 = vsel %vm2105_vm14, %v13199_v0, %v9084_v51  ;;  %v12060_v21 = vpop.eup %12059  ;;  %v2811_v0 = vld [vmem:[#allocation6 + $0x100] sm:$0xff]  ;;  %v3450_v53 = vld [vmem:[#allocation6 + $0x248] sm:$0xff]  ;;  %v3443_v12 = vld [vmem:[#allocation6 + $0x210] sm:$0xff] }
 0x178   : > { %10619 = vmatprep.subr.mxu0 %v2815_v47  ;;  %10629 = vmatprep.mubr.f32.mxu0 %v13117_v9  ;;  %2201 = vst [vmem:[#allocation2 + $0x160] sm:$0xff] %v2185_v38  ;;  %v2188_v31 = vsel %vm2108_vm15, %v13202_v48, %v9087_v23  ;;  %v2812_v9 = vld [vmem:[#allocation6 + $0x108] sm:$0xff]  ;;  %v9086_v5 = vadd.f32 -1.0, %v12060_v21  ;;  %v3141_v48 = vld [vmem:[#allocation6 + $0x1f8] sm:$0xff]  ;;  %v13380_v21 = vld [vmem:[#allocation6 + $0xf0] sm:$0xff] }
 0x179   : > { %10669 = vmatprep.subr.mxu1 %v2815_v47  ;;  %10679 = vmatprep.mubr.f32.mxu1 %v13274_v25  ;;  %2204 = vst [vmem:[#allocation2 + $0x178] sm:$0xff] %v2188_v31  ;;  %v13358_v30 = vld [vmem:[#allocation2 + $0x84] ss:$2 sm:$0xff]  ;;  %v13362_v61 = vld [vmem:[#allocation2 + $0x94] ss:$2 sm:$0xff] }
 0x17a   : > { %10620 = vmatpush3.msra.mxu0 %v2815_v47  ;;  %10670 = vmatpush3.msra.mxu1 %v2815_v47  ;;  %v2187_v49 = vsel %vm2107_vm0, %v13225_v3, %v9086_v5  ;;  %v3134_v3 = vld [vmem:[#allocation6 + $0x1c0] sm:$0xff]  ;;  %v3442_v23 = vld [vmem:[#allocation6 + $0x208] sm:$0xff]  ;;  %v13374_v38 = vld [vmem:[#allocation6 + $0xf8] sm:$0xff] }
 0x17b   : > { %10621 = vmatprep.subr.mxu0 %v2814_v54  ;;  %10671 = vmatprep.subr.mxu1 %v2814_v54  ;;  %2203 = vst [vmem:[#allocation2 + $0x170] sm:$0xff] %v2187_v49  ;;  %v13366_v47 = vld [vmem:[#allocation2 + $0xa4] ss:$2 sm:$0xff]  ;;  %v13370_v13 = vld [vmem:[#allocation2 + $0xb4] ss:$2 sm:$0xff] }
 0x17c   : > { %10622 = vmatpush3.msra.mxu0 %v2814_v54  ;;  %10672 = vmatpush3.msra.mxu1 %v2814_v54  ;;  %v3595_v51 = vld [vmem:[#allocation2 + $0x5] ss:$2 sm:$0xff]  ;;  %v3444_v54 = vld [vmem:[#allocation6 + $0x218] sm:$0xff] }
 0x17d   : > { %10623 = vmatprep.subr.mxu0 %v2813_v55  ;;  %10673 = vmatprep.subr.mxu1 %v2813_v55  ;;  %v3597_v31 = vld [vmem:[#allocation2 + $0x15] ss:$2 sm:$0xff]  ;;  %v13393_v49 = vld [vmem:[#allocation6 + $0x68] sm:$0xff] }
 0x17e   : > { %10624 = vmatpush3.msra.mxu0 %v2813_v55  ;;  %10674 = vmatpush3.msra.mxu1 %v2813_v55  ;;  %v13376_v55 = vld [vmem:[#allocation6 + $0x78] sm:$0xff]  ;;  %v13384_v5 = vld [vmem:[#allocation6 + $0x70] sm:$0xff] }
 0x17f   : > { %10625 = vmatprep.subr.mxu0 %v2812_v9  ;;  %10675 = vmatprep.subr.mxu1 %v2812_v9 }
 0x180   : > { %10626 = vmatpush3.msra.mxu0 %v2812_v9  ;;  %10676 = vmatpush3.msra.mxu1 %v2812_v9  ;;  %v3599_v9 = vld [vmem:[#allocation2 + $0x25] ss:$2 sm:$0xff] }
 0x181   : > { %10627 = vmatprep.subr.mxu0 %v2811_v0  ;;  %10677 = vmatprep.subr.mxu1 %v2811_v0 }
 0x182   : > { %10628 = vmatpush3.msra.mxu0 %v2811_v0  ;;  %10678 = vmatpush3.msra.mxu1 %v2811_v0  ;;  %v13389_v0 = vld [vmem:[#allocation6 + $0xe8] sm:$0xff] }
 0x183   : > { %10630 = vmatmul.mubr.f32.vlgmr.msra.gmra.mxu0 %v13138_v58  ;;  %10680 = vmatmul.mubr.f32.vlgmr.msra.gmra.mxu1 %v13282_v16  ;;  %v13290_v58 = vld [vmem:[#allocation2 + $0x33] ss:$2 sm:$0xff] }
 0x184   : > { %10697 = vmatprep.subr.mxu0 %v3141_v48  ;;  %10747 = vmatprep.subr.mxu1 %v3141_v48 }
 0x185   : > { %10632 = vmatprep.mubr.f32.mxu0 %v13149_v35  ;;  %10682 = vmatprep.mubr.f32.mxu1 %v13286_v29  ;;  %v13294_v35 = vld [vmem:[#allocation2 + $0x43] ss:$2 sm:$0xff] }
 0x186   : > { %10698 = vmatpush3.msra.mxu0 %v3141_v48  ;;  %10748 = vmatpush3.msra.mxu1 %v3141_v48  ;;  %v3601_v48 = vld [vmem:[#allocation2 + $0x35] ss:$2 sm:$0xff] }
 0x187   : > { %10699 = vmatprep.subr.mxu0 %v3140_v39  ;;  %10749 = vmatprep.subr.mxu1 %v3140_v39 }
 0x188   : > { %10700 = vmatpush3.msra.mxu0 %v3140_v39  ;;  %10750 = vmatpush3.msra.mxu1 %v3140_v39  ;;  %v3603_v39 = vld [vmem:[#allocation2 + $0x45] ss:$2 sm:$0xff] }
 0x189   : > { %10633 = vmatmul.mubr.f32.gmra.mxu0 %v13170_v1  ;;  %10683 = vmatmul.mubr.f32.gmra.mxu1 %v13290_v58  ;;  %v13298_v1 = vld [vmem:[#allocation2 + $0x53] ss:$2 sm:$0xff] }
 0x18a   : > { %10701 = vmatprep.subr.mxu0 %v3139_v26  ;;  %10751 = vmatprep.subr.mxu1 %v3139_v26 }
 0x18b   : > { %10635 = vmatprep.mubr.f32.mxu0 %v13180_v45  ;;  %10685 = vmatprep.mubr.f32.mxu1 %v13294_v35  ;;  %v13302_v45 = vld [vmem:[#allocation2 + $0x63] ss:$2 sm:$0xff] }
 0x18c   : > { %10702 = vmatpush3.msra.mxu0 %v3139_v26  ;;  %10752 = vmatpush3.msra.mxu1 %v3139_v26  ;;  %v13407_v26 = vld [vmem:[#allocation6 + $0xd8] sm:$0xff] }
 0x18d   : > { %10703 = vmatprep.subr.mxu0 %v3138_v17  ;;  %10753 = vmatprep.subr.mxu1 %v3138_v17 }
 0x18e   : > { %10704 = vmatpush3.msra.mxu0 %v3138_v17  ;;  %10754 = vmatpush3.msra.mxu1 %v3138_v17  ;;  %v3605_v17 = vld [vmem:[#allocation2 + $0x55] ss:$2 sm:$0xff] }
 0x18f   : > { %10636 = vmatmul.mubr.f32.gmra.mxu0 %v13196_v19  ;;  %10686 = vmatmul.mubr.f32.gmra.mxu1 %v13298_v1  ;;  %v13306_v19 = vld [vmem:[#allocation2 + $0x73] ss:$2 sm:$0xff] }
 0x190   : > { %10705 = vmatprep.subr.mxu0 %v3137_v4  ;;  %10755 = vmatprep.subr.mxu1 %v3137_v4 }
 0x191   : > { %10638 = vmatprep.mubr.f32.mxu0 %v13210_v8  ;;  %10688 = vmatprep.mubr.f32.mxu1 %v13302_v45  ;;  %v13310_v8 = vld [vmem:[#allocation2 + $0x83] ss:$2 sm:$0xff] }
 0x192   : > { %10706 = vmatpush3.msra.mxu0 %v3137_v4  ;;  %10756 = vmatpush3.msra.mxu1 %v3137_v4  ;;  %v3607_v4 = vld [vmem:[#allocation2 + $0x65] ss:$2 sm:$0xff] }
 0x193   : > { %10707 = vmatprep.subr.mxu0 %v3136_v56  ;;  %10757 = vmatprep.subr.mxu1 %v3136_v56 }
 0x194   : > { %10708 = vmatpush3.msra.mxu0 %v3136_v56  ;;  %10758 = vmatpush3.msra.mxu1 %v3136_v56  ;;  %v13425_v56 = vld [vmem:[#allocation6 + $0xc8] sm:$0xff] }
 0x195   : > { %10639 = vmatmul.mubr.f32.gmra.mxu0 %v13227_v50  ;;  %10689 = vmatmul.mubr.f32.gmra.mxu1 %v13306_v19  ;;  %v13314_v50 = vld [vmem:[#allocation2 + $0x93] ss:$2 sm:$0xff] }
 0x196   : > { %10709 = vmatprep.subr.mxu0 %v3135_v44  ;;  %10759 = vmatprep.subr.mxu1 %v3135_v44 }
 0x197   : > { %10641 = vmatprep.mubr.f32.mxu0 %v13237_v43  ;;  %10691 = vmatprep.mubr.f32.mxu1 %v13310_v8  ;;  %v13326_v43 = vld [vmem:[#allocation2 + $0x4] ss:$2 sm:$0xff] }
 0x198   : > { %10710 = vmatpush3.msra.mxu0 %v3135_v44  ;;  %10760 = vmatpush3.msra.mxu1 %v3135_v44 }
 0x199   : > { %10711 = vmatprep.subr.mxu0 %v3134_v3  ;;  %10761 = vmatprep.subr.mxu1 %v3134_v3 }
 0x19a   : > { %10712 = vmatpush3.msra.mxu0 %v3134_v3  ;;  %10762 = vmatpush3.msra.mxu1 %v3134_v3 }
 0x19b   : > { %10642 = vmatmul.mubr.f32.gmra.mxu0 %v13248_v57  ;;  %10692 = vmatmul.mubr.f32.gmra.mxu1 %v13314_v50  ;;  %v3454_v57 = vld [vmem:[#allocation6 + $0x268] sm:$0xff] }
 0x19c   : > { %10713 = vmatprep.subr.mxu0 %v3133_v6  ;;  %10763 = vmatprep.subr.mxu1 %v3133_v6 }
 0x19d   : > { %10644 = vmatprep.mubr.f32.mxu0 %v13255_v40  ;;  %10694 = vmatprep.mubr.f32.mxu1 %v13318_v20  ;;  %v3451_v40 = vld [vmem:[#allocation6 + $0x250] sm:$0xff] }
 0x19e   : > { %10714 = vmatpush3.msra.mxu0 %v3133_v6  ;;  %10764 = vmatpush3.msra.mxu1 %v3133_v6 }
 0x19f   : > { %10715 = vmatprep.subr.mxu0 %v3132_v33  ;;  %10765 = vmatprep.subr.mxu1 %v3132_v33 }
 0x1a0   : > { %10716 = vmatpush3.msra.mxu0 %v3132_v33  ;;  %10766 = vmatpush3.msra.mxu1 %v3132_v33  ;;  %v13440_v33 = vld [vmem:[#allocation6 + $0x40] sm:$0xff] }
 0x1a1   : > { %10645 = vmatmul.mubr.f32.gmra.mxu0 %v13265_v62  ;;  %10695 = vmatmul.mubr.f32.gmra.mxu1 %v13322_v10  ;;  %v3447_v62 = vld [vmem:[#allocation6 + $0x230] sm:$0xff] }
 0x1a2   : > { %10717 = vmatprep.subr.mxu0 %v3131_v60  ;;  %10767 = vmatprep.subr.mxu1 %v3131_v60 }
 0x1a3   : > { %10718 = vmatpush3.msra.mxu0 %v3131_v60  ;;  %10729 = vmatprep.mubr.f32.mxu0 %v13274_v25  ;;  %v3441_v25 = vld [vmem:[#allocation6 + $0x200] sm:$0xff] }
 0x1a4   : > { %10768 = vmatpush3.msra.mxu1 %v3131_v60  ;;  %10779 = vmatprep.mubr.f32.mxu1 %v13326_v43 }
 0x1a5   : > { %10719 = vmatprep.subr.mxu0 %v3130_v63  ;;  %10769 = vmatprep.subr.mxu1 %v3130_v63 }
 0x1a6   : > { %10720 = vmatpush3.msra.mxu0 %v3130_v63  ;;  %10770 = vmatpush3.msra.mxu1 %v3130_v63  ;;  %v13453_v63 = vld [vmem:[#allocation6 + $0x38] sm:$0xff] }
 0x1a7   : > { %10721 = vmatprep.subr.mxu0 %v3129_v41  ;;  %10771 = vmatprep.subr.mxu1 %v3129_v41 }
 0x1a8   : > { %10722 = vmatpush3.msra.mxu0 %v3129_v41  ;;  %10772 = vmatpush3.msra.mxu1 %v3129_v41 }
 0x1a9   : > { %10723 = vmatprep.subr.mxu0 %v3128_v11  ;;  %10773 = vmatprep.subr.mxu1 %v3128_v11 }
 0x1aa   : > { %10724 = vmatpush3.msra.mxu0 %v3128_v11  ;;  %10774 = vmatpush3.msra.mxu1 %v3128_v11 }
 0x1ab   : > { %10725 = vmatprep.subr.mxu0 %v3127_v42  ;;  %10775 = vmatprep.subr.mxu1 %v3127_v42 }
 0x1ac   : > { %10726 = vmatpush3.msra.mxu0 %v3127_v42  ;;  %10776 = vmatpush3.msra.mxu1 %v3127_v42  ;;  %v13458_v42 = vld [vmem:[#allocation6 + $0xb0] sm:$0xff] }
 0x1ad   : > { %10727 = vmatprep.subr.mxu0 %v3126_v14  ;;  %10777 = vmatprep.subr.mxu1 %v3126_v14 }
 0x1ae   : > { %10728 = vmatpush3.msra.mxu0 %v3126_v14  ;;  %10778 = vmatpush3.msra.mxu1 %v3126_v14 }
 0x1af   : > { %10730 = vmatmul.mubr.f32.vlgmr.msra.gmra.mxu0 %v13282_v16  ;;  %10780 = vmatmul.mubr.f32.vlgmr.msra.gmra.mxu1 %v13330_v28  ;;  %v13398_v16 = vld [vmem:[#allocation6 + $0xe0] sm:$0xff] }
 0x1b0   : > { %10797 = vmatprep.subr.mxu0 %v3456_v32  ;;  %10847 = vmatprep.subr.mxu1 %v3456_v32 }
 0x1b1   : > { %10732 = vmatprep.mubr.f32.mxu0 %v13286_v29  ;;  %10782 = vmatprep.mubr.f32.mxu1 %v13334_v24  ;;  %v13402_v29 = vld [vmem:[#allocation6 + $0x60] sm:$0xff] }
 0x1b2   : > { %10798 = vmatpush3.msra.mxu0 %v3456_v32  ;;  %10848 = vmatpush3.msra.mxu1 %v3456_v32  ;;  %v3615_v32 = vld [vmem:[#allocation2 + $0xa5] ss:$2 sm:$0xff] }
 0x1b3   : > { %10799 = vmatprep.subr.mxu0 %v3455_v34  ;;  %10849 = vmatprep.subr.mxu1 %v3455_v34 }
 0x1b4   : > { %10800 = vmatpush3.msra.mxu0 %v3455_v34  ;;  %10850 = vmatpush3.msra.mxu1 %v3455_v34  ;;  %v13469_v34 = vld [vmem:[#allocation6 + $0xa8] sm:$0xff] }
 0x1b5   : > { %10733 = vmatmul.mubr.f32.gmra.mxu0 %v13290_v58  ;;  %10783 = vmatmul.mubr.f32.gmra.mxu1 %v13338_v18  ;;  %v13411_v58 = vld [vmem:[#allocation6 + $0x58] sm:$0xff] }
 0x1b6   : > { %10801 = vmatprep.subr.mxu0 %v3454_v57  ;;  %10851 = vmatprep.subr.mxu1 %v3454_v57 }
 0x1b7   : > { %10735 = vmatprep.mubr.f32.mxu0 %v13294_v35  ;;  %10785 = vmatprep.mubr.f32.mxu1 %v13342_v59  ;;  %v13416_v35 = vld [vmem:[#allocation6 + $0xd0] sm:$0xff] }
 0x1b8   : > { %10802 = vmatpush3.msra.mxu0 %v3454_v57  ;;  %10852 = vmatpush3.msra.mxu1 %v3454_v57  ;;  %v3617_v57 = vld [vmem:[#allocation2 + $0xb5] ss:$2 sm:$0xff] }
 0x1b9   : > { %10803 = vmatprep.subr.mxu0 %v3453_v46  ;;  %10853 = vmatprep.subr.mxu1 %v3453_v46 }
 0x1ba   : > { %10804 = vmatpush3.msra.mxu0 %v3453_v46  ;;  %10854 = vmatpush3.msra.mxu1 %v3453_v46 }
 0x1bb   : > { %10736 = vmatmul.mubr.f32.gmra.mxu0 %v13298_v1  ;;  %10786 = vmatmul.mubr.f32.gmra.mxu1 %v13346_v27  ;;  %v13420_v1 = vld [vmem:[#allocation6 + $0x50] sm:$0xff] }
 0x1bc   : > { %10805 = vmatprep.subr.mxu0 %v3452_v15  ;;  %10855 = vmatprep.subr.mxu1 %v3452_v15 }
 0x1bd   : > { %10738 = vmatprep.mubr.f32.mxu0 %v13302_v45  ;;  %10788 = vmatprep.mubr.f32.mxu1 %v13350_v52  ;;  %v13429_v45 = vld [vmem:[#allocation6 + $0x48] sm:$0xff] }
 0x1be   : > { %10806 = vmatpush3.msra.mxu0 %v3452_v15  ;;  %10856 = vmatpush3.msra.mxu1 %v3452_v15  ;;  %v13486_v15 = vld [vmem:[#allocation2 + $0xc1] ss:$2 sm:$0xff] }
 0x1bf   : > { %10807 = vmatprep.subr.mxu0 %v3451_v40  ;;  %10857 = vmatprep.subr.mxu1 %v3451_v40 }
 0x1c0   : > { %10808 = vmatpush3.msra.mxu0 %v3451_v40  ;;  %10858 = vmatpush3.msra.mxu1 %v3451_v40  ;;  %v3886_v40 = vld [vmem:[#allocation2 + $0xc0] ss:$2 sm:$0xff] }
 0x1c1   : > { %10739 = vmatmul.mubr.f32.gmra.mxu0 %v13306_v19  ;;  %10789 = vmatmul.mubr.f32.gmra.mxu1 %v13354_v2  ;;  %v3609_v19 = vld [vmem:[#allocation2 + $0x75] ss:$2 sm:$0xff] }
 0x1c2   : > { %10809 = vmatprep.subr.mxu0 %v3450_v53  ;;  %10859 = vmatprep.subr.mxu1 %v3450_v53 }
 0x1c3   : > { %10741 = vmatprep.mubr.f32.mxu0 %v13310_v8  ;;  %10791 = vmatprep.mubr.f32.mxu1 %v13358_v30  ;;  %v13434_v8 = vld [vmem:[#allocation6 + $0xc0] sm:$0xff] }
 0x1c4   : > { %10810 = vmatpush3.msra.mxu0 %v3450_v53  ;;  %10860 = vmatpush3.msra.mxu1 %v3450_v53 }
 0x1c5   : > { %10811 = vmatprep.subr.mxu0 %v3449_v22  ;;  %10861 = vmatprep.subr.mxu1 %v3449_v22 }
 0x1c6   : > { %10812 = vmatpush3.msra.mxu0 %v3449_v22  ;;  %10862 = vmatpush3.msra.mxu1 %v3449_v22  ;;  %v13495_v22 = vld [vmem:[#allocation6 + $0x18] sm:$0xff] }
 0x1c7   : > { %10742 = vmatmul.mubr.f32.gmra.mxu0 %v13314_v50  ;;  %10792 = vmatmul.mubr.f32.gmra.mxu1 %v13362_v61  ;;  %v3611_v50 = vld [vmem:[#allocation2 + $0x85] ss:$2 sm:$0xff] }
 0x1c8   : > { %10813 = vmatprep.subr.mxu0 %v3448_v36  ;;  %10863 = vmatprep.subr.mxu1 %v3448_v36 }
 0x1c9   : > { %10744 = vmatprep.mubr.f32.mxu0 %v13318_v20  ;;  %10794 = vmatprep.mubr.f32.mxu1 %v13366_v47  ;;  %v13445_v20 = vld [vmem:[#allocation6 + $0xb8] sm:$0xff] }
 0x1ca   : > { %10814 = vmatpush3.msra.mxu0 %v3448_v36  ;;  %10864 = vmatpush3.msra.mxu1 %v3448_v36  ;;  %v13501_v36 = vld [vmem:[#allocation6 + $0x90] sm:$0xff] }
 0x1cb   : > { %10815 = vmatprep.subr.mxu0 %v3447_v62  ;;  %10865 = vmatprep.subr.mxu1 %v3447_v62 }
 0x1cc   : > { %10816 = vmatpush3.msra.mxu0 %v3447_v62  ;;  %10866 = vmatpush3.msra.mxu1 %v3447_v62  ;;  %v13509_v62 = vld [vmem:[#allocation6 + $0x88] sm:$0xff] }
 0x1cd   : > { %10745 = vmatmul.mubr.f32.gmra.mxu0 %v13322_v10  ;;  %10795 = vmatmul.mubr.f32.gmra.mxu1 %v13370_v13 }
 0x1ce   : > { %10817 = vmatprep.subr.mxu0 %v3446_v37  ;;  %10867 = vmatprep.subr.mxu1 %v3446_v37 }
 0x1cf   : > { %10818 = vmatpush3.msra.mxu0 %v3446_v37  ;;  %10829 = vmatprep.mubr.f32.mxu0 %v13326_v43  ;;  %v3613_v43 = vld [vmem:[#allocation2 + $0x95] ss:$2 sm:$0xff] }
 0x1d0   : > { %10868 = vmatpush3.msra.mxu1 %v3446_v37  ;;  %10879 = vmatprep.mubr.f32.mxu1 %v3595_v51  ;;  %v13517_v37 = vld [vmem:[#allocation6 + $0x80] sm:$0xff] }
 0x1d1   : > { %10819 = vmatprep.subr.mxu0 %v3445_v7  ;;  %10869 = vmatprep.subr.mxu1 %v3445_v7  ;;  %v13525_v51 = vld [vmem:[#allocation6] sm:$0xff] }
 0x1d2   : > { %10820 = vmatpush3.msra.mxu0 %v3445_v7  ;;  %10870 = vmatpush3.msra.mxu1 %v3445_v7 }
 0x1d3   : > { %10821 = vmatprep.subr.mxu0 %v3444_v54  ;;  %10871 = vmatprep.subr.mxu1 %v3444_v54 }
 0x1d4   : > { %10822 = vmatpush3.msra.mxu0 %v3444_v54  ;;  %10872 = vmatpush3.msra.mxu1 %v3444_v54 }
 0x1d5   : > { %10823 = vmatprep.subr.mxu0 %v3443_v12  ;;  %10873 = vmatprep.subr.mxu1 %v3443_v12 }
 0x1d6   : > { %10824 = vmatpush3.msra.mxu0 %v3443_v12  ;;  %10874 = vmatpush3.msra.mxu1 %v3443_v12 }
 0x1d7   : > { %10825 = vmatprep.subr.mxu0 %v3442_v23  ;;  %10875 = vmatprep.subr.mxu1 %v3442_v23 }
 0x1d8   : > { %10826 = vmatpush3.msra.mxu0 %v3442_v23  ;;  %10876 = vmatpush3.msra.mxu1 %v3442_v23 }
 0x1d9   : > { %10827 = vmatprep.subr.mxu0 %v3441_v25  ;;  %10877 = vmatprep.subr.mxu1 %v3441_v25 }
 0x1da   : > { %10828 = vmatpush3.msra.mxu0 %v3441_v25  ;;  %10878 = vmatpush3.msra.mxu1 %v3441_v25  ;;  %v13535_v25 = vld [vmem:[#allocation2 + $0xd1] ss:$2 sm:$0xff] }
 0x1db   : > { %10830 = vmatmul.mubr.f32.vlgmr.msra.gmra.mxu0 %v13330_v28  ;;  %10880 = vmatmul.mubr.f32.vlgmr.msra.gmra.mxu1 %v3597_v31  ;;  %v13464_v28 = vld [vmem:[#allocation6 + $0x30] sm:$0xff] }
 0x1dc   : > { %10897 = vmatprep.subr.mxu0 %v13374_v38  ;;  %10947 = vmatprep.subr.mxu1 %v13376_v55  ;;  %v3888_v31 = vld [vmem:[#allocation2 + $0xd0] ss:$2 sm:$0xff] }
 0x1dd   : > { %10832 = vmatprep.mubr.f32.mxu0 %v13334_v24  ;;  %10882 = vmatprep.mubr.f32.mxu1 %v3599_v9  ;;  %v13473_v24 = vld [vmem:[#allocation6 + $0x28] sm:$0xff] }
 0x1de   : > { %10898 = vmatpush3.msra.mxu0 %v13374_v38  ;;  %10948 = vmatpush3.msra.mxu1 %v13376_v55  ;;  %v13540_v9 = vld [vmem:[#allocation2 + $0xe1] ss:$2 sm:$0xff] }
 0x1df   : > { %10899 = vmatprep.subr.mxu0 %v13380_v21  ;;  %10949 = vmatprep.subr.mxu1 %v13384_v5 }
 0x1e0   : > { %10900 = vmatpush3.msra.mxu0 %v13380_v21  ;;  %10950 = vmatpush3.msra.mxu1 %v13384_v5 }
 0x1e1   : > { %10833 = vmatmul.mubr.f32.gmra.mxu0 %v13338_v18  ;;  %10883 = vmatmul.mubr.f32.gmra.mxu1 %v3601_v48  ;;  %v13478_v18 = vld [vmem:[#allocation6 + $0xa0] sm:$0xff] }
 0x1e2   : > { %10901 = vmatprep.subr.mxu0 %v13389_v0  ;;  %10951 = vmatprep.subr.mxu1 %v13393_v49  ;;  %v3890_v48 = vld [vmem:[#allocation2 + $0xe0] ss:$2 sm:$0xff] }
 0x1e3   : > { %10835 = vmatprep.mubr.f32.mxu0 %v13342_v59  ;;  %10885 = vmatprep.mubr.f32.mxu1 %v3603_v39 }
 0x1e4   : > { %10902 = vmatpush3.msra.mxu0 %v13389_v0  ;;  %10952 = vmatpush3.msra.mxu1 %v13393_v49 }
 0x1e5   : > { %10903 = vmatprep.subr.mxu0 %v13398_v16  ;;  %10953 = vmatprep.subr.mxu1 %v13402_v29 }
 0x1e6   : > { %10904 = vmatpush3.msra.mxu0 %v13398_v16  ;;  %10954 = vmatpush3.msra.mxu1 %v13402_v29 }
 0x1e7   : > { %10836 = vmatmul.mubr.f32.gmra.mxu0 %v13346_v27  ;;  %10886 = vmatmul.mubr.f32.gmra.mxu1 %v3605_v17  ;;  %v13488_v27 = vld [vmem:[#allocation6 + $0x20] sm:$0xff] }
 0x1e8   : > { %10905 = vmatprep.subr.mxu0 %v13407_v26  ;;  %10955 = vmatprep.subr.mxu1 %v13411_v58 }
 0x1e9   : > { %10838 = vmatprep.mubr.f32.mxu0 %v13350_v52  ;;  %10888 = vmatprep.mubr.f32.mxu1 %v3607_v4  ;;  %v13492_v52 = vld [vmem:[#allocation6 + $0x98] sm:$0xff] }
 0x1ea   : > { %10906 = vmatpush3.msra.mxu0 %v13407_v26  ;;  %10956 = vmatpush3.msra.mxu1 %v13411_v58  ;;  %v10431_v44 = vpop.f32.mrf.mxu0  ;;  %v10481_v3 = vpop.f32.mrf.mxu1  ;;  %v13553_v4 = vld [vmem:[#allocation2 + $0xf1] ss:$2 sm:$0xff] }
 0x1eb   : > { %10907 = vmatprep.subr.mxu0 %v13416_v35  ;;  %10957 = vmatprep.subr.mxu1 %v13420_v1  ;;  %v13436_v6 = vadd.f32 %v10481_v3, %v10431_v44 }
 0x1ec   : > { %10908 = vmatpush3.msra.mxu0 %v13416_v35  ;;  %10958 = vmatpush3.msra.mxu1 %v13420_v1  ;;  %v13447_v60 = vpop.f32.mrf.mxu0  ;;  %v13449_v10 = vpop.f32.mrf.mxu1 }
 0x1ed   : > { %10839 = vmatmul.mubr.f32.gmra.mxu0 %v13354_v2  ;;  %10889 = vmatmul.mubr.f32.gmra.mxu1 %v3609_v19 }
 0x1ee   : > { %10909 = vmatprep.subr.mxu0 %v13425_v56  ;;  %10959 = vmatprep.subr.mxu1 %v13429_v45 }
 0x1ef   : > { %10841 = vmatprep.mubr.f32.mxu0 %v13358_v30  ;;  %10891 = vmatprep.mubr.f32.mxu1 %v3611_v50 }
 0x1f0   : > { %10910 = vmatpush3.msra.mxu0 %v13425_v56  ;;  %10960 = vmatpush3.msra.mxu1 %v13429_v45 }
 0x1f1   : > { %10911 = vmatprep.subr.mxu0 %v13434_v8  ;;  %10961 = vmatprep.subr.mxu1 %v13440_v33 }
 0x1f2   : > { %10912 = vmatpush3.msra.mxu0 %v13434_v8  ;;  %10962 = vmatpush3.msra.mxu1 %v13440_v33  ;;  %v10434_v41 = vpop.f32.mrf.mxu0  ;;  %v10484_v11 = vpop.f32.mrf.mxu1 }
 0x1f3   : > { %10842 = vmatmul.mubr.f32.gmra.mxu0 %v13362_v61  ;;  %10892 = vmatmul.mubr.f32.gmra.mxu1 %v3613_v43  ;;  %v13460_v14 = vadd.f32 %v10484_v11, %v10434_v41  ;;  %v13505_v61 = vld [vmem:[#allocation6 + $0x10] sm:$0xff] }
 0x1f4   : > { %10913 = vmatprep.subr.mxu0 %v13445_v20  ;;  %10963 = vmatprep.subr.mxu1 %v13453_v63  ;;  %v13480_v46 = vpop.f32.mrf.mxu0  ;;  %v13482_v59 = vpop.f32.mrf.mxu1  ;;  %v3896_v41 = vld [vmem:[#allocation2 + $0x110] ss:$2 sm:$0xff] }
 0x1f5   : > { %10844 = vmatprep.mubr.f32.mxu0 %v13366_v47  ;;  %10894 = vmatprep.mubr.f32.mxu1 %v3615_v32  ;;  %v13513_v47 = vld [vmem:[#allocation6 + $0x8] sm:$0xff] }
 0x1f6   : > { %10914 = vmatpush3.msra.mxu0 %v13445_v20  ;;  %10964 = vmatpush3.msra.mxu1 %v13453_v63 }
 0x1f7   : > { %10915 = vmatprep.subr.mxu0 %v13458_v42  ;;  %10965 = vmatprep.subr.mxu1 %v13464_v28 }
 0x1f8   : > { %10916 = vmatpush3.msra.mxu0 %v13458_v42  ;;  %10966 = vmatpush3.msra.mxu1 %v13464_v28 }
 0x1f9   : > { %10845 = vmatmul.mubr.f32.gmra.mxu0 %v13370_v13  ;;  %10895 = vmatmul.mubr.f32.gmra.mxu1 %v3617_v57 }
 0x1fa   : > { %10917 = vmatprep.subr.mxu0 %v13469_v34  ;;  %10967 = vmatprep.subr.mxu1 %v13473_v24 }
 0x1fb   : > { %10918 = vmatpush3.msra.mxu0 %v13469_v34  ;;  %10929 = vmatprep.mubr.f32.mxu0 %v13486_v15 }
 0x1fc   : > { %10968 = vmatpush3.msra.mxu1 %v13473_v24  ;;  %v10437_v53 = vpop.f32.mrf.mxu0  ;;  %v10487_v2 = vpop.f32.mrf.mxu1  ;;  %10979 = vmatprep.mubr.f32.mxu1 %v3886_v40  ;;  %v13593_v40 = vld [vmem:[#allocation2 + $0x131] ss:$2 sm:$0xff] }
 0x1fd   : > { %10919 = vmatprep.subr.mxu0 %v13478_v18  ;;  %v13497_v30 = vadd.f32 %v10487_v2, %v10437_v53  ;;  %10969 = vmatprep.subr.mxu1 %v13488_v27 }
 0x1fe   : > { %10920 = vmatpush3.msra.mxu0 %v13478_v18  ;;  %10970 = vmatpush3.msra.mxu1 %v13488_v27  ;;  %v13519_v13 = vpop.f32.mrf.mxu0  ;;  %v13521_v7 = vpop.f32.mrf.mxu1 }
 0x1ff   : > { %10921 = vmatprep.subr.mxu0 %v13492_v52  ;;  %10971 = vmatprep.subr.mxu1 %v13495_v22 }
 0x200   : > { %10922 = vmatpush3.msra.mxu0 %v13492_v52  ;;  %10972 = vmatpush3.msra.mxu1 %v13495_v22 }
 0x201   : > { %10923 = vmatprep.subr.mxu0 %v13501_v36  ;;  %10973 = vmatprep.subr.mxu1 %v13505_v61 }
 0x202   : > { %10924 = vmatpush3.msra.mxu0 %v13501_v36  ;;  %10974 = vmatpush3.msra.mxu1 %v13505_v61 }
 0x203   : > { %10925 = vmatprep.subr.mxu0 %v13509_v62  ;;  %10975 = vmatprep.subr.mxu1 %v13513_v47  ;;  %v10440_v54 = vpop.f32.mrf.mxu0  ;;  %v10490_v12 = vpop.f32.mrf.mxu1 }
 0x204   : > { %10926 = vmatpush3.msra.mxu0 %v13509_v62  ;;  %10976 = vmatpush3.msra.mxu1 %v13513_v47  ;;  %v13531_v23 = vadd.f32 %v10490_v12, %v10440_v54  ;;  %v13598_v54 = vld [vmem:[#allocation2 + $0x141] ss:$2 sm:$0xff] }
 0x205   : > { %10927 = vmatprep.subr.mxu0 %v13517_v37  ;;  %10977 = vmatprep.subr.mxu1 %v13525_v51  ;;  %v13545_v39 = vpop.f32.mrf.mxu0  ;;  %v13547_v17 = vpop.f32.mrf.mxu1 }
 0x206   : > { %16365 = vst [vmem:[#allocation16_spill] sm:$0xff] %v13531_v23  ;;  %10928 = vmatpush3.msra.mxu0 %v13517_v37  ;;  %10978 = vmatpush3.msra.mxu1 %v13525_v51 }
 0x207   : > { %10930 = vmatmul.mubr.f32.vlgmr.msra.gmra.mxu0 %v13535_v25  ;;  %10980 = vmatmul.mubr.f32.vlgmr.msra.gmra.mxu1 %v3888_v31 }
 0x208   : > { %10997 = vmatprep.subr.mxu0 %v13374_v38  ;;  %11047 = vmatprep.subr.mxu1 %v13376_v55 }
 0x209   : > { %10932 = vmatprep.mubr.f32.mxu0 %v13540_v9  ;;  %10982 = vmatprep.mubr.f32.mxu1 %v3890_v48 }
 0x20a   : > { %10998 = vmatpush3.msra.mxu0 %v13374_v38  ;;  %11048 = vmatpush3.msra.mxu1 %v13376_v55  ;;  %v3892_v38 = vld [vmem:[#allocation2 + $0xf0] ss:$2 sm:$0xff]  ;;  %v13560_v55 = vld [vmem:[#allocation2 + $0x101] ss:$2 sm:$0xff] }
 0x20b   : > { %10999 = vmatprep.subr.mxu0 %v13380_v21  ;;  %11049 = vmatprep.subr.mxu1 %v13384_v5  ;;  %v10443_v44 = vpop.f32.mrf.mxu0  ;;  %v10493_v19 = vpop.f32.mrf.mxu1 }
 0x20c   : > { %11000 = vmatpush3.msra.mxu0 %v13380_v21  ;;  %11050 = vmatpush3.msra.mxu1 %v13384_v5  ;;  %v13557_v3 = vadd.f32 %v10493_v19, %v10443_v44  ;;  %v3894_v21 = vld [vmem:[#allocation2 + $0x100] ss:$2 sm:$0xff]  ;;  %v13569_v5 = vld [vmem:[#allocation2 + $0x111] ss:$2 sm:$0xff]  ;;  %v3904_v44 = vld [vmem:[#allocation2 + $0x150] ss:$2 sm:$0xff] }
 0x20d   : > { %10933 = vmatmul.mubr.f32.gmra.mxu0 %v13553_v4  ;;  %10983 = vmatmul.mubr.f32.gmra.mxu1 %v3892_v38  ;;  %v13571_v50 = vpop.f32.mrf.mxu0  ;;  %v13573_v43 = vpop.f32.mrf.mxu1 }
 0x20e   : > { %16366 = vst [vmem:[#allocation17_spill] sm:$0xff] %v13557_v3  ;;  %11001 = vmatprep.subr.mxu0 %v13389_v0  ;;  %11051 = vmatprep.subr.mxu1 %v13393_v49 }
 0x20f   : > { %10935 = vmatprep.mubr.f32.mxu0 %v13560_v55  ;;  %10985 = vmatprep.mubr.f32.mxu1 %v3894_v21 }
 0x210   : > { %11002 = vmatpush3.msra.mxu0 %v13389_v0  ;;  %11052 = vmatpush3.msra.mxu1 %v13393_v49  ;;  %v13578_v0 = vld [vmem:[#allocation2 + $0x121] ss:$2 sm:$0xff] }
 0x211   : > { %11003 = vmatprep.subr.mxu0 %v13398_v16  ;;  %11053 = vmatprep.subr.mxu1 %v13402_v29 }
 0x212   : > { %11004 = vmatpush3.msra.mxu0 %v13398_v16  ;;  %11054 = vmatpush3.msra.mxu1 %v13402_v29  ;;  %v3898_v16 = vld [vmem:[#allocation2 + $0x120] ss:$2 sm:$0xff] }
 0x213   : > { %10936 = vmatmul.mubr.f32.gmra.mxu0 %v13569_v5  ;;  %10986 = vmatmul.mubr.f32.gmra.mxu1 %v3896_v41 }
 0x214   : > { %11005 = vmatprep.subr.mxu0 %v13407_v26  ;;  %v10446_v49 = vpop.f32.mrf.mxu0  ;;  %v10496_v11 = vpop.f32.mrf.mxu1  ;;  %11055 = vmatprep.subr.mxu1 %v13411_v58 }
 0x215   : > { %10938 = vmatprep.mubr.f32.mxu0 %v13578_v0  ;;  %v13582_v32 = vadd.f32 %v10496_v11, %v10446_v49  ;;  %10988 = vmatprep.mubr.f32.mxu1 %v3898_v16  ;;  %v3908_v49 = vld [vmem:[#allocation2 + $0x170] ss:$2 sm:$0xf] }
 0x216   : > { %11006 = vmatpush3.msra.mxu0 %v13407_v26  ;;  %v13585_v29 = vpop.f32.mrf.mxu0  ;;  %v13587_v57 = vpop.f32.mrf.mxu1  ;;  %11056 = vmatpush3.msra.mxu1 %v13411_v58  ;;  %v3900_v26 = vld [vmem:[#allocation2 + $0x130] ss:$2 sm:$0xff] }
 0x217   : > { %16367 = vst [vmem:[#allocation18_spill] sm:$0xff] %v13582_v32  ;;  %11007 = vmatprep.subr.mxu0 %v13416_v35  ;;  %11057 = vmatprep.subr.mxu1 %v13420_v1  ;;  %v4474_v32 = vld [vmem:[#allocation6 + $0x108] sm:$0xff] }
 0x218   : > { %11008 = vmatpush3.msra.mxu0 %v13416_v35  ;;  %v10531_v53 = vpop.f32.mrf.mxu0  ;;  %11058 = vmatpush3.msra.mxu1 %v13420_v1  ;;  %v10581_v2 = vpop.f32.mrf.mxu1  ;;  %v3902_v35 = vld [vmem:[#allocation2 + $0x140] ss:$2 sm:$0xff]  ;;  %v13613_v1 = vld [vmem:[#allocation2 + $0x151] ss:$2 sm:$0xff] }
 0x219   : > { %10939 = vmatmul.mubr.f32.gmra.mxu0 %v13593_v40  ;;  %10989 = vmatmul.mubr.f32.gmra.mxu1 %v3900_v26  ;;  %v13600_v58 = vadd.f32 %v10581_v2, %v10531_v53  ;;  %v4487_v26 = vld [vmem:[#allocation6 + $0x170] sm:$0xff] }
 0x21a   : > { %11009 = vmatprep.subr.mxu0 %v13425_v56  ;;  %v13602_v12 = vpop.f32.mrf.mxu0  ;;  %11059 = vmatprep.subr.mxu1 %v13429_v45  ;;  %v13606_v31 = vpop.f32.mrf.mxu1 }
 0x21b   : > { %10941 = vmatprep.mubr.f32.mxu0 %v13598_v54  ;;  %10991 = vmatprep.mubr.f32.mxu1 %v3902_v35  ;;  %v13691_v35 = vld [vmem:[#allocation2 + $0xf2] ss:$2 sm:$0xff] }
 0x21c   : > { %11010 = vmatpush3.msra.mxu0 %v13425_v56  ;;  %11060 = vmatpush3.msra.mxu1 %v13429_v45  ;;  %v13618_v56 = vld [vmem:[#allocation2 + $0x161] ss:$2 sm:$0xff] }
 0x21d   : > { %11011 = vmatprep.subr.mxu0 %v13434_v8  ;;  %11061 = vmatprep.subr.mxu1 %v13440_v33 }
 0x21e   : > { %11012 = vmatpush3.msra.mxu0 %v13434_v8  ;;  %v10534_v48 = vpop.f32.mrf.mxu0  ;;  %11062 = vmatpush3.msra.mxu1 %v13440_v33  ;;  %v10584_v19 = vpop.f32.mrf.mxu1  ;;  %v3906_v8 = vld [vmem:[#allocation2 + $0x160] ss:$2 sm:$0xff]  ;;  %v13633_v33 = vld [vmem:[#allocation2 + $0x171] ss:$2 sm:$0xf] }
 0x21f   : > { %10942 = vmatmul.mubr.f32.gmra.mxu0 %v13613_v1  ;;  %10992 = vmatmul.mubr.f32.gmra.mxu1 %v3904_v44  ;;  %v13620_v45 = vadd.f32 %v10584_v19, %v10534_v48  ;;  %v13697_v48 = vld [vmem:[#allocation2 + $0x102] ss:$2 sm:$0xff]  ;;  %v4484_v44 = vld [vmem:[#allocation6 + $0x158] sm:$0xff] }
 0x220   : > { %11013 = vmatprep.subr.mxu0 %v13445_v20  ;;  %v13622_v38 = vpop.f32.mrf.mxu0  ;;  %11063 = vmatprep.subr.mxu1 %v13453_v63  ;;  %v13626_v21 = vpop.f32.mrf.mxu1  ;;  %v13701_v19 = vld [vmem:[#allocation2 + $0x112] ss:$2 sm:$0xff] }
 0x221   : > { %10944 = vmatprep.mubr.f32.mxu0 %v13618_v56  ;;  %10994 = vmatprep.mubr.f32.mxu1 %v3906_v8  ;;  %v4483_v8 = vld [vmem:[#allocation6 + $0x150] sm:$0xff] }
 0x222   : > { %11014 = vmatpush3.msra.mxu0 %v13445_v20  ;;  %11064 = vmatpush3.msra.mxu1 %v13453_v63 }
 0x223   : > { %11015 = vmatprep.subr.mxu0 %v13458_v42  ;;  %11065 = vmatprep.subr.mxu1 %v13464_v28 }
 0x224   : > { %11016 = vmatpush3.msra.mxu0 %v13458_v42  ;;  %v10537_v41 = vpop.f32.mrf.mxu0  ;;  %11066 = vmatpush3.msra.mxu1 %v13464_v28  ;;  %v10587_v11 = vpop.f32.mrf.mxu1  ;;  %v13644_v42 = vld [vmem:[#allocation2 + $0xc2] ss:$2 sm:$0xff] }
 0x225   : > { %10945 = vmatmul.mubr.f32.gmra.mxu0 %v13633_v33  ;;  %10995 = vmatmul.mubr.f32.gmra.mxu1 %v3908_v49  ;;  %v13638_v20 = vadd.f32 %v10587_v11, %v10537_v41  ;;  %v4482_v49 = vld [vmem:[#allocation6 + $0x148] sm:$0xff] }
 0x226   : > { %11017 = vmatprep.subr.mxu0 %v13469_v34  ;;  %v13640_v63 = vpop.f32.mrf.mxu0  ;;  %11067 = vmatprep.subr.mxu1 %v13473_v24  ;;  %v13646_v16 = vpop.f32.mrf.mxu1 }
 0x227   : > { %11018 = vmatpush3.msra.mxu0 %v13469_v34  ;;  %11029 = vmatprep.mubr.f32.mxu0 %v13644_v42 }
 0x228   : > { %11068 = vmatpush3.msra.mxu1 %v13473_v24  ;;  %11079 = vmatprep.mubr.f32.mxu1 %v13486_v15 }
 0x229   : > { %11019 = vmatprep.subr.mxu0 %v13478_v18  ;;  %11069 = vmatprep.subr.mxu1 %v13488_v27 }
 0x22a   : > { %11020 = vmatpush3.msra.mxu0 %v13478_v18  ;;  %v10540_v28 = vpop.f32.mrf.mxu0  ;;  %11070 = vmatpush3.msra.mxu1 %v13488_v27  ;;  %v10590_v34 = vpop.f32.mrf.mxu1  ;;  %v4488_v27 = vld [vmem:[#allocation6 + $0x178] sm:$0xff] }
 0x22b   : > { %11021 = vmatprep.subr.mxu0 %v13492_v52  ;;  %11071 = vmatprep.subr.mxu1 %v13495_v22  ;;  %v13658_v53 = vadd.f32 %v10590_v34, %v10540_v28 }
 0x22c   : > { %11022 = vmatpush3.msra.mxu0 %v13492_v52  ;;  %v13660_v24 = vpop.f32.mrf.mxu0  ;;  %11072 = vmatpush3.msra.mxu1 %v13495_v22  ;;  %v13664_v15 = vpop.f32.mrf.mxu1  ;;  %v13676_v22 = vld [vmem:[#allocation2 + $0xd2] ss:$2 sm:$0xff] }
 0x22d   : > { %16368 = vst [vmem:[#allocation19_spill] sm:$0xff] %v13658_v53  ;;  %11023 = vmatprep.subr.mxu0 %v13501_v36  ;;  %11073 = vmatprep.subr.mxu1 %v13505_v61  ;;  %v13770_v53 = vld [vmem:[#allocation2 + $0xd3] ss:$2 sm:$0xff] }
 0x22e   : > { %11024 = vmatpush3.msra.mxu0 %v13501_v36  ;;  %11074 = vmatpush3.msra.mxu1 %v13505_v61 }
 0x22f   : > { %11025 = vmatprep.subr.mxu0 %v13509_v62  ;;  %11075 = vmatprep.subr.mxu1 %v13513_v47 }
 0x230   : > { %11026 = vmatpush3.msra.mxu0 %v13509_v62  ;;  %v10543_v18 = vpop.f32.mrf.mxu0  ;;  %11076 = vmatpush3.msra.mxu1 %v13513_v47  ;;  %v10593_v52 = vpop.f32.mrf.mxu1  ;;  %v13687_v47 = vld [vmem:[#allocation2 + $0xe2] ss:$2 sm:$0xff] }
 0x231   : > { %11027 = vmatprep.subr.mxu0 %v13517_v37  ;;  %11077 = vmatprep.subr.mxu1 %v13525_v51  ;;  %v13678_v36 = vadd.f32 %v10593_v52, %v10543_v18  ;;  %v4481_v18 = vld [vmem:[#allocation6 + $0x140] sm:$0xff]  ;;  %v4480_v52 = vld [vmem:[#allocation6 + $0x138] sm:$0xff] }
 0x232   : > { %11028 = vmatpush3.msra.mxu0 %v13517_v37  ;;  %v13680_v61 = vpop.f32.mrf.mxu0  ;;  %11078 = vmatpush3.msra.mxu1 %v13525_v51  ;;  %v13684_v62 = vpop.f32.mrf.mxu1  ;;  %v4486_v51 = vld [vmem:[#allocation6 + $0x168] sm:$0xff] }
 0x233   : > { %16369 = vst [vmem:[#allocation20_spill] sm:$0xff] %v13678_v36  ;;  %11030 = vmatmul.mubr.f32.vlgmr.msra.gmra.mxu0 %v13676_v22  ;;  %11080 = vmatmul.mubr.f32.vlgmr.msra.gmra.mxu1 %v13535_v25 }
 0x234   : > { %11097 = vmatprep.subr.mxu0 %v4488_v27  ;;  %11147 = vmatprep.subr.mxu1 %v4488_v27 }
 0x235   : > { %11032 = vmatprep.mubr.f32.mxu0 %v13687_v47  ;;  %11082 = vmatprep.mubr.f32.mxu1 %v13540_v9  ;;  %v4485_v9 = vld [vmem:[#allocation6 + $0x160] sm:$0xff] }
 0x236   : > { %11098 = vmatpush3.msra.mxu0 %v4488_v27  ;;  %v10546_v37 = vpop.f32.mrf.mxu0  ;;  %11148 = vmatpush3.msra.mxu1 %v4488_v27  ;;  %v10596_v2 = vpop.f32.mrf.mxu1 }
 0x237   : > { %11099 = vmatprep.subr.mxu0 %v4487_v26  ;;  %11149 = vmatprep.subr.mxu1 %v4487_v26  ;;  %v13693_v25 = vadd.f32 %v10596_v2, %v10546_v37 }
 0x238   : > { %11100 = vmatpush3.msra.mxu0 %v4487_v26  ;;  %11150 = vmatpush3.msra.mxu1 %v4487_v26  ;;  %v13711_v41 = vpop.f32.mrf.mxu1 }
 0x239   : > { %16370 = vst [vmem:[#allocation21_spill] sm:$0xff] %v13693_v25  ;;  %11033 = vmatmul.mubr.f32.gmra.mxu0 %v13691_v35  ;;  %11083 = vmatmul.mubr.f32.gmra.mxu1 %v13553_v4  ;;  %v13705_v4 = vld [vmem:[#allocation2 + $0x122] ss:$2 sm:$0xff] }
 0x23a   : > { %11101 = vmatprep.subr.mxu0 %v4486_v51  ;;  %11151 = vmatprep.subr.mxu1 %v4486_v51 }
 0x23b   : > { %11035 = vmatprep.mubr.f32.mxu0 %v13697_v48  ;;  %11085 = vmatprep.mubr.f32.mxu1 %v13560_v55  ;;  %v13708_v55 = vpop.f32.mrf.mxu0 }
 0x23c   : > { %11102 = vmatpush3.msra.mxu0 %v4486_v51  ;;  %11152 = vmatpush3.msra.mxu1 %v4486_v51  ;;  %v13737_v51 = vld [vmem:[#allocation2 + $0x162] ss:$2 sm:$0xff] }
 0x23d   : > { %11103 = vmatprep.subr.mxu0 %v4485_v9  ;;  %11153 = vmatprep.subr.mxu1 %v4485_v9 }
 0x23e   : > { %11104 = vmatpush3.msra.mxu0 %v4485_v9  ;;  %11154 = vmatpush3.msra.mxu1 %v4485_v9 }
 0x23f   : > { %11036 = vmatmul.mubr.f32.gmra.mxu0 %v13701_v19  ;;  %11086 = vmatmul.mubr.f32.gmra.mxu1 %v13569_v5  ;;  %v13715_v5 = vld [vmem:[#allocation2 + $0x132] ss:$2 sm:$0xff] }
 0x240   : > { %11105 = vmatprep.subr.mxu0 %v4484_v44  ;;  %11155 = vmatprep.subr.mxu1 %v4484_v44 }
 0x241   : > { %11038 = vmatprep.mubr.f32.mxu0 %v13705_v4  ;;  %11088 = vmatprep.mubr.f32.mxu1 %v13578_v0  ;;  %v13723_v0 = vld [vmem:[#allocation2 + $0x142] ss:$2 sm:$0xff] }
 0x242   : > { %11106 = vmatpush3.msra.mxu0 %v4484_v44  ;;  %11156 = vmatpush3.msra.mxu1 %v4484_v44  ;;  %v4478_v44 = vld [vmem:[#allocation6 + $0x128] sm:$0xff] }
 0x243   : > { %11107 = vmatprep.subr.mxu0 %v4483_v8  ;;  %v13713_v11 = vpop.f32.mrf.mxu0  ;;  %11157 = vmatprep.subr.mxu1 %v4483_v8  ;;  %v13717_v28 = vpop.f32.mrf.mxu1 }
 0x244   : > { %11108 = vmatpush3.msra.mxu0 %v4483_v8  ;;  %11158 = vmatpush3.msra.mxu1 %v4483_v8 }
 0x245   : > { %11039 = vmatmul.mubr.f32.gmra.mxu0 %v13715_v5  ;;  %v13720_v34 = vpop.f32.mrf.mxu0  ;;  %11089 = vmatmul.mubr.f32.gmra.mxu1 %v13593_v40  ;;  %v13725_v27 = vpop.f32.mrf.mxu1  ;;  %v13731_v40 = vld [vmem:[#allocation2 + $0x152] ss:$2 sm:$0xff] }
 0x246   : > { %11109 = vmatprep.subr.mxu0 %v4482_v49  ;;  %11159 = vmatprep.subr.mxu1 %v4482_v49 }
 0x247   : > { %11041 = vmatprep.mubr.f32.mxu0 %v13723_v0  ;;  %11091 = vmatprep.mubr.f32.mxu1 %v13598_v54  ;;  %v4479_v54 = vld [vmem:[#allocation6 + $0x130] sm:$0xff] }
 0x248   : > { %11110 = vmatpush3.msra.mxu0 %v4482_v49  ;;  %11160 = vmatpush3.msra.mxu1 %v4482_v49  ;;  %v4477_v49 = vld [vmem:[#allocation6 + $0x120] sm:$0xff] }
 0x249   : > { %11111 = vmatprep.subr.mxu0 %v4481_v18  ;;  %v13729_v26 = vpop.f32.mrf.mxu0  ;;  %11161 = vmatprep.subr.mxu1 %v4481_v18  ;;  %v13733_v37 = vpop.f32.mrf.mxu1 }
 0x24a   : > { %11112 = vmatpush3.msra.mxu0 %v4481_v18  ;;  %11162 = vmatpush3.msra.mxu1 %v4481_v18  ;;  %v13754_v18 = vld [vmem:[#allocation2 + $0xc3] ss:$2 sm:$0xff] }
 0x24b   : > { %11042 = vmatmul.mubr.f32.gmra.mxu0 %v13731_v40  ;;  %11092 = vmatmul.mubr.f32.gmra.mxu1 %v13613_v1  ;;  %v13740_v2 = vpop.f32.mrf.mxu0  ;;  %v13743_v9 = vpop.f32.mrf.mxu1  ;;  %v13745_v1 = vld [vmem:[#allocation2 + $0x172] ss:$2 sm:$0xf] }
 0x24c   : > { %11113 = vmatprep.subr.mxu0 %v4480_v52  ;;  %11163 = vmatprep.subr.mxu1 %v4480_v52 }
 0x24d   : > { %11044 = vmatprep.mubr.f32.mxu0 %v13737_v51  ;;  %11094 = vmatprep.mubr.f32.mxu1 %v13618_v56 }
 0x24e   : > { %11114 = vmatpush3.msra.mxu0 %v4480_v52  ;;  %11164 = vmatpush3.msra.mxu1 %v4480_v52  ;;  %v4476_v52 = vld [vmem:[#allocation6 + $0x118] sm:$0xff] }
 0x24f   : > { %11115 = vmatprep.subr.mxu0 %v4479_v54  ;;  %11165 = vmatprep.subr.mxu1 %v4479_v54  ;;  %v13748_v8 = vpop.f32.mrf.mxu0  ;;  %v13751_v56 = vpop.f32.mrf.mxu1 }
 0x250   : > { %11116 = vmatpush3.msra.mxu0 %v4479_v54  ;;  %11166 = vmatpush3.msra.mxu1 %v4479_v54 }
 0x251   : > { %11045 = vmatmul.mubr.f32.gmra.mxu0 %v13745_v1  ;;  %11095 = vmatmul.mubr.f32.gmra.mxu1 %v13633_v33  ;;  %v13757_v54 = vpop.f32.mrf.mxu0  ;;  %v4475_v33 = vld [vmem:[#allocation6 + $0x110] sm:$0xff]  ;;  %v13759_v25 = vpop.f32.mrf.mxu1 }
 0x252   : > { %11117 = vmatprep.subr.mxu0 %v4478_v44  ;;  %11167 = vmatprep.subr.mxu1 %v4478_v44  ;;  %16371 = vst [vmem:[#allocation22_spill] sm:$0xff] %v13757_v54  ;;  %16372 = vst [vmem:[#allocation23_spill] sm:$0xff] %v13759_v25  ;;  %v13830_v25 = vld [vmem:[#allocation2 + $0x153] ss:$2 sm:$0xff] }
 0x253   : > { %11118 = vmatpush3.msra.mxu0 %v4478_v44  ;;  %11129 = vmatprep.mubr.f32.mxu0 %v13644_v42  ;;  %16386 = vst [vmem:[#allocation37_spill] sm:$0xff] %v13830_v25 }
 0x254   : > { %11168 = vmatpush3.msra.mxu1 %v4478_v44  ;;  %11179 = vmatprep.mubr.f32.mxu1 %v13754_v18  ;;  %v4473_v44 = vld [vmem:[#allocation6 + $0x100] sm:$0xff] }
 0x255   : > { %11119 = vmatprep.subr.mxu0 %v4477_v49  ;;  %11169 = vmatprep.subr.mxu1 %v4477_v49  ;;  %v13761_v42 = vpop.f32.mrf.mxu0  ;;  %v13763_v36 = vpop.f32.mrf.mxu1 }
 0x256   : > { %11120 = vmatpush3.msra.mxu0 %v4477_v49  ;;  %11170 = vmatpush3.msra.mxu1 %v4477_v49  ;;  %16373 = vst [vmem:[#allocation24_spill] sm:$0xff] %v13761_v42  ;;  %16374 = vst [vmem:[#allocation25_spill] sm:$0xff] %v13763_v36  ;;  %v4802_v49 = vld [vmem:[#allocation6 + $0x1f8] sm:$0xff]  ;;  %v13822_v42 = vld [vmem:[#allocation2 + $0x143] ss:$2 sm:$0xff] }
 0x257   : > { %11121 = vmatprep.subr.mxu0 %v4476_v52  ;;  %11171 = vmatprep.subr.mxu1 %v4476_v52  ;;  %v13765_v3 = vpop.f32.mrf.mxu0 }
 0x258   : > { %11122 = vmatpush3.msra.mxu0 %v4476_v52  ;;  %11172 = vmatpush3.msra.mxu1 %v4476_v52  ;;  %16375 = vst [vmem:[#allocation26_spill] sm:$0xff] %v13765_v3  ;;  %v13767_v52 = vpop.f32.mrf.mxu1 }
 0x259   : > { %11123 = vmatprep.subr.mxu0 %v4475_v33  ;;  %11173 = vmatprep.subr.mxu1 %v4475_v33  ;;  %16376 = vst [vmem:[#allocation27_spill] sm:$0xff] %v13767_v52 }
 0x25a   : > { %11124 = vmatpush3.msra.mxu0 %v4475_v33  ;;  %11174 = vmatpush3.msra.mxu1 %v4475_v33  ;;  %v4801_v33 = vld [vmem:[#allocation6 + $0x1f0] sm:$0xff] }
 0x25b   : > { %11125 = vmatprep.subr.mxu0 %v4474_v32  ;;  %11175 = vmatprep.subr.mxu1 %v4474_v32  ;;  %v13776_v36 = vpop.f32.mrf.mxu0  ;;  %v13779_v52 = vpop.f32.mrf.mxu1 }
 0x25c   : > { %11126 = vmatpush3.msra.mxu0 %v4474_v32  ;;  %11176 = vmatpush3.msra.mxu1 %v4474_v32  ;;  %v13774_v32 = vld [vmem:[#allocation2 + $0xe3] ss:$2 sm:$0xff]  ;;  %16377 = vst [vmem:[#allocation28_spill] sm:$0xff] %v13776_v36  ;;  %16378 = vst [vmem:[#allocation29_spill] sm:$0xff] %v13779_v52 }
 0x25d   : > { %11127 = vmatprep.subr.mxu0 %v4473_v44  ;;  %11177 = vmatprep.subr.mxu1 %v4473_v44  ;;  %v4799_v36 = vld [vmem:[#allocation6 + $0x1e0] sm:$0xff]  ;;  %v13787_v3 = vpop.f32.mrf.mxu1 }
 0x25e   : > { %11128 = vmatpush3.msra.mxu0 %v4473_v44  ;;  %11178 = vmatpush3.msra.mxu1 %v4473_v44  ;;  %v13782_v44 = vld [vmem:[#allocation2 + $0xf3] ss:$2 sm:$0xff]  ;;  %16380 = vst [vmem:[#allocation31_spill] sm:$0xff] %v13787_v3 }
 0x25f   : > { %11130 = vmatmul.mubr.f32.vlgmr.msra.gmra.mxu0 %v13676_v22  ;;  %11180 = vmatmul.mubr.f32.vlgmr.msra.gmra.mxu1 %v13770_v53  ;;  %v4800_v22 = vld [vmem:[#allocation6 + $0x1e8] sm:$0xff]  ;;  %v13798_v3 = vld [vmem:[#allocation2 + $0x113] ss:$2 sm:$0xff] }
 0x260   : > { %11197 = vmatprep.subr.mxu0 %v4802_v49  ;;  %11247 = vmatprep.subr.mxu1 %v4802_v49 }
 0x261   : > { %11132 = vmatprep.mubr.f32.mxu0 %v13687_v47  ;;  %11182 = vmatprep.mubr.f32.mxu1 %v13774_v32  ;;  %v13784_v47 = vpop.f32.mrf.mxu0 }
 0x262   : > { %11198 = vmatpush3.msra.mxu0 %v4802_v49  ;;  %11248 = vmatpush3.msra.mxu1 %v4802_v49  ;;  %16379 = vst [vmem:[#allocation30_spill] sm:$0xff] %v13784_v47  ;;  %v13790_v49 = vld [vmem:[#allocation2 + $0x103] ss:$2 sm:$0xff]  ;;  %v13795_v47 = vpop.f32.mrf.mxu1 }
 0x263   : > { %11199 = vmatprep.subr.mxu0 %v4801_v33  ;;  %11249 = vmatprep.subr.mxu1 %v4801_v33  ;;  %16382 = vst [vmem:[#allocation33_spill] sm:$0xff] %v13795_v47 }
 0x264   : > { %11200 = vmatpush3.msra.mxu0 %v4801_v33  ;;  %11250 = vmatpush3.msra.mxu1 %v4801_v33  ;;  %v13793_v33 = vpop.f32.mrf.mxu0  ;;  %v13807_v47 = vpop.f32.mrf.mxu1 }
 0x265   : > { %11133 = vmatmul.mubr.f32.gmra.mxu0 %v13691_v35  ;;  %11183 = vmatmul.mubr.f32.gmra.mxu1 %v13782_v44  ;;  %v4798_v35 = vld [vmem:[#allocation6 + $0x1d8] sm:$0xff]  ;;  %16381 = vst [vmem:[#allocation32_spill] sm:$0xff] %v13793_v33  ;;  %16384 = vst [vmem:[#allocation35_spill] sm:$0xff] %v13807_v47  ;;  %v4795_v47 = vld [vmem:[#allocation6 + $0x1c0] sm:$0xff] }
 0x266   : > { %11201 = vmatprep.subr.mxu0 %v4800_v22  ;;  %11251 = vmatprep.subr.mxu1 %v4800_v22  ;;  %v13804_v52 = vpop.f32.mrf.mxu0 }
 0x267   : > { %11135 = vmatprep.mubr.f32.mxu0 %v13697_v48  ;;  %11185 = vmatprep.mubr.f32.mxu1 %v13790_v49  ;;  %v4797_v48 = vld [vmem:[#allocation6 + $0x1d0] sm:$0xff]  ;;  %16383 = vst [vmem:[#allocation34_spill] sm:$0xff] %v13804_v52 }
 0x268   : > { %11202 = vmatpush3.msra.mxu0 %v4800_v22  ;;  %11252 = vmatpush3.msra.mxu1 %v4800_v22  ;;  %v13802_v22 = vld [vmem:[#allocation2 + $0x123] ss:$2 sm:$0xff] }
 0x269   : > { %11203 = vmatprep.subr.mxu0 %v4799_v36  ;;  %11253 = vmatprep.subr.mxu1 %v4799_v36 }
 0x26a   : > { %11204 = vmatpush3.msra.mxu0 %v4799_v36  ;;  %11254 = vmatpush3.msra.mxu1 %v4799_v36  ;;  %v4796_v36 = vld [vmem:[#allocation6 + $0x1c8] sm:$0xff] }
 0x26b   : > { %11136 = vmatmul.mubr.f32.gmra.mxu0 %v13701_v19  ;;  %11186 = vmatmul.mubr.f32.gmra.mxu1 %v13798_v3 }
 0x26c   : > { %11205 = vmatprep.subr.mxu0 %v4798_v35  ;;  %11255 = vmatprep.subr.mxu1 %v4798_v35 }
 0x26d   : > { %11138 = vmatprep.mubr.f32.mxu0 %v13705_v4  ;;  %11188 = vmatprep.mubr.f32.mxu1 %v13802_v22  ;;  %v13814_v4 = vld [vmem:[#allocation2 + $0x133] ss:$2 sm:$0xff] }
 0x26e   : > { %11206 = vmatpush3.msra.mxu0 %v4798_v35  ;;  %11256 = vmatpush3.msra.mxu1 %v4798_v35 }
 0x26f   : > { %11207 = vmatprep.subr.mxu0 %v4797_v48  ;;  %v13809_v19 = vpop.f32.mrf.mxu0  ;;  %11257 = vmatprep.subr.mxu1 %v4797_v48  ;;  %v13811_v33 = vpop.f32.mrf.mxu1 }
 0x270   : > { %11208 = vmatpush3.msra.mxu0 %v4797_v48  ;;  %11258 = vmatpush3.msra.mxu1 %v4797_v48 }
 0x271   : > { %11139 = vmatmul.mubr.f32.gmra.mxu0 %v13715_v5  ;;  %v13816_v52 = vpop.f32.mrf.mxu0  ;;  %11189 = vmatmul.mubr.f32.gmra.mxu1 %v13814_v4  ;;  %v13819_v35 = vpop.f32.mrf.mxu1  ;;  %v4794_v5 = vld [vmem:[#allocation6 + $0x1b8] sm:$0xff] }
 0x272   : > { %11209 = vmatprep.subr.mxu0 %v4796_v36  ;;  %11259 = vmatprep.subr.mxu1 %v4796_v36 }
 0x273   : > { %11141 = vmatprep.mubr.f32.mxu0 %v13723_v0  ;;  %11191 = vmatprep.mubr.f32.mxu1 %v13822_v42  ;;  %v4793_v0 = vld [vmem:[#allocation6 + $0x1b0] sm:$0xff] }
 0x274   : > { %11210 = vmatpush3.msra.mxu0 %v4796_v36  ;;  %11260 = vmatpush3.msra.mxu1 %v4796_v36  ;;  %v13834_v36 = vld [vmem:[#allocation2 + $0x163] ss:$2 sm:$0xff] }
 0x275   : > { %11211 = vmatprep.subr.mxu0 %v4795_v47  ;;  %v13825_v48 = vpop.f32.mrf.mxu0  ;;  %11261 = vmatprep.subr.mxu1 %v4795_v47  ;;  %v13827_v23 = vpop.f32.mrf.mxu1  ;;  %16387 = vst [vmem:[#allocation38_spill] sm:$0xff] %v13834_v36 }
 0x276   : > { %11212 = vmatpush3.msra.mxu0 %v4795_v47  ;;  %16385 = vst [vmem:[#allocation36_spill] sm:$0xff] %v13827_v23  ;;  %11262 = vmatpush3.msra.mxu1 %v4795_v47  ;;  %v13842_v47 = vld [vmem:[#allocation2 + $0x173] ss:$2 sm:$0xf] }
 0x277   : > { %11142 = vmatmul.mubr.f32.gmra.mxu0 %v13731_v40  ;;  %11192 = vmatmul.mubr.f32.gmra.mxu1 %v13830_v25  ;;  %v13836_v54 = vpop.f32.mrf.mxu0  ;;  %v13839_v23 = vpop.f32.mrf.mxu1  ;;  %v4792_v40 = vld [vmem:[#allocation6 + $0x1a8] sm:$0xff]  ;;  %16388 = vst [vmem:[#allocation39_spill] sm:$0xff] %v13842_v47  ;;  %v4791_v25 = vld [vmem:[#allocation6 + $0x1a0] sm:$0xff] }
 0x278   : > { %11213 = vmatprep.subr.mxu0 %v4794_v5  ;;  %11263 = vmatprep.subr.mxu1 %v4794_v5 }
 0x279   : > { %11144 = vmatprep.mubr.f32.mxu0 %v13737_v51  ;;  %11194 = vmatprep.mubr.f32.mxu1 %v13834_v36 }
 0x27a   : > { %11214 = vmatpush3.msra.mxu0 %v4794_v5  ;;  %11264 = vmatpush3.msra.mxu1 %v4794_v5  ;;  %v13850_v5 = vld [vmem:[#allocation2 + $0xc4] ss:$2 sm:$0xff] }
 0x27b   : > { %11215 = vmatprep.subr.mxu0 %v4793_v0  ;;  %11265 = vmatprep.subr.mxu1 %v4793_v0  ;;  %v13844_v51 = vpop.f32.mrf.mxu0  ;;  %v13847_v36 = vpop.f32.mrf.mxu1  ;;  %16391 = vst [vmem:[#allocation42_spill] sm:$0xff] %v13850_v5 }
 0x27c   : > { %11216 = vmatpush3.msra.mxu0 %v4793_v0  ;;  %11266 = vmatpush3.msra.mxu1 %v4793_v0  ;;  %16389 = vst [vmem:[#allocation40_spill] sm:$0xff] %v13844_v51  ;;  %16390 = vst [vmem:[#allocation41_spill] sm:$0xff] %v13847_v36  ;;  %v4790_v0 = vld [vmem:[#allocation6 + $0x198] sm:$0xff]  ;;  %v4788_v36 = vld [vmem:[#allocation6 + $0x188] sm:$0xff] }
 0x27d   : > { %11145 = vmatmul.mubr.f32.gmra.mxu0 %v13745_v1  ;;  %11195 = vmatmul.mubr.f32.gmra.mxu1 %v13842_v47  ;;  %v13853_v1 = vpop.f32.mrf.mxu0  ;;  %v4789_v47 = vld [vmem:[#allocation6 + $0x190] sm:$0xff]  ;;  %v13855_v51 = vpop.f32.mrf.mxu1 }
 0x27e   : > { %11217 = vmatprep.subr.mxu0 %v4792_v40  ;;  %11267 = vmatprep.subr.mxu1 %v4792_v40  ;;  %16392 = vst [vmem:[#allocation43_spill] sm:$0xff] %v13855_v51 }
 0x27f   : > { %11218 = vmatpush3.msra.mxu0 %v4792_v40  ;;  %11229 = vmatprep.mubr.f32.mxu0 %v13754_v18 }
 0x280   : > { %11268 = vmatpush3.msra.mxu1 %v4792_v40  ;;  %11279 = vmatprep.mubr.f32.mxu1 %v13850_v5  ;;  %v4787_v40 = vld [vmem:[#allocation6 + $0x180] sm:$0xff] }
 0x281   : > { %11219 = vmatprep.subr.mxu0 %v4791_v25  ;;  %11269 = vmatprep.subr.mxu1 %v4791_v25  ;;  %v13857_v18 = vpop.f32.mrf.mxu0  ;;  %v13859_v5 = vpop.f32.mrf.mxu1 }
 0x282   : > { %11220 = vmatpush3.msra.mxu0 %v4791_v25  ;;  %11270 = vmatpush3.msra.mxu1 %v4791_v25  ;;  %16393 = vst [vmem:[#allocation44_spill] sm:$0xff] %v13857_v18  ;;  %16394 = vst [vmem:[#allocation45_spill] sm:$0xff] %v13859_v5  ;;  %v5116_v25 = vld [vmem:[#allocation6 + $0x278] sm:$0xff] }
 0x283   : > { %11221 = vmatprep.subr.mxu0 %v4790_v0  ;;  %11271 = vmatprep.subr.mxu1 %v4790_v0  ;;  %v13861_v51 = vpop.f32.mrf.mxu0  ;;  %v13866_v18 = vld [vmem:[#allocation2 + $0xd4] ss:$2 sm:$0xff] }
 0x284   : > { %11222 = vmatpush3.msra.mxu0 %v4790_v0  ;;  %11272 = vmatpush3.msra.mxu1 %v4790_v0  ;;  %v13863_v0 = vpop.f32.mrf.mxu1  ;;  %16396 = vst [vmem:[#allocation47_spill] sm:$0xff] %v13866_v18 }
 0x285   : > { %11223 = vmatprep.subr.mxu0 %v4789_v47  ;;  %11273 = vmatprep.subr.mxu1 %v4789_v47  ;;  %16395 = vst [vmem:[#allocation46_spill] sm:$0xff] %v13863_v0 }
 0x286   : > { %11224 = vmatpush3.msra.mxu0 %v4789_v47  ;;  %11274 = vmatpush3.msra.mxu1 %v4789_v47  ;;  %v5115_v47 = vld [vmem:[#allocation6 + $0x270] sm:$0xff] }
 0x287   : > { %11225 = vmatprep.subr.mxu0 %v4788_v36  ;;  %11275 = vmatprep.subr.mxu1 %v4788_v36  ;;  %v13872_v5 = vpop.f32.mrf.mxu0  ;;  %v13875_v0 = vpop.f32.mrf.mxu1 }
 0x288   : > { %11226 = vmatpush3.msra.mxu0 %v4788_v36  ;;  %11276 = vmatpush3.msra.mxu1 %v4788_v36  ;;  %v13870_v36 = vld [vmem:[#allocation2 + $0xe4] ss:$2 sm:$0xff] }
 0x289   : > { %11227 = vmatprep.subr.mxu0 %v4787_v40  ;;  %11277 = vmatprep.subr.mxu1 %v4787_v40  ;;  %16397 = vst [vmem:[#allocation48_spill] sm:$0xff] %v13870_v36 }
 0x28a   : > { %11228 = vmatpush3.msra.mxu0 %v4787_v40  ;;  %11278 = vmatpush3.msra.mxu1 %v4787_v40  ;;  %v13878_v40 = vld [vmem:[#allocation2 + $0xf4] ss:$2 sm:$0xff] }
 0x28b   : > { %11230 = vmatmul.mubr.f32.vlgmr.msra.gmra.mxu0 %v13770_v53  ;;  %11280 = vmatmul.mubr.f32.vlgmr.msra.gmra.mxu1 %v13866_v18  ;;  %v5114_v53 = vld [vmem:[#allocation6 + $0x268] sm:$0xff]  ;;  %16398 = vst [vmem:[#allocation49_spill] sm:$0xff] %v13878_v40  ;;  %v5113_v18 = vld [vmem:[#allocation6 + $0x260] sm:$0xff] }
 0x28c   : > { %11297 = vmatprep.subr.mxu0 %v5116_v25  ;;  %11347 = vmatprep.subr.mxu1 %v5116_v25 }
 0x28d   : > { %11232 = vmatprep.mubr.f32.mxu0 %v13774_v32  ;;  %11282 = vmatprep.mubr.f32.mxu1 %v13870_v36  ;;  %v13880_v32 = vpop.f32.mrf.mxu0  ;;  %v13883_v36 = vpop.f32.mrf.mxu1 }
 0x28e   : > { %11298 = vmatpush3.msra.mxu0 %v5116_v25  ;;  %11348 = vmatpush3.msra.mxu1 %v5116_v25  ;;  %16399 = vst [vmem:[#allocation50_spill] sm:$0xff] %v13880_v32  ;;  %16400 = vst [vmem:[#allocation51_spill] sm:$0xff] %v13883_v36  ;;  %v13886_v25 = vld [vmem:[#allocation2 + $0x104] ss:$2 sm:$0xff]  ;;  %v2488_v32 = vadd.f32 %v13482_v59, %v13480_v46  ;;  %v2752_v46 = vadd.f32 %v13606_v31, %v13602_v12 }
 0x28f   : > { %11299 = vmatprep.subr.mxu0 %v5115_v47  ;;  %11349 = vmatprep.subr.mxu1 %v5115_v47  ;;  %16401 = vst [vmem:[#allocation52_spill] sm:$0xff] %v13886_v25  ;;  %v13895_v36 = vpop.f32.mrf.mxu1  ;;  %v2953_v59 = vadd.f32 %v13713_v11, %v13436_v6  ;;  %v5110_v31 = vld [vmem:[#allocation6 + $0x248] sm:$0xff] }
 0x290   : > { %11300 = vmatpush3.msra.mxu0 %v5115_v47  ;;  %11350 = vmatpush3.msra.mxu1 %v5115_v47  ;;  %v13889_v47 = vpop.f32.mrf.mxu0  ;;  %v3113_v12 = vadd.f32 %v13725_v27, %v2752_v46  ;;  %v5109_v27 = vld [vmem:[#allocation6 + $0x240] sm:$0xff] }
 0x291   : > { %11233 = vmatmul.mubr.f32.gmra.mxu0 %v13782_v44  ;;  %11283 = vmatmul.mubr.f32.gmra.mxu1 %v13878_v40  ;;  %v5112_v44 = vld [vmem:[#allocation6 + $0x258] sm:$0xff]  ;;  %v2478_v40 = vadd.f32 %v13449_v10, %v13447_v60  ;;  %v13914_v10 = vadd.f32 %v13587_v57, %v13585_v29  ;;  %v3268_v29 = vadd.f32 %v13809_v19, %v2953_v59  ;;  %v13941_v57 = vpop.f32.mrf.mxu1  ;;  %v16405_v59 = vld [vmem:[#allocation37_spill] sm:$0xff] }
 0x292   : > { %11301 = vmatprep.subr.mxu0 %v5114_v53  ;;  %11351 = vmatprep.subr.mxu1 %v5114_v53  ;;  %v13910_v60 = vld [vmem:[#allocation2 + $0x114] ss:$2 sm:$0xff]  ;;  %v13932_v6 = vpop.f32.mrf.mxu0  ;;  %v3428_v11 = vadd.f32 %v13819_v35, %v3113_v12  ;;  %v3118_v19 = vadd.f32 %v13751_v56, %v13638_v20 }
 0x293   : > { %11235 = vmatprep.mubr.f32.mxu0 %v13790_v49  ;;  %11285 = vmatprep.mubr.f32.mxu1 %v13886_v25  ;;  %v13899_v49 = vadd.f32 %v13521_v7, %v13519_v13  ;;  %v13907_v25 = vadd.f32 %v13573_v43, %v13571_v50  ;;  %v5111_v13 = vld [vmem:[#allocation6 + $0x250] sm:$0xff]  ;;  %v2762_v7 = vadd.f32 %v13626_v21, %v13622_v38  ;;  %v16402_v35 = vld [vmem:[#allocation36_spill] sm:$0xff] }
 0x294   : > { %11302 = vmatpush3.msra.mxu0 %v5114_v53  ;;  %11352 = vmatpush3.msra.mxu1 %v5114_v53  ;;  %v13903_v53 = vadd.f32 %v13547_v17, %v13545_v39  ;;  %v13925_v39 = vadd.f32 %v13646_v16, %v13640_v63  ;;  %v3114_v17 = vadd.f32 %v13717_v28, %v13600_v58  ;;  %v16407_v12 = vld [vmem:[#allocation24_spill] sm:$0xff] }
 0x295   : > { %11303 = vmatprep.subr.mxu0 %v5113_v18  ;;  %11353 = vmatprep.subr.mxu1 %v5113_v18  ;;  %v13936_v50 = vadd.f32 %v13664_v15, %v13660_v24  ;;  %v2952_v43 = vadd.f32 %v13720_v34, %v2478_v40  ;;  %v13945_v58 = vadd.f32 %v13684_v62, %v13680_v61  ;;  %v13957_v62 = vld [vmem:[#allocation2 + $0x134] ss:$2 sm:$0xff] }
 0x296   : > { %11304 = vmatpush3.msra.mxu0 %v5113_v18  ;;  %11354 = vmatpush3.msra.mxu1 %v5113_v18  ;;  %v3429_v38 = vadd.f32 %v13811_v33, %v3114_v17  ;;  %v13951_v63 = vadd.f32 %v13711_v41, %v13708_v55  ;;  %v2955_v61 = vadd.f32 %v13729_v26, %v13460_v14  ;;  %v13967_v14 = vld [vmem:[%s16264_s4] ss:$0 sm:$0xff] }
 0x297   : > { %11236 = vmatmul.mubr.f32.gmra.mxu0 %v13798_v3  ;;  %11286 = vmatmul.mubr.f32.gmra.mxu1 %v13910_v60  ;;  %v13930_v3 = vld [vmem:[#allocation2 + $0x124] ss:$2 sm:$0xff]  ;;  %v3267_v16 = vadd.f32 %v13816_v52, %v2952_v43  ;;  %v3116_v55 = vadd.f32 %v13733_v37, %v13620_v45  ;;  %v2954_v41 = vadd.f32 %v13740_v2, %v2488_v32 }
 0x298   : > { %11305 = vmatprep.subr.mxu0 %v5112_v44  ;;  %11355 = vmatprep.subr.mxu1 %v5112_v44  ;;  %v3115_v33 = vadd.f32 %v13743_v9, %v2762_v7  ;;  %v2957_v2 = vadd.f32 %v13748_v8, %v13497_v30  ;;  %v5108_v9 = vld [vmem:[#allocation6 + $0x238] sm:$0xff] }
 0x299   : > { %11238 = vmatprep.mubr.f32.mxu0 %v13802_v22  ;;  %11288 = vmatprep.mubr.f32.mxu1 %v13930_v3  ;;  %v13971_v22 = vld [vmem:[#allocation2 + $0x144] ss:$2 sm:$0xff]  ;;  %v3269_v20 = vadd.f32 %v13836_v54, %v2954_v41 }
 0x29a   : > { %11306 = vmatpush3.msra.mxu0 %v5112_v44  ;;  %11356 = vmatpush3.msra.mxu1 %v5112_v44  ;;  %v16403_v30 = vld [vmem:[#allocation22_spill] sm:$0xff] }
 0x29b   : > { %11307 = vmatprep.subr.mxu0 %v5111_v13  ;;  %v10831_v21 = vpop.f32.mrf.mxu0  ;;  %11357 = vmatprep.subr.mxu1 %v5111_v13  ;;  %v10881_v15 = vpop.f32.mrf.mxu1  ;;  %v2956_v8 = vadd.f32 %v16403_v30, %v13899_v49  ;;  %v16411_v41 = vld [vmem:[#allocation26_spill] sm:$0xff] }
 0x29c   : > { %11308 = vmatpush3.msra.mxu0 %v5111_v13  ;;  %v3583_v24 = vadd.f32 %v10831_v21, %v3268_v29  ;;  %11358 = vmatpush3.msra.mxu1 %v5111_v13  ;;  %v3744_v28 = vadd.f32 %v10881_v15, %v3429_v38  ;;  %v13989_v13 = vld [vmem:[#allocation2 + $0x154] ss:$2 sm:$0xff] }
 0x29d   : > { %11239 = vmatmul.mubr.f32.gmra.mxu0 %v13814_v4  ;;  %v3523_v34 = vpop.f32.mrf.mxu0  ;;  %11289 = vmatmul.mubr.f32.gmra.mxu1 %v13957_v62  ;;  %v3684_v52 = vpop.f32.mrf.mxu1  ;;  %v3270_v4 = vadd.f32 %v13825_v48, %v2955_v61  ;;  %v16404_v48 = vld [vmem:[#allocation23_spill] sm:$0xff]  ;;  %v16406_v29 = vld [vmem:[#allocation16_spill] sm:$0xff]  ;;  %v16410_v61 = vld [vmem:[#allocation38_spill] sm:$0xff] }
 0x29e   : > { %11309 = vmatprep.subr.mxu0 %v5110_v31  ;;  %v3582_v26 = vadd.f32 %v3523_v34, %v3267_v16  ;;  %11359 = vmatprep.subr.mxu1 %v5110_v31  ;;  %v3756_v45 = vmax.f32 %v3583_v24, %v3744_v28  ;;  %v3743_v37 = vadd.f32 %v3684_v52, %v3428_v11  ;;  %v16408_v16 = vld [vmem:[#allocation19_spill] sm:$0xff]  ;;  %v16409_v24 = vld [vmem:[#allocation25_spill] sm:$0xff] }
 0x29f   : > { %11241 = vmatprep.mubr.f32.mxu0 %v13822_v42  ;;  %11291 = vmatprep.mubr.f32.mxu1 %v13971_v22  ;;  %v3431_v42 = vadd.f32 %v16402_v35, %v3116_v55  ;;  %v3117_v46 = vadd.f32 %v16404_v48, %v13925_v39  ;;  %v2959_v54 = vadd.f32 %v16407_v12, %v16406_v29  ;;  %v14002_v11 = vld [vmem:[#allocation2 + $0x164] ss:$2 sm:$0xff] }
 0x2a0   : > { %11310 = vmatpush3.msra.mxu0 %v5110_v31  ;;  %11360 = vmatpush3.msra.mxu1 %v5110_v31  ;;  %v13981_v18 = vadd.f32 %v13967_v14, %v3756_v45  ;;  %v3755_v40 = vmax.f32 %v3582_v26, %v3743_v37  ;;  %v5107_v31 = vld [vmem:[#allocation6 + $0x230] sm:$0xff]  ;;  %v3430_v39 = vadd.f32 %v13839_v23, %v3115_v33  ;;  %v16412_v23 = vld [vmem:[#allocation40_spill] sm:$0xff] }
 0x2a1   : > { %11311 = vmatprep.subr.mxu0 %v5109_v27  ;;  %v10834_v32 = vpop.f32.mrf.mxu0  ;;  %11361 = vmatprep.subr.mxu1 %v5109_v27  ;;  %v10884_v44 = vpop.f32.mrf.mxu1  ;;  %v3120_v15 = vadd.f32 %v16409_v24, %v16408_v16  ;;  %v3272_v26 = vadd.f32 %v16412_v23, %v2957_v2  ;;  %v5106_v33 = vld [vmem:[#allocation6 + $0x228] sm:$0xff]  ;;  %v16414_v2 = vld [vmem:[#allocation39_spill] sm:$0xff]  ;;  %v16421_v24 = vld [vmem:[#allocation30_spill] sm:$0xff] }
 0x2a2   : > { %11312 = vmatpush3.msra.mxu0 %v5109_v27  ;;  %v3585_v56 = vadd.f32 %v10834_v32, %v3270_v4  ;;  %11362 = vmatpush3.msra.mxu1 %v5109_v27  ;;  %v3798_v7 = vmin.f32 %v13981_v18, 0.0  ;;  %v13993_v17 = vadd.f32 %v13967_v14, %v3755_v40  ;;  %v3746_v49 = vadd.f32 %v10884_v44, %v3431_v42  ;;  %v16413_v45 = vld [vmem:[#allocation41_spill] sm:$0xff]  ;;  %v16418_v12 = vld [vmem:[#allocation28_spill] sm:$0xff] }
 0x2a3   : > { %11242 = vmatmul.mubr.f32.gmra.mxu0 %v16405_v59  ;;  %v3533_v43 = vpop.f32.mrf.mxu0  ;;  %11292 = vmatmul.mubr.f32.gmra.mxu1 %v13989_v13  ;;  %v3694_v21 = vpop.f32.mrf.mxu1  ;;  %v2958_v27 = vadd.f32 %v16411_v41, %v13903_v53  ;;  %v3433_v37 = vadd.f32 %v16413_v45, %v3118_v19  ;;  %v3271_v53 = vadd.f32 %v13853_v1, %v2956_v8  ;;  %v16416_v59 = vld [vmem:[#allocation27_spill] sm:$0xff]  ;;  %v16417_v29 = vld [vmem:[#allocation17_spill] sm:$0xff]  ;;  %v16423_v41 = vld [vmem:[#allocation44_spill] sm:$0xff]  ;;  %vm3786_vm1 = vcmp.gt.f32.partialorder %v13981_v18, 0.0 }
 0x2a4   : > { %11313 = vmatprep.subr.mxu0 %v5108_v9  ;;  %v3584_v38 = vadd.f32 %v3533_v43, %v3269_v20  ;;  %11363 = vmatprep.subr.mxu1 %v5108_v9  ;;  %v3811_v28 = vmul.f32 1.442695, %v3798_v7  ;;  %v3797_v34 = vmin.f32 %v13993_v17, 0.0  ;;  %v3758_v55 = vmax.f32 %v3585_v56, %v3746_v49  ;;  %v16415_v20 = vld [vmem:[#allocation43_spill] sm:$0xff]  ;;  %v16420_v16 = vld [vmem:[#allocation29_spill] sm:$0xff] }
 0x2a5   : > { %11244 = vmatprep.mubr.f32.mxu0 %v16410_v61  ;;  %11294 = vmatprep.mubr.f32.mxu1 %v14002_v11  ;;  %v3745_v52 = vadd.f32 %v3694_v21, %v3430_v39  ;;  %v3432_v19 = vadd.f32 %v16415_v20, %v3117_v46  ;;  %v3119_v7 = vadd.f32 %v16416_v59, %v13936_v50  ;;  %v5105_v1 = vld [vmem:[#allocation6 + $0x220] sm:$0xff]  ;;  %v16429_v59 = vld [vmem:[#allocation33_spill] sm:$0xff]  ;;  %vm3785_vm2 = vcmp.gt.f32.partialorder %v13993_v17, 0.0 }
 0x2a6   : > { %11314 = vmatpush3.msra.mxu0 %v5108_v9  ;;  %11364 = vmatpush3.msra.mxu1 %v5108_v9  ;;  %12061 = vpow2.f32 %v3811_v28  ;;  %v3809_v4 = vmul.f32 1.442695, %v3797_v34  ;;  %v14011_v35 = vadd.f32 %v13967_v14, %v3758_v55  ;;  %v14015_v9 = vld [vmem:[#allocation2 + $0x174] ss:$2 sm:$0xf]  ;;  %v2961_v46 = vadd.f32 %v16418_v12, %v16417_v29  ;;  %v16419_v21 = vld [vmem:[#allocation20_spill] sm:$0xff] }
 0x2a7   : > { %11315 = vmatprep.subr.mxu0 %v5107_v31  ;;  %v10837_v42 = vpop.f32.mrf.mxu0  ;;  %11365 = vmatprep.subr.mxu1 %v5107_v31  ;;  %v3757_v40 = vmax.f32 %v3584_v38, %v3745_v52  ;;  %v10887_v30 = vpop.f32.mrf.mxu1  ;;  %v3122_v50 = vadd.f32 %v16420_v16, %v16419_v21  ;;  %v2960_v61 = vadd.f32 %v16421_v24, %v13907_v25  ;;  %v16422_v28 = vld [vmem:[#allocation42_spill] sm:$0xff]  ;;  %v16424_v52 = vld [vmem:[#allocation45_spill] sm:$0xff]  ;;  %v16425_v25 = vld [vmem:[#allocation31_spill] sm:$0xff] }
 0x2a8   : > { %11316 = vmatpush3.msra.mxu0 %v5107_v31  ;;  %v3587_v32 = vadd.f32 %v10837_v42, %v3272_v26  ;;  %11366 = vmatpush3.msra.mxu1 %v5107_v31  ;;  %12063 = vpow2.f32 %v3809_v4  ;;  %v3800_v56 = vmin.f32 %v14011_v35, 0.0  ;;  %v3748_v44 = vadd.f32 %v10887_v30, %v3433_v37  ;;  %v5255_v34 = vld [vmem:[#allocation2 + $0xc5] ss:$2 sm:$0xff]  ;;  %v5104_v55 = vld [vmem:[#allocation6 + $0x218] sm:$0xff] }
 0x2a9   : > { %11245 = vmatmul.mubr.f32.gmra.mxu0 %v16414_v2  ;;  %v3543_v48 = vpop.f32.mrf.mxu0  ;;  %11295 = vmatmul.mubr.f32.gmra.mxu1 %v14015_v9  ;;  %v14023_v8 = vadd.f32 %v13967_v14, %v3757_v40  ;;  %v3704_v43 = vpop.f32.mrf.mxu1  ;;  %v3274_v23 = vadd.f32 %v16423_v41, %v2959_v54  ;;  %v3435_v45 = vadd.f32 %v16424_v52, %v3120_v15  ;;  %v16426_v2 = vld [vmem:[#allocation18_spill] sm:$0xff]  ;;  %v16427_v20 = vld [vmem:[#allocation32_spill] sm:$0xff]  ;;  %v16432_v16 = vld [vmem:[#allocation35_spill] sm:$0xff]  ;;  %vm3788_vm3 = vcmp.gt.f32.partialorder %v14011_v35, 0.0 }
 0x2aa   : > { %11317 = vmatprep.subr.mxu0 %v5106_v33  ;;  %v3586_v49 = vadd.f32 %v3543_v48, %v3271_v53  ;;  %11367 = vmatprep.subr.mxu1 %v5106_v33  ;;  %v3815_v31 = vmul.f32 1.442695, %v3800_v56  ;;  %v3760_v39 = vmax.f32 %v3587_v32, %v3748_v44  ;;  %v3747_v38 = vadd.f32 %v3704_v43, %v3432_v19  ;;  %v16428_v48 = vld [vmem:[#allocation21_spill] sm:$0xff]  ;;  %v16431_v12 = vld [vmem:[#allocation34_spill] sm:$0xff] }
 0x2ab   : > { %11318 = vmatpush3.msra.mxu0 %v5106_v33  ;;  %11329 = vmatprep.mubr.f32.mxu0 %v16422_v28  ;;  %v3799_v26 = vmin.f32 %v14023_v8, 0.0  ;;  %v3121_v53 = vadd.f32 %v16425_v25, %v13945_v58  ;;  %v3273_v54 = vadd.f32 %v13861_v51, %v2958_v27  ;;  %v14043_v15 = vadd.f32 %v16427_v20, %v16426_v2  ;;  %v5102_v51 = vld [vmem:[#allocation6 + $0x208] sm:$0xff]  ;;  %v16430_v27 = vld [vmem:[#allocation46_spill] sm:$0xff] }
 0x2ac   : > { %11368 = vmatpush3.msra.mxu1 %v5106_v33  ;;  %11379 = vmatprep.mubr.f32.mxu1 %v5255_v34  ;;  %12065 = vpow2.f32 %v3815_v31  ;;  %v14036_v37 = vadd.f32 %v13967_v14, %v3760_v39  ;;  %v3759_v4 = vmax.f32 %v3586_v49, %v3747_v38  ;;  %v5103_v33 = vld [vmem:[#allocation6 + $0x210] sm:$0xff]  ;;  %v14051_v49 = vadd.f32 %v16429_v59, %v16428_v48  ;;  %v16436_v59 = vld [vmem:[#allocation48_spill] sm:$0xff] }
 0x2ad   : > { %11319 = vmatprep.subr.mxu0 %v5105_v1  ;;  %v10840_v42 = vpop.f32.mrf.mxu0  ;;  %11369 = vmatprep.subr.mxu1 %v5105_v1  ;;  %v3813_v40 = vmul.f32 1.442695, %v3799_v26  ;;  %v10890_v30 = vpop.f32.mrf.mxu1  ;;  %v3434_v43 = vadd.f32 %v16430_v27, %v3119_v7  ;;  %v14056_v31 = vadd.f32 %v16431_v12, %v13914_v10  ;;  %v14061_v24 = vadd.f32 %v16432_v16, %v13951_v63  ;;  %v5101_v7 = vld [vmem:[#allocation6 + $0x200] sm:$0xff]  ;;  %v16433_v63 = vld [vmem:[#allocation50_spill] sm:$0xff]  ;;  %v16437_v16 = vld [vmem:[#allocation49_spill] sm:$0xff] }
 0x2ae   : > { %11320 = vmatpush3.msra.mxu0 %v5105_v1  ;;  %v3589_v32 = vadd.f32 %v10840_v42, %v3274_v23  ;;  %11370 = vmatpush3.msra.mxu1 %v5105_v1  ;;  %v3802_v19 = vmin.f32 %v14036_v37, 0.0  ;;  %v14047_v56 = vadd.f32 %v13967_v14, %v3759_v4  ;;  %v3750_v58 = vadd.f32 %v10890_v30, %v3435_v45  ;;  %v5257_v2 = vld [vmem:[#allocation2 + $0xd5] ss:$2 sm:$0xff] }
 0x2af   : > { %11321 = vmatprep.subr.mxu0 %v5104_v55  ;;  %v3553_v44 = vpop.f32.mrf.mxu0  ;;  %11371 = vmatprep.subr.mxu1 %v5104_v55  ;;  %12067 = vpow2.f32 %v3813_v40  ;;  %v3714_v1 = vpop.f32.mrf.mxu1  ;;  %v3276_v28 = vadd.f32 %v13872_v5, %v2961_v46  ;;  %v3437_v10 = vadd.f32 %v13875_v0, %v3122_v50  ;;  %v3275_v52 = vadd.f32 %v16433_v63, %v2960_v61  ;;  %v16434_v5 = vld [vmem:[#allocation51_spill] sm:$0xff] }
 0x2b0   : > { %11322 = vmatpush3.msra.mxu0 %v5104_v55  ;;  %v3588_v29 = vadd.f32 %v3553_v44, %v3273_v54  ;;  %11372 = vmatpush3.msra.mxu1 %v5104_v55  ;;  %v3819_v39 = vmul.f32 1.442695, %v3802_v19  ;;  %v3801_v38 = vmin.f32 %v14047_v56, 0.0  ;;  %v3762_v21 = vmax.f32 %v3589_v32, %v3750_v58  ;;  %v14072_v54 = vld [vmem:[#allocation9 + $0xf8] sm:$0xff] }
 0x2b1   : > { %11323 = vmatprep.subr.mxu0 %v5103_v33  ;;  %11373 = vmatprep.subr.mxu1 %v5103_v33  ;;  %v3749_v34 = vadd.f32 %v3714_v1, %v3434_v43  ;;  %v3436_v46 = vadd.f32 %v16434_v5, %v3121_v53  ;;  %v16435_v53 = vld [vmem:[#allocation47_spill] sm:$0xff]  ;;  %v3278_v27 = vadd.f32 %v13889_v47, %v14043_v15  ;;  %v14094_v15 = vld [vmem:[#allocation9 + $0xf0] sm:$0xff]  ;;  %vm3787_vm4 = vcmp.gt.f32.partialorder %v14023_v8, 0.0 }
 0x2b2   : > { %11324 = vmatpush3.msra.mxu0 %v5103_v33  ;;  %11374 = vmatpush3.msra.mxu1 %v5103_v33  ;;  %12069 = vpow2.f32 %v3819_v39  ;;  %v3817_v55 = vmul.f32 1.442695, %v3801_v38  ;;  %v14066_v41 = vadd.f32 %v13967_v14, %v3762_v21  ;;  %v14079_v58 = vld [vmem:[#allocation9 + $0x78] sm:$0xff]  ;;  %v3277_v47 = vadd.f32 %v13932_v6, %v14056_v31  ;;  %v14103_v31 = vld [vmem:[#allocation9 + $0x70] sm:$0xff] }
 0x2b3   : > { %11325 = vmatprep.subr.mxu0 %v5102_v51  ;;  %v10843_v23 = vpop.f32.mrf.mxu0  ;;  %v12062_v26 = vpop.eup %12061  ;;  %11375 = vmatprep.subr.mxu1 %v5102_v51  ;;  %v3761_v45 = vmax.f32 %v3588_v29, %v3749_v34  ;;  %vm3790_vm5 = vcmp.gt.f32.partialorder %v14036_v37, 0.0  ;;  %vm3789_vm6 = vcmp.gt.f32.partialorder %v14047_v56, 0.0 }
 0x2b4   : > { %11326 = vmatpush3.msra.mxu0 %v5102_v51  ;;  %v3591_v4 = vadd.f32 %v10843_v23, %v3276_v28  ;;  %v10893_v42 = vpop.f32.mrf.mxu1  ;;  %11376 = vmatpush3.msra.mxu1 %v5102_v51  ;;  %v9090_v25 = vadd.f32 -1.0, %v12062_v26  ;;  %12071 = vpow2.f32 %v3817_v55  ;;  %v3804_v0 = vmin.f32 %v14066_v41, 0.0  ;;  %v5259_v51 = vld [vmem:[#allocation2 + $0xe5] ss:$2 sm:$0xff] }
 0x2b5   : > { %11327 = vmatprep.subr.mxu0 %v5101_v7  ;;  %v3563_v50 = vpop.f32.mrf.mxu0  ;;  %v12064_v33 = vpop.eup %12063  ;;  %11377 = vmatprep.subr.mxu1 %v5101_v7  ;;  %v14075_v61 = vadd.f32 %v13967_v14, %v3761_v45  ;;  %v3752_v40 = vadd.f32 %v10893_v42, %v3437_v10  ;;  %v3438_v28 = vadd.f32 %v13941_v57, %v14061_v24  ;;  %v16438_v23 = vld [vmem:[#allocation52_spill] sm:$0xff]  ;;  %vm3792_vm7 = vcmp.gt.f32.partialorder %v14066_v41, 0.0 }
 0x2b6   : > { %11328 = vmatpush3.msra.mxu0 %v5101_v7  ;;  %v3590_v32 = vadd.f32 %v3563_v50, %v3275_v52  ;;  %v3724_v30 = vpop.f32.mrf.mxu1  ;;  %11378 = vmatpush3.msra.mxu1 %v5101_v7  ;;  %v3846_v20 = vsel %vm3786_vm1, %v13981_v18, %v9090_v25  ;;  %v9089_v19 = vadd.f32 -1.0, %v12064_v33  ;;  %v3823_v44 = vmul.f32 1.442695, %v3804_v0  ;;  %v5261_v7 = vld [vmem:[#allocation2 + $0xf5] ss:$2 sm:$0xff] }
 0x2b7   : > { %11330 = vmatmul.mubr.f32.vlgmr.msra.gmra.mxu0 %v16435_v53  ;;  %v3751_v48 = vadd.f32 %v3724_v30, %v3436_v46  ;;  %11380 = vmatmul.mubr.f32.vlgmr.msra.gmra.mxu1 %v5257_v2  ;;  %3858 = vst [vmem:[#allocation3 + $0x8] sm:$0xff] %v3846_v20  ;;  %v3803_v43 = vmin.f32 %v14075_v61, 0.0  ;;  %v3764_v29 = vmax.f32 %v3591_v4, %v3752_v40  ;;  %v5263_v26 = vld [vmem:[#allocation2 + $0x105] ss:$2 sm:$0xff]  ;;  %v5265_v50 = vld [vmem:[#allocation2 + $0x115] ss:$2 sm:$0xff] }
 0x2b8   : > { %11332 = vmatprep.mubr.f32.mxu0 %v16436_v59  ;;  %11382 = vmatprep.mubr.f32.mxu1 %v5259_v51  ;;  %v3439_v18 = vadd.f32 %v13895_v36, %v14051_v49  ;;  %v3845_v1 = vsel %vm3785_vm2, %v13993_v17, %v9089_v19  ;;  %12073 = vpow2.f32 %v3823_v44  ;;  %v14116_v46 = vld [vmem:[#allocation9 + $0xe8] sm:$0xff]  ;;  %v5269_v44 = vld [vmem:[#allocation2 + $0x135] ss:$2 sm:$0xff]  ;;  %vm3791_vm8 = vcmp.gt.f32.partialorder %v14075_v61, 0.0 }
 0x2b9   : > { %11397 = vmatprep.subr.mxu0 %v14072_v54  ;;  %v3763_v12 = vmax.f32 %v3590_v32, %v3751_v48  ;;  %v10846_v39 = vpop.f32.mrf.mxu0  ;;  %v12066_v38 = vpop.eup %12065  ;;  %3857 = vst [vmem:[#allocation3] sm:$0xff] %v3845_v1  ;;  %11447 = vmatprep.subr.mxu1 %v14079_v58  ;;  %v3821_v21 = vmul.f32 1.442695, %v3803_v43  ;;  %v14097_v36 = vadd.f32 %v13967_v14, %v3764_v29  ;;  %v5267_v30 = vld [vmem:[#allocation2 + $0x125] ss:$2 sm:$0xff]  ;;  %v14150_v29 = vld [vmem:[#allocation9 + $0xd8] sm:$0xff] }
 0x2ba   : > { %11398 = vmatpush3.msra.mxu0 %v14072_v54  ;;  %v3593_v17 = vadd.f32 %v10846_v39, %v3278_v27  ;;  %v10896_v49 = vpop.f32.mrf.mxu1  ;;  %v9092_v6 = vadd.f32 -1.0, %v12066_v38  ;;  %11448 = vmatpush3.msra.mxu1 %v14079_v58  ;;  %v14141_v51 = vld [vmem:[#allocation9 + $0x60] sm:$0xff] }
 0x2bb   : > { %11333 = vmatmul.mubr.f32.gmra.mxu0 %v16437_v16  ;;  %v14106_v34 = vadd.f32 %v13967_v14, %v3763_v12  ;;  %v3754_v10 = vadd.f32 %v10896_v49, %v3439_v18  ;;  %v3573_v55 = vpop.f32.mrf.mxu0  ;;  %11383 = vmatmul.mubr.f32.gmra.mxu1 %v5261_v7  ;;  %12075 = vpow2.f32 %v3821_v21  ;;  %v3806_v63 = vmin.f32 %v14097_v36, 0.0  ;;  %v5271_v43 = vld [vmem:[#allocation2 + $0x145] ss:$2 sm:$0xff]  ;;  %v5273_v18 = vld [vmem:[#allocation2 + $0x155] ss:$2 sm:$0xff] }
 0x2bc   : > { %11335 = vmatprep.mubr.f32.mxu0 %v16438_v23  ;;  %v3592_v57 = vadd.f32 %v3573_v55, %v3277_v47  ;;  %v3734_v24 = vpop.f32.mrf.mxu1  ;;  %v12068_v52 = vpop.eup %12067  ;;  %11385 = vmatprep.mubr.f32.mxu1 %v5263_v26  ;;  %v3848_v45 = vsel %vm3788_vm3, %v14011_v35, %v9092_v6  ;;  %v14121_v35 = vld [vmem:[#allocation9 + $0x68] sm:$0xff]  ;;  %v14154_v12 = vld [vmem:[#allocation9 + $0x58] sm:$0xff]  ;;  %vm3794_vm9 = vcmp.gt.f32.partialorder %v14097_v36, 0.0 }
 0x2bd   : > { %11399 = vmatprep.subr.mxu0 %v14094_v15  ;;  %v3805_v4 = vmin.f32 %v14106_v34, 0.0  ;;  %v3766_v42 = vmax.f32 %v3593_v17, %v3754_v10  ;;  %3860 = vst [vmem:[#allocation3 + $0x18] sm:$0xff] %v3848_v45  ;;  %v9091_v5 = vadd.f32 -1.0, %v12068_v52  ;;  %11449 = vmatprep.subr.mxu1 %v14103_v31  ;;  %v3827_v25 = vmul.f32 1.442695, %v3806_v63  ;;  %v14179_v10 = vld [vmem:[#allocation9 + $0x48] sm:$0xff] }
 0x2be   : > { %11400 = vmatpush3.msra.mxu0 %v14094_v15  ;;  %v3753_v0 = vadd.f32 %v3734_v24, %v3438_v28  ;;  %11450 = vmatpush3.msra.mxu1 %v14103_v31  ;;  %v5275_v39 = vld [vmem:[#allocation2 + $0x165] ss:$2 sm:$0xff]  ;;  %v14192_v52 = vld [vmem:[#allocation9 + $0xb8] sm:$0xff]  ;;  %vm3793_vm10 = vcmp.gt.f32.partialorder %v14106_v34, 0.0 }
 0x2bf   : > { %11336 = vmatmul.mubr.f32.gmra.mxu0 %v13910_v60  ;;  %v3825_v33 = vmul.f32 1.442695, %v3805_v4  ;;  %v14124_v40 = vadd.f32 %v13967_v14, %v3766_v42  ;;  %v12070_v32 = vpop.eup %12069  ;;  %11386 = vmatmul.mubr.f32.gmra.mxu1 %v5265_v50  ;;  %v3847_v53 = vsel %vm3787_vm4, %v14023_v8, %v9091_v5  ;;  %12077 = vpow2.f32 %v3827_v25  ;;  %v14175_v28 = vld [vmem:[#allocation9 + $0xc8] sm:$0xff]  ;;  %v14202_v5 = vld [vmem:[#allocation9 + $0x38] sm:$0xff]  ;;  %v14209_v50 = vld [vmem:[#allocation9 + $0xb0] sm:$0xff] }
 0x2c0   : > { %11338 = vmatprep.mubr.f32.mxu0 %v13930_v3  ;;  %v3765_v60 = vmax.f32 %v3592_v57, %v3753_v0  ;;  %11388 = vmatprep.mubr.f32.mxu1 %v5267_v30  ;;  %3859 = vst [vmem:[#allocation3 + $0x10] sm:$0xff] %v3847_v53  ;;  %v9094_v2 = vadd.f32 -1.0, %v12070_v32  ;;  %v14133_v3 = vld [vmem:[#allocation9 + $0xe0] sm:$0xff]  ;;  %v14222_v53 = vld [vmem:[#allocation9 + $0x28] sm:$0xff] }
 0x2c1   : > { %11401 = vmatprep.subr.mxu0 %v14116_v46  ;;  %12079 = vpow2.f32 %v3825_v33  ;;  %v3808_v20 = vmin.f32 %v14124_v40, 0.0  ;;  %v12072_v19 = vpop.eup %12071  ;;  %11451 = vmatprep.subr.mxu1 %v14121_v35  ;;  %v14213_v33 = vld [vmem:[#allocation9 + $0x30] sm:$0xff]  ;;  %vm3796_vm11 = vcmp.gt.f32.partialorder %v14124_v40, 0.0 }
 0x2c2   : > { %11402 = vmatpush3.msra.mxu0 %v14116_v46  ;;  %v14136_v8 = vadd.f32 %v13967_v14, %v3765_v60  ;;  %v3850_v48 = vsel %vm3790_vm5, %v14036_v37, %v9094_v2  ;;  %v9093_v59 = vadd.f32 -1.0, %v12072_v19  ;;  %11452 = vmatpush3.msra.mxu1 %v14121_v35  ;;  %v14227_v19 = vld [vmem:[#allocation9 + $0xa0] sm:$0xff] }
 0x2c3   : > { %11339 = vmatmul.mubr.f32.gmra.mxu0 %v13957_v62  ;;  %v3831_v27 = vmul.f32 1.442695, %v3808_v20  ;;  %11389 = vmatmul.mubr.f32.gmra.mxu1 %v5269_v44  ;;  %3862 = vst [vmem:[#allocation3 + $0x28] sm:$0xff] %v3850_v48 }
 0x2c4   : > { %11341 = vmatprep.mubr.f32.mxu0 %v13971_v22  ;;  %v3807_v14 = vmin.f32 %v14136_v8, 0.0  ;;  %11391 = vmatprep.mubr.f32.mxu1 %v5271_v43  ;;  %v3849_v62 = vsel %vm3789_vm6, %v14047_v56, %v9093_v59  ;;  %vm3795_vm12 = vcmp.gt.f32.partialorder %v14136_v8, 0.0 }
 0x2c5   : > { %11403 = vmatprep.subr.mxu0 %v14133_v3  ;;  %12081 = vpow2.f32 %v3831_v27  ;;  %v12074_v37 = vpop.eup %12073  ;;  %3861 = vst [vmem:[#allocation3 + $0x20] sm:$0xff] %v3849_v62  ;;  %11453 = vmatprep.subr.mxu1 %v14141_v51  ;;  %v14235_v27 = vld [vmem:[#allocation9 + $0x20] sm:$0xff]  ;;  %v14247_v62 = vld [vmem:[#allocation9 + $0x18] sm:$0xff] }
 0x2c6   : > { %11404 = vmatpush3.msra.mxu0 %v14133_v3  ;;  %v3829_v22 = vmul.f32 1.442695, %v3807_v14  ;;  %v9096_v1 = vadd.f32 -1.0, %v12074_v37  ;;  %11454 = vmatpush3.msra.mxu1 %v14141_v51  ;;  %v14251_v37 = vld [vmem:[#allocation9 + $0x90] sm:$0xff] }
 0x2c7   : > { %11342 = vmatmul.mubr.f32.gmra.mxu0 %v13989_v13  ;;  %v10931_v56 = vpop.f32.mrf.mxu0  ;;  %11392 = vmatmul.mubr.f32.gmra.mxu1 %v5273_v18  ;;  %v10981_v38 = vpop.f32.mrf.mxu1  ;;  %v14160_v13 = vld [vmem:[#allocation9 + $0xd0] sm:$0xff] }
 0x2c8   : > { %11344 = vmatprep.mubr.f32.mxu0 %v14002_v11  ;;  %12083 = vpow2.f32 %v3829_v22  ;;  %v12076_v47 = vpop.eup %12075  ;;  %11394 = vmatprep.mubr.f32.mxu1 %v5275_v39  ;;  %v3852_v21 = vsel %vm3792_vm7, %v14066_v41, %v9096_v1  ;;  %v14162_v17 = vadd.f32 %v10981_v38, %v10931_v56  ;;  %v14168_v11 = vld [vmem:[#allocation9 + $0x50] sm:$0xff]  ;;  %v14259_v1 = vld [vmem:[#allocation9 + $0x88] sm:$0xff] }
 0x2c9   : > { %11405 = vmatprep.subr.mxu0 %v14150_v29  ;;  %v14164_v49 = vpop.f32.mrf.mxu0  ;;  %3864 = vst [vmem:[#allocation3 + $0x38] sm:$0xff] %v3852_v21  ;;  %v9095_v16 = vadd.f32 -1.0, %v12076_v47  ;;  %11455 = vmatprep.subr.mxu1 %v14154_v12  ;;  %v14170_v7 = vpop.f32.mrf.mxu1  ;;  %v5277_v41 = vld [vmem:[#allocation2 + $0x175] ss:$2 sm:$0xf]  ;;  %v14269_v47 = vld [vmem:[#allocation9 + $0x8] sm:$0xff] }
 0x2ca   : > { %11406 = vmatpush3.msra.mxu0 %v14150_v29  ;;  %11456 = vmatpush3.msra.mxu1 %v14154_v12  ;;  %v14255_v18 = vld [vmem:[#allocation9 + $0x10] sm:$0xff]  ;;  %v14267_v38 = vld [vmem:[#allocation3 + $0x1] ss:$2 sm:$0xff] }
 0x2cb   : > { %11345 = vmatmul.mubr.f32.gmra.mxu0 %v14015_v9  ;;  %11395 = vmatmul.mubr.f32.gmra.mxu1 %v5277_v41  ;;  %v3851_v6 = vsel %vm3791_vm8, %v14075_v61, %v9095_v16  ;;  %v14183_v9 = vld [vmem:[#allocation9 + $0xc0] sm:$0xff]  ;;  %16439 = vst [vmem:[#allocation36_spill] sm:$0xff] %v14267_v38 }
 0x2cc   : > { %11407 = vmatprep.subr.mxu0 %v14160_v13  ;;  %v12078_v55 = vpop.eup %12077  ;;  %3863 = vst [vmem:[#allocation3 + $0x30] sm:$0xff] %v3851_v6  ;;  %11457 = vmatprep.subr.mxu1 %v14168_v11  ;;  %v14187_v61 = vld [vmem:[#allocation9 + $0x40] sm:$0xff] }
 0x2cd   : > { %11408 = vmatpush3.msra.mxu0 %v14160_v13  ;;  %v10934_v23 = vpop.f32.mrf.mxu0  ;;  %v9098_v63 = vadd.f32 -1.0, %v12078_v55  ;;  %11458 = vmatpush3.msra.mxu1 %v14168_v11  ;;  %v10984_v57 = vpop.f32.mrf.mxu1  ;;  %v5540_v16 = vld [vmem:[#allocation3] ss:$2 sm:$0xff] }
 0x2ce   : > { %v12080_v26 = vpop.eup %12079  ;;  %11409 = vmatprep.subr.mxu0 %v14175_v28  ;;  %11459 = vmatprep.subr.mxu1 %v14179_v10  ;;  %v14194_v45 = vadd.f32 %v10984_v57, %v10934_v23  ;;  %v14277_v41 = vld [vmem:[#allocation9 + $0x80] sm:$0xff]  ;;  %v14284_v23 = vld [vmem:[#allocation3 + $0x11] ss:$2 sm:$0xff] }
 0x2cf   : > { %v9097_v24 = vadd.f32 -1.0, %v12080_v26  ;;  %11410 = vmatpush3.msra.mxu0 %v14175_v28  ;;  %v14196_v4 = vpop.f32.mrf.mxu0  ;;  %v3854_v42 = vsel %vm3794_vm9, %v14097_v36, %v9098_v63  ;;  %11460 = vmatpush3.msra.mxu1 %v14179_v10  ;;  %v14204_v25 = vpop.f32.mrf.mxu1  ;;  %v14281_v6 = vld [vmem:[#allocation9] sm:$0xff]  ;;  %16440 = vst [vmem:[#allocation22_spill] sm:$0xff] %v14284_v23  ;;  %v5542_v63 = vld [vmem:[#allocation3 + $0x10] ss:$2 sm:$0xff] }
 0x2d0   : > { %11411 = vmatprep.subr.mxu0 %v14183_v9  ;;  %3866 = vst [vmem:[#allocation3 + $0x48] sm:$0xff] %v3854_v42  ;;  %11461 = vmatprep.subr.mxu1 %v14187_v61  ;;  %v14288_v57 = vld [vmem:[#allocation3 + $0x21] ss:$2 sm:$0xff] }
 0x2d1   : > { %v3853_v0 = vsel %vm3793_vm10, %v14106_v34, %v9097_v24  ;;  %11412 = vmatpush3.msra.mxu0 %v14183_v9  ;;  %11462 = vmatpush3.msra.mxu1 %v14187_v61  ;;  %v14217_v34 = vld [vmem:[#allocation9 + $0xa8] sm:$0xff]  ;;  %16441 = vst [vmem:[#allocation23_spill] sm:$0xff] %v14288_v57 }
 0x2d2   : > { %v12082_v36 = vpop.eup %12081  ;;  %3865 = vst [vmem:[#allocation3 + $0x40] sm:$0xff] %v3853_v0  ;;  %11413 = vmatprep.subr.mxu0 %v14192_v52  ;;  %11463 = vmatprep.subr.mxu1 %v14202_v5  ;;  %v5544_v0 = vld [vmem:[#allocation3 + $0x20] ss:$2 sm:$0xff] }
 0x2d3   : > { %v9100_v32 = vadd.f32 -1.0, %v12082_v36  ;;  %11414 = vmatpush3.msra.mxu0 %v14192_v52  ;;  %v10937_v30 = vpop.f32.mrf.mxu0  ;;  %11464 = vmatpush3.msra.mxu1 %v14202_v5  ;;  %v10987_v60 = vpop.f32.mrf.mxu1 }
 0x2d4   : > { %11415 = vmatprep.subr.mxu0 %v14209_v50  ;;  %11465 = vmatprep.subr.mxu1 %v14213_v33  ;;  %v14229_v44 = vadd.f32 %v10987_v60, %v10937_v30  ;;  %v5546_v30 = vld [vmem:[#allocation3 + $0x30] ss:$2 sm:$0xff] }
 0x2d5   : > { %v12084_v2 = vpop.eup %12083  ;;  %v3856_v20 = vsel %vm3796_vm11, %v14124_v40, %v9100_v32  ;;  %11416 = vmatpush3.msra.mxu0 %v14209_v50  ;;  %v14231_v48 = vpop.f32.mrf.mxu0  ;;  %11466 = vmatpush3.msra.mxu1 %v14213_v33  ;;  %v14242_v40 = vld [vmem:[#allocation9 + $0x98] sm:$0xff] }
 0x2d6   : > { %3868 = vst [vmem:[#allocation3 + $0x58] sm:$0xff] %v3856_v20  ;;  %v9099_v59 = vadd.f32 -1.0, %v12084_v2  ;;  %11417 = vmatprep.subr.mxu0 %v14217_v34  ;;  %v14237_v43 = vpop.f32.mrf.mxu1  ;;  %11467 = vmatprep.subr.mxu1 %v14222_v53  ;;  %v14301_v32 = vld [vmem:[#allocation3 + $0x31] ss:$2 sm:$0xff] }
 0x2d7   : > { %11418 = vmatpush3.msra.mxu0 %v14217_v34  ;;  %11468 = vmatpush3.msra.mxu1 %v14222_v53  ;;  %16442 = vst [vmem:[#allocation37_spill] sm:$0xff] %v14301_v32 }
 0x2d8   : > { %v3855_v14 = vsel %vm3795_vm12, %v14136_v8, %v9099_v59  ;;  %11419 = vmatprep.subr.mxu0 %v14227_v19  ;;  %11469 = vmatprep.subr.mxu1 %v14235_v27 }
 0x2d9   : > { %3867 = vst [vmem:[#allocation3 + $0x50] sm:$0xff] %v3855_v14  ;;  %11420 = vmatpush3.msra.mxu0 %v14227_v19  ;;  %v10940_v22 = vpop.f32.mrf.mxu0  ;;  %11470 = vmatpush3.msra.mxu1 %v14235_v27  ;;  %v10990_v8 = vpop.f32.mrf.mxu1  ;;  %v14303_v2 = vld [vmem:[#allocation3 + $0x41] ss:$2 sm:$0xff]  ;;  %v5548_v59 = vld [vmem:[#allocation3 + $0x40] ss:$2 sm:$0xff] }
 0x2da   : > { %11421 = vmatprep.subr.mxu0 %v14242_v40  ;;  %11471 = vmatprep.subr.mxu1 %v14247_v62  ;;  %v14261_v56 = vadd.f32 %v10990_v8, %v10940_v22  ;;  %16443 = vst [vmem:[#allocation16_spill] sm:$0xff] %v14303_v2 }
 0x2db   : > { %11422 = vmatpush3.msra.mxu0 %v14242_v40  ;;  %v14263_v39 = vpop.f32.mrf.mxu0  ;;  %11472 = vmatpush3.msra.mxu1 %v14247_v62  ;;  %v14271_v21 = vpop.f32.mrf.mxu1 }
 0x2dc   : > { %11423 = vmatprep.subr.mxu0 %v14251_v37  ;;  %11473 = vmatprep.subr.mxu1 %v14255_v18 }
 0x2dd   : > { %11424 = vmatpush3.msra.mxu0 %v14251_v37  ;;  %11474 = vmatpush3.msra.mxu1 %v14255_v18 }
 0x2de   : > { %11425 = vmatprep.subr.mxu0 %v14259_v1  ;;  %11429 = vmatprep.mubr.f32.mxu0 %v14267_v38 }
 0x2df   : > { %11475 = vmatprep.subr.mxu1 %v14269_v47  ;;  %v10943_v55 = vpop.f32.mrf.mxu0  ;;  %11479 = vmatprep.mubr.f32.mxu1 %v5540_v16  ;;  %v10993_v26 = vpop.f32.mrf.mxu1 }
 0x2e0   : > { %11426 = vmatpush3.msra.mxu0 %v14259_v1  ;;  %11476 = vmatpush3.msra.mxu1 %v14269_v47  ;;  %v14290_v24 = vadd.f32 %v10993_v26, %v10943_v55  ;;  %v14313_v22 = vld [vmem:[#allocation3 + $0x51] ss:$2 sm:$0xff]  ;;  %v5550_v8 = vld [vmem:[#allocation3 + $0x50] ss:$2 sm:$0xff] }
 0x2e1   : > { %11427 = vmatprep.subr.mxu0 %v14277_v41  ;;  %v14292_v42 = vpop.f32.mrf.mxu0  ;;  %11477 = vmatprep.subr.mxu1 %v14281_v6  ;;  %v14296_v36 = vpop.f32.mrf.mxu1  ;;  %16445 = vst [vmem:[#allocation19_spill] sm:$0xff] %v14313_v22 }
 0x2e2   : > { %11428 = vmatpush3.msra.mxu0 %v14277_v41  ;;  %11478 = vmatpush3.msra.mxu1 %v14281_v6 }
 0x2e3   : > { %11430 = vmatmul.mubr.f32.vlgmr.msra.gmra.mxu0 %v14284_v23  ;;  %11480 = vmatmul.mubr.f32.vlgmr.msra.gmra.mxu1 %v5542_v63 }
 0x2e4   : > { %11432 = vmatprep.mubr.f32.mxu0 %v14288_v57  ;;  %11482 = vmatprep.mubr.f32.mxu1 %v5544_v0 }
 0x2e5   : > { %v10946_v60 = vpop.f32.mrf.mxu0  ;;  %11497 = vmatprep.subr.mxu0 %v14072_v54  ;;  %v10996_v20 = vpop.f32.mrf.mxu1  ;;  %11547 = vmatprep.subr.mxu1 %v14079_v58 }
 0x2e6   : > { %11498 = vmatpush3.msra.mxu0 %v14072_v54  ;;  %v14309_v14 = vadd.f32 %v10996_v20, %v10946_v60  ;;  %11548 = vmatpush3.msra.mxu1 %v14079_v58 }
 0x2e7   : > { %11433 = vmatmul.mubr.f32.gmra.mxu0 %v14301_v32  ;;  %11483 = vmatmul.mubr.f32.gmra.mxu1 %v5546_v30  ;;  %v14329_v54 = vpop.f32.mrf.mxu0  ;;  %v14333_v58 = vpop.f32.mrf.mxu1 }
 0x2e8   : > { %16444 = vst [vmem:[#allocation24_spill] sm:$0xff] %v14309_v14  ;;  %11435 = vmatprep.mubr.f32.mxu0 %v14303_v2  ;;  %11485 = vmatprep.mubr.f32.mxu1 %v5548_v59 }
 0x2e9   : > { %11499 = vmatprep.subr.mxu0 %v14094_v15  ;;  %11549 = vmatprep.subr.mxu1 %v14103_v31 }
 0x2ea   : > { %11500 = vmatpush3.msra.mxu0 %v14094_v15  ;;  %11550 = vmatpush3.msra.mxu1 %v14103_v31 }
 0x2eb   : > { %11436 = vmatmul.mubr.f32.gmra.mxu0 %v14313_v22  ;;  %11486 = vmatmul.mubr.f32.gmra.mxu1 %v5550_v8 }
 0x2ec   : > { %11501 = vmatprep.subr.mxu0 %v14116_v46  ;;  %11551 = vmatprep.subr.mxu1 %v14121_v35 }
 0x2ed   : > { %11502 = vmatpush3.msra.mxu0 %v14116_v46  ;;  %11552 = vmatpush3.msra.mxu1 %v14121_v35 }
 0x2ee   : > { %11503 = vmatprep.subr.mxu0 %v14133_v3  ;;  %11553 = vmatprep.subr.mxu1 %v14141_v51 }
 0x2ef   : > { %11504 = vmatpush3.msra.mxu0 %v14133_v3  ;;  %11554 = vmatpush3.msra.mxu1 %v14141_v51 }
 0x2f0   : > { %11505 = vmatprep.subr.mxu0 %v14150_v29  ;;  %11555 = vmatprep.subr.mxu1 %v14154_v12 }
 0x2f1   : > { %11506 = vmatpush3.msra.mxu0 %v14150_v29  ;;  %11556 = vmatpush3.msra.mxu1 %v14154_v12 }
 0x2f2   : > { %11507 = vmatprep.subr.mxu0 %v14160_v13  ;;  %11557 = vmatprep.subr.mxu1 %v14168_v11 }
 0x2f3   : > { %v11031_v15 = vpop.f32.mrf.mxu0  ;;  %11508 = vmatpush3.msra.mxu0 %v14160_v13  ;;  %v11081_v31 = vpop.f32.mrf.mxu1  ;;  %11558 = vmatpush3.msra.mxu1 %v14168_v11 }
 0x2f4   : > { %11509 = vmatprep.subr.mxu0 %v14175_v28  ;;  %v14341_v46 = vadd.f32 %v11081_v31, %v11031_v15  ;;  %11559 = vmatprep.subr.mxu1 %v14179_v10 }
 0x2f5   : > { %v14343_v35 = vpop.f32.mrf.mxu0  ;;  %11510 = vmatpush3.msra.mxu0 %v14175_v28  ;;  %v14347_v3 = vpop.f32.mrf.mxu1  ;;  %11560 = vmatpush3.msra.mxu1 %v14179_v10 }
 0x2f6   : > { %11511 = vmatprep.subr.mxu0 %v14183_v9  ;;  %11561 = vmatprep.subr.mxu1 %v14187_v61 }
 0x2f7   : > { %11512 = vmatpush3.msra.mxu0 %v14183_v9  ;;  %11562 = vmatpush3.msra.mxu1 %v14187_v61 }
 0x2f8   : > { %11513 = vmatprep.subr.mxu0 %v14192_v52  ;;  %11563 = vmatprep.subr.mxu1 %v14202_v5 }
 0x2f9   : > { %v11034_v51 = vpop.f32.mrf.mxu0  ;;  %11514 = vmatpush3.msra.mxu0 %v14192_v52  ;;  %v11084_v29 = vpop.f32.mrf.mxu1  ;;  %11564 = vmatpush3.msra.mxu1 %v14202_v5 }
 0x2fa   : > { %11515 = vmatprep.subr.mxu0 %v14209_v50  ;;  %v14359_v12 = vadd.f32 %v11084_v29, %v11034_v51  ;;  %11565 = vmatprep.subr.mxu1 %v14213_v33  ;;  %v14412_v51 = vld [vmem:[#allocation9 + $0x178] sm:$0xff] }
 0x2fb   : > { %v14361_v13 = vpop.f32.mrf.mxu0  ;;  %11516 = vmatpush3.msra.mxu0 %v14209_v50  ;;  %v14365_v11 = vpop.f32.mrf.mxu1  ;;  %11566 = vmatpush3.msra.mxu1 %v14213_v33  ;;  %16448 = vst [vmem:[#allocation26_spill] sm:$0xff] %v14412_v51 }
 0x2fc   : > { %11517 = vmatprep.subr.mxu0 %v14217_v34  ;;  %11567 = vmatprep.subr.mxu1 %v14222_v53 }
 0x2fd   : > { %11518 = vmatpush3.msra.mxu0 %v14217_v34  ;;  %11568 = vmatpush3.msra.mxu1 %v14222_v53 }
 0x2fe   : > { %11519 = vmatprep.subr.mxu0 %v14227_v19  ;;  %11569 = vmatprep.subr.mxu1 %v14235_v27 }
 0x2ff   : > { %v11037_v28 = vpop.f32.mrf.mxu0  ;;  %11520 = vmatpush3.msra.mxu0 %v14227_v19  ;;  %v11087_v10 = vpop.f32.mrf.mxu1  ;;  %11570 = vmatpush3.msra.mxu1 %v14235_v27 }
 0x300   : > { %11521 = vmatprep.subr.mxu0 %v14242_v40  ;;  %v14377_v9 = vadd.f32 %v11087_v10, %v11037_v28  ;;  %11571 = vmatprep.subr.mxu1 %v14247_v62 }
 0x301   : > { %v14379_v61 = vpop.f32.mrf.mxu0  ;;  %11522 = vmatpush3.msra.mxu0 %v14242_v40  ;;  %v14383_v52 = vpop.f32.mrf.mxu1  ;;  %11572 = vmatpush3.msra.mxu1 %v14247_v62 }
 0x302   : > { %11523 = vmatprep.subr.mxu0 %v14251_v37  ;;  %11573 = vmatprep.subr.mxu1 %v14255_v18 }
 0x303   : > { %11524 = vmatpush3.msra.mxu0 %v14251_v37  ;;  %11574 = vmatpush3.msra.mxu1 %v14255_v18 }
 0x304   : > { %11525 = vmatprep.subr.mxu0 %v14259_v1  ;;  %11575 = vmatprep.subr.mxu1 %v14269_v47 }
 0x305   : > { %v11040_v5 = vpop.f32.mrf.mxu0  ;;  %11526 = vmatpush3.msra.mxu0 %v14259_v1  ;;  %v11090_v50 = vpop.f32.mrf.mxu1  ;;  %11576 = vmatpush3.msra.mxu1 %v14269_v47 }
 0x306   : > { %11527 = vmatprep.subr.mxu0 %v14277_v41  ;;  %v14395_v33 = vadd.f32 %v11090_v50, %v11040_v5  ;;  %11577 = vmatprep.subr.mxu1 %v14281_v6 }
 0x307   : > { %v14397_v34 = vpop.f32.mrf.mxu0  ;;  %11528 = vmatpush3.msra.mxu0 %v14277_v41  ;;  %v14401_v53 = vpop.f32.mrf.mxu1  ;;  %11578 = vmatpush3.msra.mxu1 %v14281_v6 }
 0x308   : > { %11597 = vmatprep.subr.mxu0 %v14412_v51  ;;  %11647 = vmatprep.subr.mxu1 %v14412_v51 }
 0x30b   : > { %v11043_v19 = vpop.f32.mrf.mxu0  ;;  %v11093_v27 = vpop.f32.mrf.mxu1 }
 0x30c   : > { %v14404_v40 = vadd.f32 %v11093_v27, %v11043_v19 }
 0x30d   : > { %v14406_v62 = vpop.f32.mrf.mxu0  ;;  %v14408_v37 = vpop.f32.mrf.mxu1 }
 0x30e   : > { %16446 = vst [vmem:[#allocation25_spill] sm:$0xff] %v14404_v40 }
 0x311   : > { %v11046_v18 = vpop.f32.mrf.mxu0  ;;  %v11096_v1 = vpop.f32.mrf.mxu1 }
 0x312   : > { %v14410_v47 = vadd.f32 %v11096_v1, %v11046_v18 }
 0x313   : > { %v4339_v16 = vpop.f32.mrf.mxu0  ;;  %v4464_v55 = vpop.f32.mrf.mxu1 }
 0x314   : > { %16447 = vst [vmem:[#allocation38_spill] sm:$0xff] %v14410_v47 }
 0x31f   : > { %v11131_v26 = vpop.f32.mrf.mxu0  ;;  %v11181_v41 = vpop.f32.mrf.mxu1 }
 0x321   : > { %v4555_v63 = vpop.f32.mrf.mxu0  ;;  %v4716_v0 = vpop.f32.mrf.mxu1 }
 0x325   : > { %v11134_v30 = vpop.f32.mrf.mxu0  ;;  %v11184_v6 = vpop.f32.mrf.mxu1 }
 0x327   : > { %v4565_v60 = vpop.f32.mrf.mxu0  ;;  %v4726_v20 = vpop.f32.mrf.mxu1 }
 0x32b   : > { %v11137_v59 = vpop.f32.mrf.mxu0  ;;  %v11187_v8 = vpop.f32.mrf.mxu1 }
 0x32d   : > { %v4575_v15 = vpop.f32.mrf.mxu0  ;;  %v4736_v31 = vpop.f32.mrf.mxu1 }
 0x331   : > { %v11140_v29 = vpop.f32.mrf.mxu0  ;;  %v11190_v28 = vpop.f32.mrf.mxu1 }
 0x333   : > { %v4585_v10 = vpop.f32.mrf.mxu0  ;;  %v4746_v5 = vpop.f32.mrf.mxu1 }
 0x337   : > { %v14416_v50 = vpop.f32.mrf.mxu0  ;;  %v14418_v19 = vpop.f32.mrf.mxu1 }
 0x338   : > { %16449 = vst [vmem:[#allocation40_spill] sm:$0xff] %v14416_v50  ;;  %16450 = vst [vmem:[#allocation41_spill] sm:$0xff] %v14418_v19 }
 0x339   : > { %v14420_v27 = vpop.f32.mrf.mxu0  ;;  %v14422_v18 = vpop.f32.mrf.mxu1 }
 0x33a   : > { %16451 = vst [vmem:[#allocation39_spill] sm:$0xff] %v14420_v27  ;;  %16452 = vst [vmem:[#allocation43_spill] sm:$0xff] %v14422_v18 }
 0x33d   : > { %v14424_v1 = vpop.f32.mrf.mxu0  ;;  %v14426_v22 = vpop.f32.mrf.mxu1 }
 0x33e   : > { %16453 = vst [vmem:[#allocation27_spill] sm:$0xff] %v14424_v1  ;;  %16454 = vst [vmem:[#allocation17_spill] sm:$0xff] %v14426_v22 }
 0x33f   : > { %v14428_v2 = vpop.f32.mrf.mxu0  ;;  %v14430_v32 = vpop.f32.mrf.mxu1 }
 0x340   : > { %16455 = vst [vmem:[#allocation28_spill] sm:$0xff] %v14428_v2  ;;  %16456 = vst [vmem:[#allocation20_spill] sm:$0xff] %v14430_v32 }
 0x34b   : > { %v11231_v57 = vpop.f32.mrf.mxu0  ;;  %v11281_v51 = vpop.f32.mrf.mxu1 }
 0x34d   : > { %v4869_v23 = vpop.f32.mrf.mxu0  ;;  %v5030_v38 = vpop.f32.mrf.mxu1 }
 0x351   : > { %v14432_v47 = vpop.f32.mrf.mxu0  ;;  %v14434_v14 = vpop.f32.mrf.mxu1 }
 0x352   : > { %16457 = vst [vmem:[#allocation29_spill] sm:$0xff] %v14432_v47  ;;  %16458 = vst [vmem:[#allocation30_spill] sm:$0xff] %v14434_v14 }
 0x353   : > { %v14436_v19 = vpop.f32.mrf.mxu0  ;;  %v14438_v27 = vpop.f32.mrf.mxu1 }
 0x354   : > { %16459 = vst [vmem:[#allocation42_spill] sm:$0xff] %v14436_v19  ;;  %16460 = vst [vmem:[#allocation44_spill] sm:$0xff] %v14438_v27 }
 0x357   : > { %v14440_v18 = vpop.f32.mrf.mxu0  ;;  %v14442_v1 = vpop.f32.mrf.mxu1 }
 0x358   : > { %16461 = vst [vmem:[#allocation45_spill] sm:$0xff] %v14440_v18 }
 0x359   : > { %v14444_v22 = vpop.f32.mrf.mxu0  ;;  %v14446_v2 = vpop.f32.mrf.mxu1 }
 0x35a   : > { %16462 = vst [vmem:[#allocation31_spill] sm:$0xff] %v14444_v22  ;;  %v4141_v22 = vadd.f32 %v14170_v7, %v14164_v49  ;;  %v4415_v49 = vadd.f32 %v14347_v3, %v14343_v35  ;;  %v4425_v7 = vadd.f32 %v14365_v11, %v14361_v13  ;;  %v4778_v35 = vadd.f32 %v11184_v6, %v14359_v12 }
 0x35b   : > { %v4619_v11 = vadd.f32 %v11137_v59, %v14229_v44 }
 0x35c   : > { %v4777_v13 = vadd.f32 %v4726_v20, %v4425_v7  ;;  %v16475_v20 = vld [vmem:[#allocation27_spill] sm:$0xff] }
 0x35d   : > { %v14448_v32 = vpop.f32.mrf.mxu0  ;;  %v14450_v40 = vpop.f32.mrf.mxu1 }
 0x35e   : > { %16463 = vst [vmem:[#allocation18_spill] sm:$0xff] %v14448_v32  ;;  %16464 = vst [vmem:[#allocation32_spill] sm:$0xff] %v14450_v40  ;;  %v4151_v32 = vadd.f32 %v14204_v25, %v14196_v4  ;;  %v4161_v40 = vadd.f32 %v14237_v43, %v14231_v48  ;;  %v4435_v4 = vadd.f32 %v14383_v52, %v14379_v61 }
 0x35f   : > { %v14452_v50 = vpop.f32.mrf.mxu0  ;;  %v14454_v47 = vpop.f32.mrf.mxu1  ;;  %v4445_v25 = vadd.f32 %v14401_v53, %v14397_v34  ;;  %v4455_v43 = vadd.f32 %v14408_v37, %v14406_v62  ;;  %v4780_v61 = vadd.f32 %v11187_v8, %v14377_v9  ;;  %v16471_v9 = vld [vmem:[#allocation41_spill] sm:$0xff]  ;;  %v16476_v8 = vld [vmem:[#allocation38_spill] sm:$0xff] }
 0x360   : > { %16465 = vst [vmem:[#allocation21_spill] sm:$0xff] %v14454_v47  ;;  %v4171_v47 = vadd.f32 %v14271_v21, %v14263_v39  ;;  %v4465_v39 = vadd.f32 %v4464_v55, %v4339_v16  ;;  %v4615_v21 = vadd.f32 %v11131_v26, %v14162_v17  ;;  %v4616_v3 = vadd.f32 %v4565_v60, %v4151_v32  ;;  %v16469_v16 = vld [vmem:[#allocation40_spill] sm:$0xff]  ;;  %v16470_v55 = vld [vmem:[#allocation25_spill] sm:$0xff] }
 0x361   : > { %v4618_v34 = vadd.f32 %v4575_v15, %v4161_v40  ;;  %v4779_v53 = vadd.f32 %v4736_v31, %v4435_v4  ;;  %v4621_v17 = vadd.f32 %v11140_v29, %v14261_v56  ;;  %v4781_v37 = vadd.f32 %v4746_v5, %v4445_v25  ;;  %v16474_v60 = vld [vmem:[#allocation24_spill] sm:$0xff]  ;;  %v16478_v31 = vld [vmem:[#allocation29_spill] sm:$0xff] }
 0x362   : > { %v4929_v62 = vadd.f32 %v11231_v57, %v4615_v21  ;;  %v4623_v44 = vadd.f32 %v16469_v16, %v14290_v24  ;;  %v4784_v26 = vadd.f32 %v16471_v9, %v16470_v55  ;;  %v16473_v57 = vld [vmem:[#allocation43_spill] sm:$0xff]  ;;  %v14512_v59 = vadd.f32 %v16475_v20, %v16474_v60  ;;  %v16477_v24 = vld [vmem:[#allocation17_spill] sm:$0xff]  ;;  %v16481_v4 = vld [vmem:[#allocation20_spill] sm:$0xff] }
 0x363   : > { %v14456_v14 = vpop.f32.mrf.mxu0  ;;  %v14458_v19 = vpop.f32.mrf.mxu1  ;;  %v14516_v15 = vadd.f32 %v16477_v24, %v16476_v8  ;;  %v14524_v25 = vadd.f32 %v16481_v4, %v4465_v39  ;;  %v5094_v55 = vadd.f32 %v14442_v1, %v4780_v61 }
 0x364   : > { %16466 = vst [vmem:[#allocation33_spill] sm:$0xff] %v14456_v14  ;;  %16467 = vst [vmem:[#allocation46_spill] sm:$0xff] %v14458_v19  ;;  %v4181_v14 = vadd.f32 %v14296_v36, %v14292_v42  ;;  %v4776_v42 = vadd.f32 %v11181_v41, %v14341_v46  ;;  %v4614_v36 = vadd.f32 %v4555_v63, %v4141_v22 }
 0x365   : > { %v14460_v27 = vpop.f32.mrf.mxu0  ;;  %v14462_v18 = vpop.f32.mrf.mxu1  ;;  %v4782_v22 = vadd.f32 %v11190_v28, %v14395_v33  ;;  %v16479_v28 = vld [vmem:[#allocation28_spill] sm:$0xff] }
 0x366   : > { %16468 = vst [vmem:[#allocation34_spill] sm:$0xff] %v14460_v27  ;;  %v4191_v27 = vadd.f32 %v14333_v58, %v14329_v54  ;;  %v4775_v54 = vadd.f32 %v4716_v0, %v4415_v49  ;;  %v4617_v58 = vadd.f32 %v11134_v30, %v14194_v45  ;;  %v4620_v45 = vadd.f32 %v4585_v10, %v4171_v47  ;;  %v16472_v0 = vld [vmem:[#allocation39_spill] sm:$0xff]  ;;  %v16480_v10 = vld [vmem:[#allocation30_spill] sm:$0xff] }
 0x367   : > { %v5090_v12 = vadd.f32 %v11281_v51, %v4776_v42  ;;  %v4928_v41 = vadd.f32 %v4869_v23, %v4614_v36  ;;  %v4622_v56 = vadd.f32 %v16472_v0, %v4181_v14  ;;  %v14508_v30 = vadd.f32 %v16473_v57, %v4455_v43  ;;  %v16482_v43 = vld [vmem:[#allocation42_spill] sm:$0xff]  ;;  %v16483_v42 = vld [vmem:[#allocation44_spill] sm:$0xff]  ;;  %v16488_v8 = vld [vmem:[#allocation21_spill] sm:$0xff] }
 0x368   : > { %v5089_v6 = vadd.f32 %v5030_v38, %v4775_v54  ;;  %v4931_v23 = vadd.f32 %v16478_v31, %v4617_v58  ;;  %v14520_v14 = vadd.f32 %v16479_v28, %v4191_v27  ;;  %v5092_v5 = vadd.f32 %v16480_v10, %v4778_v35  ;;  %v16484_v58 = vld [vmem:[#allocation45_spill] sm:$0xff]  ;;  %v14532_v27 = vld [vmem:[%s16264_s4] ss:$0 sm:$0xff] }
 0x369   : > { %v14476_v19 = vpop.f32.mrf.mxu0  ;;  %v14486_v48 = vpop.f32.mrf.mxu1  ;;  %v4930_v21 = vadd.f32 %v16482_v43, %v4616_v3  ;;  %v5091_v36 = vadd.f32 %v16483_v42, %v4777_v13  ;;  %v16485_v3 = vld [vmem:[#allocation31_spill] sm:$0xff]  ;;  %v5093_v13 = vadd.f32 %v14446_v2, %v4779_v53  ;;  %v4934_v20 = vadd.f32 %v14452_v50, %v4620_v45 }
 0x36a   : > { %v4932_v9 = vadd.f32 %v16485_v3, %v4618_v34  ;;  %v5095_v2 = vadd.f32 %v16488_v8, %v4781_v37 }
 0x36b   : > { %v14496_v52 = vpop.f32.mrf.mxu0  ;;  %v14499_v46 = vpop.f32.mrf.mxu1 }
 0x36d   : > { %v16491_v42 = vld [vmem:[#allocation34_spill] sm:$0xff] }
 0x377   : > { %v11331_v32 = vpop.f32.mrf.mxu0  ;;  %v11381_v63 = vpop.f32.mrf.mxu1 }
 0x378   : > { %v5243_v40 = vadd.f32 %v11331_v32, %v4929_v62  ;;  %v5404_v33 = vadd.f32 %v11381_v63, %v5090_v12  ;;  %v4933_v12 = vadd.f32 %v16484_v58, %v4619_v11  ;;  %v16486_v11 = vld [vmem:[#allocation18_spill] sm:$0xff] }
 0x379   : > { %v5183_v47 = vpop.f32.mrf.mxu0  ;;  %v5344_v29 = vpop.f32.mrf.mxu1  ;;  %v4935_v63 = vadd.f32 %v16486_v11, %v4621_v17 }
 0x37a   : > { %v5242_v51 = vadd.f32 %v5183_v47, %v4928_v41  ;;  %v5416_v38 = vmax.f32 %v5243_v40, %v5404_v33  ;;  %v5403_v49 = vadd.f32 %v5344_v29, %v5089_v6  ;;  %v16487_v47 = vld [vmem:[#allocation32_spill] sm:$0xff] }
 0x37b   : > { %v11334_v7 = vpop.f32.mrf.mxu0  ;;  %v11384_v62 = vpop.f32.mrf.mxu1  ;;  %v5096_v60 = vadd.f32 %v16487_v47, %v4782_v22 }
 0x37c   : > { %v5245_v54 = vadd.f32 %v11334_v7, %v4931_v23  ;;  %v14535_v35 = vadd.f32 %v14532_v27, %v5416_v38  ;;  %v5415_v32 = vmax.f32 %v5242_v51, %v5403_v49  ;;  %v5406_v16 = vadd.f32 %v11384_v62, %v5092_v5  ;;  %v16489_v23 = vld [vmem:[#allocation33_spill] sm:$0xff]  ;;  %v16490_v5 = vld [vmem:[#allocation46_spill] sm:$0xff] }
 0x37d   : > { %v5193_v39 = vpop.f32.mrf.mxu0  ;;  %v5354_v40 = vpop.f32.mrf.mxu1  ;;  %v4937_v51 = vadd.f32 %v16489_v23, %v4623_v44  ;;  %v5098_v50 = vadd.f32 %v16490_v5, %v4784_v26  ;;  %v4936_v44 = vadd.f32 %v16491_v42, %v4622_v56  ;;  %v5097_v26 = vadd.f32 %v14462_v18, %v14508_v30 }
 0x37e   : > { %v5244_v41 = vadd.f32 %v5193_v39, %v4930_v21  ;;  %v5452_v0 = vmin.f32 %v14535_v35, 0.0  ;;  %v14543_v57 = vadd.f32 %v14532_v27, %v5415_v32  ;;  %v5418_v6 = vmax.f32 %v5245_v54, %v5406_v16 }
 0x37f   : > { %v11337_v33 = vpop.f32.mrf.mxu0  ;;  %v5405_v1 = vadd.f32 %v5354_v40, %v5091_v36  ;;  %v11387_v34 = vpop.f32.mrf.mxu1  ;;  %v4939_v56 = vadd.f32 %v14476_v19, %v14512_v59  ;;  %vm5440_vm13 = vcmp.gt.f32.partialorder %v14535_v35, 0.0 }
 0x380   : > { %v5247_v61 = vadd.f32 %v11337_v33, %v4933_v12  ;;  %v5465_v53 = vmul.f32 1.442695, %v5452_v0  ;;  %v5451_v24 = vmin.f32 %v14543_v57, 0.0  ;;  %v14550_v17 = vadd.f32 %v14532_v27, %v5418_v6 }
 0x381   : > { %v5203_v31 = vpop.f32.mrf.mxu0  ;;  %v5417_v29 = vmax.f32 %v5244_v41, %v5405_v1  ;;  %v5408_v28 = vadd.f32 %v11387_v34, %v5094_v55  ;;  %v5364_v22 = vpop.f32.mrf.mxu1  ;;  %v5100_v33 = vadd.f32 %v14486_v48, %v14516_v15  ;;  %v5099_v15 = vadd.f32 %v14499_v46, %v14524_v25 }
 0x382   : > { %v5246_v10 = vadd.f32 %v5203_v31, %v4932_v9  ;;  %12085 = vpow2.f32 %v5465_v53  ;;  %v5463_v45 = vmul.f32 1.442695, %v5451_v24  ;;  %v5454_v38 = vmin.f32 %v14550_v17, 0.0 }
 0x383   : > { %v11340_v37 = vpop.f32.mrf.mxu0  ;;  %v14556_v49 = vadd.f32 %v14532_v27, %v5417_v29  ;;  %v5420_v7 = vmax.f32 %v5247_v61, %v5408_v28  ;;  %v5407_v4 = vadd.f32 %v5364_v22, %v5093_v13  ;;  %v11390_v21 = vpop.f32.mrf.mxu1  ;;  %vm5439_vm14 = vcmp.gt.f32.partialorder %v14543_v57, 0.0 }
 0x384   : > { %v5249_v43 = vadd.f32 %v11340_v37, %v4935_v63  ;;  %12087 = vpow2.f32 %v5463_v45  ;;  %v5469_v36 = vmul.f32 1.442695, %v5454_v38  ;;  %v5410_v54 = vadd.f32 %v11390_v21, %v5096_v60 }
 0x385   : > { %v5213_v62 = vpop.f32.mrf.mxu0  ;;  %v5453_v58 = vmin.f32 %v14556_v49, 0.0  ;;  %v14563_v12 = vadd.f32 %v14532_v27, %v5420_v7  ;;  %v5419_v32 = vmax.f32 %v5246_v10, %v5407_v4  ;;  %v5374_v16 = vpop.f32.mrf.mxu1  ;;  %v4938_v60 = vadd.f32 %v14496_v52, %v14520_v14 }
 0x386   : > { %12089 = vpow2.f32 %v5469_v36  ;;  %v5422_v39 = vmax.f32 %v5249_v43, %v5410_v54  ;;  %v5248_v55 = vadd.f32 %v5213_v62, %v4934_v20  ;;  %v5409_v3 = vadd.f32 %v5374_v16, %v5095_v2 }
 0x387   : > { %v11343_v9 = vpop.f32.mrf.mxu0  ;;  %v5467_v13 = vmul.f32 1.442695, %v5453_v58  ;;  %v5456_v41 = vmin.f32 %v14563_v12, 0.0  ;;  %v14569_v18 = vadd.f32 %v14532_v27, %v5419_v32  ;;  %v11393_v30 = vpop.f32.mrf.mxu1  ;;  %vm5442_vm15 = vcmp.gt.f32.partialorder %v14550_v17, 0.0 }
 0x388   : > { %v14572_v40 = vadd.f32 %v14532_v27, %v5422_v39  ;;  %v5421_v11 = vmax.f32 %v5248_v55, %v5409_v3  ;;  %v5251_v63 = vadd.f32 %v11343_v9, %v4937_v51  ;;  %v5412_v0 = vadd.f32 %v11393_v30, %v5098_v50 }
 0x389   : > { %v5223_v6 = vpop.f32.mrf.mxu0  ;;  %12091 = vpow2.f32 %v5467_v13  ;;  %v5473_v47 = vmul.f32 1.442695, %v5456_v41  ;;  %v5455_v19 = vmin.f32 %v14569_v18, 0.0  ;;  %v5384_v59 = vpop.f32.mrf.mxu1  ;;  %vm5441_vm0 = vcmp.gt.f32.partialorder %v14556_v49, 0.0 }
 0x38a   : > { %v5458_v20 = vmin.f32 %v14572_v40, 0.0  ;;  %v14581_v1 = vadd.f32 %v14532_v27, %v5421_v11  ;;  %v5424_v61 = vmax.f32 %v5251_v63, %v5412_v0  ;;  %v5250_v2 = vadd.f32 %v5223_v6, %v4936_v44 }
 0x38b   : > { %v11346_v34 = vpop.f32.mrf.mxu0  ;;  %12093 = vpow2.f32 %v5473_v47  ;;  %v5471_v8 = vmul.f32 1.442695, %v5455_v19  ;;  %v5411_v53 = vadd.f32 %v5384_v59, %v5097_v26  ;;  %v11396_v48 = vpop.f32.mrf.mxu1  ;;  %vm5444_vm1 = vcmp.gt.f32.partialorder %v14563_v12, 0.0 }
 0x38c   : > { %v5477_v24 = vmul.f32 1.442695, %v5458_v20  ;;  %v5457_v31 = vmin.f32 %v14581_v1, 0.0  ;;  %v14587_v52 = vadd.f32 %v14532_v27, %v5424_v61  ;;  %v5253_v51 = vadd.f32 %v11346_v34, %v4939_v56 }
 0x38d   : > { %v5233_v14 = vpop.f32.mrf.mxu0  ;;  %12095 = vpow2.f32 %v5471_v8  ;;  %v5423_v23 = vmax.f32 %v5250_v2, %v5411_v53  ;;  %v5414_v29 = vadd.f32 %v11396_v48, %v5100_v33  ;;  %v5394_v28 = vpop.f32.mrf.mxu1  ;;  %vm5443_vm2 = vcmp.gt.f32.partialorder %v14569_v18, 0.0 }
 0x38e   : > { %12097 = vpow2.f32 %v5477_v24  ;;  %v5475_v10 = vmul.f32 1.442695, %v5457_v31  ;;  %v5460_v22 = vmin.f32 %v14587_v52, 0.0  ;;  %v5252_v25 = vadd.f32 %v5233_v14, %v4938_v60 }
 0x38f   : > { %v12086_v5 = vpop.eup %12085  ;;  %v14591_v50 = vadd.f32 %v14532_v27, %v5423_v23  ;;  %v5426_v46 = vmax.f32 %v5253_v51, %v5414_v29  ;;  %v5413_v45 = vadd.f32 %v5394_v28, %v5099_v15  ;;  %vm5446_vm3 = vcmp.gt.f32.partialorder %v14572_v40, 0.0 }
 0x390   : > { %v9102_v38 = vadd.f32 -1.0, %v12086_v5  ;;  %12099 = vpow2.f32 %v5475_v10  ;;  %v5481_v37 = vmul.f32 1.442695, %v5460_v22  ;;  %vm5445_vm4 = vcmp.gt.f32.partialorder %v14581_v1, 0.0 }
 0x391   : > { %v12088_v7 = vpop.eup %12087  ;;  %v5459_v4 = vmin.f32 %v14591_v50, 0.0  ;;  %v5438_v43 = vadd.f32 %v14532_v27, %v5426_v46  ;;  %v5425_v21 = vmax.f32 %v5252_v25, %v5413_v45  ;;  %vm5448_vm5 = vcmp.gt.f32.partialorder %v14587_v52, 0.0 }
 0x392   : > { %v5500_v42 = vsel %vm5440_vm13, %v14535_v35, %v9102_v38  ;;  %v9101_v44 = vadd.f32 -1.0, %v12088_v7  ;;  %12101 = vpow2.f32 %v5481_v37  ;;  %vm5447_vm6 = vcmp.gt.f32.partialorder %v14591_v50, 0.0 }
 0x393   : > { %v12090_v36 = vpop.eup %12089  ;;  %5512 = vst [vmem:[#allocation3 + $0x68] sm:$0xff] %v5500_v42  ;;  %v5479_v54 = vmul.f32 1.442695, %v5459_v4  ;;  %v5462_v62 = vmin.f32 %v5438_v43, 0.0  ;;  %v14599_v26 = vadd.f32 %v14532_v27, %v5425_v21  ;;  %v14653_v43 = vld [vmem:[#allocation3 + $0x2] ss:$2 sm:$0xff] }
 0x394   : > { %v5499_v58 = vsel %vm5439_vm14, %v14543_v57, %v9101_v44  ;;  %v9104_v32 = vadd.f32 -1.0, %v12090_v36  ;;  %v16492_v21 = vld [vmem:[#allocation36_spill] sm:$0xff]  ;;  %v14657_v42 = vld [vmem:[#allocation3 + $0x12] ss:$2 sm:$0xff] }
 0x395   : > { %5511 = vst [vmem:[#allocation3 + $0x60] sm:$0xff] %v5499_v58  ;;  %12103 = vpow2.f32 %v5479_v54  ;;  %v5485_v16 = vmul.f32 1.442695, %v5462_v62  ;;  %v5461_v35 = vmin.f32 %v14599_v26, 0.0  ;;  %vm5449_vm7 = vcmp.gt.f32.partialorder %v14599_v26, 0.0  ;;  %v16493_v44 = vld [vmem:[#allocation22_spill] sm:$0xff] }
 0x396   : > { %v12092_v39 = vpop.eup %12091  ;;  %v5502_v55 = vsel %vm5442_vm15, %v14550_v17, %v9104_v32  ;;  %v6143_v36 = vld [vmem:[#allocation9 + $0x170] sm:$0xff]  ;;  %v6142_v58 = vld [vmem:[#allocation9 + $0x168] sm:$0xff] }
 0x397   : > { %5514 = vst [vmem:[#allocation3 + $0x78] sm:$0xff] %v5502_v55  ;;  %v9103_v3 = vadd.f32 -1.0, %v12092_v39  ;;  %12105 = vpow2.f32 %v5485_v16  ;;  %v5483_v9 = vmul.f32 1.442695, %v5461_v35  ;;  %v16494_v54 = vld [vmem:[#allocation26_spill] sm:$0xff]  ;;  %v16496_v16 = vld [vmem:[#allocation37_spill] sm:$0xff] }
 0x398   : > { %v12094_v56 = vpop.eup %12093  ;;  %v14663_v62 = vld [vmem:[#allocation3 + $0x22] ss:$2 sm:$0xff]  ;;  %v14667_v32 = vld [vmem:[#allocation3 + $0x32] ss:$2 sm:$0xff] }
 0x399   : > { %v5501_v27 = vsel %vm5441_vm0, %v14556_v49, %v9103_v3  ;;  %v9106_v57 = vadd.f32 -1.0, %v12094_v56  ;;  %12107 = vpow2.f32 %v5483_v9  ;;  %v6141_v35 = vld [vmem:[#allocation9 + $0x160] sm:$0xff]  ;;  %v6140_v3 = vld [vmem:[#allocation9 + $0x158] sm:$0xff] }
 0x39a   : > { %v12096_v13 = vpop.eup %12095  ;;  %5513 = vst [vmem:[#allocation3 + $0x70] sm:$0xff] %v5501_v27  ;;  %v14671_v39 = vld [vmem:[#allocation3 + $0x42] ss:$2 sm:$0xff]  ;;  %v16498_v56 = vld [vmem:[#allocation19_spill] sm:$0xff] }
 0x39b   : > { %v12098_v41 = vpop.eup %12097  ;;  %v5504_v30 = vsel %vm5444_vm1, %v14563_v12, %v9106_v57  ;;  %v9105_v11 = vadd.f32 -1.0, %v12096_v13  ;;  %v16497_v55 = vld [vmem:[#allocation16_spill] sm:$0xff]  ;;  %v6139_v27 = vld [vmem:[#allocation9 + $0x150] sm:$0xff] }
 0x39c   : > { %5516 = vst [vmem:[#allocation3 + $0x88] sm:$0xff] %v5504_v30  ;;  %v9108_v17 = vadd.f32 -1.0, %v12098_v41  ;;  %v14610_v63 = vld [vmem:[#allocation3 + $0x61] ss:$2 sm:$0xff]  ;;  %v5552_v0 = vld [vmem:[#allocation3 + $0x60] ss:$2 sm:$0xff] }
 0x39d   : > { %v12100_v6 = vpop.eup %12099  ;;  %v5503_v49 = vsel %vm5443_vm2, %v14569_v18, %v9105_v11  ;;  %11438 = vmatprep.mubr.f32.mxu0 %v14610_v63  ;;  %11488 = vmatprep.mubr.f32.mxu1 %v5552_v0  ;;  %v14675_v9 = vld [vmem:[#allocation3 + $0x52] ss:$2 sm:$0xff]  ;;  %v6138_v13 = vld [vmem:[#allocation9 + $0x148] sm:$0xff] }
 0x39e   : > { %5515 = vst [vmem:[#allocation3 + $0x80] sm:$0xff] %v5503_v49  ;;  %v5506_v33 = vsel %vm5446_vm3, %v14572_v40, %v9108_v17  ;;  %v9107_v12 = vadd.f32 -1.0, %v12100_v6  ;;  %v6137_v30 = vld [vmem:[#allocation9 + $0x140] sm:$0xff]  ;;  %v6136_v17 = vld [vmem:[#allocation9 + $0x138] sm:$0xff]  ;;  %v6135_v0 = vld [vmem:[#allocation9 + $0x130] sm:$0xff] }
 0x39f   : > { %v12102_v47 = vpop.eup %12101  ;;  %5518 = vst [vmem:[#allocation3 + $0x98] sm:$0xff] %v5506_v33  ;;  %v6134_v49 = vld [vmem:[#allocation9 + $0x128] sm:$0xff] }
 0x3a0   : > { %v5505_v19 = vsel %vm5445_vm4, %v14581_v1, %v9107_v12  ;;  %v9110_v59 = vadd.f32 -1.0, %v12102_v47  ;;  %v6133_v12 = vld [vmem:[#allocation9 + $0x120] sm:$0xff] }
 0x3a1   : > { %5517 = vst [vmem:[#allocation3 + $0x90] sm:$0xff] %v5505_v19  ;;  %v14619_v18 = vld [vmem:[#allocation3 + $0x71] ss:$2 sm:$0xff]  ;;  %v5554_v60 = vld [vmem:[#allocation3 + $0x70] ss:$2 sm:$0xff] }
 0x3a2   : > { %v12104_v20 = vpop.eup %12103  ;;  %v5508_v61 = vsel %vm5448_vm5, %v14587_v52, %v9110_v59  ;;  %11439 = vmatmul.mubr.f32.gmra.mxu0 %v14619_v18  ;;  %11489 = vmatmul.mubr.f32.gmra.mxu1 %v5554_v60  ;;  %v14679_v57 = vld [vmem:[#allocation3 + $0x62] ss:$2 sm:$0xff]  ;;  %v14704_v47 = vld [vmem:[#allocation3 + $0x3] ss:$2 sm:$0xff]  ;;  %v6132_v19 = vld [vmem:[#allocation9 + $0x118] sm:$0xff] }
 0x3a3   : > { %v11431_v40 = vpop.f32.mrf.mxu0  ;;  %5520 = vst [vmem:[#allocation3 + $0xa8] sm:$0xff] %v5508_v61  ;;  %v9109_v34 = vadd.f32 -1.0, %v12104_v20  ;;  %v11481_v8 = vpop.f32.mrf.mxu1  ;;  %v6131_v59 = vld [vmem:[#allocation9 + $0x110] sm:$0xff]  ;;  %v6129_v60 = vld [vmem:[#allocation9 + $0x100] sm:$0xff]  ;;  %v6459_v20 = vld [vmem:[#allocation9 + $0x1f8] sm:$0xff] }
 0x3a4   : > { %v12106_v2 = vpop.eup %12105  ;;  %v14624_v1 = vadd.f32 %v11481_v8, %v11431_v40  ;;  %v14707_v61 = vld [vmem:[#allocation3 + $0x13] ss:$2 sm:$0xff]  ;;  %v14711_v40 = vld [vmem:[#allocation3 + $0x23] ss:$2 sm:$0xff] }
 0x3a5   : > { %v14626_v53 = vpop.f32.mrf.mxu0  ;;  %v5507_v48 = vsel %vm5447_vm6, %v14591_v50, %v9109_v34  ;;  %v14629_v15 = vld [vmem:[#allocation3 + $0x81] ss:$2 sm:$0xff]  ;;  %v5556_v24 = vld [vmem:[#allocation3 + $0x80] ss:$2 sm:$0xff]  ;;  %v14631_v31 = vpop.f32.mrf.mxu1  ;;  %v6458_v34 = vld [vmem:[#allocation9 + $0x1f0] sm:$0xff] }
 0x3a6   : > { %v12108_v52 = vpop.eup %12107  ;;  %5519 = vst [vmem:[#allocation3 + $0xa0] sm:$0xff] %v5507_v48  ;;  %11441 = vmatprep.mubr.f32.mxu0 %v14629_v15  ;;  %11491 = vmatprep.mubr.f32.mxu1 %v5556_v24  ;;  %v14683_v41 = vld [vmem:[#allocation3 + $0x72] ss:$2 sm:$0xff]  ;;  %v6457_v8 = vld [vmem:[#allocation9 + $0x1e8] sm:$0xff]  ;;  %v14715_v2 = vld [vmem:[#allocation3 + $0x33] ss:$2 sm:$0xff] }
 0x3a7   : > { %v11434_v14 = vpop.f32.mrf.mxu0  ;;  %v9111_v23 = vadd.f32 -1.0, %v12108_v52  ;;  %v11484_v51 = vpop.f32.mrf.mxu1  ;;  %v14719_v48 = vld [vmem:[#allocation3 + $0x43] ss:$2 sm:$0xff]  ;;  %v6455_v24 = vld [vmem:[#allocation9 + $0x1d8] sm:$0xff] }
 0x3a8   : > { %v14635_v29 = vld [vmem:[#allocation3 + $0x91] ss:$2 sm:$0xff]  ;;  %v5558_v28 = vld [vmem:[#allocation3 + $0x90] ss:$2 sm:$0xff]  ;;  %v14637_v10 = vadd.f32 %v11484_v51, %v11434_v14  ;;  %v6453_v51 = vld [vmem:[#allocation9 + $0x1c8] sm:$0xff] }
 0x3a9   : > { %v14639_v22 = vpop.f32.mrf.mxu0  ;;  %v5509_v5 = vsel %vm5449_vm7, %v14599_v26, %v9111_v23  ;;  %11442 = vmatmul.mubr.f32.gmra.mxu0 %v14635_v29  ;;  %11492 = vmatmul.mubr.f32.gmra.mxu1 %v5558_v28  ;;  %v14643_v50 = vpop.f32.mrf.mxu1  ;;  %v16495_v26 = vld [vmem:[#allocation23_spill] sm:$0xff]  ;;  %v14687_v11 = vld [vmem:[#allocation3 + $0x82] ss:$2 sm:$0xff]  ;;  %v14727_v14 = vld [vmem:[#allocation3 + $0x63] ss:$2 sm:$0xff] }
 0x3aa   : > { %5521 = vst [vmem:[#allocation3 + $0xb0] sm:$0xff] %v5509_v5  ;;  %v14723_v52 = vld [vmem:[#allocation3 + $0x53] ss:$2 sm:$0xff]  ;;  %v14735_v28 = vld [vmem:[#allocation3 + $0x83] ss:$2 sm:$0xff] }
 0x3ab   : > { %v11437_v46 = vpop.f32.mrf.mxu0  ;;  %v11487_v25 = vpop.f32.mrf.mxu1  ;;  %v6454_v23 = vld [vmem:[#allocation9 + $0x1d0] sm:$0xff]  ;;  %v6452_v5 = vld [vmem:[#allocation9 + $0x1c0] sm:$0xff] }
 0x3ac   : > { %v14645_v45 = vadd.f32 %v11487_v25, %v11437_v46  ;;  %v6451_v46 = vld [vmem:[#allocation9 + $0x1b8] sm:$0xff] }
 0x3ad   : > { %v14647_v38 = vld [vmem:[#allocation3 + $0xa1] ss:$2 sm:$0xff]  ;;  %v5560_v37 = vld [vmem:[#allocation3 + $0xa0] ss:$2 sm:$0xff] }
 0x3ae   : > { %11444 = vmatprep.mubr.f32.mxu0 %v14647_v38  ;;  %11494 = vmatprep.mubr.f32.mxu1 %v5560_v37  ;;  %v14739_v25 = vld [vmem:[#allocation3 + $0x93] ss:$2 sm:$0xff] }
 0x3af   : > { %v6450_v37 = vld [vmem:[#allocation9 + $0x1b0] sm:$0xff] }
 0x3b1   : > { %v14650_v7 = vld [vmem:[#allocation3 + $0xb1] ss:$2 sm:$0x3]  ;;  %v5562_v4 = vld [vmem:[#allocation3 + $0xb0] ss:$2 sm:$0x3] }
 0x3b2   : > { %11445 = vmatmul.mubr.f32.gmra.mxu0 %v14650_v7  ;;  %11495 = vmatmul.mubr.f32.gmra.mxu1 %v5562_v4  ;;  %v14695_v6 = vld [vmem:[#allocation3 + $0xa2] ss:$2 sm:$0xff]  ;;  %v14699_v33 = vld [vmem:[#allocation3 + $0xb2] ss:$2 sm:$0x3] }
 0x3b3   : > { %11529 = vmatprep.mubr.f32.mxu0 %v14653_v43  ;;  %11579 = vmatprep.mubr.f32.mxu1 %v16492_v21  ;;  %v14747_v4 = vld [vmem:[#allocation3 + $0xb3] ss:$2 sm:$0x3]  ;;  %v14752_v21 = vld [vmem:[#allocation3 + $0x4] ss:$2 sm:$0xff] }
 0x3b6   : > { %11530 = vmatmul.mubr.f32.vlgmr.msra.gmra.mxu0 %v14657_v42  ;;  %11580 = vmatmul.mubr.f32.vlgmr.msra.gmra.mxu1 %v16493_v44  ;;  %v6446_v44 = vld [vmem:[#allocation9 + $0x190] sm:$0xff] }
 0x3b7   : > { %11598 = vmatpush3.msra.mxu0 %v16494_v54  ;;  %11648 = vmatpush3.msra.mxu1 %v16494_v54  ;;  %v6444_v54 = vld [vmem:[#allocation9 + $0x180] sm:$0xff] }
 0x3b8   : > { %11532 = vmatprep.mubr.f32.mxu0 %v14663_v62  ;;  %11582 = vmatprep.mubr.f32.mxu1 %v16495_v26  ;;  %v14755_v26 = vld [vmem:[#allocation3 + $0x14] ss:$2 sm:$0xff] }
 0x3b9   : > { %11599 = vmatprep.subr.mxu0 %v6143_v36  ;;  %11649 = vmatprep.subr.mxu1 %v6143_v36 }
 0x3ba   : > { %11600 = vmatpush3.msra.mxu0 %v6143_v36  ;;  %11650 = vmatpush3.msra.mxu1 %v6143_v36  ;;  %v6445_v36 = vld [vmem:[#allocation9 + $0x188] sm:$0xff] }
 0x3bb   : > { %11601 = vmatprep.subr.mxu0 %v6142_v58  ;;  %11651 = vmatprep.subr.mxu1 %v6142_v58 }
 0x3bc   : > { %11533 = vmatmul.mubr.f32.gmra.mxu0 %v14667_v32  ;;  %11583 = vmatmul.mubr.f32.gmra.mxu1 %v16496_v16  ;;  %v6772_v16 = vld [vmem:[#allocation9 + $0x268] sm:$0xff] }
 0x3bd   : > { %11602 = vmatpush3.msra.mxu0 %v6142_v58  ;;  %11652 = vmatpush3.msra.mxu1 %v6142_v58  ;;  %v14759_v58 = vld [vmem:[#allocation3 + $0x24] ss:$2 sm:$0xff] }
 0x3be   : > { %11535 = vmatprep.mubr.f32.mxu0 %v14671_v39  ;;  %11585 = vmatprep.mubr.f32.mxu1 %v16497_v55  ;;  %v6771_v55 = vld [vmem:[#allocation9 + $0x260] sm:$0xff] }
 0x3bf   : > { %11603 = vmatprep.subr.mxu0 %v6141_v35  ;;  %11653 = vmatprep.subr.mxu1 %v6141_v35 }
 0x3c0   : > { %11604 = vmatpush3.msra.mxu0 %v6141_v35  ;;  %11654 = vmatpush3.msra.mxu1 %v6141_v35  ;;  %v14763_v35 = vld [vmem:[#allocation3 + $0x34] ss:$2 sm:$0xff] }
 0x3c1   : > { %11605 = vmatprep.subr.mxu0 %v6140_v3  ;;  %11655 = vmatprep.subr.mxu1 %v6140_v3 }
 0x3c2   : > { %11536 = vmatmul.mubr.f32.gmra.mxu0 %v14675_v9  ;;  %11586 = vmatmul.mubr.f32.gmra.mxu1 %v16498_v56  ;;  %v14775_v56 = vld [vmem:[#allocation3 + $0x64] ss:$2 sm:$0xff] }
 0x3c3   : > { %11606 = vmatpush3.msra.mxu0 %v6140_v3  ;;  %11656 = vmatpush3.msra.mxu1 %v6140_v3  ;;  %v6770_v3 = vld [vmem:[#allocation9 + $0x258] sm:$0xff] }
 0x3c4   : > { %11538 = vmatprep.mubr.f32.mxu0 %v14679_v57  ;;  %11588 = vmatprep.mubr.f32.mxu1 %v14610_v63  ;;  %v14691_v63 = vld [vmem:[#allocation3 + $0x92] ss:$2 sm:$0xff] }
 0x3c5   : > { %11607 = vmatprep.subr.mxu0 %v6139_v27  ;;  %11657 = vmatprep.subr.mxu1 %v6139_v27 }
 0x3c6   : > { %11608 = vmatpush3.msra.mxu0 %v6139_v27  ;;  %11658 = vmatpush3.msra.mxu1 %v6139_v27  ;;  %v6769_v27 = vld [vmem:[#allocation9 + $0x250] sm:$0xff] }
 0x3c7   : > { %11609 = vmatprep.subr.mxu0 %v6138_v13  ;;  %11659 = vmatprep.subr.mxu1 %v6138_v13 }
 0x3c8   : > { %11539 = vmatmul.mubr.f32.gmra.mxu0 %v14683_v41  ;;  %11589 = vmatmul.mubr.f32.gmra.mxu1 %v14619_v18  ;;  %v6130_v18 = vld [vmem:[#allocation9 + $0x108] sm:$0xff] }
 0x3c9   : > { %11610 = vmatpush3.msra.mxu0 %v6138_v13  ;;  %11660 = vmatpush3.msra.mxu1 %v6138_v13  ;;  %v14779_v13 = vld [vmem:[#allocation3 + $0x74] ss:$2 sm:$0xff] }
 0x3ca   : > { %11541 = vmatprep.mubr.f32.mxu0 %v14687_v11  ;;  %11591 = vmatprep.mubr.f32.mxu1 %v14629_v15  ;;  %v6456_v15 = vld [vmem:[#allocation9 + $0x1e0] sm:$0xff] }
 0x3cb   : > { %11611 = vmatprep.subr.mxu0 %v6137_v30  ;;  %11661 = vmatprep.subr.mxu1 %v6137_v30 }
 0x3cc   : > { %11612 = vmatpush3.msra.mxu0 %v6137_v30  ;;  %11662 = vmatpush3.msra.mxu1 %v6137_v30  ;;  %v6767_v30 = vld [vmem:[#allocation9 + $0x240] sm:$0xff] }
 0x3cd   : > { %11613 = vmatprep.subr.mxu0 %v6136_v17  ;;  %11663 = vmatprep.subr.mxu1 %v6136_v17 }
 0x3ce   : > { %11542 = vmatmul.mubr.f32.gmra.mxu0 %v14691_v63  ;;  %11592 = vmatmul.mubr.f32.gmra.mxu1 %v14635_v29  ;;  %v14731_v29 = vld [vmem:[#allocation3 + $0x73] ss:$2 sm:$0xff] }
 0x3cf   : > { %11614 = vmatpush3.msra.mxu0 %v6136_v17  ;;  %11664 = vmatpush3.msra.mxu1 %v6136_v17  ;;  %v14787_v17 = vld [vmem:[#allocation3 + $0x94] ss:$2 sm:$0xff] }
 0x3d0   : > { %11544 = vmatprep.mubr.f32.mxu0 %v14695_v6  ;;  %11594 = vmatprep.mubr.f32.mxu1 %v14647_v38  ;;  %v14743_v38 = vld [vmem:[#allocation3 + $0xa3] ss:$2 sm:$0xff] }
 0x3d1   : > { %11615 = vmatprep.subr.mxu0 %v6135_v0  ;;  %11665 = vmatprep.subr.mxu1 %v6135_v0 }
 0x3d2   : > { %11616 = vmatpush3.msra.mxu0 %v6135_v0  ;;  %11666 = vmatpush3.msra.mxu1 %v6135_v0  ;;  %v6765_v0 = vld [vmem:[#allocation9 + $0x230] sm:$0xff] }
 0x3d3   : > { %11617 = vmatprep.subr.mxu0 %v6134_v49  ;;  %11667 = vmatprep.subr.mxu1 %v6134_v49 }
 0x3d4   : > { %11545 = vmatmul.mubr.f32.gmra.mxu0 %v14699_v33  ;;  %11595 = vmatmul.mubr.f32.gmra.mxu1 %v14650_v7  ;;  %v6449_v7 = vld [vmem:[#allocation9 + $0x1a8] sm:$0xff] }
 0x3d5   : > { %11618 = vmatpush3.msra.mxu0 %v6134_v49  ;;  %11668 = vmatpush3.msra.mxu1 %v6134_v49  ;;  %v14795_v49 = vld [vmem:[#allocation3 + $0xb4] ss:$2 sm:$0x3] }
 0x3d6   : > { %11619 = vmatprep.subr.mxu0 %v6133_v12  ;;  %11629 = vmatprep.mubr.f32.mxu0 %v14653_v43  ;;  %v6448_v43 = vld [vmem:[#allocation9 + $0x1a0] sm:$0xff] }
 0x3d7   : > { %11669 = vmatprep.subr.mxu1 %v6133_v12  ;;  %11679 = vmatprep.mubr.f32.mxu1 %v14704_v47 }
 0x3d8   : > { %11620 = vmatpush3.msra.mxu0 %v6133_v12  ;;  %11670 = vmatpush3.msra.mxu1 %v6133_v12  ;;  %v6913_v12 = vld [vmem:[#allocation3 + $0x5] ss:$2 sm:$0xff] }
 0x3d9   : > { %11621 = vmatprep.subr.mxu0 %v6132_v19  ;;  %11671 = vmatprep.subr.mxu1 %v6132_v19 }
 0x3da   : > { %11622 = vmatpush3.msra.mxu0 %v6132_v19  ;;  %11672 = vmatpush3.msra.mxu1 %v6132_v19  ;;  %v6761_v19 = vld [vmem:[#allocation9 + $0x210] sm:$0xff] }
 0x3db   : > { %11623 = vmatprep.subr.mxu0 %v6131_v59  ;;  %11673 = vmatprep.subr.mxu1 %v6131_v59 }
 0x3dc   : > { %11624 = vmatpush3.msra.mxu0 %v6131_v59  ;;  %11674 = vmatpush3.msra.mxu1 %v6131_v59  ;;  %v6760_v59 = vld [vmem:[#allocation9 + $0x208] sm:$0xff] }
 0x3dd   : > { %11625 = vmatprep.subr.mxu0 %v6130_v18  ;;  %11675 = vmatprep.subr.mxu1 %v6130_v18 }
 0x3de   : > { %11626 = vmatpush3.msra.mxu0 %v6130_v18  ;;  %11676 = vmatpush3.msra.mxu1 %v6130_v18  ;;  %v6759_v18 = vld [vmem:[#allocation9 + $0x200] sm:$0xff] }
 0x3df   : > { %11627 = vmatprep.subr.mxu0 %v6129_v60  ;;  %11677 = vmatprep.subr.mxu1 %v6129_v60 }
 0x3e0   : > { %11628 = vmatpush3.msra.mxu0 %v6129_v60  ;;  %11678 = vmatpush3.msra.mxu1 %v6129_v60  ;;  %v6915_v60 = vld [vmem:[#allocation3 + $0x15] ss:$2 sm:$0xff] }
 0x3e1   : > { %11630 = vmatmul.mubr.f32.vlgmr.msra.gmra.mxu0 %v14657_v42  ;;  %11680 = vmatmul.mubr.f32.vlgmr.msra.gmra.mxu1 %v14707_v61  ;;  %v6447_v42 = vld [vmem:[#allocation9 + $0x198] sm:$0xff] }
 0x3e2   : > { %11697 = vmatprep.subr.mxu0 %v6459_v20  ;;  %11747 = vmatprep.subr.mxu1 %v6459_v20 }
 0x3e3   : > { %11632 = vmatprep.mubr.f32.mxu0 %v14663_v62  ;;  %11682 = vmatprep.mubr.f32.mxu1 %v14711_v40  ;;  %v6774_v62 = vld [vmem:[#allocation9 + $0x278] sm:$0xff] }
 0x3e4   : > { %11698 = vmatpush3.msra.mxu0 %v6459_v20  ;;  %11748 = vmatpush3.msra.mxu1 %v6459_v20  ;;  %v6917_v20 = vld [vmem:[#allocation3 + $0x25] ss:$2 sm:$0xff] }
 0x3e5   : > { %11699 = vmatprep.subr.mxu0 %v6458_v34  ;;  %11749 = vmatprep.subr.mxu1 %v6458_v34 }
 0x3e6   : > { %11700 = vmatpush3.msra.mxu0 %v6458_v34  ;;  %11750 = vmatpush3.msra.mxu1 %v6458_v34  ;;  %v6923_v34 = vld [vmem:[#allocation3 + $0x55] ss:$2 sm:$0xff] }
 0x3e7   : > { %11633 = vmatmul.mubr.f32.gmra.mxu0 %v14667_v32  ;;  %11683 = vmatmul.mubr.f32.gmra.mxu1 %v14715_v2  ;;  %v6773_v32 = vld [vmem:[#allocation9 + $0x270] sm:$0xff] }
 0x3e8   : > { %11701 = vmatprep.subr.mxu0 %v6457_v8  ;;  %11751 = vmatprep.subr.mxu1 %v6457_v8 }
 0x3e9   : > { %11635 = vmatprep.mubr.f32.mxu0 %v14671_v39  ;;  %11685 = vmatprep.mubr.f32.mxu1 %v14719_v48  ;;  %v14767_v39 = vld [vmem:[#allocation3 + $0x44] ss:$2 sm:$0xff] }
 0x3ea   : > { %11702 = vmatpush3.msra.mxu0 %v6457_v8  ;;  %11752 = vmatpush3.msra.mxu1 %v6457_v8  ;;  %v6925_v8 = vld [vmem:[#allocation3 + $0x65] ss:$2 sm:$0xff] }
 0x3eb   : > { %11703 = vmatprep.subr.mxu0 %v6456_v15  ;;  %11753 = vmatprep.subr.mxu1 %v6456_v15 }
 0x3ec   : > { %11704 = vmatpush3.msra.mxu0 %v6456_v15  ;;  %11754 = vmatpush3.msra.mxu1 %v6456_v15  ;;  %v6931_v15 = vld [vmem:[#allocation3 + $0x95] ss:$2 sm:$0xff] }
 0x3ed   : > { %11636 = vmatmul.mubr.f32.gmra.mxu0 %v14675_v9  ;;  %11686 = vmatmul.mubr.f32.gmra.mxu1 %v14723_v52  ;;  %v14771_v9 = vld [vmem:[#allocation3 + $0x54] ss:$2 sm:$0xff] }
 0x3ee   : > { %11705 = vmatprep.subr.mxu0 %v6455_v24  ;;  %11755 = vmatprep.subr.mxu1 %v6455_v24 }
 0x3ef   : > { %11638 = vmatprep.mubr.f32.mxu0 %v14679_v57  ;;  %11688 = vmatprep.mubr.f32.mxu1 %v14727_v14  ;;  %v6768_v57 = vld [vmem:[#allocation9 + $0x248] sm:$0xff] }
 0x3f0   : > { %11706 = vmatpush3.msra.mxu0 %v6455_v24  ;;  %11756 = vmatpush3.msra.mxu1 %v6455_v24  ;;  %v6933_v24 = vld [vmem:[#allocation3 + $0xa5] ss:$2 sm:$0xff] }
 0x3f1   : > { %11707 = vmatprep.subr.mxu0 %v6454_v23  ;;  %11757 = vmatprep.subr.mxu1 %v6454_v23 }
 0x3f2   : > { %11708 = vmatpush3.msra.mxu0 %v6454_v23  ;;  %11758 = vmatpush3.msra.mxu1 %v6454_v23  ;;  %v14813_v23 = vpop.f32.mrf.mxu1 }
 0x3f3   : > { %11639 = vmatmul.mubr.f32.gmra.mxu0 %v14683_v41  ;;  %11689 = vmatmul.mubr.f32.gmra.mxu1 %v14731_v29  ;;  %v14783_v41 = vld [vmem:[#allocation3 + $0x84] ss:$2 sm:$0xff] }
 0x3f4   : > { %11709 = vmatprep.subr.mxu0 %v6453_v51  ;;  %11759 = vmatprep.subr.mxu1 %v6453_v51 }
 0x3f5   : > { %11641 = vmatprep.mubr.f32.mxu0 %v14687_v11  ;;  %11691 = vmatprep.mubr.f32.mxu1 %v14735_v28  ;;  %v6766_v11 = vld [vmem:[#allocation9 + $0x238] sm:$0xff] }
 0x3f6   : > { %11710 = vmatpush3.msra.mxu0 %v6453_v51  ;;  %11760 = vmatpush3.msra.mxu1 %v6453_v51 }
 0x3f7   : > { %11711 = vmatprep.subr.mxu0 %v6452_v5  ;;  %11761 = vmatprep.subr.mxu1 %v6452_v5 }
 0x3f8   : > { %11712 = vmatpush3.msra.mxu0 %v6452_v5  ;;  %11762 = vmatpush3.msra.mxu1 %v6452_v5 }
 0x3f9   : > { %11642 = vmatmul.mubr.f32.gmra.mxu0 %v14691_v63  ;;  %11692 = vmatmul.mubr.f32.gmra.mxu1 %v14739_v25  ;;  %v14791_v63 = vld [vmem:[#allocation3 + $0xa4] ss:$2 sm:$0xff] }
 0x3fa   : > { %11713 = vmatprep.subr.mxu0 %v6451_v46  ;;  %11763 = vmatprep.subr.mxu1 %v6451_v46 }
 0x3fb   : > { %11644 = vmatprep.mubr.f32.mxu0 %v14695_v6  ;;  %11694 = vmatprep.mubr.f32.mxu1 %v14743_v38  ;;  %v6764_v6 = vld [vmem:[#allocation9 + $0x228] sm:$0xff] }
 0x3fc   : > { %11714 = vmatpush3.msra.mxu0 %v6451_v46  ;;  %11764 = vmatpush3.msra.mxu1 %v6451_v46 }
 0x3fd   : > { %11715 = vmatprep.subr.mxu0 %v6450_v37  ;;  %11765 = vmatprep.subr.mxu1 %v6450_v37 }
 0x3fe   : > { %11716 = vmatpush3.msra.mxu0 %v6450_v37  ;;  %11766 = vmatpush3.msra.mxu1 %v6450_v37 }
 0x3ff   : > { %11645 = vmatmul.mubr.f32.gmra.mxu0 %v14699_v33  ;;  %11695 = vmatmul.mubr.f32.gmra.mxu1 %v14747_v4  ;;  %v6763_v33 = vld [vmem:[#allocation9 + $0x220] sm:$0xff] }
 0x400   : > { %11717 = vmatprep.subr.mxu0 %v6449_v7  ;;  %11767 = vmatprep.subr.mxu1 %v6449_v7 }
 0x401   : > { %11718 = vmatpush3.msra.mxu0 %v6449_v7  ;;  %11729 = vmatprep.mubr.f32.mxu0 %v14704_v47  ;;  %v6762_v47 = vld [vmem:[#allocation9 + $0x218] sm:$0xff] }
 0x402   : > { %11768 = vmatpush3.msra.mxu1 %v6449_v7  ;;  %11779 = vmatprep.mubr.f32.mxu1 %v14752_v21 }
 0x403   : > { %11719 = vmatprep.subr.mxu0 %v6448_v43  ;;  %11769 = vmatprep.subr.mxu1 %v6448_v43 }
 0x404   : > { %11720 = vmatpush3.msra.mxu0 %v6448_v43  ;;  %11770 = vmatpush3.msra.mxu1 %v6448_v43 }
 0x405   : > { %11721 = vmatprep.subr.mxu0 %v6447_v42  ;;  %11771 = vmatprep.subr.mxu1 %v6447_v42 }
 0x406   : > { %11722 = vmatpush3.msra.mxu0 %v6447_v42  ;;  %11772 = vmatpush3.msra.mxu1 %v6447_v42 }
 0x407   : > { %11723 = vmatprep.subr.mxu0 %v6446_v44  ;;  %11773 = vmatprep.subr.mxu1 %v6446_v44 }
 0x408   : > { %11724 = vmatpush3.msra.mxu0 %v6446_v44  ;;  %11774 = vmatpush3.msra.mxu1 %v6446_v44 }
 0x409   : > { %11725 = vmatprep.subr.mxu0 %v6445_v36  ;;  %11775 = vmatprep.subr.mxu1 %v6445_v36 }
 0x40a   : > { %11726 = vmatpush3.msra.mxu0 %v6445_v36  ;;  %11776 = vmatpush3.msra.mxu1 %v6445_v36 }
 0x40b   : > { %11727 = vmatprep.subr.mxu0 %v6444_v54  ;;  %11777 = vmatprep.subr.mxu1 %v6444_v54 }
 0x40c   : > { %11728 = vmatpush3.msra.mxu0 %v6444_v54  ;;  %11778 = vmatpush3.msra.mxu1 %v6444_v54 }
 0x40d   : > { %11730 = vmatmul.mubr.f32.vlgmr.msra.gmra.mxu0 %v14707_v61  ;;  %11780 = vmatmul.mubr.f32.vlgmr.msra.gmra.mxu1 %v14755_v26  ;;  %v6919_v61 = vld [vmem:[#allocation3 + $0x35] ss:$2 sm:$0xff] }
 0x40e   : > { %11797 = vmatprep.subr.mxu0 %v6774_v62  ;;  %11847 = vmatprep.subr.mxu1 %v6774_v62 }
 0x40f   : > { %11732 = vmatprep.mubr.f32.mxu0 %v14711_v40  ;;  %11782 = vmatprep.mubr.f32.mxu1 %v14759_v58  ;;  %v6921_v40 = vld [vmem:[#allocation3 + $0x45] ss:$2 sm:$0xff] }
 0x410   : > { %11798 = vmatpush3.msra.mxu0 %v6774_v62  ;;  %11848 = vmatpush3.msra.mxu1 %v6774_v62 }
 0x411   : > { %11799 = vmatprep.subr.mxu0 %v6773_v32  ;;  %11849 = vmatprep.subr.mxu1 %v6773_v32 }
 0x412   : > { %11800 = vmatpush3.msra.mxu0 %v6773_v32  ;;  %11850 = vmatpush3.msra.mxu1 %v6773_v32 }
 0x413   : > { %11733 = vmatmul.mubr.f32.gmra.mxu0 %v14715_v2  ;;  %11783 = vmatmul.mubr.f32.gmra.mxu1 %v14763_v35  ;;  %v6927_v2 = vld [vmem:[#allocation3 + $0x75] ss:$2 sm:$0xff] }
 0x414   : > { %11801 = vmatprep.subr.mxu0 %v6772_v16  ;;  %11851 = vmatprep.subr.mxu1 %v6772_v16 }
 0x415   : > { %11735 = vmatprep.mubr.f32.mxu0 %v14719_v48  ;;  %11785 = vmatprep.mubr.f32.mxu1 %v14767_v39  ;;  %v6929_v48 = vld [vmem:[#allocation3 + $0x85] ss:$2 sm:$0xff] }
 0x416   : > { %11802 = vmatpush3.msra.mxu0 %v6772_v16  ;;  %11852 = vmatpush3.msra.mxu1 %v6772_v16 }
 0x417   : > { %11803 = vmatprep.subr.mxu0 %v6771_v55  ;;  %11853 = vmatprep.subr.mxu1 %v6771_v55 }
 0x418   : > { %11804 = vmatpush3.msra.mxu0 %v6771_v55  ;;  %11854 = vmatpush3.msra.mxu1 %v6771_v55 }
 0x419   : > { %11736 = vmatmul.mubr.f32.gmra.mxu0 %v14723_v52  ;;  %11786 = vmatmul.mubr.f32.gmra.mxu1 %v14771_v9  ;;  %v6935_v52 = vld [vmem:[#allocation3 + $0xb5] ss:$2 sm:$0x3] }
 0x41a   : > { %11805 = vmatprep.subr.mxu0 %v6770_v3  ;;  %11855 = vmatprep.subr.mxu1 %v6770_v3 }
 0x41b   : > { %11738 = vmatprep.mubr.f32.mxu0 %v14727_v14  ;;  %11788 = vmatprep.mubr.f32.mxu1 %v14775_v56  ;;  %v14811_v14 = vpop.f32.mrf.mxu0 }
 0x41c   : > { %11806 = vmatpush3.msra.mxu0 %v6770_v3  ;;  %11856 = vmatpush3.msra.mxu1 %v6770_v3 }
 0x41d   : > { %11807 = vmatprep.subr.mxu0 %v6769_v27  ;;  %11857 = vmatprep.subr.mxu1 %v6769_v27 }
 0x41e   : > { %11808 = vmatpush3.msra.mxu0 %v6769_v27  ;;  %11858 = vmatpush3.msra.mxu1 %v6769_v27  ;;  %v14843_v27 = vld [vmem:[%s16267_s7 + $0xf8] sm:$0xff] }
 0x41f   : > { %11739 = vmatmul.mubr.f32.gmra.mxu0 %v14731_v29  ;;  %11789 = vmatmul.mubr.f32.gmra.mxu1 %v14779_v13 }
 0x420   : > { %11809 = vmatprep.subr.mxu0 %v6768_v57  ;;  %11859 = vmatprep.subr.mxu1 %v6768_v57 }
 0x421   : > { %11741 = vmatprep.mubr.f32.mxu0 %v14735_v28  ;;  %11791 = vmatprep.mubr.f32.mxu1 %v14783_v41 }
 0x422   : > { %11810 = vmatpush3.msra.mxu0 %v6768_v57  ;;  %11860 = vmatpush3.msra.mxu1 %v6768_v57 }
 0x423   : > { %11811 = vmatprep.subr.mxu0 %v6767_v30  ;;  %11861 = vmatprep.subr.mxu1 %v6767_v30 }
 0x424   : > { %11812 = vmatpush3.msra.mxu0 %v6767_v30  ;;  %11862 = vmatpush3.msra.mxu1 %v6767_v30  ;;  %v14852_v30 = vld [vmem:[%s16267_s7 + $0x1f0] sm:$0xff] }
 0x425   : > { %11742 = vmatmul.mubr.f32.gmra.mxu0 %v14739_v25  ;;  %11792 = vmatmul.mubr.f32.gmra.mxu1 %v14787_v17  ;;  %16502 = vst [vmem:[#allocation47_spill] sm:$0xff] %v14852_v30 }
 0x426   : > { %11813 = vmatprep.subr.mxu0 %v6766_v11  ;;  %11863 = vmatprep.subr.mxu1 %v6766_v11 }
 0x427   : > { %11744 = vmatprep.mubr.f32.mxu0 %v14743_v38  ;;  %11794 = vmatprep.mubr.f32.mxu1 %v14791_v63 }
 0x428   : > { %11814 = vmatpush3.msra.mxu0 %v6766_v11  ;;  %11864 = vmatpush3.msra.mxu1 %v6766_v11  ;;  %v14857_v11 = vld [vmem:[%s16267_s7 + $0xf0] sm:$0xff] }
 0x429   : > { %11815 = vmatprep.subr.mxu0 %v6765_v0  ;;  %11865 = vmatprep.subr.mxu1 %v6765_v0  ;;  %16503 = vst [vmem:[#allocation48_spill] sm:$0xff] %v14857_v11 }
 0x42a   : > { %11816 = vmatpush3.msra.mxu0 %v6765_v0  ;;  %11866 = vmatpush3.msra.mxu1 %v6765_v0  ;;  %v14876_v0 = vld [vmem:[%s16267_s7 + $0x1e0] sm:$0xff] }
 0x42b   : > { %11745 = vmatmul.mubr.f32.gmra.mxu0 %v14747_v4  ;;  %11795 = vmatmul.mubr.f32.gmra.mxu1 %v14795_v49  ;;  %16506 = vst [vmem:[#allocation40_spill] sm:$0xff] %v14876_v0 }
 0x42c   : > { %11817 = vmatprep.subr.mxu0 %v6764_v6  ;;  %11867 = vmatprep.subr.mxu1 %v6764_v6 }
 0x42d   : > { %11818 = vmatpush3.msra.mxu0 %v6764_v6  ;;  %11829 = vmatprep.mubr.f32.mxu0 %v14752_v21 }
 0x42e   : > { %11868 = vmatpush3.msra.mxu1 %v6764_v6  ;;  %11879 = vmatprep.mubr.f32.mxu1 %v6913_v12  ;;  %v14881_v6 = vld [vmem:[%s16267_s7 + $0xe0] sm:$0xff]  ;;  %v14888_v12 = vld [vmem:[%s16267_s7 + $0x1d8] sm:$0xff] }
 0x42f   : > { %11819 = vmatprep.subr.mxu0 %v6763_v33  ;;  %11869 = vmatprep.subr.mxu1 %v6763_v33  ;;  %16507 = vst [vmem:[#allocation25_spill] sm:$0xff] %v14881_v6  ;;  %16508 = vst [vmem:[#allocation41_spill] sm:$0xff] %v14888_v12 }
 0x430   : > { %11820 = vmatpush3.msra.mxu0 %v6763_v33  ;;  %11870 = vmatpush3.msra.mxu1 %v6763_v33 }
 0x431   : > { %11821 = vmatprep.subr.mxu0 %v6762_v47  ;;  %11871 = vmatprep.subr.mxu1 %v6762_v47 }
 0x432   : > { %11822 = vmatpush3.msra.mxu0 %v6762_v47  ;;  %11872 = vmatpush3.msra.mxu1 %v6762_v47  ;;  %v14893_v47 = vld [vmem:[%s16267_s7 + $0xd8] sm:$0xff] }
 0x433   : > { %11823 = vmatprep.subr.mxu0 %v6761_v19  ;;  %11873 = vmatprep.subr.mxu1 %v6761_v19  ;;  %16509 = vst [vmem:[#allocation39_spill] sm:$0xff] %v14893_v47 }
 0x434   : > { %11824 = vmatpush3.msra.mxu0 %v6761_v19  ;;  %11874 = vmatpush3.msra.mxu1 %v6761_v19 }
 0x435   : > { %11825 = vmatprep.subr.mxu0 %v6760_v59  ;;  %11875 = vmatprep.subr.mxu1 %v6760_v59 }
 0x436   : > { %11826 = vmatpush3.msra.mxu0 %v6760_v59  ;;  %11876 = vmatpush3.msra.mxu1 %v6760_v59  ;;  %v14902_v59 = vld [vmem:[%s16267_s7 + $0x1d0] sm:$0xff] }
 0x437   : > { %11827 = vmatprep.subr.mxu0 %v6759_v18  ;;  %11877 = vmatprep.subr.mxu1 %v6759_v18  ;;  %16510 = vst [vmem:[#allocation43_spill] sm:$0xff] %v14902_v59 }
 0x438   : > { %11828 = vmatpush3.msra.mxu0 %v6759_v18  ;;  %11878 = vmatpush3.msra.mxu1 %v6759_v18  ;;  %v14907_v18 = vld [vmem:[%s16267_s7 + $0xd0] sm:$0xff] }
 0x439   : > { %11830 = vmatmul.mubr.f32.vlgmr.msra.gmra.mxu0 %v14755_v26  ;;  %11880 = vmatmul.mubr.f32.vlgmr.msra.gmra.mxu1 %v6915_v60  ;;  %16511 = vst [vmem:[#allocation24_spill] sm:$0xff] %v14907_v18 }
 0x43a   : > { %11832 = vmatprep.mubr.f32.mxu0 %v14759_v58  ;;  %11882 = vmatprep.mubr.f32.mxu1 %v6917_v20 }
 0x43b   : > { %7389 = vmatprep.subr.mxu1 %v14843_v27 }
 0x43c   : > { %7390 = vmatpush1.msra.mxu1 %v14857_v11 }
 0x43d   : > { %11833 = vmatmul.mubr.f32.gmra.mxu0 %v14763_v35  ;;  %11883 = vmatmul.mubr.f32.gmra.mxu1 %v6919_v61  ;;  %v14914_v61 = vld [vmem:[%s16267_s7 + $0x1c8] sm:$0xff] }
 0x43e   : > { %11835 = vmatprep.mubr.f32.mxu0 %v14767_v39  ;;  %11885 = vmatprep.mubr.f32.mxu1 %v6921_v40  ;;  %16512 = vst [vmem:[#allocation27_spill] sm:$0xff] %v14914_v61  ;;  %v14919_v40 = vld [vmem:[%s16267_s7 + $0xc8] sm:$0xff] }
 0x43f   : > { %16513 = vst [vmem:[#allocation38_spill] sm:$0xff] %v14919_v40 }
 0x441   : > { %11836 = vmatmul.mubr.f32.gmra.mxu0 %v14771_v9  ;;  %11886 = vmatmul.mubr.f32.gmra.mxu1 %v6923_v34 }
 0x442   : > { %11838 = vmatprep.mubr.f32.mxu0 %v14775_v56  ;;  %11888 = vmatprep.mubr.f32.mxu1 %v6925_v8  ;;  %v14838_v56 = vld [vmem:[%s16267_s7 + $0x1f8] sm:$0xff]  ;;  %v14928_v8 = vld [vmem:[%s16267_s7 + $0x1c0] sm:$0xff] }
 0x443   : > { %7288 = vmatprep.subr.mxu0 %v14838_v56  ;;  %16514 = vst [vmem:[#allocation17_spill] sm:$0xff] %v14928_v8 }
 0x444   : > { %7289 = vmatpush1.msra.mxu0 %v14852_v30 }
 0x445   : > { %11839 = vmatmul.mubr.f32.gmra.mxu0 %v14779_v13  ;;  %11889 = vmatmul.mubr.f32.gmra.mxu1 %v6927_v2  ;;  %v14933_v2 = vld [vmem:[%s16267_s7 + $0xc0] sm:$0xff] }
 0x446   : > { %11841 = vmatprep.mubr.f32.mxu0 %v14783_v41  ;;  %11891 = vmatprep.mubr.f32.mxu1 %v6929_v48  ;;  %16515 = vst [vmem:[#allocation29_spill] sm:$0xff] %v14933_v2  ;;  %v14940_v48 = vld [vmem:[%s16267_s7 + $0x1b8] sm:$0xff] }
 0x447   : > { %16516 = vst [vmem:[#allocation28_spill] sm:$0xff] %v14940_v48 }
 0x449   : > { %11842 = vmatmul.mubr.f32.gmra.mxu0 %v14787_v17  ;;  %11892 = vmatmul.mubr.f32.gmra.mxu1 %v6931_v15  ;;  %v14864_v17 = vld [vmem:[%s16267_s7 + $0x1e8] sm:$0xff]  ;;  %v14945_v15 = vld [vmem:[%s16267_s7 + $0xb8] sm:$0xff] }
 0x44a   : > { %11844 = vmatprep.mubr.f32.mxu0 %v14791_v63  ;;  %11894 = vmatprep.mubr.f32.mxu1 %v6933_v24  ;;  %16504 = vst [vmem:[#allocation49_spill] sm:$0xff] %v14864_v17  ;;  %v14869_v63 = vld [vmem:[%s16267_s7 + $0xe8] sm:$0xff]  ;;  %16517 = vst [vmem:[#allocation30_spill] sm:$0xff] %v14945_v15  ;;  %v14952_v24 = vld [vmem:[%s16267_s7 + $0x1b0] sm:$0xff] }
 0x44b   : > { %16505 = vst [vmem:[#allocation52_spill] sm:$0xff] %v14869_v63  ;;  %7290 = vmatprep.subr.mxu0 %v14864_v17  ;;  %7391 = vmatprep.subr.mxu1 %v14869_v63  ;;  %16518 = vst [vmem:[#allocation20_spill] sm:$0xff] %v14952_v24 }
 0x44c   : > { %7291 = vmatpush1.msra.mxu0 %v14876_v0  ;;  %7392 = vmatpush1.msra.mxu1 %v14881_v6 }
 0x44d   : > { %11845 = vmatmul.mubr.f32.gmra.mxu0 %v14795_v49  ;;  %11895 = vmatmul.mubr.f32.gmra.mxu1 %v6935_v52  ;;  %v14957_v52 = vld [vmem:[%s16267_s7 + $0xb0] sm:$0xff] }
 0x44e   : > { %7292 = vmatprep.subr.mxu0 %v14888_v12  ;;  %7393 = vmatprep.subr.mxu1 %v14893_v47  ;;  %16519 = vst [vmem:[#allocation42_spill] sm:$0xff] %v14957_v52 }
 0x44f   : > { %7293 = vmatpush1.msra.mxu0 %v14902_v59  ;;  %7394 = vmatpush1.msra.mxu1 %v14907_v18 }
 0x450   : > { %7294 = vmatprep.subr.mxu0 %v14914_v61  ;;  %7395 = vmatprep.subr.mxu1 %v14919_v40 }
 0x451   : > { %7295 = vmatpush1.msra.mxu0 %v14928_v8  ;;  %7396 = vmatpush1.msra.mxu1 %v14933_v2 }
 0x452   : > { %7296 = vmatprep.subr.mxu0 %v14940_v48  ;;  %7397 = vmatprep.subr.mxu1 %v14945_v15 }
 0x453   : > { %7297 = vmatpush1.msra.mxu0 %v14952_v24  ;;  %7398 = vmatpush1.msra.mxu1 %v14957_v52 }
 0x462   : > { %v11440_v51 = vpop.f32.mrf.mxu0  ;;  %v11490_v29 = vpop.f32.mrf.mxu1 }
 0x463   : > { %v14815_v28 = vadd.f32 %v11490_v29, %v11440_v51 }
 0x464   : > { %v14817_v5 = vpop.f32.mrf.mxu0  ;;  %v14819_v46 = vpop.f32.mrf.mxu1 }
 0x469   : > { %v11443_v25 = vpop.f32.mrf.mxu0  ;;  %v11493_v38 = vpop.f32.mrf.mxu1 }
 0x46a   : > { %v14821_v37 = vadd.f32 %v11493_v38, %v11443_v25  ;;  %v14964_v25 = vld [vmem:[%s16267_s7 + $0x1a8] sm:$0xff] }
 0x46b   : > { %v5710_v7 = vpop.f32.mrf.mxu0  ;;  %v5835_v4 = vpop.f32.mrf.mxu1  ;;  %16520 = vst [vmem:[#allocation44_spill] sm:$0xff] %v14964_v25  ;;  %v14969_v38 = vld [vmem:[%s16267_s7 + $0xa8] sm:$0xff]  ;;  %7298 = vmatprep.subr.mxu0 %v14964_v25 }
 0x46c   : > { %v14823_v43 = vadd.f32 %v5835_v4, %v5710_v7  ;;  %16521 = vst [vmem:[#allocation45_spill] sm:$0xff] %v14969_v38  ;;  %7399 = vmatprep.subr.mxu1 %v14969_v38  ;;  %v14978_v4 = vld [vmem:[%s16267_s7 + $0x1a0] sm:$0xff] }
 0x46d   : > { %16522 = vst [vmem:[#allocation31_spill] sm:$0xff] %v14978_v4  ;;  %7299 = vmatpush1.msra.mxu0 %v14978_v4 }
 0x46e   : > { %16499 = vst [vmem:[#allocation35_spill] sm:$0xff] %v14823_v43 }
 0x472   : > { %v11446_v21 = vpop.f32.mrf.mxu0  ;;  %v11496_v42 = vpop.f32.mrf.mxu1 }
 0x473   : > { %v14825_v44 = vadd.f32 %v11496_v42, %v11446_v21  ;;  %v14983_v21 = vld [vmem:[%s16267_s7 + $0xa0] sm:$0xff] }
 0x474   : > { %v5720_v36 = vpop.f32.mrf.mxu0  ;;  %v5845_v54 = vpop.f32.mrf.mxu1  ;;  %16523 = vst [vmem:[#allocation18_spill] sm:$0xff] %v14983_v21  ;;  %7400 = vmatpush1.msra.mxu1 %v14983_v21 }
 0x475   : > { %16500 = vst [vmem:[#allocation50_spill] sm:$0xff] %v14825_v44  ;;  %v14827_v62 = vadd.f32 %v5845_v54, %v5720_v36  ;;  %v14990_v54 = vld [vmem:[%s16267_s7 + $0x198] sm:$0xff] }
 0x476   : > { %v11531_v26 = vpop.f32.mrf.mxu0  ;;  %v11581_v58 = vpop.f32.mrf.mxu1  ;;  %16524 = vst [vmem:[#allocation32_spill] sm:$0xff] %v14990_v54  ;;  %7300 = vmatprep.subr.mxu0 %v14990_v54 }
 0x477   : > { %16501 = vst [vmem:[#allocation51_spill] sm:$0xff] %v14827_v62  ;;  %v14829_v32 = vadd.f32 %v11581_v58, %v11531_v26  ;;  %v14995_v26 = vld [vmem:[%s16267_s7 + $0x98] sm:$0xff] }
 0x478   : > { %v5944_v16 = vpop.f32.mrf.mxu0  ;;  %v6069_v35 = vpop.f32.mrf.mxu1  ;;  %16525 = vst [vmem:[#allocation21_spill] sm:$0xff] %v14995_v26  ;;  %7401 = vmatprep.subr.mxu1 %v14995_v26 }
 0x479   : > { %v14831_v39 = vadd.f32 %v6069_v35, %v5944_v16  ;;  %v15004_v16 = vld [vmem:[%s16267_s7 + $0x190] sm:$0xff] }
 0x47a   : > { %16526 = vst [vmem:[#allocation33_spill] sm:$0xff] %v15004_v16  ;;  %v15009_v35 = vld [vmem:[%s16267_s7 + $0x90] sm:$0xff]  ;;  %7301 = vmatpush1.msra.mxu0 %v15004_v16 }
 0x47b   : > { %16527 = vst [vmem:[#allocation46_spill] sm:$0xff] %v15009_v35  ;;  %7402 = vmatpush1.msra.mxu1 %v15009_v35 }
 0x47c   : > { %v11534_v55 = vpop.f32.mrf.mxu0  ;;  %v11584_v3 = vpop.f32.mrf.mxu1 }
 0x47d   : > { %v14833_v9 = vadd.f32 %v11584_v3, %v11534_v55  ;;  %v15016_v55 = vld [vmem:[%s16267_s7 + $0x188] sm:$0xff] }
 0x47e   : > { %v5954_v57 = vpop.f32.mrf.mxu0  ;;  %v6079_v13 = vpop.f32.mrf.mxu1  ;;  %16528 = vst [vmem:[#allocation34_spill] sm:$0xff] %v15016_v55  ;;  %v15021_v3 = vld [vmem:[%s16267_s7 + $0x88] sm:$0xff]  ;;  %7302 = vmatprep.subr.mxu0 %v15016_v55 }
 0x47f   : > { %v14847_v41 = vadd.f32 %v6079_v13, %v5954_v57  ;;  %16529 = vst [vmem:[#allocation36_spill] sm:$0xff] %v15021_v3  ;;  %7403 = vmatprep.subr.mxu1 %v15021_v3  ;;  %v15028_v57 = vld [vmem:[%s16267_s7 + $0x180] sm:$0xff] }
 0x480   : > { %16530 = vst [vmem:[#allocation22_spill] sm:$0xff] %v15028_v57  ;;  %v15033_v13 = vld [vmem:[%s16267_s7 + $0x80] sm:$0xff]  ;;  %7303 = vmatpush1.msra.mxu0 %v15028_v57 }
 0x481   : > { %16531 = vst [vmem:[#allocation26_spill] sm:$0xff] %v15033_v13  ;;  %7404 = vmatpush1.msra.mxu1 %v15033_v13 }
 0x482   : > { %v11537_v49 = vpop.f32.mrf.mxu0  ;;  %v11587_v33 = vpop.f32.mrf.mxu1 }
 0x483   : > { %v14895_v19 = vadd.f32 %v11587_v33, %v11537_v49 }
 0x484   : > { %v5964_v60 = vpop.f32.mrf.mxu0  ;;  %v6089_v20 = vpop.f32.mrf.mxu1 }
 0x485   : > { %v14921_v34 = vadd.f32 %v6089_v20, %v5964_v60  ;;  %v15040_v60 = vld [vmem:[%s16267_s7 + $0x178] sm:$0xff] }
 0x486   : > { %16532 = vst [vmem:[#allocation23_spill] sm:$0xff] %v15040_v60  ;;  %v15045_v20 = vld [vmem:[%s16267_s7 + $0x78] sm:$0xff]  ;;  %7304 = vmatprep.subr.mxu0 %v15040_v60 }
 0x487   : > { %16533 = vst [vmem:[#allocation37_spill] sm:$0xff] %v15045_v20  ;;  %7405 = vmatprep.subr.mxu1 %v15045_v20 }
 0x488   : > { %v11540_v51 = vpop.f32.mrf.mxu0  ;;  %v11590_v29 = vpop.f32.mrf.mxu1 }
 0x489   : > { %v14971_v7 = vadd.f32 %v11590_v29, %v11540_v51  ;;  %v15054_v29 = vld [vmem:[%s16267_s7 + $0x170] sm:$0xff] }
 0x48a   : > { %v5974_v42 = vpop.f32.mrf.mxu0  ;;  %v6099_v36 = vpop.f32.mrf.mxu1  ;;  %16535 = vst [vmem:[#allocation19_spill] sm:$0xff] %v15054_v29  ;;  %7305 = vmatpush1.msra.mxu0 %v15054_v29  ;;  %v15085_v29 = vld [vmem:[%s16267_s7 + $0x60] sm:$0xff] }
 0x48b   : > { %v14997_v58 = vadd.f32 %v6099_v36, %v5974_v42  ;;  %v15059_v42 = vld [vmem:[%s16267_s7 + $0x70] sm:$0xff]  ;;  %16541 = vst [vmem:[#allocation58_spill] sm:$0xff] %v15085_v29 }
 0x48c   : > { %16536 = vst [vmem:[#allocation53_spill] sm:$0xff] %v15059_v42  ;;  %7406 = vmatpush1.msra.mxu1 %v15059_v42  ;;  %v15080_v42 = vld [vmem:[%s16267_s7 + $0x160] sm:$0xff] }
 0x48d   : > { %16540 = vst [vmem:[#allocation57_spill] sm:$0xff] %v15080_v42 }
 0x48e   : > { %v11543_v49 = vpop.f32.mrf.mxu0  ;;  %v11593_v33 = vpop.f32.mrf.mxu1 }
 0x48f   : > { %v15047_v51 = vadd.f32 %v11593_v33, %v11543_v49  ;;  %v15066_v49 = vld [vmem:[%s16267_s7 + $0x168] sm:$0xff] }
 0x490   : > { %v5984_v36 = vpop.f32.mrf.mxu0  ;;  %v6109_v13 = vpop.f32.mrf.mxu1  ;;  %16537 = vst [vmem:[#allocation54_spill] sm:$0xff] %v15066_v49  ;;  %v15071_v33 = vld [vmem:[%s16267_s7 + $0x68] sm:$0xff]  ;;  %7306 = vmatprep.subr.mxu0 %v15066_v49 }
 0x491   : > { %16534 = vst [vmem:[#allocation16_spill] sm:$0xff] %v15047_v51  ;;  %16538 = vst [vmem:[#allocation55_spill] sm:$0xff] %v15071_v33  ;;  %v15073_v20 = vadd.f32 %v6109_v13, %v5984_v36  ;;  %7407 = vmatprep.subr.mxu1 %v15071_v33  ;;  %7307 = vmatpush1.msra.mxu0 %v15080_v42  ;;  %v15092_v13 = vld [vmem:[%s16267_s7 + $0x158] sm:$0xff]  ;;  %v15104_v42 = vld [vmem:[%s16267_s7 + $0x150] sm:$0xff] }
 0x492   : > { %7408 = vmatpush1.msra.mxu1 %v15085_v29  ;;  %16542 = vst [vmem:[#allocation59_spill] sm:$0xff] %v15092_v13  ;;  %v15097_v36 = vld [vmem:[%s16267_s7 + $0x58] sm:$0xff]  ;;  %7308 = vmatprep.subr.mxu0 %v15092_v13  ;;  %16544 = vst [vmem:[#allocation61_spill] sm:$0xff] %v15104_v42  ;;  %v15109_v29 = vld [vmem:[%s16267_s7 + $0x50] sm:$0xff] }
 0x493   : > { %16539 = vst [vmem:[#allocation56_spill] sm:$0xff] %v15073_v20  ;;  %16543 = vst [vmem:[#allocation60_spill] sm:$0xff] %v15097_v36  ;;  %7409 = vmatprep.subr.mxu1 %v15097_v36  ;;  %7309 = vmatpush1.msra.mxu0 %v15104_v42  ;;  %v15116_v36 = vld [vmem:[%s16267_s7 + $0x148] sm:$0xff]  ;;  %v15135_v42 = vld [vmem:[%s16267_s7 + $0x40] sm:$0xff] }
 0x494   : > { %16545 = vst [vmem:[#allocation62_spill] sm:$0xff] %v15109_v29  ;;  %v11546_v33 = vpop.f32.mrf.mxu0  ;;  %v11596_v49 = vpop.f32.mrf.mxu1  ;;  %7410 = vmatpush1.msra.mxu1 %v15109_v29  ;;  %16546 = vst [vmem:[#allocation63_spill] sm:$0xff] %v15116_v36  ;;  %v15121_v13 = vld [vmem:[%s16267_s7 + $0x48] sm:$0xff]  ;;  %7310 = vmatprep.subr.mxu0 %v15116_v36  ;;  %v15130_v29 = vld [vmem:[%s16267_s7 + $0x140] sm:$0xff] }
 0x495   : > { %16547 = vst [vmem:[#allocation64_spill] sm:$0xff] %v15121_v13  ;;  %v15123_v60 = vadd.f32 %v11596_v49, %v11546_v33  ;;  %7411 = vmatprep.subr.mxu1 %v15121_v13  ;;  %16549 = vst [vmem:[#allocation66_spill] sm:$0xff] %v15130_v29  ;;  %7311 = vmatpush1.msra.mxu0 %v15130_v29  ;;  %v15142_v49 = vld [vmem:[%s16267_s7 + $0x138] sm:$0xff]  ;;  %v15161_v29 = vld [vmem:[%s16267_s7 + $0x30] sm:$0xff] }
 0x496   : > { %16550 = vst [vmem:[#allocation67_spill] sm:$0xff] %v15135_v42  ;;  %v5994_v57 = vpop.f32.mrf.mxu0  ;;  %v6119_v3 = vpop.f32.mrf.mxu1  ;;  %7412 = vmatpush1.msra.mxu1 %v15135_v42  ;;  %16551 = vst [vmem:[#allocation68_spill] sm:$0xff] %v15142_v49  ;;  %v15147_v33 = vld [vmem:[%s16267_s7 + $0x38] sm:$0xff]  ;;  %7312 = vmatprep.subr.mxu0 %v15142_v49  ;;  %v15156_v42 = vld [vmem:[%s16267_s7 + $0x130] sm:$0xff] }
 0x497   : > { %16548 = vst [vmem:[#allocation65_spill] sm:$0xff] %v15123_v60  ;;  %16552 = vst [vmem:[#allocation69_spill] sm:$0xff] %v15147_v33  ;;  %v15149_v13 = vadd.f32 %v6119_v3, %v5994_v57  ;;  %7413 = vmatprep.subr.mxu1 %v15147_v33  ;;  %7313 = vmatpush1.msra.mxu0 %v15156_v42  ;;  %v15168_v3 = vld [vmem:[%s16267_s7 + $0x128] sm:$0xff]  ;;  %v16333_v33 = vmov 0.0  }
 0x498   : > { %16554 = vst [vmem:[#allocation71_spill] sm:$0xff] %v15156_v42  ;;  %16555 = vst [vmem:[#allocation72_spill] sm:$0xff] %v15161_v29  ;;  %7414 = vmatpush1.msra.mxu1 %v15161_v29  ;;  %v15173_v57 = vld [vmem:[%s16267_s7 + $0x28] sm:$0xff]  ;;  %7314 = vmatprep.subr.mxu0 %v15168_v3  ;;  %v15180_v42 = vld [vmem:[%s16267_s7 + $0x120] sm:$0xff] }
 0x499   : > { %16553 = vst [vmem:[#allocation70_spill] sm:$0xff] %v15149_v13  ;;  %16556 = vst [vmem:[#allocation73_spill] sm:$0xff] %v15168_v3  ;;  %7415 = vmatprep.subr.mxu1 %v15173_v57  ;;  %v15185_v29 = vld [vmem:[%s16267_s7 + $0x20] sm:$0xff]  ;;  %7315 = vmatpush1.msra.mxu0 %v15180_v42  ;;  %v15192_v3 = vld [vmem:[%s16267_s7 + $0x118] sm:$0xff] }
 0x49a   : > { %16557 = vst [vmem:[#allocation74_spill] sm:$0xff] %v15173_v57  ;;  %16558 = vst [vmem:[#allocation75_spill] sm:$0xff] %v15180_v42  ;;  %7416 = vmatpush1.msra.mxu1 %v15185_v29  ;;  %v15197_v57 = vld [vmem:[%s16267_s7 + $0x18] sm:$0xff]  ;;  %7316 = vmatprep.subr.mxu0 %v15192_v3  ;;  %v15204_v42 = vld [vmem:[%s16267_s7 + $0x110] sm:$0xff] }
 0x49b   : > { %16559 = vst [vmem:[#allocation76_spill] sm:$0xff] %v15185_v29  ;;  %16560 = vst [vmem:[#allocation77_spill] sm:$0xff] %v15192_v3  ;;  %7417 = vmatprep.subr.mxu1 %v15197_v57  ;;  %v15209_v29 = vld [vmem:[%s16267_s7 + $0x10] sm:$0xff]  ;;  %7317 = vmatpush1.msra.mxu0 %v15204_v42  ;;  %v15216_v3 = vld [vmem:[%s16267_s7 + $0x108] sm:$0xff] }
 0x49c   : > { %16561 = vst [vmem:[#allocation78_spill] sm:$0xff] %v15197_v57  ;;  %16562 = vst [vmem:[#allocation79_spill] sm:$0xff] %v15204_v42  ;;  %7418 = vmatpush1.msra.mxu1 %v15209_v29  ;;  %v15221_v57 = vld [vmem:[%s16267_s7 + $0x8] sm:$0xff]  ;;  %7318 = vmatprep.subr.mxu0 %v15216_v3  ;;  %v15228_v42 = vld [vmem:[%s16267_s7 + $0x100] sm:$0xff] }
 0x49d   : > { %16563 = vst [vmem:[#allocation80_spill] sm:$0xff] %v15209_v29  ;;  %16564 = vst [vmem:[#allocation81_spill] sm:$0xff] %v15216_v3  ;;  %7419 = vmatprep.subr.mxu1 %v15221_v57  ;;  %v15233_v29 = vld [vmem:[%s16267_s7] sm:$0xff]  ;;  %7319 = vmatpush1.msra.mxu0 %v15228_v42 }
 0x49e   : > { %16565 = vst [vmem:[#allocation82_spill] sm:$0xff] %v15221_v57  ;;  %16566 = vst [vmem:[#allocation83_spill] sm:$0xff] %v15228_v42  ;;  %7420 = vmatpush1.msra.mxu1 %v15233_v29  ;;  %7352 = vmatprep.mubr.f32.mxu0 %v16333_v33 }
 0x49f   : > { %16567 = vst [vmem:[#allocation84_spill] sm:$0xff] %v15233_v29  ;;  %7197 = vst [vmem:[#allocation5 + $0x10] sm:$0xff] %v16333_v33  ;;  %7453 = vmatprep.mubr.f32.mxu1 %v16333_v33  ;;  %7502 = vmatprep.subr.mxu0 %v14838_v56 }
 0x4a0   : > { %7198 = vst [vmem:[#allocation5 + $0x40] sm:$0xff] %v16333_v33  ;;  %7603 = vmatprep.subr.mxu1 %v14843_v27 }
 0x4a1   : > { %v11631_v57 = vpop.f32.mrf.mxu0  ;;  %v11681_v3 = vpop.f32.mrf.mxu1 }
 0x4a3   : > { %v6211_v49 = vpop.f32.mrf.mxu0  ;;  %v6372_v36 = vpop.f32.mrf.mxu1 }
 0x4a7   : > { %v11634_v42 = vpop.f32.mrf.mxu0  ;;  %v11684_v55 = vpop.f32.mrf.mxu1 }
 0x4a9   : > { %v6221_v29 = vpop.f32.mrf.mxu0  ;;  %v6382_v35 = vpop.f32.mrf.mxu1 }
 0x4ad   : > { %v11637_v16 = vpop.f32.mrf.mxu0  ;;  %v11687_v26 = vpop.f32.mrf.mxu1 }
 0x4af   : > { %v6231_v54 = vpop.f32.mrf.mxu0  ;;  %v6392_v21 = vpop.f32.mrf.mxu1 }
 0x4b3   : > { %v11640_v4 = vpop.f32.mrf.mxu0  ;;  %v11690_v38 = vpop.f32.mrf.mxu1 }
 0x4b5   : > { %v6241_v25 = vpop.f32.mrf.mxu0  ;;  %v6402_v33 = vpop.f32.mrf.mxu1 }
 0x4b9   : > { %v11643_v52 = vpop.f32.mrf.mxu0  ;;  %v11693_v56 = vpop.f32.mrf.mxu1 }
 0x4bb   : > { %v6251_v24 = vpop.f32.mrf.mxu0  ;;  %v6412_v27 = vpop.f32.mrf.mxu1 }
 0x4bf   : > { %v11646_v15 = vpop.f32.mrf.mxu0  ;;  %v11696_v48 = vpop.f32.mrf.mxu1 }
 0x4c1   : > { %v6261_v2 = vpop.f32.mrf.mxu0  ;;  %v15243_v8 = vpop.f32.mrf.mxu1 }
 0x4c2   : > { %16568 = vst [vmem:[#allocation85_spill] sm:$0xff] %v15243_v8 }
 0x4cd   : > { %v11731_v40 = vpop.f32.mrf.mxu0  ;;  %v11781_v61 = vpop.f32.mrf.mxu1 }
 0x4cf   : > { %v6526_v18 = vpop.f32.mrf.mxu0  ;;  %v6687_v59 = vpop.f32.mrf.mxu1 }
 0x4d3   : > { %v11734_v47 = vpop.f32.mrf.mxu0  ;;  %v11784_v12 = vpop.f32.mrf.mxu1 }
 0x4d5   : > { %v6536_v6 = vpop.f32.mrf.mxu0  ;;  %v6697_v0 = vpop.f32.mrf.mxu1 }
 0x4d9   : > { %v11737_v63 = vpop.f32.mrf.mxu0  ;;  %v15245_v17 = vpop.f32.mrf.mxu1 }
 0x4db   : > { %v15247_v11 = vpop.f32.mrf.mxu0  ;;  %v15249_v30 = vpop.f32.mrf.mxu1 }
 0x4dc   : > { %16569 = vst [vmem:[#allocation86_spill] sm:$0xff] %v15247_v11  ;;  %16570 = vst [vmem:[#allocation87_spill] sm:$0xff] %v15249_v30  ;;  %v5796_v11 = vadd.f32 %v14631_v31, %v14626_v53  ;;  %v6431_v53 = vadd.f32 %v6372_v36, %v14831_v39  ;;  %v6273_v31 = vadd.f32 %v11634_v42, %v14637_v10 }
 0x4df   : > { %v15251_v13 = vpop.f32.mrf.mxu0  ;;  %v15253_v62 = vpop.f32.mrf.mxu1 }
 0x4e0   : > { %16571 = vst [vmem:[#allocation88_spill] sm:$0xff] %v15251_v13  ;;  %16572 = vst [vmem:[#allocation89_spill] sm:$0xff] %v15253_v62  ;;  %v5806_v13 = vadd.f32 %v14643_v50, %v14639_v22  ;;  %v6434_v22 = vadd.f32 %v11684_v55, %v14833_v9  ;;  %v6437_v9 = vadd.f32 %v6402_v33, %v14997_v58 }
 0x4e1   : > { %v15255_v8 = vpop.f32.mrf.mxu0  ;;  %v15257_v60 = vpop.f32.mrf.mxu1 }
 0x4e2   : > { %16573 = vst [vmem:[#allocation90_spill] sm:$0xff] %v15257_v60  ;;  %v5816_v60 = vadd.f32 %v14813_v23, %v14811_v14  ;;  %v6272_v50 = vadd.f32 %v6221_v29, %v5806_v13  ;;  %v6436_v14 = vadd.f32 %v11687_v26, %v14895_v19  ;;  %v16587_v29 = vld [vmem:[#allocation85_spill] sm:$0xff] }
 0x4e4   : > { %v6274_v23 = vadd.f32 %v6231_v54, %v5816_v60  ;;  %v16581_v54 = vld [vmem:[#allocation35_spill] sm:$0xff] }
 0x4e5   : > { %v15259_v44 = vpop.f32.mrf.mxu0  ;;  %v15261_v20 = vpop.f32.mrf.mxu1  ;;  %v6278_v26 = vadd.f32 %v6251_v24, %v16581_v54  ;;  %v15313_v24 = vld [vmem:[%s16266_s6] ss:$0 sm:$0xff] }
 0x4e6   : > { %16574 = vst [vmem:[#allocation91_spill] sm:$0xff] %v15259_v44  ;;  %16575 = vst [vmem:[#allocation92_spill] sm:$0xff] %v15261_v20  ;;  %v5826_v20 = vadd.f32 %v14819_v46, %v14817_v5  ;;  %v6270_v44 = vadd.f32 %v6211_v49, %v5796_v11  ;;  %v6435_v5 = vadd.f32 %v6392_v21, %v14921_v34  ;;  %v16582_v34 = vld [vmem:[#allocation56_spill] sm:$0xff] }
 0x4e7   : > { %v15263_v43 = vpop.f32.mrf.mxu0  ;;  %v15265_v51 = vpop.f32.mrf.mxu1  ;;  %v6438_v46 = vadd.f32 %v11690_v38, %v14971_v7  ;;  %v15299_v21 = vadd.f32 %v6412_v27, %v16582_v34 }
 0x4e8   : > { %16576 = vst [vmem:[#allocation93_spill] sm:$0xff] %v15263_v43  ;;  %16577 = vst [vmem:[#allocation94_spill] sm:$0xff] %v15265_v51  ;;  %v6271_v43 = vadd.f32 %v11631_v57, %v14624_v1  ;;  %v6432_v51 = vadd.f32 %v11681_v3, %v14829_v32  ;;  %v6277_v1 = vadd.f32 %v11640_v4, %v14815_v28 }
 0x4e9   : > { %v6276_v10 = vadd.f32 %v6241_v25, %v5826_v20  ;;  %v6585_v7 = vadd.f32 %v6526_v18, %v6270_v44  ;;  %v6746_v4 = vadd.f32 %v6687_v59, %v6431_v53  ;;  %v16583_v25 = vld [vmem:[#allocation50_spill] sm:$0xff]  ;;  %v6749_v59 = vadd.f32 %v11784_v12, %v6434_v22  ;;  %v16589_v53 = vld [vmem:[#allocation87_spill] sm:$0xff]  ;;  %v16590_v22 = vld [vmem:[#allocation88_spill] sm:$0xff] }
 0x4ea   : > { %v6586_v11 = vadd.f32 %v11731_v40, %v6271_v43  ;;  %v15302_v60 = vadd.f32 %v11646_v15, %v16583_v25  ;;  %v16584_v43 = vld [vmem:[#allocation65_spill] sm:$0xff]  ;;  %v16586_v15 = vld [vmem:[#allocation70_spill] sm:$0xff]  ;;  %v6751_v12 = vadd.f32 %v15245_v17, %v6436_v14 }
 0x4eb   : > { %v15271_v30 = vpop.f32.mrf.mxu0  ;;  %v15273_v62 = vpop.f32.mrf.mxu1  ;;  %v15317_v42 = vadd.f32 %v16587_v29, %v16586_v15  ;;  %v16592_v54 = vld [vmem:[#allocation90_spill] sm:$0xff] }
 0x4ec   : > { %16578 = vst [vmem:[#allocation95_spill] sm:$0xff] %v15271_v30  ;;  %16579 = vst [vmem:[#allocation96_spill] sm:$0xff] %v15273_v62  ;;  %v6433_v62 = vadd.f32 %v6382_v35, %v14847_v41  ;;  %v6275_v30 = vadd.f32 %v11637_v16, %v14645_v45  ;;  %v6747_v41 = vadd.f32 %v11781_v61, %v6432_v51  ;;  %v16580_v16 = vld [vmem:[#allocation16_spill] sm:$0xff] }
 0x4ed   : > { %v15290_v32 = vpop.f32.mrf.mxu0  ;;  %v15292_v39 = vpop.f32.mrf.mxu1  ;;  %v6279_v45 = vadd.f32 %v11643_v52, %v14821_v37  ;;  %v6440_v19 = vadd.f32 %v11693_v56, %v16580_v16  ;;  %v15305_v61 = vadd.f32 %v11696_v48, %v16584_v43  ;;  %v16585_v37 = vld [vmem:[#allocation51_spill] sm:$0xff]  ;;  %v6588_v52 = vadd.f32 %v11734_v47, %v6273_v31  ;;  %v16588_v56 = vld [vmem:[#allocation86_spill] sm:$0xff] }
 0x4ee   : > { %v15308_v40 = vadd.f32 %v6261_v2, %v16585_v37  ;;  %v6587_v48 = vadd.f32 %v6536_v6, %v6272_v50  ;;  %v6748_v13 = vadd.f32 %v6697_v0, %v6433_v62  ;;  %v6590_v2 = vadd.f32 %v11737_v63, %v6275_v30  ;;  %v16591_v62 = vld [vmem:[#allocation89_spill] sm:$0xff] }
 0x4ef   : > { %v6589_v27 = vadd.f32 %v16588_v56, %v6274_v23  ;;  %v6750_v31 = vadd.f32 %v16589_v53, %v6435_v5  ;;  %v6753_v30 = vadd.f32 %v16591_v62, %v6438_v46  ;;  %v6591_v16 = vadd.f32 %v15255_v8, %v6276_v10 }
 0x4f0   : > { %v6752_v17 = vadd.f32 %v16592_v54, %v6437_v9  ;;  %v16595_v9 = vld [vmem:[#allocation93_spill] sm:$0xff] }
 0x4f1   : > { %v6593_v37 = vadd.f32 %v16595_v9, %v6278_v26 }
 0x4f3   : > { %v16597_v56 = vld [vmem:[#allocation95_spill] sm:$0xff] }
 0x4f9   : > { %v11831_v28 = vpop.f32.mrf.mxu0  ;;  %v11881_v38 = vpop.f32.mrf.mxu1 }
 0x4fa   : > { %v6901_v35 = vadd.f32 %v11831_v28, %v6586_v11  ;;  %v7062_v55 = vadd.f32 %v11881_v38, %v6747_v41  ;;  %v6592_v11 = vadd.f32 %v16590_v22, %v6277_v1  ;;  %v16593_v28 = vld [vmem:[#allocation91_spill] sm:$0xff] }
 0x4fb   : > { %v6841_v58 = vpop.f32.mrf.mxu0  ;;  %v7002_v44 = vpop.f32.mrf.mxu1  ;;  %v6594_v1 = vadd.f32 %v16593_v28, %v6279_v45 }
 0x4fc   : > { %v7074_v18 = vmax.f32 %v6901_v35, %v7062_v55  ;;  %v6900_v20 = vadd.f32 %v6841_v58, %v6585_v7  ;;  %v7061_v51 = vadd.f32 %v7002_v44, %v6746_v4  ;;  %v16594_v4 = vld [vmem:[#allocation92_spill] sm:$0xff] }
 0x4fd   : > { %v11834_v36 = vpop.f32.mrf.mxu0  ;;  %v11884_v47 = vpop.f32.mrf.mxu1  ;;  %v6755_v35 = vadd.f32 %v16594_v4, %v6440_v19  ;;  %v6756_v4 = vadd.f32 %v15292_v39, %v15317_v42 }
 0x4fe   : > { %v15320_v49 = vadd.f32 %v15313_v24, %v7074_v18  ;;  %v7073_v33 = vmax.f32 %v6900_v20, %v7061_v51  ;;  %v6903_v3 = vadd.f32 %v11834_v36, %v6588_v52  ;;  %v7064_v57 = vadd.f32 %v11884_v47, %v6749_v59 }
 0x4ff   : > { %v6851_v41 = vpop.f32.mrf.mxu0  ;;  %v7012_v6 = vpop.f32.mrf.mxu1 }
 0x500   : > { %v7116_v63 = vmin.f32 %v15320_v49, 0.0  ;;  %v15329_v0 = vadd.f32 %v15313_v24, %v7073_v33  ;;  %v7076_v50 = vmax.f32 %v6903_v3, %v7064_v57  ;;  %v6902_v14 = vadd.f32 %v6851_v41, %v6587_v48  ;;  %v16596_v48 = vld [vmem:[#allocation94_spill] sm:$0xff] }
 0x501   : > { %v7063_v23 = vadd.f32 %v7012_v6, %v6748_v13  ;;  %v11837_v34 = vpop.f32.mrf.mxu0  ;;  %v11887_v5 = vpop.f32.mrf.mxu1  ;;  %v6754_v13 = vadd.f32 %v16596_v48, %v15299_v21  ;;  %vm7104_vm8 = vcmp.gt.f32.partialorder %v15320_v49, 0.0 }
 0x502   : > { %v7129_v38 = vmul.f32 1.442695, %v7116_v63  ;;  %v7115_v7 = vmin.f32 %v15329_v0, 0.0  ;;  %v15336_v46 = vadd.f32 %v15313_v24, %v7076_v50  ;;  %v6905_v25 = vadd.f32 %v11837_v34, %v6590_v2  ;;  %v16598_v63 = vld [vmem:[#allocation96_spill] sm:$0xff] }
 0x503   : > { %v7075_v55 = vmax.f32 %v6902_v14, %v7063_v23  ;;  %v7066_v43 = vadd.f32 %v11887_v5, %v6751_v12  ;;  %v6861_v8 = vpop.f32.mrf.mxu0  ;;  %v7022_v10 = vpop.f32.mrf.mxu1  ;;  %v6757_v50 = vadd.f32 %v16598_v63, %v15305_v61  ;;  %v6595_v14 = vadd.f32 %v15290_v32, %v15308_v40 }
 0x504   : > { %12109 = vpow2.f32 %v7129_v38  ;;  %v7127_v52 = vmul.f32 1.442695, %v7115_v7  ;;  %v7118_v58 = vmin.f32 %v15336_v46, 0.0  ;;  %v6904_v59 = vadd.f32 %v6861_v8, %v6589_v27 }
 0x505   : > { %v15342_v45 = vadd.f32 %v15313_v24, %v7075_v55  ;;  %v7078_v44 = vmax.f32 %v6905_v25, %v7066_v43  ;;  %v7065_v18 = vadd.f32 %v7022_v10, %v6750_v31  ;;  %v11840_v20 = vpop.f32.mrf.mxu0  ;;  %v11890_v51 = vpop.f32.mrf.mxu1  ;;  %v6596_v27 = vadd.f32 %v16597_v56, %v15302_v60 }
 0x506   : > { %12111 = vpow2.f32 %v7127_v52  ;;  %v7133_v19 = vmul.f32 1.442695, %v7118_v58  ;;  %v6907_v15 = vadd.f32 %v11840_v20, %v6592_v11  ;;  %v7068_v29 = vadd.f32 %v11890_v51, %v6753_v30 }
 0x507   : > { %v7117_v26 = vmin.f32 %v15342_v45, 0.0  ;;  %v15348_v2 = vadd.f32 %v15313_v24, %v7078_v44  ;;  %v7077_v36 = vmax.f32 %v6904_v59, %v7065_v18  ;;  %v6871_v47 = vpop.f32.mrf.mxu0  ;;  %v7032_v33 = vpop.f32.mrf.mxu1  ;;  %vm7103_vm9 = vcmp.gt.f32.partialorder %v15329_v0, 0.0 }
 0x508   : > { %12113 = vpow2.f32 %v7133_v19  ;;  %v7080_v3 = vmax.f32 %v6907_v15, %v7068_v29  ;;  %v6906_v57 = vadd.f32 %v6871_v47, %v6591_v16  ;;  %v7067_v12 = vadd.f32 %v7032_v33, %v6752_v17 }
 0x509   : > { %v7131_v53 = vmul.f32 1.442695, %v7117_v26  ;;  %v7120_v31 = vmin.f32 %v15348_v2, 0.0  ;;  %v15354_v21 = vadd.f32 %v15313_v24, %v7077_v36  ;;  %v11843_v22 = vpop.f32.mrf.mxu0  ;;  %v11893_v11 = vpop.f32.mrf.mxu1  ;;  %vm7106_vm10 = vcmp.gt.f32.partialorder %v15336_v46, 0.0 }
 0x50a   : > { %v15357_v41 = vadd.f32 %v15313_v24, %v7080_v3  ;;  %v7079_v6 = vmax.f32 %v6906_v57, %v7067_v12  ;;  %v6909_v62 = vadd.f32 %v11843_v22, %v6594_v1  ;;  %v7070_v30 = vadd.f32 %v11893_v11, %v6755_v35 }
 0x50b   : > { %12115 = vpow2.f32 %v7131_v53  ;;  %v7137_v16 = vmul.f32 1.442695, %v7120_v31  ;;  %v7119_v60 = vmin.f32 %v15354_v21, 0.0  ;;  %v6881_v54 = vpop.f32.mrf.mxu0  ;;  %v7042_v17 = vpop.f32.mrf.mxu1  ;;  %vm7105_vm11 = vcmp.gt.f32.partialorder %v15342_v45, 0.0 }
 0x50c   : > { %v7122_v23 = vmin.f32 %v15357_v41, 0.0  ;;  %v15366_v34 = vadd.f32 %v15313_v24, %v7079_v6  ;;  %v7082_v5 = vmax.f32 %v6909_v62, %v7070_v30  ;;  %v6908_v1 = vadd.f32 %v6881_v54, %v6593_v37  ;;  %v16600_v54 = vld [vmem:[#allocation48_spill] sm:$0xff] }
 0x50d   : > { %12117 = vpow2.f32 %v7137_v16  ;;  %v7135_v28 = vmul.f32 1.442695, %v7119_v60  ;;  %v7069_v38 = vadd.f32 %v7042_v17, %v6754_v13  ;;  %v11846_v61 = vpop.f32.mrf.mxu0  ;;  %v11896_v7 = vpop.f32.mrf.mxu1  ;;  %vm7108_vm12 = vcmp.gt.f32.partialorder %v15348_v2, 0.0  ;;  %v16599_v60 = vld [vmem:[#allocation47_spill] sm:$0xff] }
 0x50e   : > { %v7141_v35 = vmul.f32 1.442695, %v7122_v23  ;;  %v7121_v55 = vmin.f32 %v15366_v34, 0.0  ;;  %v15372_v32 = vadd.f32 %v15313_v24, %v7082_v5  ;;  %v6911_v25 = vadd.f32 %v11846_v61, %v6596_v27 }
 0x50f   : > { %12119 = vpow2.f32 %v7135_v28  ;;  %v7081_v40 = vmax.f32 %v6908_v1, %v7069_v38  ;;  %v7072_v43 = vadd.f32 %v11896_v7, %v6757_v50  ;;  %v6891_v8 = vpop.f32.mrf.mxu0  ;;  %v7052_v10 = vpop.f32.mrf.mxu1  ;;  %vm7107_vm13 = vcmp.gt.f32.partialorder %v15354_v21, 0.0  ;;  %v16603_v28 = vld [vmem:[#allocation40_spill] sm:$0xff]  ;;  %v16604_v1 = vld [vmem:[#allocation25_spill] sm:$0xff] }
 0x510   : > { %12121 = vpow2.f32 %v7141_v35  ;;  %v7139_v9 = vmul.f32 1.442695, %v7121_v55  ;;  %v7124_v37 = vmin.f32 %v15372_v32, 0.0  ;;  %v6910_v42 = vadd.f32 %v6891_v8, %v6595_v14  ;;  %v16601_v14 = vld [vmem:[#allocation49_spill] sm:$0xff] }
 0x511   : > { %v12110_v52 = vpop.eup %12109  ;;  %v15376_v58 = vadd.f32 %v15313_v24, %v7081_v40  ;;  %v7084_v39 = vmax.f32 %v6911_v25, %v7072_v43  ;;  %v7071_v44 = vadd.f32 %v7052_v10, %v6756_v4  ;;  %vm7110_vm14 = vcmp.gt.f32.partialorder %v15357_v41, 0.0  ;;  %v16606_v35 = vld [vmem:[#allocation41_spill] sm:$0xff]  ;;  %v16608_v25 = vld [vmem:[#allocation43_spill] sm:$0xff]  ;;  %v16609_v43 = vld [vmem:[#allocation24_spill] sm:$0xff] }
 0x512   : > { %v9115_v59 = vadd.f32 -1.0, %v12110_v52  ;;  %12123 = vpow2.f32 %v7139_v9  ;;  %v7145_v18 = vmul.f32 1.442695, %v7124_v37  ;;  %vm7109_vm15 = vcmp.gt.f32.partialorder %v15366_v34, 0.0  ;;  %v16611_v9 = vld [vmem:[#allocation38_spill] sm:$0xff]  ;;  %v16612_v52 = vld [vmem:[#allocation17_spill] sm:$0xff] }
 0x513   : > { %v12112_v20 = vpop.eup %12111  ;;  %v7123_v51 = vmin.f32 %v15376_v58, 0.0  ;;  %v15381_v19 = vadd.f32 %v15313_v24, %v7084_v39  ;;  %v7083_v15 = vmax.f32 %v6910_v42, %v7071_v44  ;;  %vm7112_vm0 = vcmp.gt.f32.partialorder %v15372_v32, 0.0  ;;  %v16613_v39 = vld [vmem:[#allocation29_spill] sm:$0xff] }
 0x514   : > { %v7164_v29 = vsel %vm7104_vm8, %v15320_v49, %v9115_v59  ;;  %v9114_v48 = vadd.f32 -1.0, %v12112_v20  ;;  %12125 = vpow2.f32 %v7145_v18  ;;  %vm7111_vm1 = vcmp.gt.f32.partialorder %v15376_v58, 0.0  ;;  %v16615_v20 = vld [vmem:[#allocation30_spill] sm:$0xff] }
 0x515   : > { %v12114_v13 = vpop.eup %12113  ;;  %7176 = vst [vmem:[#allocation4 + $0x8] sm:$0xff] %v7164_v29  ;;  %v7143_v26 = vmul.f32 1.442695, %v7123_v51  ;;  %v7126_v36 = vmin.f32 %v15381_v19, 0.0  ;;  %v15387_v47 = vadd.f32 %v15313_v24, %v7083_v15  ;;  %vm7114_vm2 = vcmp.gt.f32.partialorder %v15381_v19, 0.0  ;;  %v16616_v15 = vld [vmem:[#allocation20_spill] sm:$0xff] }
 0x516   : > { %v7163_v33 = vsel %vm7103_vm9, %v15329_v0, %v9114_v48  ;;  %v9117_v3 = vadd.f32 -1.0, %v12114_v13  ;;  %v16618_v29 = vld [vmem:[#allocation44_spill] sm:$0xff]  ;;  %v16619_v48 = vld [vmem:[#allocation45_spill] sm:$0xff]  ;;  %v16620_v13 = vld [vmem:[#allocation31_spill] sm:$0xff] }
 0x517   : > { %7175 = vst [vmem:[#allocation4] sm:$0xff] %v7163_v33  ;;  %12127 = vpow2.f32 %v7143_v26  ;;  %v7149_v49 = vmul.f32 1.442695, %v7126_v36  ;;  %v7125_v57 = vmin.f32 %v15387_v47, 0.0  ;;  %vm7113_vm3 = vcmp.gt.f32.partialorder %v15387_v47, 0.0  ;;  %v16621_v26 = vld [vmem:[#allocation18_spill] sm:$0xff] }
 0x518   : > { %v12116_v12 = vpop.eup %12115  ;;  %v7166_v56 = vsel %vm7106_vm10, %v15336_v46, %v9117_v3  ;;  %v16623_v3 = vld [vmem:[#allocation21_spill] sm:$0xff] }
 0x519   : > { %7178 = vst [vmem:[#allocation4 + $0x18] sm:$0xff] %v7166_v56  ;;  %v9116_v27 = vadd.f32 -1.0, %v12116_v12  ;;  %12129 = vpow2.f32 %v7149_v49  ;;  %v7147_v53 = vmul.f32 1.442695, %v7125_v57  ;;  %v16624_v49 = vld [vmem:[#allocation33_spill] sm:$0xff]  ;;  %v16625_v57 = vld [vmem:[#allocation46_spill] sm:$0xff] }
 0x51a   : > { %v12118_v31 = vpop.eup %12117  ;;  %v16626_v12 = vld [vmem:[#allocation34_spill] sm:$0xff]  ;;  %v16627_v56 = vld [vmem:[#allocation36_spill] sm:$0xff] }
 0x51b   : > { %v7165_v24 = vsel %vm7105_vm11, %v15342_v45, %v9116_v27  ;;  %v9119_v0 = vadd.f32 -1.0, %v12118_v31  ;;  %12131 = vpow2.f32 %v7147_v53  ;;  %v16628_v27 = vld [vmem:[#allocation22_spill] sm:$0xff] }
 0x51c   : > { %v12120_v22 = vpop.eup %12119  ;;  %7177 = vst [vmem:[#allocation4 + $0x10] sm:$0xff] %v7165_v24  ;;  %v16629_v53 = vld [vmem:[#allocation26_spill] sm:$0xff] }
 0x51d   : > { %v12122_v11 = vpop.eup %12121  ;;  %v7168_v6 = vsel %vm7108_vm12, %v15348_v2, %v9119_v0  ;;  %v9118_v62 = vadd.f32 -1.0, %v12120_v22  ;;  %v16630_v0 = vld [vmem:[#allocation23_spill] sm:$0xff]  ;;  %v16631_v22 = vld [vmem:[#allocation37_spill] sm:$0xff] }
 0x51e   : > { %7180 = vst [vmem:[#allocation4 + $0x28] sm:$0xff] %v7168_v6  ;;  %v9121_v46 = vadd.f32 -1.0, %v12122_v11  ;;  %v15398_v30 = vld [vmem:[#allocation4 + $0x1] ss:$2 sm:$0xff]  ;;  %v7232_v63 = vld [vmem:[#allocation4] ss:$2 sm:$0xff] }
 0x51f   : > { %v12124_v50 = vpop.eup %12123  ;;  %v7167_v45 = vsel %vm7107_vm13, %v15354_v21, %v9118_v62  ;;  %7353 = vmatmul.mubr.f32.vlgmr.msra.gmra.mxu0 %v15398_v30  ;;  %7454 = vmatmul.mubr.f32.vlgmr.msra.gmra.mxu1 %v7232_v63  ;;  %v16602_v21 = vld [vmem:[#allocation52_spill] sm:$0xff]  ;;  %v16632_v11 = vld [vmem:[#allocation19_spill] sm:$0xff]  ;;  %v16633_v6 = vld [vmem:[#allocation53_spill] sm:$0xff] }
 0x520   : > { %7179 = vst [vmem:[#allocation4 + $0x20] sm:$0xff] %v7167_v45  ;;  %v7170_v16 = vsel %vm7110_vm14, %v15357_v41, %v9121_v46  ;;  %v9120_v2 = vadd.f32 -1.0, %v12124_v50  ;;  %7503 = vmatpush1.msra.mxu0 %v16599_v60  ;;  %7604 = vmatpush1.msra.mxu1 %v16600_v54  ;;  %v16605_v41 = vmov 0.0   ;;  %v16634_v62 = vld [vmem:[#allocation54_spill] sm:$0xff]  ;;  %v16635_v46 = vld [vmem:[#allocation55_spill] sm:$0xff]  ;;  %v16636_v63 = vld [vmem:[#allocation57_spill] sm:$0xff] }
 0x521   : > { %v12126_v17 = vpop.eup %12125  ;;  %7182 = vst [vmem:[#allocation4 + $0x38] sm:$0xff] %v7170_v16  ;;  %7504 = vmatprep.subr.mxu0 %v16601_v14  ;;  %7605 = vmatprep.subr.mxu1 %v16602_v21  ;;  %v16637_v50 = vld [vmem:[#allocation58_spill] sm:$0xff]  ;;  %v16639_v60 = vld [vmem:[#allocation60_spill] sm:$0xff]  ;;  %v16640_v54 = vld [vmem:[#allocation61_spill] sm:$0xff] }
 0x522   : > { %v7169_v23 = vsel %vm7109_vm15, %v15366_v34, %v9120_v2  ;;  %v9123_v5 = vadd.f32 -1.0, %v12126_v17  ;;  %7505 = vmatpush1.msra.mxu0 %v16603_v28  ;;  %7606 = vmatpush1.msra.mxu1 %v16604_v1  ;;  %v16607_v34 = vld [vmem:[#allocation39_spill] sm:$0xff]  ;;  %v16641_v17 = vld [vmem:[#allocation62_spill] sm:$0xff]  ;;  %v16643_v21 = vld [vmem:[#allocation64_spill] sm:$0xff] }
 0x523   : > { %7181 = vst [vmem:[#allocation4 + $0x30] sm:$0xff] %v7169_v23  ;;  %7358 = vmatprep.mubr.f32.mxu0 %v16605_v41  ;;  %7459 = vmatprep.mubr.f32.mxu1 %v16605_v41  ;;  %v15415_v38 = vld [vmem:[#allocation4 + $0x11] ss:$2 sm:$0xff]  ;;  %v7234_v61 = vld [vmem:[#allocation4 + $0x10] ss:$2 sm:$0xff]  ;;  %v16646_v28 = vld [vmem:[#allocation68_spill] sm:$0xff] }
 0x524   : > { %v12128_v7 = vpop.eup %12127  ;;  %v7172_v4 = vsel %vm7112_vm0, %v15372_v32, %v9123_v5  ;;  %7506 = vmatprep.subr.mxu0 %v16606_v35  ;;  %7607 = vmatprep.subr.mxu1 %v16607_v34  ;;  %v16610_v32 = vld [vmem:[#allocation27_spill] sm:$0xff]  ;;  %v16644_v23 = vld [vmem:[#allocation66_spill] sm:$0xff]  ;;  %v16647_v1 = vld [vmem:[#allocation69_spill] sm:$0xff] }
 0x525   : > { %7184 = vst [vmem:[#allocation4 + $0x48] sm:$0xff] %v7172_v4  ;;  %v9122_v55 = vadd.f32 -1.0, %v12128_v7  ;;  %7359 = vmatmul.mubr.f32.gmra.mxu0 %v15415_v38  ;;  %7460 = vmatmul.mubr.f32.gmra.mxu1 %v7234_v61  ;;  %v16638_v2 = vld [vmem:[#allocation59_spill] sm:$0xff]  ;;  %v16649_v7 = vld [vmem:[#allocation72_spill] sm:$0xff]  ;;  %v16650_v4 = vld [vmem:[#allocation73_spill] sm:$0xff] }
 0x526   : > { %v12130_v40 = vpop.eup %12129  ;;  %7507 = vmatpush1.msra.mxu0 %v16608_v25  ;;  %7608 = vmatpush1.msra.mxu1 %v16609_v43  ;;  %v16642_v14 = vld [vmem:[#allocation63_spill] sm:$0xff]  ;;  %v16651_v35 = vld [vmem:[#allocation74_spill] sm:$0xff] }
 0x527   : > { %v7171_v8 = vsel %vm7111_vm1, %v15376_v58, %v9122_v55  ;;  %v9125_v10 = vadd.f32 -1.0, %v12130_v40  ;;  %7508 = vmatprep.subr.mxu0 %v16610_v32  ;;  %7609 = vmatprep.subr.mxu1 %v16611_v9  ;;  %v15430_v42 = vld [vmem:[#allocation4 + $0x21] ss:$2 sm:$0xff]  ;;  %v7236_v44 = vld [vmem:[#allocation4 + $0x20] ss:$2 sm:$0xff]  ;;  %v16655_v25 = vld [vmem:[#allocation78_spill] sm:$0xff] }
 0x528   : > { %v12132_v37 = vpop.eup %12131  ;;  %7183 = vst [vmem:[#allocation4 + $0x40] sm:$0xff] %v7171_v8  ;;  %7509 = vmatpush1.msra.mxu0 %v16612_v52  ;;  %7610 = vmatpush1.msra.mxu1 %v16613_v39  ;;  %v16614_v58 = vld [vmem:[#allocation28_spill] sm:$0xff]  ;;  %v16645_v5 = vld [vmem:[#allocation67_spill] sm:$0xff]  ;;  %v16654_v40 = vld [vmem:[#allocation77_spill] sm:$0xff] }
 0x529   : > { %v7174_v59 = vsel %vm7114_vm2, %v15381_v19, %v9125_v10  ;;  %v9124_v18 = vadd.f32 -1.0, %v12132_v37  ;;  %7364 = vmatprep.mubr.f32.mxu0 %v16605_v41  ;;  %7465 = vmatprep.mubr.f32.mxu1 %v16605_v41  ;;  %v16617_v19 = vld [vmem:[#allocation42_spill] sm:$0xff]  ;;  %v16648_v61 = vld [vmem:[#allocation71_spill] sm:$0xff]  ;;  %v16653_v55 = vld [vmem:[#allocation76_spill] sm:$0xff] }
 0x52a   : > { %7186 = vst [vmem:[#allocation4 + $0x58] sm:$0x3] %v7174_v59  ;;  %7510 = vmatprep.subr.mxu0 %v16614_v58  ;;  %7611 = vmatprep.subr.mxu1 %v16615_v20  ;;  %v15446_v36 = vld [vmem:[#allocation4 + $0x31] ss:$2 sm:$0xff]  ;;  %v7238_v33 = vld [vmem:[#allocation4 + $0x30] ss:$2 sm:$0xff] }
 0x52b   : > { %v7173_v51 = vsel %vm7113_vm3, %v15387_v47, %v9124_v18  ;;  %7365 = vmatmul.mubr.f32.gmra.mxu0 %v15430_v42  ;;  %7466 = vmatmul.mubr.f32.gmra.mxu1 %v7236_v44  ;;  %v16622_v47 = vld [vmem:[#allocation32_spill] sm:$0xff]  ;;  %v16652_v34 = vld [vmem:[#allocation75_spill] sm:$0xff]  ;;  %v16658_v10 = vld [vmem:[#allocation81_spill] sm:$0xff] }
 0x52c   : > { %7185 = vst [vmem:[#allocation4 + $0x50] sm:$0xff] %v7173_v51  ;;  %7511 = vmatpush1.msra.mxu0 %v16616_v15  ;;  %7612 = vmatpush1.msra.mxu1 %v16617_v19  ;;  %v16656_v43 = vld [vmem:[#allocation79_spill] sm:$0xff]  ;;  %v16657_v8 = vld [vmem:[#allocation80_spill] sm:$0xff]  ;;  %v16659_v32 = vld [vmem:[#allocation82_spill] sm:$0xff] }
 0x52d   : > { %7512 = vmatprep.subr.mxu0 %v16618_v29  ;;  %7613 = vmatprep.subr.mxu1 %v16619_v48  ;;  %v16660_v9 = vld [vmem:[#allocation83_spill] sm:$0xff]  ;;  %v16661_v52 = vld [vmem:[#allocation84_spill] sm:$0xff]  ;;  %v9188_v44 = vld [vmem:[%s16267_s7 + $0x2f0] sm:$0xff] }
 0x52e   : > { %7513 = vmatpush1.msra.mxu0 %v16620_v13  ;;  %7614 = vmatpush1.msra.mxu1 %v16621_v26  ;;  %v9189_v37 = vld [vmem:[%s16267_s7 + $0x2f8] sm:$0xff]  ;;  %v15506_v39 = vld [vmem:[#allocation4 + $0x2] ss:$2 sm:$0xff] }
 0x52f   : > { %7370 = vmatprep.mubr.f32.mxu0 %v16605_v41  ;;  %7471 = vmatprep.mubr.f32.mxu1 %v16605_v41  ;;  %v15459_v31 = vld [vmem:[#allocation4 + $0x41] ss:$2 sm:$0xff]  ;;  %v7240_v24 = vld [vmem:[#allocation4 + $0x40] ss:$2 sm:$0xff]  ;;  %v9184_v20 = vld [vmem:[%s16267_s7 + $0x2d0] sm:$0xff] }
 0x530   : > { %7514 = vmatprep.subr.mxu0 %v16622_v47  ;;  %7615 = vmatprep.subr.mxu1 %v16623_v3  ;;  %v9187_v59 = vld [vmem:[%s16267_s7 + $0x2e8] sm:$0xff]  ;;  %v9186_v18 = vld [vmem:[%s16267_s7 + $0x2e0] sm:$0xff]  ;;  %v9180_v29 = vld [vmem:[%s16267_s7 + $0x2b0] sm:$0xff] }
 0x531   : > { %7371 = vmatmul.mubr.f32.gmra.mxu0 %v15446_v36  ;;  %7472 = vmatmul.mubr.f32.gmra.mxu1 %v7238_v33  ;;  %v15524_v58 = vld [vmem:[#allocation4 + $0x12] ss:$2 sm:$0xff]  ;;  %v9183_v51 = vld [vmem:[%s16267_s7 + $0x2c8] sm:$0xff] }
 0x532   : > { %7515 = vmatpush1.msra.mxu0 %v16624_v49  ;;  %7616 = vmatpush1.msra.mxu1 %v16625_v57  ;;  %v9182_v15 = vld [vmem:[%s16267_s7 + $0x2c0] sm:$0xff]  ;;  %v9179_v48 = vld [vmem:[%s16267_s7 + $0x2a8] sm:$0xff]  ;;  %v9176_v33 = vld [vmem:[%s16267_s7 + $0x290] sm:$0xff] }
 0x533   : > { %7516 = vmatprep.subr.mxu0 %v16626_v12  ;;  %7617 = vmatprep.subr.mxu1 %v16627_v56  ;;  %v15472_v45 = vld [vmem:[#allocation4 + $0x51] ss:$2 sm:$0x7]  ;;  %v7242_v16 = vld [vmem:[#allocation4 + $0x50] ss:$2 sm:$0x7] }
 0x534   : > { %7517 = vmatpush1.msra.mxu0 %v16628_v27  ;;  %7618 = vmatpush1.msra.mxu1 %v16629_v53  ;;  %v15542_v19 = vld [vmem:[#allocation4 + $0x22] ss:$2 sm:$0xff]  ;;  %v15560_v26 = vld [vmem:[#allocation4 + $0x32] ss:$2 sm:$0xff] }
 0x535   : > { %7376 = vmatprep.mubr.f32.mxu0 %v16605_v41  ;;  %7477 = vmatprep.mubr.f32.mxu1 %v16605_v41  ;;  %v9178_v13 = vld [vmem:[%s16267_s7 + $0x2a0] sm:$0xff]  ;;  %v9175_v47 = vld [vmem:[%s16267_s7 + $0x288] sm:$0xff]  ;;  %v9172_v57 = vld [vmem:[%s16267_s7 + $0x270] sm:$0xff] }
 0x536   : > { %7518 = vmatprep.subr.mxu0 %v16630_v0  ;;  %7619 = vmatprep.subr.mxu1 %v16631_v22  ;;  %v9174_v3 = vld [vmem:[%s16267_s7 + $0x280] sm:$0xff]  ;;  %v9171_v12 = vld [vmem:[%s16267_s7 + $0x268] sm:$0xff]  ;;  %v9169_v27 = vld [vmem:[%s16267_s7 + $0x258] sm:$0xff] }
 0x537   : > { %7377 = vmatmul.mubr.f32.gmra.mxu0 %v15459_v31  ;;  %7478 = vmatmul.mubr.f32.gmra.mxu1 %v7240_v24  ;;  %v15578_v49 = vld [vmem:[#allocation4 + $0x42] ss:$2 sm:$0xff]  ;;  %v15596_v53 = vld [vmem:[#allocation4 + $0x52] ss:$2 sm:$0x7]  ;;  %v9165_v22 = vld [vmem:[%s16267_s7 + $0x238] sm:$0xff] }
 0x538   : > { %7519 = vmatpush1.msra.mxu0 %v16632_v11  ;;  %7620 = vmatpush1.msra.mxu1 %v16633_v6  ;;  %v9170_v56 = vld [vmem:[%s16267_s7 + $0x260] sm:$0xff]  ;;  %v9167_v24 = vld [vmem:[%s16267_s7 + $0x248] sm:$0xff]  ;;  %v9164_v11 = vld [vmem:[%s16267_s7 + $0x230] sm:$0xff] }
 0x539   : > { %7520 = vmatprep.subr.mxu0 %v16634_v62  ;;  %7621 = vmatprep.subr.mxu1 %v16635_v46  ;;  %v9166_v0 = vld [vmem:[%s16267_s7 + $0x240] sm:$0xff]  ;;  %v9163_v6 = vld [vmem:[%s16267_s7 + $0x228] sm:$0xff]  ;;  %v9161_v46 = vld [vmem:[%s16267_s7 + $0x218] sm:$0xff] }
 0x53a   : > { %7521 = vmatpush1.msra.mxu0 %v16636_v63  ;;  %7622 = vmatpush1.msra.mxu1 %v16637_v50  ;;  %v9162_v62 = vld [vmem:[%s16267_s7 + $0x220] sm:$0xff]  ;;  %v9160_v63 = vld [vmem:[%s16267_s7 + $0x210] sm:$0xff]  ;;  %v9159_v50 = vld [vmem:[%s16267_s7 + $0x208] sm:$0xff] }
 0x53b   : > { %7382 = vmatprep.mubr.f32.mxu0 %v16605_v41  ;;  %7483 = vmatprep.mubr.f32.mxu1 %v16605_v41 }
 0x53c   : > { %7522 = vmatprep.subr.mxu0 %v16638_v2  ;;  %7623 = vmatprep.subr.mxu1 %v16639_v60  ;;  %v15638_v2 = vld [vmem:[#allocation4 + $0x3] ss:$2 sm:$0xff] }
 0x53d   : > { %7383 = vmatmul.mubr.f32.gmra.mxu0 %v15472_v45  ;;  %7484 = vmatmul.mubr.f32.gmra.mxu1 %v7242_v16  ;;  %v9221_v16 = vld [vmem:[%s16267_s7 + $0x3f8] sm:$0xff]  ;;  %v9220_v60 = vld [vmem:[%s16267_s7 + $0x3f0] sm:$0xff] }
 0x53e   : > { %7523 = vmatpush1.msra.mxu0 %v16640_v54  ;;  %7624 = vmatpush1.msra.mxu1 %v16641_v17  ;;  %v9219_v54 = vld [vmem:[%s16267_s7 + $0x3e8] sm:$0xff]  ;;  %v9218_v17 = vld [vmem:[%s16267_s7 + $0x3e0] sm:$0xff] }
 0x53f   : > { %7524 = vmatprep.subr.mxu0 %v16642_v14  ;;  %7625 = vmatprep.subr.mxu1 %v16643_v21  ;;  %v15652_v14 = vld [vmem:[#allocation5 + $0x10] sm:$0xff]  ;;  %v9217_v21 = vld [vmem:[%s16267_s7 + $0x3d8] sm:$0xff] }
 0x540   : > { %7525 = vmatpush1.msra.mxu0 %v16644_v23  ;;  %7626 = vmatpush1.msra.mxu1 %v16645_v5  ;;  %v15658_v23 = vld [vmem:[#allocation4 + $0x13] ss:$2 sm:$0xff] }
 0x541   : > { %7526 = vmatprep.subr.mxu0 %v16646_v28  ;;  %7627 = vmatprep.subr.mxu1 %v16647_v1  ;;  %v9216_v5 = vld [vmem:[%s16267_s7 + $0x3d0] sm:$0xff]  ;;  %v9214_v28 = vld [vmem:[%s16267_s7 + $0x3c0] sm:$0xff]  ;;  %v9213_v1 = vld [vmem:[%s16267_s7 + $0x3b8] sm:$0xff] }
 0x542   : > { %7527 = vmatpush1.msra.mxu0 %v16648_v61  ;;  %7628 = vmatpush1.msra.mxu1 %v16649_v7  ;;  %v15676_v61 = vld [vmem:[#allocation4 + $0x23] ss:$2 sm:$0xff] }
 0x543   : > { %7528 = vmatprep.subr.mxu0 %v16650_v4  ;;  %7629 = vmatprep.subr.mxu1 %v16651_v35  ;;  %v9212_v7 = vld [vmem:[%s16267_s7 + $0x3b0] sm:$0xff]  ;;  %v9211_v4 = vld [vmem:[%s16267_s7 + $0x3a8] sm:$0xff]  ;;  %v9210_v35 = vld [vmem:[%s16267_s7 + $0x3a0] sm:$0xff] }
 0x544   : > { %7529 = vmatpush1.msra.mxu0 %v16652_v34  ;;  %7630 = vmatpush1.msra.mxu1 %v16653_v55  ;;  %v9209_v34 = vld [vmem:[%s16267_s7 + $0x398] sm:$0xff] }
 0x545   : > { %7530 = vmatprep.subr.mxu0 %v16654_v40  ;;  %7631 = vmatprep.subr.mxu1 %v16655_v25  ;;  %v15694_v55 = vld [vmem:[#allocation4 + $0x33] ss:$2 sm:$0xff]  ;;  %v9207_v25 = vld [vmem:[%s16267_s7 + $0x388] sm:$0xff] }
 0x546   : > { %7531 = vmatpush1.msra.mxu0 %v16656_v43  ;;  %7632 = vmatpush1.msra.mxu1 %v16657_v8  ;;  %v9208_v40 = vld [vmem:[%s16267_s7 + $0x390] sm:$0xff]  ;;  %v9206_v43 = vld [vmem:[%s16267_s7 + $0x380] sm:$0xff]  ;;  %v9205_v8 = vld [vmem:[%s16267_s7 + $0x378] sm:$0xff] }
 0x547   : > { %7532 = vmatprep.subr.mxu0 %v16658_v10  ;;  %7633 = vmatprep.subr.mxu1 %v16659_v32  ;;  %v15712_v10 = vld [vmem:[#allocation4 + $0x43] ss:$2 sm:$0xff] }
 0x548   : > { %7533 = vmatpush1.msra.mxu0 %v16660_v9  ;;  %7566 = vmatprep.mubr.f32.mxu0 %v16605_v41  ;;  %v9204_v32 = vld [vmem:[%s16267_s7 + $0x370] sm:$0xff]  ;;  %v9203_v9 = vld [vmem:[%s16267_s7 + $0x368] sm:$0xff] }
 0x549   : > { %7634 = vmatpush1.msra.mxu1 %v16661_v52  ;;  %7667 = vmatprep.mubr.f32.mxu1 %v16605_v41  ;;  %v9201_v52 = vld [vmem:[%s16267_s7 + $0x358] sm:$0xff] }
 0x54a   : > { %7567 = vmatmul.mubr.f32.vlgmr.msra.gmra.mxu0 %v15506_v39  ;;  %7668 = vmatmul.mubr.f32.vlgmr.msra.gmra.mxu1 %v15398_v30  ;;  %v9185_v30 = vld [vmem:[%s16267_s7 + $0x2d8] sm:$0xff] }
 0x54b   : > { %7737 = vmatprep.subr.mxu0 %v9189_v37  ;;  %7862 = vmatprep.subr.mxu1 %v9189_v37  ;;  %v9202_v37 = vld [vmem:[%s16267_s7 + $0x360] sm:$0xff] }
 0x54c   : > { %7738 = vmatpush1.msra.mxu0 %v9188_v44  ;;  %7863 = vmatpush1.msra.mxu1 %v9188_v44  ;;  %v9200_v44 = vld [vmem:[%s16267_s7 + $0x350] sm:$0xff] }
 0x54d   : > { %7739 = vmatprep.subr.mxu0 %v9187_v59  ;;  %7864 = vmatprep.subr.mxu1 %v9187_v59  ;;  %v9199_v59 = vld [vmem:[%s16267_s7 + $0x348] sm:$0xff] }
 0x54e   : > { %7572 = vmatprep.mubr.f32.mxu0 %v16605_v41  ;;  %7673 = vmatprep.mubr.f32.mxu1 %v16605_v41 }
 0x54f   : > { %7740 = vmatpush1.msra.mxu0 %v9186_v18  ;;  %7865 = vmatpush1.msra.mxu1 %v9186_v18  ;;  %v9198_v18 = vld [vmem:[%s16267_s7 + $0x340] sm:$0xff] }
 0x550   : > { %7573 = vmatmul.mubr.f32.gmra.mxu0 %v15524_v58  ;;  %7674 = vmatmul.mubr.f32.gmra.mxu1 %v15415_v38  ;;  %v9181_v38 = vld [vmem:[%s16267_s7 + $0x2b8] sm:$0xff] }
 0x551   : > { %7741 = vmatprep.subr.mxu0 %v9185_v30  ;;  %7866 = vmatprep.subr.mxu1 %v9185_v30  ;;  %v9197_v30 = vld [vmem:[%s16267_s7 + $0x338] sm:$0xff] }
 0x552   : > { %7742 = vmatpush1.msra.mxu0 %v9184_v20  ;;  %7867 = vmatpush1.msra.mxu1 %v9184_v20  ;;  %v9195_v20 = vld [vmem:[%s16267_s7 + $0x328] sm:$0xff] }
 0x553   : > { %7743 = vmatprep.subr.mxu0 %v9183_v51  ;;  %7868 = vmatprep.subr.mxu1 %v9183_v51  ;;  %v9194_v51 = vld [vmem:[%s16267_s7 + $0x320] sm:$0xff] }
 0x554   : > { %7578 = vmatprep.mubr.f32.mxu0 %v16605_v41  ;;  %7679 = vmatprep.mubr.f32.mxu1 %v16605_v41 }
 0x555   : > { %7744 = vmatpush1.msra.mxu0 %v9182_v15  ;;  %7869 = vmatpush1.msra.mxu1 %v9182_v15  ;;  %v9193_v15 = vld [vmem:[%s16267_s7 + $0x318] sm:$0xff] }
 0x556   : > { %7579 = vmatmul.mubr.f32.gmra.mxu0 %v15542_v19  ;;  %7680 = vmatmul.mubr.f32.gmra.mxu1 %v15430_v42  ;;  %v9177_v42 = vld [vmem:[%s16267_s7 + $0x298] sm:$0xff] }
 0x557   : > { %7745 = vmatprep.subr.mxu0 %v9181_v38  ;;  %7870 = vmatprep.subr.mxu1 %v9181_v38  ;;  %v9192_v38 = vld [vmem:[%s16267_s7 + $0x310] sm:$0xff] }
 0x558   : > { %7746 = vmatpush1.msra.mxu0 %v9180_v29  ;;  %7871 = vmatpush1.msra.mxu1 %v9180_v29  ;;  %v9190_v29 = vld [vmem:[%s16267_s7 + $0x300] sm:$0xff] }
 0x559   : > { %7747 = vmatprep.subr.mxu0 %v9179_v48  ;;  %7872 = vmatprep.subr.mxu1 %v9179_v48  ;;  %v9253_v48 = vld [vmem:[%s16267_s7 + $0x4f8] sm:$0xff] }
 0x55a   : > { %7584 = vmatprep.mubr.f32.mxu0 %v16605_v41  ;;  %7685 = vmatprep.mubr.f32.mxu1 %v16605_v41 }
 0x55b   : > { %7748 = vmatpush1.msra.mxu0 %v9178_v13  ;;  %7873 = vmatpush1.msra.mxu1 %v9178_v13  ;;  %v15772_v13 = vld [vmem:[#allocation4 + $0x4] ss:$2 sm:$0xff] }
 0x55c   : > { %7585 = vmatmul.mubr.f32.gmra.mxu0 %v15560_v26  ;;  %7686 = vmatmul.mubr.f32.gmra.mxu1 %v15446_v36  ;;  %v9173_v36 = vld [vmem:[%s16267_s7 + $0x278] sm:$0xff] }
 0x55d   : > { %7749 = vmatprep.subr.mxu0 %v9177_v42  ;;  %7874 = vmatprep.subr.mxu1 %v9177_v42  ;;  %v9252_v42 = vld [vmem:[%s16267_s7 + $0x4f0] sm:$0xff] }
 0x55e   : > { %7750 = vmatpush1.msra.mxu0 %v9176_v33  ;;  %7875 = vmatpush1.msra.mxu1 %v9176_v33  ;;  %v9250_v33 = vld [vmem:[%s16267_s7 + $0x4e0] sm:$0xff] }
 0x55f   : > { %7751 = vmatprep.subr.mxu0 %v9175_v47  ;;  %7876 = vmatprep.subr.mxu1 %v9175_v47  ;;  %v9249_v47 = vld [vmem:[%s16267_s7 + $0x4d8] sm:$0xff] }
 0x560   : > { %7590 = vmatprep.mubr.f32.mxu0 %v16605_v41  ;;  %7691 = vmatprep.mubr.f32.mxu1 %v16605_v41 }
 0x561   : > { %7752 = vmatpush1.msra.mxu0 %v9174_v3  ;;  %7877 = vmatpush1.msra.mxu1 %v9174_v3  ;;  %v15790_v3 = vld [vmem:[#allocation4 + $0x14] ss:$2 sm:$0xff] }
 0x562   : > { %7591 = vmatmul.mubr.f32.gmra.mxu0 %v15578_v49  ;;  %7692 = vmatmul.mubr.f32.gmra.mxu1 %v15459_v31  ;;  %v9168_v31 = vld [vmem:[%s16267_s7 + $0x250] sm:$0xff] }
 0x563   : > { %7753 = vmatprep.subr.mxu0 %v9173_v36  ;;  %7878 = vmatprep.subr.mxu1 %v9173_v36  ;;  %v9248_v36 = vld [vmem:[%s16267_s7 + $0x4d0] sm:$0xff] }
 0x564   : > { %7754 = vmatpush1.msra.mxu0 %v9172_v57  ;;  %7879 = vmatpush1.msra.mxu1 %v9172_v57  ;;  %v9246_v57 = vld [vmem:[%s16267_s7 + $0x4c0] sm:$0xff] }
 0x565   : > { %7755 = vmatprep.subr.mxu0 %v9171_v12  ;;  %7880 = vmatprep.subr.mxu1 %v9171_v12  ;;  %v9245_v12 = vld [vmem:[%s16267_s7 + $0x4b8] sm:$0xff] }
 0x566   : > { %7596 = vmatprep.mubr.f32.mxu0 %v16605_v41  ;;  %7697 = vmatprep.mubr.f32.mxu1 %v16605_v41 }
 0x567   : > { %7756 = vmatpush1.msra.mxu0 %v9170_v56  ;;  %7881 = vmatpush1.msra.mxu1 %v9170_v56  ;;  %v15808_v56 = vld [vmem:[#allocation4 + $0x24] ss:$2 sm:$0xff] }
 0x568   : > { %7597 = vmatmul.mubr.f32.gmra.mxu0 %v15596_v53  ;;  %7698 = vmatmul.mubr.f32.gmra.mxu1 %v15472_v45  ;;  %v9158_v45 = vld [vmem:[%s16267_s7 + $0x200] sm:$0xff] }
 0x569   : > { %7757 = vmatprep.subr.mxu0 %v9169_v27  ;;  %7882 = vmatprep.subr.mxu1 %v9169_v27  ;;  %v9244_v27 = vld [vmem:[%s16267_s7 + $0x4b0] sm:$0xff] }
 0x56a   : > { %7758 = vmatpush1.msra.mxu0 %v9168_v31  ;;  %7883 = vmatpush1.msra.mxu1 %v9168_v31  ;;  %v9242_v31 = vld [vmem:[%s16267_s7 + $0x4a0] sm:$0xff] }
 0x56b   : > { %7759 = vmatprep.subr.mxu0 %v9167_v24  ;;  %7884 = vmatprep.subr.mxu1 %v9167_v24  ;;  %v9241_v24 = vld [vmem:[%s16267_s7 + $0x498] sm:$0xff] }
 0x56c   : > { %7760 = vmatpush1.msra.mxu0 %v9166_v0  ;;  %7885 = vmatpush1.msra.mxu1 %v9166_v0  ;;  %v15826_v0 = vld [vmem:[#allocation4 + $0x34] ss:$2 sm:$0xff] }
 0x56d   : > { %7761 = vmatprep.subr.mxu0 %v9165_v22  ;;  %7886 = vmatprep.subr.mxu1 %v9165_v22  ;;  %v9240_v22 = vld [vmem:[%s16267_s7 + $0x490] sm:$0xff] }
 0x56e   : > { %7762 = vmatpush1.msra.mxu0 %v9164_v11  ;;  %7887 = vmatpush1.msra.mxu1 %v9164_v11  ;;  %v9239_v11 = vld [vmem:[%s16267_s7 + $0x488] sm:$0xff] }
 0x56f   : > { %7763 = vmatprep.subr.mxu0 %v9163_v6  ;;  %7888 = vmatprep.subr.mxu1 %v9163_v6  ;;  %v9238_v6 = vld [vmem:[%s16267_s7 + $0x480] sm:$0xff] }
 0x570   : > { %7764 = vmatpush1.msra.mxu0 %v9162_v62  ;;  %7889 = vmatpush1.msra.mxu1 %v9162_v62  ;;  %v9237_v62 = vld [vmem:[%s16267_s7 + $0x478] sm:$0xff] }
 0x571   : > { %7765 = vmatprep.subr.mxu0 %v9161_v46  ;;  %7890 = vmatprep.subr.mxu1 %v9161_v46  ;;  %v15844_v46 = vld [vmem:[#allocation4 + $0x44] ss:$2 sm:$0xff] }
 0x572   : > { %7766 = vmatpush1.msra.mxu0 %v9160_v63  ;;  %7891 = vmatpush1.msra.mxu1 %v9160_v63  ;;  %v9236_v63 = vld [vmem:[%s16267_s7 + $0x470] sm:$0xff] }
 0x573   : > { %7767 = vmatprep.subr.mxu0 %v9159_v50  ;;  %7892 = vmatprep.subr.mxu1 %v9159_v50  ;;  %v9235_v50 = vld [vmem:[%s16267_s7 + $0x468] sm:$0xff] }
 0x574   : > { %7768 = vmatpush1.msra.mxu0 %v9158_v45  ;;  %7801 = vmatprep.mubr.f32.mxu0 %v16605_v41 }
 0x575   : > { %7893 = vmatpush1.msra.mxu1 %v9158_v45  ;;  %7926 = vmatprep.mubr.f32.mxu1 %v16605_v41  ;;  %v9234_v45 = vld [vmem:[%s16267_s7 + $0x460] sm:$0xff] }
 0x576   : > { %7802 = vmatmul.mubr.f32.vlgmr.msra.gmra.mxu0 %v15506_v39  ;;  %7927 = vmatmul.mubr.f32.vlgmr.msra.gmra.mxu1 %v15638_v2  ;;  %v15730_v39 = vld [vmem:[#allocation4 + $0x53] ss:$2 sm:$0x7] }
 0x577   : > { %8008 = vmatprep.subr.mxu0 %v9221_v16  ;;  %8133 = vmatprep.subr.mxu1 %v9221_v16  ;;  %v9233_v16 = vld [vmem:[%s16267_s7 + $0x458] sm:$0xff] }
 0x578   : > { %8009 = vmatpush1.msra.mxu0 %v9220_v60  ;;  %8134 = vmatpush1.msra.mxu1 %v9220_v60  ;;  %v9232_v60 = vld [vmem:[%s16267_s7 + $0x450] sm:$0xff] }
 0x579   : > { %8010 = vmatprep.subr.mxu0 %v9219_v54  ;;  %8135 = vmatprep.subr.mxu1 %v9219_v54  ;;  %v9231_v54 = vld [vmem:[%s16267_s7 + $0x448] sm:$0xff] }
 0x57a   : > { %7807 = vmatprep.mubr.f32.mxu0 %v16605_v41  ;;  %7932 = vmatprep.mubr.f32.mxu1 %v15652_v14  ;;  %v9215_v41 = vld [vmem:[%s16267_s7 + $0x3c8] sm:$0xff] }
 0x57b   : > { %8011 = vmatpush1.msra.mxu0 %v9218_v17  ;;  %8136 = vmatpush1.msra.mxu1 %v9218_v17  ;;  %v9230_v17 = vld [vmem:[%s16267_s7 + $0x440] sm:$0xff] }
 0x57c   : > { %7808 = vmatmul.mubr.f32.gmra.mxu0 %v15524_v58  ;;  %7933 = vmatmul.mubr.f32.gmra.mxu1 %v15658_v23  ;;  %v9196_v58 = vld [vmem:[%s16267_s7 + $0x330] sm:$0xff] }
 0x57d   : > { %8012 = vmatprep.subr.mxu0 %v9217_v21  ;;  %8137 = vmatprep.subr.mxu1 %v9217_v21  ;;  %v9229_v21 = vld [vmem:[%s16267_s7 + $0x438] sm:$0xff] }
 0x57e   : > { %8013 = vmatpush1.msra.mxu0 %v9216_v5  ;;  %8138 = vmatpush1.msra.mxu1 %v9216_v5  ;;  %v9227_v5 = vld [vmem:[%s16267_s7 + $0x428] sm:$0xff] }
 0x57f   : > { %8014 = vmatprep.subr.mxu0 %v9215_v41  ;;  %8139 = vmatprep.subr.mxu1 %v9215_v41  ;;  %v9226_v41 = vld [vmem:[%s16267_s7 + $0x420] sm:$0xff] }
 0x580   : > { %7813 = vmatprep.mubr.f32.mxu0 %v15652_v14  ;;  %7938 = vmatprep.mubr.f32.mxu1 %v15652_v14 }
 0x581   : > { %8015 = vmatpush1.msra.mxu0 %v9214_v28  ;;  %8140 = vmatpush1.msra.mxu1 %v9214_v28  ;;  %v9225_v28 = vld [vmem:[%s16267_s7 + $0x418] sm:$0xff] }
 0x582   : > { %7814 = vmatmul.mubr.f32.gmra.mxu0 %v15542_v19  ;;  %7939 = vmatmul.mubr.f32.gmra.mxu1 %v15676_v61  ;;  %v9191_v19 = vld [vmem:[%s16267_s7 + $0x308] sm:$0xff] }
 0x583   : > { %8016 = vmatprep.subr.mxu0 %v9213_v1  ;;  %8141 = vmatprep.subr.mxu1 %v9213_v1  ;;  %v9224_v1 = vld [vmem:[%s16267_s7 + $0x410] sm:$0xff] }
 0x584   : > { %8017 = vmatpush1.msra.mxu0 %v9212_v7  ;;  %8142 = vmatpush1.msra.mxu1 %v9212_v7  ;;  %v9222_v7 = vld [vmem:[%s16267_s7 + $0x400] sm:$0xff] }
 0x585   : > { %8018 = vmatprep.subr.mxu0 %v9211_v4  ;;  %8143 = vmatprep.subr.mxu1 %v9211_v4  ;;  %v8393_v4 = vld [vmem:[#allocation4 + $0x5] ss:$2 sm:$0xff] }
 0x586   : > { %7819 = vmatprep.mubr.f32.mxu0 %v15652_v14  ;;  %7944 = vmatprep.mubr.f32.mxu1 %v15652_v14 }
 0x587   : > { %8019 = vmatpush1.msra.mxu0 %v9210_v35  ;;  %8144 = vmatpush1.msra.mxu1 %v9210_v35  ;;  %v8395_v35 = vld [vmem:[#allocation4 + $0x15] ss:$2 sm:$0xff] }
 0x588   : > { %7820 = vmatmul.mubr.f32.gmra.mxu0 %v15560_v26  ;;  %7945 = vmatmul.mubr.f32.gmra.mxu1 %v15694_v55  ;;  %v9251_v26 = vld [vmem:[%s16267_s7 + $0x4e8] sm:$0xff] }
 0x589   : > { %8020 = vmatprep.subr.mxu0 %v9209_v34  ;;  %8145 = vmatprep.subr.mxu1 %v9209_v34  ;;  %v8397_v34 = vld [vmem:[#allocation4 + $0x25] ss:$2 sm:$0xff] }
 0x58a   : > { %8021 = vmatpush1.msra.mxu0 %v9208_v40  ;;  %8146 = vmatpush1.msra.mxu1 %v9208_v40  ;;  %v8401_v40 = vld [vmem:[#allocation4 + $0x45] ss:$2 sm:$0xff] }
 0x58b   : > { %8022 = vmatprep.subr.mxu0 %v9207_v25  ;;  %8147 = vmatprep.subr.mxu1 %v9207_v25 }
 0x58c   : > { %7825 = vmatprep.mubr.f32.mxu0 %v15652_v14  ;;  %7950 = vmatprep.mubr.f32.mxu1 %v15652_v14 }
 0x58d   : > { %8023 = vmatpush1.msra.mxu0 %v9206_v43  ;;  %8148 = vmatpush1.msra.mxu1 %v9206_v43 }
 0x58e   : > { %7826 = vmatmul.mubr.f32.gmra.mxu0 %v15578_v49  ;;  %7951 = vmatmul.mubr.f32.gmra.mxu1 %v15712_v10  ;;  %v9247_v49 = vld [vmem:[%s16267_s7 + $0x4c8] sm:$0xff] }
 0x58f   : > { %8024 = vmatprep.subr.mxu0 %v9205_v8  ;;  %8149 = vmatprep.subr.mxu1 %v9205_v8 }
 0x590   : > { %8025 = vmatpush1.msra.mxu0 %v9204_v32  ;;  %8150 = vmatpush1.msra.mxu1 %v9204_v32 }
 0x591   : > { %8026 = vmatprep.subr.mxu0 %v9203_v9  ;;  %8151 = vmatprep.subr.mxu1 %v9203_v9 }
 0x592   : > { %7831 = vmatprep.mubr.f32.mxu0 %v15652_v14  ;;  %7956 = vmatprep.mubr.f32.mxu1 %v15652_v14 }
 0x593   : > { %8027 = vmatpush1.msra.mxu0 %v9202_v37  ;;  %8152 = vmatpush1.msra.mxu1 %v9202_v37 }
 0x594   : > { %7832 = vmatmul.mubr.f32.gmra.mxu0 %v15596_v53  ;;  %7957 = vmatmul.mubr.f32.gmra.mxu1 %v15730_v39  ;;  %v9243_v53 = vld [vmem:[%s16267_s7 + $0x4a8] sm:$0xff] }
 0x595   : > { %8028 = vmatprep.subr.mxu0 %v9201_v52  ;;  %8153 = vmatprep.subr.mxu1 %v9201_v52 }
 0x596   : > { %8029 = vmatpush1.msra.mxu0 %v9200_v44  ;;  %8154 = vmatpush1.msra.mxu1 %v9200_v44 }
 0x597   : > { %8030 = vmatprep.subr.mxu0 %v9199_v59  ;;  %8155 = vmatprep.subr.mxu1 %v9199_v59 }
 0x598   : > { %8031 = vmatpush1.msra.mxu0 %v9198_v18  ;;  %8156 = vmatpush1.msra.mxu1 %v9198_v18 }
 0x599   : > { %8032 = vmatprep.subr.mxu0 %v9197_v30  ;;  %8157 = vmatprep.subr.mxu1 %v9197_v30 }
 0x59a   : > { %8033 = vmatpush1.msra.mxu0 %v9196_v58  ;;  %8158 = vmatpush1.msra.mxu1 %v9196_v58 }
 0x59b   : > { %8034 = vmatprep.subr.mxu0 %v9195_v20  ;;  %8159 = vmatprep.subr.mxu1 %v9195_v20 }
 0x59c   : > { %8035 = vmatpush1.msra.mxu0 %v9194_v51  ;;  %8160 = vmatpush1.msra.mxu1 %v9194_v51 }
 0x59d   : > { %8036 = vmatprep.subr.mxu0 %v9193_v15  ;;  %8161 = vmatprep.subr.mxu1 %v9193_v15 }
 0x59e   : > { %8037 = vmatpush1.msra.mxu0 %v9192_v38  ;;  %8162 = vmatpush1.msra.mxu1 %v9192_v38 }
 0x59f   : > { %8038 = vmatprep.subr.mxu0 %v9191_v19  ;;  %8163 = vmatprep.subr.mxu1 %v9191_v19 }
 0x5a0   : > { %8039 = vmatpush1.msra.mxu0 %v9190_v29  ;;  %8072 = vmatprep.mubr.f32.mxu0 %v15652_v14 }
 0x5a1   : > { %8164 = vmatpush1.msra.mxu1 %v9190_v29  ;;  %8197 = vmatprep.mubr.f32.mxu1 %v15652_v14 }
 0x5a2   : > { %8073 = vmatmul.mubr.f32.vlgmr.msra.gmra.mxu0 %v15638_v2  ;;  %8198 = vmatmul.mubr.f32.vlgmr.msra.gmra.mxu1 %v15772_v13  ;;  %v15862_v2 = vld [vmem:[#allocation4 + $0x54] ss:$2 sm:$0x7] }
 0x5a3   : > { %8279 = vmatprep.subr.mxu0 %v9253_v48  ;;  %8404 = vmatprep.subr.mxu1 %v9253_v48 }
 0x5a4   : > { %8280 = vmatpush1.msra.mxu0 %v9252_v42  ;;  %8405 = vmatpush1.msra.mxu1 %v9252_v42 }
 0x5a5   : > { %8281 = vmatprep.subr.mxu0 %v9251_v26  ;;  %8406 = vmatprep.subr.mxu1 %v9251_v26 }
 0x5a6   : > { %8078 = vmatprep.mubr.f32.mxu0 %v15652_v14  ;;  %8203 = vmatprep.mubr.f32.mxu1 %v15652_v14 }
 0x5a7   : > { %8282 = vmatpush1.msra.mxu0 %v9250_v33  ;;  %8407 = vmatpush1.msra.mxu1 %v9250_v33 }
 0x5a8   : > { %8079 = vmatmul.mubr.f32.gmra.mxu0 %v15658_v23  ;;  %8204 = vmatmul.mubr.f32.gmra.mxu1 %v15790_v3  ;;  %v9228_v23 = vld [vmem:[%s16267_s7 + $0x430] sm:$0xff] }
 0x5a9   : > { %8283 = vmatprep.subr.mxu0 %v9249_v47  ;;  %8408 = vmatprep.subr.mxu1 %v9249_v47 }
 0x5aa   : > { %8284 = vmatpush1.msra.mxu0 %v9248_v36  ;;  %8409 = vmatpush1.msra.mxu1 %v9248_v36 }
 0x5ab   : > { %8285 = vmatprep.subr.mxu0 %v9247_v49  ;;  %8410 = vmatprep.subr.mxu1 %v9247_v49 }
 0x5ac   : > { %8084 = vmatprep.mubr.f32.mxu0 %v15652_v14  ;;  %8209 = vmatprep.mubr.f32.mxu1 %v15652_v14 }
 0x5ad   : > { %8286 = vmatpush1.msra.mxu0 %v9246_v57  ;;  %8411 = vmatpush1.msra.mxu1 %v9246_v57 }
 0x5ae   : > { %8085 = vmatmul.mubr.f32.gmra.mxu0 %v15676_v61  ;;  %8210 = vmatmul.mubr.f32.gmra.mxu1 %v15808_v56  ;;  %v9223_v61 = vld [vmem:[%s16267_s7 + $0x408] sm:$0xff] }
 0x5af   : > { %8287 = vmatprep.subr.mxu0 %v9245_v12  ;;  %8412 = vmatprep.subr.mxu1 %v9245_v12 }
 0x5b0   : > { %8288 = vmatpush1.msra.mxu0 %v9244_v27  ;;  %8413 = vmatpush1.msra.mxu1 %v9244_v27 }
 0x5b1   : > { %8289 = vmatprep.subr.mxu0 %v9243_v53  ;;  %8414 = vmatprep.subr.mxu1 %v9243_v53 }
 0x5b2   : > { %8090 = vmatprep.mubr.f32.mxu0 %v15652_v14  ;;  %8215 = vmatprep.mubr.f32.mxu1 %v15652_v14 }
 0x5b3   : > { %8290 = vmatpush1.msra.mxu0 %v9242_v31  ;;  %8415 = vmatpush1.msra.mxu1 %v9242_v31 }
 0x5b4   : > { %8091 = vmatmul.mubr.f32.gmra.mxu0 %v15694_v55  ;;  %8216 = vmatmul.mubr.f32.gmra.mxu1 %v15826_v0  ;;  %v8399_v55 = vld [vmem:[#allocation4 + $0x35] ss:$2 sm:$0xff] }
 0x5b5   : > { %8291 = vmatprep.subr.mxu0 %v9241_v24  ;;  %8416 = vmatprep.subr.mxu1 %v9241_v24 }
 0x5b6   : > { %8292 = vmatpush1.msra.mxu0 %v9240_v22  ;;  %8417 = vmatpush1.msra.mxu1 %v9240_v22 }
 0x5b7   : > { %8293 = vmatprep.subr.mxu0 %v9239_v11  ;;  %8418 = vmatprep.subr.mxu1 %v9239_v11 }
 0x5b8   : > { %8096 = vmatprep.mubr.f32.mxu0 %v15652_v14  ;;  %8221 = vmatprep.mubr.f32.mxu1 %v15652_v14 }
 0x5b9   : > { %8294 = vmatpush1.msra.mxu0 %v9238_v6  ;;  %8419 = vmatpush1.msra.mxu1 %v9238_v6 }
 0x5ba   : > { %8097 = vmatmul.mubr.f32.gmra.mxu0 %v15712_v10  ;;  %8222 = vmatmul.mubr.f32.gmra.mxu1 %v15844_v46  ;;  %v8403_v10 = vld [vmem:[#allocation4 + $0x55] ss:$2 sm:$0x7] }
 0x5bb   : > { %8295 = vmatprep.subr.mxu0 %v9237_v62  ;;  %8420 = vmatprep.subr.mxu1 %v9237_v62 }
 0x5bc   : > { %8296 = vmatpush1.msra.mxu0 %v9236_v63  ;;  %8421 = vmatpush1.msra.mxu1 %v9236_v63 }
 0x5bd   : > { %8297 = vmatprep.subr.mxu0 %v9235_v50  ;;  %8422 = vmatprep.subr.mxu1 %v9235_v50 }
 0x5be   : > { %8102 = vmatprep.mubr.f32.mxu0 %v15652_v14  ;;  %8227 = vmatprep.mubr.f32.mxu1 %v15652_v14 }
 0x5bf   : > { %8298 = vmatpush1.msra.mxu0 %v9234_v45  ;;  %8423 = vmatpush1.msra.mxu1 %v9234_v45 }
 0x5c0   : > { %8103 = vmatmul.mubr.f32.gmra.mxu0 %v15730_v39  ;;  %8228 = vmatmul.mubr.f32.gmra.mxu1 %v15862_v2 }
 0x5c1   : > { %8299 = vmatprep.subr.mxu0 %v9233_v16  ;;  %8424 = vmatprep.subr.mxu1 %v9233_v16 }
 0x5c2   : > { %8300 = vmatpush1.msra.mxu0 %v9232_v60  ;;  %8425 = vmatpush1.msra.mxu1 %v9232_v60 }
 0x5c3   : > { %8301 = vmatprep.subr.mxu0 %v9231_v54  ;;  %8426 = vmatprep.subr.mxu1 %v9231_v54 }
 0x5c4   : > { %8302 = vmatpush1.msra.mxu0 %v9230_v17  ;;  %8427 = vmatpush1.msra.mxu1 %v9230_v17 }
 0x5c5   : > { %8303 = vmatprep.subr.mxu0 %v9229_v21  ;;  %8428 = vmatprep.subr.mxu1 %v9229_v21 }
 0x5c6   : > { %8304 = vmatpush1.msra.mxu0 %v9228_v23  ;;  %8429 = vmatpush1.msra.mxu1 %v9228_v23 }
 0x5c7   : > { %8305 = vmatprep.subr.mxu0 %v9227_v5  ;;  %8430 = vmatprep.subr.mxu1 %v9227_v5 }
 0x5c8   : > { %8306 = vmatpush1.msra.mxu0 %v9226_v41  ;;  %8431 = vmatpush1.msra.mxu1 %v9226_v41 }
 0x5c9   : > { %8307 = vmatprep.subr.mxu0 %v9225_v28  ;;  %8432 = vmatprep.subr.mxu1 %v9225_v28 }
 0x5ca   : > { %8308 = vmatpush1.msra.mxu0 %v9224_v1  ;;  %8433 = vmatpush1.msra.mxu1 %v9224_v1 }
 0x5cb   : > { %8309 = vmatprep.subr.mxu0 %v9223_v61  ;;  %8434 = vmatprep.subr.mxu1 %v9223_v61 }
 0x5cc   : > { %8310 = vmatpush1.msra.mxu0 %v9222_v7  ;;  %8343 = vmatprep.mubr.f32.mxu0 %v15652_v14 }
 0x5cd   : > { %8435 = vmatpush1.msra.mxu1 %v9222_v7  ;;  %8468 = vmatprep.mubr.f32.mxu1 %v15652_v14 }
 0x5ce   : > { %8344 = vmatmul.mubr.f32.vlgmr.msra.gmra.mxu0 %v15772_v13  ;;  %8469 = vmatmul.mubr.f32.vlgmr.msra.gmra.mxu1 %v8393_v4 }
 0x5cf   : > { %8349 = vmatprep.mubr.f32.mxu0 %v15652_v14  ;;  %8474 = vmatprep.mubr.f32.mxu1 %v15652_v14 }
 0x5d2   : > { %8350 = vmatmul.mubr.f32.gmra.mxu0 %v15790_v3  ;;  %8475 = vmatmul.mubr.f32.gmra.mxu1 %v8395_v35 }
 0x5d3   : > { %8355 = vmatprep.mubr.f32.mxu0 %v15652_v14  ;;  %8480 = vmatprep.mubr.f32.mxu1 %v15652_v14 }
 0x5d6   : > { %8356 = vmatmul.mubr.f32.gmra.mxu0 %v15808_v56  ;;  %8481 = vmatmul.mubr.f32.gmra.mxu1 %v8397_v34 }
 0x5d7   : > { %8361 = vmatprep.mubr.f32.mxu0 %v15652_v14  ;;  %8486 = vmatprep.mubr.f32.mxu1 %v15652_v14 }
 0x5da   : > { %8362 = vmatmul.mubr.f32.gmra.mxu0 %v15826_v0  ;;  %8487 = vmatmul.mubr.f32.gmra.mxu1 %v8399_v55 }
 0x5db   : > { %8367 = vmatprep.mubr.f32.mxu0 %v15652_v14  ;;  %8492 = vmatprep.mubr.f32.mxu1 %v15652_v14 }
 0x5de   : > { %8368 = vmatmul.mubr.f32.gmra.mxu0 %v15844_v46  ;;  %8493 = vmatmul.mubr.f32.gmra.mxu1 %v8401_v40 }
 0x5df   : > { %8373 = vmatprep.mubr.f32.mxu0 %v15652_v14  ;;  %8498 = vmatprep.mubr.f32.mxu1 %v15652_v14  ;;  %v7354_v25 = vpop.f32.mrf.mxu0  ;;  %v7455_v43 = vpop.f32.mrf.mxu1 }
 0x5e0   : > { %v15916_v8 = vadd.f32 %v7455_v43, %v7354_v25 }
 0x5e1   : > { %v7356_v32 = vpop.f32.mrf.mxu0  ;;  %v7457_v9 = vpop.f32.mrf.mxu1 }
 0x5e2   : > { %8374 = vmatmul.mubr.f32.gmra.mxu0 %v15862_v2  ;;  %8499 = vmatmul.mubr.f32.gmra.mxu1 %v8403_v10  ;;  %v15919_v37 = vadd.f32 %v7457_v9, %v7356_v32 }
 0x5e5   : > { %v7360_v52 = vpop.f32.mrf.mxu0  ;;  %v7461_v39 = vpop.f32.mrf.mxu1 }
 0x5e6   : > { %v15921_v44 = vadd.f32 %v7461_v39, %v7360_v52 }
 0x5e7   : > { %v7362_v59 = vpop.f32.mrf.mxu0  ;;  %v7463_v18 = vpop.f32.mrf.mxu1 }
 0x5e8   : > { %v15923_v30 = vadd.f32 %v7463_v18, %v7362_v59 }
 0x5eb   : > { %v7366_v14 = vpop.f32.mrf.mxu0  ;;  %v7467_v58 = vpop.f32.mrf.mxu1 }
 0x5ec   : > { %v15925_v20 = vadd.f32 %v7467_v58, %v7366_v14 }
 0x5ed   : > { %v7368_v51 = vpop.f32.mrf.mxu0  ;;  %v7469_v15 = vpop.f32.mrf.mxu1 }
 0x5ee   : > { %v15927_v38 = vadd.f32 %v7469_v15, %v7368_v51 }
 0x5f1   : > { %v7372_v19 = vpop.f32.mrf.mxu0  ;;  %v7473_v29 = vpop.f32.mrf.mxu1 }
 0x5f2   : > { %v15929_v48 = vadd.f32 %v7473_v29, %v7372_v19 }
 0x5f3   : > { %v7374_v13 = vpop.f32.mrf.mxu0  ;;  %v7475_v42 = vpop.f32.mrf.mxu1 }
 0x5f4   : > { %v15931_v26 = vadd.f32 %v7475_v42, %v7374_v13 }
 0x5f7   : > { %v7378_v33 = vpop.f32.mrf.mxu0  ;;  %v7479_v47 = vpop.f32.mrf.mxu1 }
 0x5f8   : > { %v15933_v3 = vadd.f32 %v7479_v47, %v7378_v33 }
 0x5f9   : > { %v7380_v36 = vpop.f32.mrf.mxu0  ;;  %v7481_v49 = vpop.f32.mrf.mxu1 }
 0x5fa   : > { %v15935_v57 = vadd.f32 %v7481_v49, %v7380_v36 }
 0x5fd   : > { %v7384_v12 = vpop.f32.mrf.mxu0  ;;  %v7485_v56 = vpop.f32.mrf.mxu1 }
 0x5fe   : > { %v15937_v27 = vadd.f32 %v7485_v56, %v7384_v12 }
 0x5ff   : > { %v7386_v53 = vpop.f32.mrf.mxu0  ;;  %v7487_v31 = vpop.f32.mrf.mxu1 }
 0x600   : > { %v15939_v24 = vadd.f32 %v7487_v31, %v7386_v53 }
 0x60a   : > { %v7568_v0 = vpop.f32.mrf.mxu0  ;;  %v7669_v22 = vpop.f32.mrf.mxu1 }
 0x60b   : > { %v15941_v11 = vadd.f32 %v7669_v22, %v7568_v0 }
 0x60c   : > { %v7570_v6 = vpop.f32.mrf.mxu0  ;;  %v7671_v62 = vpop.f32.mrf.mxu1 }
 0x60d   : > { %v15943_v46 = vadd.f32 %v7671_v62, %v7570_v6 }
 0x610   : > { %v7574_v63 = vpop.f32.mrf.mxu0  ;;  %v7675_v50 = vpop.f32.mrf.mxu1 }
 0x611   : > { %v15945_v45 = vadd.f32 %v7675_v50, %v7574_v63 }
 0x612   : > { %v7576_v16 = vpop.f32.mrf.mxu0  ;;  %v7677_v2 = vpop.f32.mrf.mxu1 }
 0x613   : > { %v15947_v60 = vadd.f32 %v7677_v2, %v7576_v16 }
 0x616   : > { %v7580_v54 = vpop.f32.mrf.mxu0  ;;  %v7681_v17 = vpop.f32.mrf.mxu1 }
 0x617   : > { %v15949_v21 = vadd.f32 %v7681_v17, %v7580_v54 }
 0x618   : > { %v7582_v23 = vpop.f32.mrf.mxu0  ;;  %v7683_v5 = vpop.f32.mrf.mxu1 }
 0x619   : > { %v15951_v41 = vadd.f32 %v7683_v5, %v7582_v23 }
 0x61c   : > { %v7586_v28 = vpop.f32.mrf.mxu0  ;;  %v7687_v1 = vpop.f32.mrf.mxu1 }
 0x61d   : > { %v15953_v61 = vadd.f32 %v7687_v1, %v7586_v28 }
 0x61e   : > { %v7588_v7 = vpop.f32.mrf.mxu0  ;;  %v7689_v4 = vpop.f32.mrf.mxu1 }
 0x61f   : > { %v15955_v35 = vadd.f32 %v7689_v4, %v7588_v7 }
 0x622   : > { %v7592_v34 = vpop.f32.mrf.mxu0  ;;  %v7693_v55 = vpop.f32.mrf.mxu1 }
 0x623   : > { %v15957_v40 = vadd.f32 %v7693_v55, %v7592_v34 }
 0x624   : > { %v7594_v25 = vpop.f32.mrf.mxu0  ;;  %v7695_v43 = vpop.f32.mrf.mxu1 }
 0x625   : > { %v15959_v10 = vadd.f32 %v7695_v43, %v7594_v25 }
 0x628   : > { %v7598_v32 = vpop.f32.mrf.mxu0  ;;  %v7699_v9 = vpop.f32.mrf.mxu1 }
 0x629   : > { %v15961_v52 = vadd.f32 %v7699_v9, %v7598_v32 }
 0x62a   : > { %v7600_v39 = vpop.f32.mrf.mxu0  ;;  %v7701_v59 = vpop.f32.mrf.mxu1 }
 0x62b   : > { %v15963_v18 = vadd.f32 %v7701_v59, %v7600_v39 }
 0x62d   : > { %16662 = vst [vmem:[#allocation16_spill] sm:$0xff] %v15963_v18 }
 0x636   : > { %v7803_v14 = vpop.f32.mrf.mxu0  ;;  %v7928_v58 = vpop.f32.mrf.mxu1 }
 0x638   : > { %v7805_v51 = vpop.f32.mrf.mxu0  ;;  %v7930_v15 = vpop.f32.mrf.mxu1 }
 0x63c   : > { %v7809_v19 = vpop.f32.mrf.mxu0  ;;  %v7934_v29 = vpop.f32.mrf.mxu1 }
 0x63e   : > { %v7811_v13 = vpop.f32.mrf.mxu0  ;;  %v7936_v42 = vpop.f32.mrf.mxu1 }
 0x642   : > { %v7815_v33 = vpop.f32.mrf.mxu0  ;;  %v7940_v47 = vpop.f32.mrf.mxu1 }
 0x644   : > { %v7817_v36 = vpop.f32.mrf.mxu0  ;;  %v7942_v49 = vpop.f32.mrf.mxu1 }
 0x648   : > { %v7821_v12 = vpop.f32.mrf.mxu0  ;;  %v7946_v56 = vpop.f32.mrf.mxu1 }
 0x64a   : > { %v7823_v53 = vpop.f32.mrf.mxu0  ;;  %v7948_v31 = vpop.f32.mrf.mxu1 }
 0x64e   : > { %v7827_v0 = vpop.f32.mrf.mxu0  ;;  %v7952_v22 = vpop.f32.mrf.mxu1 }
 0x650   : > { %v7829_v6 = vpop.f32.mrf.mxu0  ;;  %v7954_v62 = vpop.f32.mrf.mxu1 }
 0x654   : > { %v15965_v63 = vpop.f32.mrf.mxu0  ;;  %v15967_v50 = vpop.f32.mrf.mxu1 }
 0x656   : > { %v15969_v16 = vpop.f32.mrf.mxu0  ;;  %v15971_v2 = vpop.f32.mrf.mxu1 }
 0x657   : > { %16663 = vst [vmem:[#allocation35_spill] sm:$0xff] %v15969_v16  ;;  %16664 = vst [vmem:[#allocation56_spill] sm:$0xff] %v15971_v2  ;;  %v16353_v2 = vlaneseq  ;;  %v7965_v16 = vadd.f32 %v7934_v29, %v15945_v45  ;;  %v7970_v45 = vadd.f32 %v7948_v31, %v15955_v35 }
 0x65e   : > { %v16681_v35 = vld [vmem:[#allocation35_spill] sm:$0xff] }
 0x662   : > { %v8074_v54 = vpop.f32.mrf.mxu0  ;;  %v8199_v17 = vpop.f32.mrf.mxu1 }
 0x664   : > { %v8076_v23 = vpop.f32.mrf.mxu0  ;;  %v8201_v5 = vpop.f32.mrf.mxu1 }
 0x668   : > { %v8080_v28 = vpop.f32.mrf.mxu0  ;;  %v8205_v1 = vpop.f32.mrf.mxu1 }
 0x66a   : > { %v15973_v7 = vpop.f32.mrf.mxu0  ;;  %v15975_v4 = vpop.f32.mrf.mxu1 }
 0x66b   : > { %16665 = vst [vmem:[#allocation50_spill] sm:$0xff] %v15973_v7  ;;  %16666 = vst [vmem:[#allocation65_spill] sm:$0xff] %v15975_v4 }
 0x66e   : > { %v15977_v34 = vpop.f32.mrf.mxu0  ;;  %v15979_v55 = vpop.f32.mrf.mxu1 }
 0x66f   : > { %16667 = vst [vmem:[#allocation51_spill] sm:$0xff] %v15977_v34  ;;  %16668 = vst [vmem:[#allocation70_spill] sm:$0xff] %v15979_v55  ;;  %v8531_v34 = vshrl.u32 %v16353_v2, 7 }
 0x670   : > { %v15981_v25 = vpop.f32.mrf.mxu0  ;;  %v15983_v43 = vpop.f32.mrf.mxu1 }
 0x671   : > { %16669 = vst [vmem:[#allocation85_spill] sm:$0xff] %v15981_v25  ;;  %16670 = vst [vmem:[#allocation86_spill] sm:$0xff] %v15983_v43  ;;  %v8532_v43 = vsub.s32 0, %v8531_v34  ;;  %v8536_v18 = vsub.s32 1, %v8531_v34  ;;  %v7964_v34 = vadd.f32 %v7930_v15, %v15943_v46  ;;  %v7969_v46 = vadd.f32 %v7946_v56, %v15953_v61  ;;  %v16683_v56 = vld [vmem:[#allocation56_spill] sm:$0xff] }
 0x674   : > { %v15985_v32 = vpop.f32.mrf.mxu0  ;;  %v15987_v9 = vpop.f32.mrf.mxu1 }
 0x675   : > { %16671 = vst [vmem:[#allocation87_spill] sm:$0xff] %v15985_v32  ;;  %16672 = vst [vmem:[#allocation88_spill] sm:$0xff] %v15987_v9  ;;  %v7199_v9 = vld [vmem:[%s16268_s8] sm:$0x3] }
 0x676   : > { %v15989_v39 = vpop.f32.mrf.mxu0  ;;  %v15991_v59 = vpop.f32.mrf.mxu1  ;;  %v16011_v32 = vrot.slane %v7199_v9, %v8532_v43  ;;  %v16013_v2 = vrot.slane %v7199_v9, %v8536_v18  ;;  %v7968_v18 = vadd.f32 %v7942_v49, %v15951_v41  ;;  %v7847_v41 = vadd.f32 %v7829_v6, %v15935_v57 }
 0x677   : > { %16673 = vst [vmem:[#allocation89_spill] sm:$0xff] %v15989_v39  ;;  %16674 = vst [vmem:[#allocation90_spill] sm:$0xff] %v15991_v59  ;;  %v16049_v57 = vadd.f32 %v16681_v35, %v15939_v24 }
 0x67a   : > { %v15993_v7 = vpop.f32.mrf.mxu0  ;;  %v15995_v4 = vpop.f32.mrf.mxu1 }
 0x67b   : > { %16675 = vst [vmem:[#allocation91_spill] sm:$0xff] %v15993_v7  ;;  %16676 = vst [vmem:[#allocation92_spill] sm:$0xff] %v15995_v4  ;;  %v7838_v7 = vadd.f32 %v7803_v14, %v15916_v8  ;;  %v7963_v4 = vadd.f32 %v7928_v58, %v15941_v11  ;;  %v7842_v8 = vadd.f32 %v7815_v33, %v15925_v20 }
 0x67c   : > { %v15998_v55 = vpop.f32.mrf.mxu0  ;;  %v16000_v25 = vpop.f32.mrf.mxu1  ;;  %v7967_v11 = vadd.f32 %v7940_v47, %v15949_v21  ;;  %v7843_v14 = vadd.f32 %v7817_v36, %v15927_v38  ;;  %v7846_v21 = vadd.f32 %v7827_v0, %v15933_v3  ;;  %v7971_v38 = vadd.f32 %v7952_v22, %v15957_v40  ;;  %v16685_v0 = vld [vmem:[#allocation65_spill] sm:$0xff]  ;;  %v16686_v22 = vld [vmem:[#allocation51_spill] sm:$0xff]  ;;  %v16691_v9 = vld [vmem:[#allocation88_spill] sm:$0xff] }
 0x67d   : > { %16677 = vst [vmem:[#allocation93_spill] sm:$0xff] %v15998_v55  ;;  %16678 = vst [vmem:[#allocation94_spill] sm:$0xff] %v16000_v25  ;;  %v7839_v25 = vadd.f32 %v7805_v51, %v15919_v37  ;;  %v7840_v55 = vadd.f32 %v7809_v19, %v15921_v44  ;;  %v7844_v37 = vadd.f32 %v7821_v12, %v15929_v48  ;;  %v16682_v12 = vld [vmem:[#allocation16_spill] sm:$0xff] }
 0x67e   : > { %v8234_v20 = vadd.f32 %v8199_v17, %v7963_v4  ;;  %v16037_v48 = vadd.f32 %v7954_v62, %v15959_v10  ;;  %v8235_v19 = vadd.f32 %v8201_v5, %v7964_v34  ;;  %v16045_v3 = vadd.f32 %v15967_v50, %v15961_v52  ;;  %v16687_v17 = vld [vmem:[#allocation70_spill] sm:$0xff]  ;;  %v16688_v5 = vld [vmem:[#allocation85_spill] sm:$0xff]  ;;  %v16690_v4 = vld [vmem:[#allocation87_spill] sm:$0xff] }
 0x67f   : > { %v8110_v15 = vadd.f32 %v8076_v23, %v7839_v25  ;;  %v8111_v40 = vadd.f32 %v8080_v28, %v7840_v55  ;;  %v8236_v33 = vadd.f32 %v8205_v1, %v7965_v16  ;;  %v8113_v6 = vadd.f32 %v16686_v22, %v7842_v8  ;;  %v16689_v1 = vld [vmem:[#allocation86_spill] sm:$0xff] }
 0x680   : > { %v16005_v39 = vpop.f32.mrf.mxu0  ;;  %v16007_v59 = vpop.f32.mrf.mxu1  ;;  %v8238_v23 = vadd.f32 %v16687_v17, %v7967_v11  ;;  %v8114_v28 = vadd.f32 %v16688_v5, %v7843_v14  ;;  %v8115_v55 = vadd.f32 %v16690_v4, %v7844_v37 }
 0x681   : > { %16679 = vst [vmem:[#allocation95_spill] sm:$0xff] %v16005_v39  ;;  %16680 = vst [vmem:[#allocation96_spill] sm:$0xff] %v16007_v59  ;;  %v7841_v39 = vadd.f32 %v7811_v13, %v15923_v30  ;;  %v7966_v59 = vadd.f32 %v7936_v42, %v15947_v60  ;;  %v7845_v30 = vadd.f32 %v7823_v53, %v15931_v26 }
 0x682   : > { %v16027_v58 = vpop.f32.mrf.mxu0  ;;  %v16029_v44 = vpop.f32.mrf.mxu1  ;;  %v8109_v60 = vadd.f32 %v8074_v54, %v7838_v7  ;;  %v16041_v26 = vadd.f32 %v15965_v63, %v15937_v27  ;;  %v16053_v53 = vadd.f32 %v16683_v56, %v16682_v12  ;;  %v16684_v27 = vld [vmem:[#allocation50_spill] sm:$0xff]  ;;  %v8239_v7 = vadd.f32 %v16689_v1, %v7968_v18  ;;  %v16695_v35 = vld [vmem:[#allocation92_spill] sm:$0xff] }
 0x683   : > { %v8112_v31 = vadd.f32 %v16684_v27, %v7841_v39  ;;  %v8237_v52 = vadd.f32 %v16685_v0, %v7966_v59  ;;  %v8240_v39 = vadd.f32 %v16691_v9, %v7969_v46 }
 0x688   : > { %v16698_v1 = vld [vmem:[#allocation95_spill] sm:$0xff] }
 0x68e   : > { %v8345_v61 = vpop.f32.mrf.mxu0  ;;  %v8470_v51 = vpop.f32.mrf.mxu1 }
 0x68f   : > { %v8380_v29 = vadd.f32 %v8345_v61, %v8109_v60  ;;  %v8505_v13 = vadd.f32 %v8470_v51, %v8234_v20  ;;  %v16692_v60 = vld [vmem:[#allocation89_spill] sm:$0xff]  ;;  %v16693_v61 = vld [vmem:[#allocation90_spill] sm:$0xff] }
 0x690   : > { %v8347_v10 = vpop.f32.mrf.mxu0  ;;  %v8472_v42 = vpop.f32.mrf.mxu1  ;;  %v8116_v20 = vadd.f32 %v16692_v60, %v7845_v30  ;;  %v8241_v11 = vadd.f32 %v16693_v61, %v7970_v45  ;;  %v16696_v45 = vld [vmem:[#allocation93_spill] sm:$0xff]  ;;  %v16699_v60 = vld [vmem:[#allocation96_spill] sm:$0xff] }
 0x691   : > { %v8517_v47 = vmax.f32 %v8380_v29, %v8505_v13  ;;  %v8381_v36 = vadd.f32 %v8347_v10, %v8110_v15  ;;  %v8506_v49 = vadd.f32 %v8472_v42, %v8235_v19  ;;  %v16694_v19 = vld [vmem:[#allocation91_spill] sm:$0xff] }
 0x692   : > { %v8351_v62 = vpop.f32.mrf.mxu0  ;;  %v8476_v24 = vpop.f32.mrf.mxu1  ;;  %v8117_v37 = vadd.f32 %v16694_v19, %v7846_v21 }
 0x693   : > { %v16059_v63 = vadd.f32 %v16011_v32, %v8517_v47  ;;  %v8518_v50 = vmax.f32 %v8381_v36, %v8506_v49  ;;  %v8382_v16 = vadd.f32 %v8351_v62, %v8111_v40  ;;  %v8507_v54 = vadd.f32 %v8476_v24, %v8236_v33  ;;  %v16697_v62 = vld [vmem:[#allocation94_spill] sm:$0xff] }
 0x694   : > { %v8353_v25 = vpop.f32.mrf.mxu0  ;;  %v8478_v43 = vpop.f32.mrf.mxu1  ;;  %v8242_v40 = vadd.f32 %v16695_v35, %v7971_v38  ;;  %v8118_v36 = vadd.f32 %v16696_v45, %v7847_v41  ;;  %v8243_v24 = vadd.f32 %v16697_v62, %v16037_v48 }
 0x695   : > { %v8564_v59 = vmin.f32 %v16059_v63, 0.0  ;;  %v16068_v34 = vadd.f32 %v16013_v2, %v8518_v50  ;;  %v8519_v8 = vmax.f32 %v8382_v16, %v8507_v54  ;;  %v8383_v51 = vadd.f32 %v8353_v25, %v8112_v31 }
 0x696   : > { %v8508_v14 = vadd.f32 %v8478_v43, %v8237_v52  ;;  %v8357_v15 = vpop.f32.mrf.mxu0  ;;  %v8482_v18 = vpop.f32.mrf.mxu1  ;;  %vm8552_vm4 = vcmp.gt.f32.partialorder %v16059_v63, 0.0 }
 0x697   : > { %v8576_v29 = vmul.f32 1.442695, %v8564_v59  ;;  %v8565_v13 = vmin.f32 %v16068_v34, 0.0  ;;  %v16075_v46 = vadd.f32 %v16011_v32, %v8519_v8  ;;  %v8384_v42 = vadd.f32 %v8357_v15, %v8113_v6 }
 0x698   : > { %v8520_v10 = vmax.f32 %v8383_v51, %v8508_v14  ;;  %v8509_v33 = vadd.f32 %v8482_v18, %v8238_v23  ;;  %v8359_v30 = vpop.f32.mrf.mxu0  ;;  %v8484_v47 = vpop.f32.mrf.mxu1  ;;  %v8120_v14 = vadd.f32 %v16027_v58, %v16049_v57  ;;  %vm8553_vm5 = vcmp.gt.f32.partialorder %v16068_v34, 0.0 }
 0x699   : > { %12133 = vpow2.f32 %v8576_v29  ;;  %v8578_v49 = vmul.f32 1.442695, %v8565_v13  ;;  %v8566_v12 = vmin.f32 %v16075_v46, 0.0  ;;  %v8385_v27 = vadd.f32 %v8359_v30, %v8114_v28 }
 0x69a   : > { %v16081_v21 = vadd.f32 %v16013_v2, %v8520_v10  ;;  %v8521_v56 = vmax.f32 %v8384_v42, %v8509_v33  ;;  %v8510_v31 = vadd.f32 %v8484_v47, %v8239_v7  ;;  %v8363_v0 = vpop.f32.mrf.mxu0  ;;  %v8488_v52 = vpop.f32.mrf.mxu1  ;;  %v8119_v7 = vadd.f32 %v16698_v1, %v16041_v26 }
 0x69b   : > { %12135 = vpow2.f32 %v8578_v49  ;;  %v8580_v38 = vmul.f32 1.442695, %v8566_v12  ;;  %v8386_v22 = vadd.f32 %v8363_v0, %v8115_v55  ;;  %v8511_v6 = vadd.f32 %v8488_v52, %v8240_v39 }
 0x69c   : > { %v8567_v41 = vmin.f32 %v16081_v21, 0.0  ;;  %v16087_v50 = vadd.f32 %v16011_v32, %v8521_v56  ;;  %v8522_v16 = vmax.f32 %v8385_v27, %v8510_v31  ;;  %v8365_v54 = vpop.f32.mrf.mxu0  ;;  %v8490_v17 = vpop.f32.mrf.mxu1  ;;  %vm8554_vm6 = vcmp.gt.f32.partialorder %v16075_v46, 0.0 }
 0x69d   : > { %12137 = vpow2.f32 %v8580_v38  ;;  %v8523_v23 = vmax.f32 %v8386_v22, %v8511_v6  ;;  %v8387_v5 = vadd.f32 %v8365_v54, %v8116_v20  ;;  %v8512_v28 = vadd.f32 %v8490_v17, %v8241_v11 }
 0x69e   : > { %v8582_v4 = vmul.f32 1.442695, %v8567_v41  ;;  %v8568_v55 = vmin.f32 %v16087_v50, 0.0  ;;  %v16093_v48 = vadd.f32 %v16013_v2, %v8522_v16  ;;  %v8369_v25 = vpop.f32.mrf.mxu0  ;;  %v8494_v43 = vpop.f32.mrf.mxu1  ;;  %v8244_v20 = vadd.f32 %v16699_v60, %v16045_v3  ;;  %v8648_v41 = vld [vmem:[%s16269_s9] sm:$0xff] }
 0x69f   : > { %v16096_v9 = vadd.f32 %v16011_v32, %v8523_v23  ;;  %v8524_v39 = vmax.f32 %v8387_v5, %v8512_v28  ;;  %v8388_v59 = vadd.f32 %v8369_v25, %v8117_v37  ;;  %v8513_v8 = vadd.f32 %v8494_v43, %v8242_v40  ;;  %v9266_v16 = vld [vmem:[%s16269_s9 + $0x60] sm:$0xff]  ;;  %v9267_v5 = vld [vmem:[%s16269_s9 + $0x68] sm:$0xff]  ;;  %v9268_v25 = vld [vmem:[%s16269_s9 + $0x70] sm:$0xff] }
 0x6a0   : > { %12139 = vpow2.f32 %v8582_v4  ;;  %v8584_v61 = vmul.f32 1.442695, %v8568_v55  ;;  %v8569_v26 = vmin.f32 %v16093_v48, 0.0  ;;  %v8371_v11 = vpop.f32.mrf.mxu0  ;;  %v8496_v51 = vpop.f32.mrf.mxu1  ;;  %v8245_v40 = vadd.f32 %v16029_v44, %v16053_v53 }
 0x6a1   : > { %v8570_v15 = vmin.f32 %v16096_v9, 0.0  ;;  %v16105_v18 = vadd.f32 %v16013_v2, %v8524_v39  ;;  %v8525_v19 = vmax.f32 %v8388_v59, %v8513_v8  ;;  %v8389_v29 = vadd.f32 %v8371_v11, %v8118_v36  ;;  %v9269_v11 = vld [vmem:[%s16269_s9 + $0x78] sm:$0xff] }
 0x6a2   : > { %12141 = vpow2.f32 %v8584_v61  ;;  %v8586_v37 = vmul.f32 1.442695, %v8569_v26  ;;  %v8514_v13 = vadd.f32 %v8496_v51, %v8243_v24  ;;  %v8375_v3 = vpop.f32.mrf.mxu0  ;;  %v8500_v35 = vpop.f32.mrf.mxu1  ;;  %v8651_v61 = vld [vmem:[%s16269_s9 + $0x18] sm:$0xff]  ;;  %vm8555_vm7 = vcmp.gt.f32.partialorder %v16081_v21, 0.0 }
 0x6a3   : > { %v8588_v10 = vmul.f32 1.442695, %v8570_v15  ;;  %v8571_v42 = vmin.f32 %v16105_v18, 0.0  ;;  %v16111_v58 = vadd.f32 %v16011_v32, %v8525_v19  ;;  %v8390_v33 = vadd.f32 %v8375_v3, %v8119_v7  ;;  %v8650_v7 = vld [vmem:[%s16269_s9 + $0x10] sm:$0xff] }
 0x6a4   : > { %12143 = vpow2.f32 %v8586_v37  ;;  %v8526_v57 = vmax.f32 %v8389_v29, %v8514_v13  ;;  %v8515_v30 = vadd.f32 %v8500_v35, %v8244_v20  ;;  %v8377_v47 = vpop.f32.mrf.mxu0  ;;  %v8502_v45 = vpop.f32.mrf.mxu1  ;;  %vm8556_vm8 = vcmp.gt.f32.partialorder %v16087_v50, 0.0  ;;  %v8652_v29 = vld [vmem:[%s16269_s9 + $0x20] sm:$0xff] }
 0x6a5   : > { %12145 = vpow2.f32 %v8588_v10  ;;  %v8590_v36 = vmul.f32 1.442695, %v8571_v42  ;;  %v8572_v49 = vmin.f32 %v16111_v58, 0.0  ;;  %v8391_v53 = vadd.f32 %v8377_v47, %v8120_v14  ;;  %v9270_v13 = vld [vmem:[%s16269_s9 + $0x80] sm:$0xff] }
 0x6a6   : > { %v12134_v12 = vpop.eup %12133  ;;  %v16115_v56 = vadd.f32 %v16013_v2, %v8526_v57  ;;  %v8527_v44 = vmax.f32 %v8390_v33, %v8515_v30  ;;  %v8516_v27 = vadd.f32 %v8502_v45, %v8245_v40  ;;  %vm8557_vm9 = vcmp.gt.f32.partialorder %v16093_v48, 0.0  ;;  %v8653_v30 = vld [vmem:[%s16269_s9 + $0x28] sm:$0xff]  ;;  %v8654_v45 = vld [vmem:[%s16269_s9 + $0x30] sm:$0xff] }
 0x6a7   : > { %v9254_v31 = vadd.f32 -1.0, %v12134_v12  ;;  %12147 = vpow2.f32 %v8590_v36  ;;  %v8592_v0 = vmul.f32 1.442695, %v8572_v49  ;;  %v9271_v12 = vld [vmem:[%s16269_s9 + $0x88] sm:$0xff]  ;;  %vm8558_vm10 = vcmp.gt.f32.partialorder %v16096_v9, 0.0 }
 0x6a8   : > { %v12136_v52 = vpop.eup %12135  ;;  %v8573_v38 = vmin.f32 %v16115_v56, 0.0  ;;  %v16120_v22 = vadd.f32 %v16011_v32, %v8527_v44  ;;  %v8528_v6 = vmax.f32 %v8391_v53, %v8516_v27  ;;  %vm8559_vm11 = vcmp.gt.f32.partialorder %v16105_v18, 0.0 }
 0x6a9   : > { %v8612_v62 = vsel %vm8552_vm4, %v16059_v63, %v9254_v31  ;;  %v9255_v24 = vadd.f32 -1.0, %v12136_v52  ;;  %12149 = vpow2.f32 %v8592_v0  ;;  %v8649_v63 = vld [vmem:[%s16269_s9 + $0x8] sm:$0xff]  ;;  %vm8560_vm12 = vcmp.gt.f32.partialorder %v16111_v58, 0.0 }
 0x6aa   : > { %v12138_v54 = vpop.eup %12137  ;;  %v8594_v17 = vmul.f32 1.442695, %v8573_v38  ;;  %v8574_v32 = vmin.f32 %v16120_v22, 0.0  ;;  %v16132_v23 = vadd.f32 %v16013_v2, %v8528_v6  ;;  %v8660_v55 = vmul.f32 %v8648_v41, %v8612_v62  ;;  %v8655_v38 = vld [vmem:[%s16269_s9 + $0x38] sm:$0xff] }
 0x6ab   : > { %v8613_v28 = vsel %vm8553_vm5, %v16068_v34, %v9255_v24  ;;  %v9256_v1 = vadd.f32 -1.0, %v12138_v54  ;;  %v8705_v59 = vmul.f32 %v9266_v16, %v8612_v62  ;;  %v9273_v24 = vld [vmem:[%s16269_s9 + $0x98] sm:$0xff]  ;;  %vm8561_vm13 = vcmp.gt.f32.partialorder %v16115_v56, 0.0 }
 0x6ac   : > { %12151 = vpow2.f32 %v8594_v17  ;;  %v8596_v2 = vmul.f32 1.442695, %v8574_v32  ;;  %v8575_v4 = vmin.f32 %v16132_v23, 0.0  ;;  %v8661_v34 = vmul.f32 %v8649_v63, %v8613_v28 }
 0x6ad   : > { %v12140_v43 = vpop.eup %12139  ;;  %v8614_v39 = vsel %vm8554_vm6, %v16075_v46, %v9256_v1  ;;  %v8706_v8 = vmul.f32 %v9267_v5, %v8613_v28  ;;  %v9274_v28 = vld [vmem:[%s16269_s9 + $0xa0] sm:$0xff]  ;;  %vm8562_vm14 = vcmp.gt.f32.partialorder %v16120_v22, 0.0  ;;  %vm8563_vm15 = vcmp.gt.f32.partialorder %v16132_v23, 0.0 }
 0x6ae   : > { %v9257_v60 = vadd.f32 -1.0, %v12140_v43  ;;  %12153 = vpow2.f32 %v8596_v2  ;;  %v8598_v20 = vmul.f32 1.442695, %v8575_v4  ;;  %v8662_v26 = vmul.f32 %v8650_v7, %v8614_v39  ;;  %v8657_v43 = vld [vmem:[%s16269_s9 + $0x48] sm:$0xff] }
 0x6af   : > { %v12142_v51 = vpop.eup %12141  ;;  %v8672_v14 = vadd.f32 %v8661_v34, %v8660_v55  ;;  %v8707_v46 = vmul.f32 %v9268_v25, %v8614_v39  ;;  %v8717_v15 = vadd.f32 %v8706_v8, %v8705_v59  ;;  %v9275_v34 = vld [vmem:[%s16269_s9 + $0xa8] sm:$0xff] }
 0x6b0   : > { %v8615_v19 = vsel %vm8555_vm7, %v16081_v21, %v9257_v60  ;;  %v9258_v37 = vadd.f32 -1.0, %v12142_v51  ;;  %12155 = vpow2.f32 %v8598_v20 }
 0x6b1   : > { %v12144_v3 = vpop.eup %12143  ;;  %v8663_v35 = vmul.f32 %v8651_v61, %v8615_v19  ;;  %v8673_v40 = vadd.f32 %v8672_v14, %v8662_v26  ;;  %v8708_v10 = vmul.f32 %v9269_v11, %v8615_v19  ;;  %v8718_v42 = vadd.f32 %v8717_v15, %v8707_v46 }
 0x6b2   : > { %v12146_v57 = vpop.eup %12145  ;;  %v8616_v21 = vsel %vm8556_vm8, %v16087_v50, %v9258_v37  ;;  %v9259_v33 = vadd.f32 -1.0, %v12144_v3  ;;  %v9272_v50 = vld [vmem:[%s16269_s9 + $0x90] sm:$0xff] }
 0x6b3   : > { %v9260_v47 = vadd.f32 -1.0, %v12146_v57  ;;  %v8664_v36 = vmul.f32 %v8652_v29, %v8616_v21  ;;  %v8674_v49 = vadd.f32 %v8673_v40, %v8663_v35  ;;  %v8709_v44 = vmul.f32 %v9270_v13, %v8616_v21  ;;  %v9276_v35 = vld [vmem:[%s16269_s9 + $0xb0] sm:$0xff] }
 0x6b4   : > { %v12148_v53 = vpop.eup %12147  ;;  %v8617_v27 = vsel %vm8557_vm9, %v16093_v48, %v9259_v33  ;;  %v8719_v31 = vadd.f32 %v8718_v42, %v8708_v10 }
 0x6b5   : > { %v8618_v0 = vsel %vm8558_vm10, %v16096_v9, %v9260_v47  ;;  %v9261_v52 = vadd.f32 -1.0, %v12148_v53  ;;  %v8665_v6 = vmul.f32 %v8653_v30, %v8617_v27  ;;  %v8675_v62 = vadd.f32 %v8674_v49, %v8664_v36  ;;  %v8656_v9 = vld [vmem:[%s16269_s9 + $0x40] sm:$0xff] }
 0x6b6   : > { %v12150_v41 = vpop.eup %12149  ;;  %v8666_v48 = vmul.f32 %v8654_v45, %v8618_v0  ;;  %v8710_v16 = vmul.f32 %v9271_v12, %v8617_v27  ;;  %v8711_v54 = vmul.f32 %v9272_v50, %v8618_v0  ;;  %v8720_v17 = vadd.f32 %v8719_v31, %v8709_v44 }
 0x6b7   : > { %v8619_v32 = vsel %vm8559_vm11, %v16105_v18, %v9261_v52  ;;  %v9262_v63 = vadd.f32 -1.0, %v12150_v41  ;;  %v8676_v5 = vadd.f32 %v8675_v62, %v8665_v6 }
 0x6b8   : > { %v8667_v1 = vmul.f32 %v8655_v38, %v8619_v32  ;;  %v8712_v7 = vmul.f32 %v9273_v24, %v8619_v32  ;;  %v8721_v2 = vadd.f32 %v8720_v17, %v8710_v16 }
 0x6b9   : > { %v12152_v4 = vpop.eup %12151  ;;  %v8620_v55 = vsel %vm8560_vm12, %v16111_v58, %v9262_v63  ;;  %v8677_v25 = vadd.f32 %v8676_v5, %v8666_v48  ;;  %v16700_v48 = vlaneseq }
 0x6ba   : > { %v9263_v18 = vadd.f32 -1.0, %v12152_v4  ;;  %v8668_v39 = vmul.f32 %v8656_v9, %v8620_v55  ;;  %v8713_v59 = vmul.f32 %v9274_v28, %v8620_v55  ;;  %v8722_v8 = vadd.f32 %v8721_v2, %v8711_v54  ;;  %v8746_v9 = vld [vmem:[%s16270_s10] sm:$0x1] }
 0x6bb   : > { %v12154_v60 = vpop.eup %12153  ;;  %v8678_v20 = vadd.f32 %v8677_v25, %v8667_v1  ;;  %v8738_v16 = vand.u32 127, %v16700_v48 }
 0x6bc   : > { %v8621_v61 = vsel %vm8561_vm13, %v16115_v56, %v9263_v18  ;;  %v9264_v58 = vadd.f32 -1.0, %v12154_v60  ;;  %v8723_v26 = vadd.f32 %v8722_v8, %v8712_v7  ;;  %v8658_v56 = vld [vmem:[%s16269_s9 + $0x50] sm:$0xff] }
 0x6bd   : > { %v12156_v11 = vpop.eup %12155  ;;  %v8669_v51 = vmul.f32 %v8657_v43, %v8621_v61  ;;  %v8679_v14 = vadd.f32 %v8678_v20, %v8668_v39  ;;  %v8714_v46 = vmul.f32 %v9275_v34, %v8621_v61  ;;  %vm8739_vm0 = vcmp.eq.s32.totalorder %v8738_v16, 0 }
 0x6be   : > { %v8622_v15 = vsel %vm8562_vm14, %v16120_v22, %v9264_v58  ;;  %v9265_v19 = vadd.f32 -1.0, %v12156_v11  ;;  %v8724_v37 = vadd.f32 %v8723_v26, %v8713_v59  ;;  %v8659_v22 = vld [vmem:[%s16269_s9 + $0x58] sm:$0xff]  ;;  %vm8742_vm1 = vcmp.eq.s32.totalorder %v8738_v16, 1 }
 0x6bf   : > { %8634 = vst [vmem:[#allocation5 + $0x10] sm:$0x7] %v8622_v15  ;;  %v8680_v29 = vadd.f32 %v8679_v14, %v8669_v51 }
 0x6c0   : > { %v8623_v13 = vsel %vm8563_vm15, %v16132_v23, %v9265_v19  ;;  %v8725_v3 = vadd.f32 %v8724_v37, %v8714_v46  ;;  %v9277_v23 = vld [vmem:[%s16269_s9 + $0xb8] sm:$0xff] }
 0x6c1   : > { %8635 = vst [vmem:[#allocation5 + $0x40] sm:$0x7] %v8623_v13 }
 0x6c6   : > { %v8646_v40 = vld [vmem:[#allocation5 + $0x10] sm:$0xff] }
 0x6c7   : > { %v8670_v10 = vmul.f32 %v8658_v56, %v8646_v40  ;;  %v8715_v42 = vmul.f32 %v9276_v35, %v8646_v40 }
 0x6c8   : > { %v8647_v57 = vld [vmem:[#allocation5 + $0x40] sm:$0xff] }
 0x6c9   : > { %v8671_v21 = vmul.f32 %v8659_v22, %v8647_v57  ;;  %v8681_v33 = vadd.f32 %v8680_v29, %v8670_v10  ;;  %v8716_v47 = vmul.f32 %v9277_v23, %v8647_v57  ;;  %v8726_v45 = vadd.f32 %v8725_v3, %v8715_v42 }
 0x6cb   : > { %v8682_v30 = vadd.f32 %v8681_v33, %v8671_v21  ;;  %v8727_v36 = vadd.f32 %v8726_v45, %v8716_v47 }
 0x6cd   : > { %8683 = vadd.xlane.f32.xlu0 %v8682_v30 }
 0x6d1   : > { %8728 = vadd.xlane.f32.xlu0 %v8727_v36 }
 0x756   : > { %v8684_v49 = vpop.xlane.xlu0 %8683 }
 0x757   : > { %v8685_v12 = vrot.slane %v8684_v49, 4 }
 0x759   : > { %v8686_v50 = vadd.f32 %v8685_v12, %v8684_v49 }
 0x75a   : > { %v8729_v44 = vpop.xlane.xlu0 %8728 }
 0x75b   : > { %v8687_v53 = vrot.slane %v8686_v50, 2  ;;  %v8730_v27 = vrot.slane %v8729_v44, 4 }
 0x75d   : > { %v8731_v31 = vadd.f32 %v8730_v27, %v8729_v44  ;;  %v8688_v0 = vadd.f32 %v8687_v53, %v8686_v50 }
 0x75f   : > { %v8732_v52 = vrot.slane %v8731_v31, 2  ;;  %v8689_v38 = vrot.slane %v8688_v0, 1 }
 0x761   : > { %v8733_v6 = vadd.f32 %v8732_v52, %v8731_v31  ;;  %v8690_v62 = vadd.f32 %v8689_v38, %v8688_v0 }
 0x763   : > { %11898 = vpush %v8690_v62  ;;  %v8734_v24 = vrot.slane %v8733_v6, 1 }
 0x765   : > { %v8735_v41 = vadd.f32 %v8734_v24, %v8733_v6 }
 0x767   : > { %11900 = vpush %v8735_v41 }
 0x794   : > { %s11899_s15 = spop %11898 }
 0x795   : > { %v8740_v54 = vstv %s11899_s15  ;;  %s8750_s15 = scalar_lea.sflag [#allocation8], %s407_s22 }
 0x796   : > { %v8741_v32 = vsel %vm8739_vm0, %v8740_v54, 0.0 }
 0x798   : > { %s11901_s24 = spop %11900 }
 0x799   : > { %v8743_v17 = vstv %s11901_s24  ;;  %s12291_s24 = smov [#allocation11]  }
 0x79a   : > { %v8744_v63 = vsel %vm8742_vm1, %v8743_v17, 0.0  ;;  %s12220_s25 = sshll.u32 %s12291_s24, 4  ;;  %s12221_s25 = int_to_ptr.vmem [resolvable:$false] %s12220_s25 }
 0x79b   : > { %v8745_v5 = vadd.f32 %v8744_v63, %v8741_v32  ;;  %s12222_s21 = scalar_lea.vmem %s12221_s25, 32  ;;  %p12223_p11 = scmp.lt.s32.totalorder %s8763_s26, %s12221_s25 }
 0x79c   : > { %p12224_p0 = scmp.lt.s32.totalorder %s12222_s21, %s12216_s0 }
 0x79d   : > { %v8747_v28 = vadd.f32 %v8746_v9, %v8745_v5 }
 0x79e   : > { %p12225_p1 = por %p12224_p0, %p12223_p11 }
 0x79f   : > { %8748 = vst [vmem:[%s408_s16] sm:$0x1] %v8747_v28 }
 0x7a0   : > { %p12226_p3 = pnand %p12225_p1, %p12219_p8 }
 0x7a2   : > { %12229 = shalt.err (!%p12226_p3)
}
 0x7a3   : > { %s12230_s30 = scalar_lea.hbm %s8760_s29, 16  ;;  %s12234_s16 = scalar_lea.hbm %s16271_s11, 32 }
 0x7a4   : > { %p12231_p2 = scmp.ne.s32.totalorder %s8760_s29, %s12230_s30  ;;  %p12235_p7 = scmp.lt.s32.totalorder %s8760_s29, %s16271_s11 }
 0x7a5   : > { %p12236_p6 = scmp.lt.s32.totalorder %s12234_s16, %s12230_s30 }
 0x7a6   : > { %p12232_p4 = pnand %p12231_p2, %p12390_p5 }
 0x7a7   : > { %p12237_p9 = por %p12236_p6, %p12235_p7 }
 0x7a8   : > { %p12233_p13 = pneg %p12232_p4 }
 0x7aa   : > { %p12238_p10 = pnand %p12237_p9, %p12233_p13 }
 0x7ac   : > { %12241 = shalt.err (!%p12238_p10)
}
 0x7ad   : > { %11910 = dma.vmem_to_hbm [thread:$0]  (%p12390_p5), %s8763_s26, 16, %s8760_s29, %s8750_s15  }
 0x7ae PF: > { %p11927_p12 = scmp.ge.s32.totalorder %s12284_s20, 2  ;;  %s8774_s0 = sand.u32 1, %s12272_s17  }
 0x7af   : > { %p16701_p8 = scmp.ne.s32.totalorder %s16357_s28, 0  ;;  %s8775_s24 = scalar_lea.sflag [#allocation8], %s8774_s0 }
 0x7b1   : > { %p11920_p11 = pnand %p11927_p12, %p16701_p8 }
 0x7b3   : > { %p11921_p0 = pneg %p11920_p11 }
 0x7b5   : > { %12267 = dma.done.wait (%p11921_p0), %s8775_s24, 16  }
 0x7b6   : > { %12269 = vsyncadd (%p11921_p0), %s8775_s24, 4294967280  ;;  %s16702_s25 = sld [smem:[#allocation15_spill]]  ;;  %p23_p1 = scmp.ge.s32.totalorder %s12377_s23, 4  }
 0x7b7   : > { %s16703_s17 = smov %s12276_s18  ;;  %s16704_s18 = smov %s12280_s19 }
 0x7b8   : > { %s16706_s20 = smov %s12377_s23  ;;  %25 = sbr.rel (!%p23_p1) target bundleno = 7 (0x7), region = 465 }
 0x7bc   : > { %s16705_s19 = smov %s16702_s25 }
 0x7bd   :  { %8779 = vsyncpa [#allocation7], 1 }
 0x7be   :  { %8781 = vsyncpa [#allocation7 + $0x1], 1 }
 0x7bf   :  { %8782 = vsyncpa [#allocation10], 1 }
 0x7c0   :  { %8783 = vsyncpa [#allocation8], 1 }
 0x7c1   :  { %8785 = vsyncpa [#allocation8 + $0x1], 1 }

</bundles_post_ra>
